<compile_context>
chip_gen: v6e
topology: v6e:2x2x1
jax: 0.10.0
libtpu: 0.0.40
codegen_flags: <defaults>
</compile_context>

<pallas_src>
import functools

import jax
import jax.numpy as jnp
from jax import lax
from jax.experimental import pallas as pl
from jax.experimental.pallas import tpu as pltpu

_NEG_SLOPE = 0.2


def _round_up(n, m):
    return ((n + m - 1) // m) * m


# -----------------------------------------------------------------------------
# Parameter packing: pad to lane-dense (128) shapes, pre-pack fused MXU operands
# -----------------------------------------------------------------------------
def pack_icnn_params(p, d_pad, h_pad, compute_dtype):
    """Returns (w0, wk, b, v0, vk, wq_last, wl_last, wz_last).

      w0 : (Dp, 2Hp)          forward layer 0:      x @ [wq0.T | wl0.T]
      wk : (L-1, Dp+Hp, 2Hp)  forward layers k>=1:  [x|z] @ [[wqk.T|wlk.T],[0|wz(k-1).T]]
      b  : (L, 1, Hp)         biases (f32, elementwise path)
      v0 : (2Hp, Dp)          backward layer 0:     [2q*ga|ga] @ [wq0 ; wl0]
      vk : (L-1, 2Hp, Dp+Hp)  backward layers k>=1: [2q*ga|ga] @ [[wqk,0],[wlk,wz(k-1)]]
                              -> [dx_inc | dz_new]
      wq_last / wl_last / wz_last : rank-1 last-layer rows (f32, VPU path)

    Matmul operands are stored in `compute_dtype` (bf16 for MXU throughput);
    bias / last-layer rows stay f32.
    """
    L, H, D = p["wq"].shape
    Dp, Hp = int(d_pad), int(h_pad)

    def pad_hd(w):                                    # (L, H, D) -> (L, Hp, Dp)
        return jnp.pad(w.astype(jnp.float32), ((0, 0), (0, Hp - H), (0, Dp - D)))

    wq = pad_hd(p["wq"])
    wl = pad_hd(p["wl"])
    wz = jnp.pad(p["wz"].astype(jnp.float32),
                 ((0, 0), (0, Hp - H), (0, Hp - H)))                   # (L-1,Hp,Hp)

    wqlT = jnp.concatenate([jnp.swapaxes(wq, 1, 2),
                            jnp.swapaxes(wl, 1, 2)], axis=2)           # (L, Dp, 2Hp)
    wqlN = jnp.concatenate([wq, wl], axis=1)                           # (L, 2Hp, Dp)

    zeros_hh = jnp.zeros((L - 1, Hp, Hp), jnp.float32)
    # forward fused RHS: top Dp rows = [wq.T | wl.T], bottom Hp rows = [0 | wz.T]
    wk = jnp.concatenate(
        [wqlT[1:], jnp.concatenate([zeros_hh, jnp.swapaxes(wz, 1, 2)], axis=2)],
        axis=1)                                                        # (L-1, Dp+Hp, 2Hp)
    # backward fused RHS: left Dp cols = [wq ; wl], right Hp cols = [0 ; wz]
    vk = jnp.concatenate(
        [wqlN[1:], jnp.concatenate([zeros_hh, wz], axis=1)], axis=2)   # (L-1, 2Hp, Dp+Hp)

    b = jnp.pad(p["bl"].astype(jnp.float32), ((0, 0), (0, 0), (0, Hp - H)))
    wq_last = jnp.pad(p["wq_last"].astype(jnp.float32), ((0, 0), (0, Dp - D)))
    wl_last = jnp.pad(p["wl_last"].astype(jnp.float32), ((0, 0), (0, Dp - D)))
    wz_last = jnp.pad(p["wz_last"].astype(jnp.float32), ((0, 0), (0, Hp - H)))

    c = compute_dtype
    return (wqlT[0].astype(c), wk.astype(c), b,
            wqlN[0].astype(c), vk.astype(c),
            wq_last, wl_last, wz_last)


# -----------------------------------------------------------------------------
# Fused Pallas kernel: whole ICNNCouple.forward for one batch tile.
# -----------------------------------------------------------------------------
def _make_couple_kernel(num_layers, num_iters, strong_convexity, d_pad, h_pad,
                        compute_dtype, negative_slope=_NEG_SLOPE):
    L = int(num_layers)
    T = int(num_iters)
    sc = float(strong_convexity)
    ns = float(negative_slope)
    Dp = int(d_pad)
    Hp = int(h_pad)
    cdt = compute_dtype

    def kernel(ss_ref, x_ref, tgt_ref,
               f_w0, f_wk, f_b, f_v0, f_vk, f_wq, f_wl, f_wz,
               b_w0, b_wk, b_b, b_v0, b_vk, b_wq, b_wl, b_wz,
               out_ref):
        x = x_ref[...]                                  # (TB, Dp) f32
        tgt = tgt_ref[...]
        B = x.shape[0]

        def dot(a, w):
            return jnp.dot(a, w, preferred_element_type=jnp.float32)

        def bcast_row(ref, n):
            return jnp.broadcast_to(ref[...], (B, n))

        # Broadcasts hoisted out of the T x L unrolled body (JAX does not CSE
        # broadcast_in_dim; otherwise they re-materialize every layer/iter).
        f_bias = [jnp.broadcast_to(f_b[k], (B, Hp)) for k in range(L)]
        b_bias = [jnp.broadcast_to(b_b[k], (B, Hp)) for k in range(L)]
        f_wq_b, f_wl_b, f_wz_b = bcast_row(f_wq, Dp), bcast_row(f_wl, Dp), bcast_row(f_wz, Hp)
        b_wq_b, b_wl_b, b_wz_b = bcast_row(b_wq, Dp), bcast_row(b_wl, Dp), bcast_row(b_wz, Hp)

        def icnn_grad_step(v, w0, wk, bias, v0, vk, wq_b, wl_b, wz_b):
            """(1-sc) * d scalar(v)/dv + sc * v for one ICNN (closed-form grad)."""
            v_c = v.astype(cdt)

            # -- forward through the convex potential; save q_k and lrelu grad --
            qs, gs = [], []
            z_c = None
            for k in range(L):                          # static unroll over layers
                if k == 0:
                    pre = dot(v_c, w0[...])             # (B, 2Hp) = [q_0 | lin_0]
                else:
                    # fused [v | z] @ [[wq.T|wl.T],[0|wz.T]] -> [q_k | lin_k + z wz.T]
                    pre = dot(jnp.concatenate([v_c, z_c], axis=1), wk[k - 1])
                qk = pre[:, :Hp]                        # f32 (MXU accumulates f32)
                a = qk * qk + pre[:, Hp:] + bias[k]
                z = jnp.where(a > 0, a, ns * a)         # leaky_relu, f32 on VPU
                qs.append(qk.astype(cdt))
                gs.append(jnp.where(a > 0, 1.0, ns).astype(cdt))
                z_c = z.astype(cdt)

            # -- rank-1 last layer on VPU/XLU (multiply + lane reduce, no MXU) --
            q_last = jnp.sum(v * wq_b, axis=-1, keepdims=True)        # (B, 1) f32

            # -- hand-derived reverse-mode gradient w.r.t. v --
            dx = 2.0 * q_last * wq_b + wl_b
            dz = wz_b                                                 # (B, Hp) f32
            for k in range(L - 1, -1, -1):
                ga = dz * gs[k]                                       # f32
                stacked = jnp.concatenate([2.0 * qs[k] * ga, ga], axis=1).astype(cdt)
                if k == 0:
                    dx = dx + dot(stacked, v0[...])
                else:
                    # fused [2q*ga | ga] @ [[wq,0],[wl,wz]] -> [dx_inc | dz_new]
                    res = dot(stacked, vk[k - 1])                     # (B, Dp+Hp)
                    dx = dx + res[:, :Dp]
                    dz = res[:, Dp:]
            return (1.0 - sc) * dx + sc * v

        # fwd_model(x) is loop-invariant in the reference module: compute once.
        fx = icnn_grad_step(x, f_w0, f_wk, f_bias, f_v0, f_vk,
                            f_wq_b, f_wl_b, f_wz_b)

        def body(i, fwd):
            ss = ss_ref[i]                              # scalar step size (SMEM)
            v = fx - ss * (fwd - tgt)                   # gradFun(fwd) = fwd - target
            return icnn_grad_step(v, b_w0, b_wk, b_bias, b_v0, b_vk,
                                  b_wq_b, b_wl_b, b_wz_b)

        out_ref[...] = lax.fori_loop(0, T, body, x, unroll=True).astype(out_ref.dtype)

    return kernel


# -----------------------------------------------------------------------------
# Wrapper: pad, pack, single pallas_call over a batch grid.
# -----------------------------------------------------------------------------
def icnn_couple_forward(x, fwd_params, bwd_params, stepsize, target, *,
                        num_layers, strong_convexity,
                        compute_dtype=jnp.bfloat16, block_batch=128):
    B, D = x.shape
    H = fwd_params["wq"].shape[1]
    L = int(num_layers)
    assert L >= 2, "packing assumes num_layers >= 2 (reference default is 10)"

    Dp = _round_up(D, 128)
    Hp = _round_up(H, 128)
    # Batch tile: multiple of 8, capped at 128 to keep the unrolled T-loop's
    # live state out of pathological spill territory.
    TB = _round_up(min(int(block_batch), _round_up(B, 8)), 8)
    Bp = _round_up(B, TB)
    grid = (Bp // TB,)

    x_p = jnp.pad(x.astype(jnp.float32), ((0, Bp - B), (0, Dp - D)))
    t_p = jnp.pad(target.astype(jnp.float32), ((0, Bp - B), (0, Dp - D)))
    fp = pack_icnn_params(fwd_params, Dp, Hp, compute_dtype)
    bp = pack_icnn_params(bwd_params, Dp, Hp, compute_dtype)
    weights = fp + bp

    T = int(stepsize.shape[0])
    kernel = _make_couple_kernel(L, T, strong_convexity, Dp, Hp, compute_dtype)

    def pinned(w):
        zeros = (0,) * w.ndim
        return pl.BlockSpec(w.shape, lambda i, ss: zeros)   # DMA once, VMEM-resident

    in_specs = ([pl.BlockSpec((TB, Dp), lambda i, ss: (i, 0)),       # x
                 pl.BlockSpec((TB, Dp), lambda i, ss: (i, 0))]       # target
                + [pinned(w) for w in weights])
    out_spec = pl.BlockSpec((TB, Dp), lambda i, ss: (i, 0))

    # Advisory cost estimate for XLA scheduling around the fused call.
    mm_flops_per_row = 8 * Dp * Hp + 8 * (L - 1) * (Dp + Hp) * Hp
    flops = int((T + 1) * Bp * mm_flops_per_row)
    bytes_accessed = int(sum(int(a.size) * a.dtype.itemsize
                             for a in (x_p, t_p, stepsize) + weights)
                         + Bp * Dp * 4)

    out = pl.pallas_call(
        kernel,
        out_shape=jax.ShapeDtypeStruct((Bp, Dp), jnp.float32),
        grid_spec=pltpu.PrefetchScalarGridSpec(
            num_scalar_prefetch=1,                 # stepsize -> SMEM
            grid=grid,
            in_specs=in_specs,
            out_specs=out_spec,
        ),
        compiler_params=pltpu.CompilerParams(
            dimension_semantics=("parallel",),
            vmem_limit_bytes=64 * 1024 * 1024,
        ),
        cost_estimate=pl.CostEstimate(flops=flops, transcendentals=0,
                                      bytes_accessed=bytes_accessed),
    )(stepsize.astype(jnp.float32), x_p, t_p, *weights)
    return out[:B, :D]


# -----------------------------------------------------------------------------
# Deterministic parameter init (mimics nn.Linear default + initialize_weights)
# -----------------------------------------------------------------------------
def init_icnn_params(key, in_dim, hidden, num_layers):
    ks = jax.random.split(key, 7)
    bound = 1.0 / float(in_dim) ** 0.5

    def uni(k, shape):
        return jax.random.uniform(k, shape, jnp.float32, -bound, bound)

    return dict(
        wq=uni(ks[0], (num_layers, hidden, in_dim)),
        wl=uni(ks[1], (num_layers, hidden, in_dim)),
        bl=uni(ks[2], (num_layers, 1, hidden)),
        wz=jnp.exp(0.1 * jax.random.normal(ks[3], (num_layers - 1, hidden, hidden),
                                           jnp.float32) - 4.0),
        wq_last=uni(ks[4], (1, in_dim)),
        wl_last=uni(ks[5], (1, in_dim)),
        wz_last=jnp.exp(0.1 * jax.random.normal(ks[6], (1, hidden),
                                                jnp.float32) - 4.0),
    )


# -----------------------------------------------------------------------------
# Pure-JAX reference (jax.grad, mirrors the torch autograd path)
# -----------------------------------------------------------------------------
def _icnn_scalar_ref(x, p, num_layers, ns=_NEG_SLOPE):
    lrelu = lambda a: jnp.where(a > 0, a, ns * a)
    q = x @ p["wq"][0].T
    z = lrelu(q * q + x @ p["wl"][0].T + p["bl"][0])
    for k in range(1, num_layers):
        q = x @ p["wq"][k].T
        z = lrelu(z @ p["wz"][k - 1].T + q * q + x @ p["wl"][k].T + p["bl"][k])
    ql = x @ p["wq_last"].T
    return z @ p["wz_last"].T + ql * ql + x @ p["wl_last"].T


def _icnn_ref(x, p, num_layers, sc):
    g = jax.grad(lambda xx: jnp.sum(_icnn_scalar_ref(xx, p, num_layers)))(x)
    return (1.0 - sc) * g + sc * x


def _couple_ref(x, fp, bp, stepsize, grad_fun, num_layers, sc):
    fwd = x
    for i in range(stepsize.shape[0]):
        fwd = _icnn_ref(_icnn_ref(x, fp, num_layers, sc) - stepsize[i] * grad_fun(fwd),
                        bp, num_layers, sc)
    return fwd


# -----------------------------------------------------------------------------
if __name__ == "__main__":
    B, in_dim, hidden, num_layers = 8, 16, 32, 4
    num_iters = 3
    strong_convexity = 0.5
    stepsize_init = 0.01

    key = jax.random.PRNGKey(0)
    kx, kf, kb, kt = jax.random.split(key, 4)

    x = jax.random.normal(kx, (B, in_dim), jnp.float32)
    fwd_params = init_icnn_params(kf, in_dim, hidden, num_layers)
    bwd_params = init_icnn_params(kb, in_dim, hidden, num_layers)
    stepsize = stepsize_init * jnp.ones((num_iters,), jnp.float32)
    target = jax.random.normal(kt, (B, in_dim), jnp.float32)   # gradFun(v)=v-target

    ref = _couple_ref(x, fwd_params, bwd_params, stepsize,
                      lambda v: v - target, num_layers, strong_convexity)

    def run(dtype):
        fn = jax.jit(functools.partial(icnn_couple_forward,
                                       num_layers=num_layers,
                                       strong_convexity=strong_convexity,
                                       compute_dtype=dtype))
        return jax.block_until_ready(fn(x, fwd_params, bwd_params, stepsize, target))

    # f32 compute path: bit-for-bit math check against jax.grad reference.
    out_f32 = run(jnp.float32)
    if not bool(jnp.allclose(out_f32, ref, rtol=1e-3, atol=5e-4)):
        raise AssertionError(
            "f32 Pallas ICNNCouple mismatch, max abs err = %e"
            % float(jnp.max(jnp.abs(out_f32 - ref))))

    # bf16 compute path (default / fast): looser tolerance for MXU rounding
    # through the T-step fixed-point iteration.
    out_bf16 = run(jnp.bfloat16)
    if not bool(jnp.allclose(out_bf16, ref, rtol=5e-2, atol=2e-2)):
        raise AssertionError(
            "bf16 Pallas ICNNCouple mismatch, max abs err = %e"
            % float(jnp.max(jnp.abs(out_bf16 - ref))))

    print("KERNEL_OK")
</pallas_src>

<mosaic_0001>
module attributes {stable_mosaic.version = 11 : i64} {
  func.func @kernel(%arg0: i32, %arg1: memref<3xf32, #tpu.memory_space<smem>>, %arg2: memref<8x128xf32, #tpu.memory_space<vmem>>, %arg3: memref<8x128xf32, #tpu.memory_space<vmem>>, %arg4: memref<128x256xf32, #tpu.memory_space<vmem>>, %arg5: memref<3x256x256xf32, #tpu.memory_space<vmem>>, %arg6: memref<4x1x128xf32, #tpu.memory_space<vmem>>, %arg7: memref<256x128xf32, #tpu.memory_space<vmem>>, %arg8: memref<3x256x256xf32, #tpu.memory_space<vmem>>, %arg9: memref<1x128xf32, #tpu.memory_space<vmem>>, %arg10: memref<1x128xf32, #tpu.memory_space<vmem>>, %arg11: memref<1x128xf32, #tpu.memory_space<vmem>>, %arg12: memref<128x256xf32, #tpu.memory_space<vmem>>, %arg13: memref<3x256x256xf32, #tpu.memory_space<vmem>>, %arg14: memref<4x1x128xf32, #tpu.memory_space<vmem>>, %arg15: memref<256x128xf32, #tpu.memory_space<vmem>>, %arg16: memref<3x256x256xf32, #tpu.memory_space<vmem>>, %arg17: memref<1x128xf32, #tpu.memory_space<vmem>>, %arg18: memref<1x128xf32, #tpu.memory_space<vmem>>, %arg19: memref<1x128xf32, #tpu.memory_space<vmem>>, %arg20: memref<8x128xf32, #tpu.memory_space<vmem>>) attributes {dimension_semantics = [#tpu.dimension_semantics<parallel>], iteration_bounds = array<i64: 1>, scalar_prefetch = 1 : i64, scratch_operands = 0 : i64, tpu.core_type = #tpu.core_type<tc>, window_params = [{transform_indices = @transform_0, window_bounds = array<i64: 8, 128>}, {transform_indices = @transform_1, window_bounds = array<i64: 8, 128>}, {pipeline_mode = #tpu.pipeline_mode<synchronous>, transform_indices = @transform_2, window_bounds = array<i64: 128, 256>}, {pipeline_mode = #tpu.pipeline_mode<synchronous>, transform_indices = @transform_3, window_bounds = array<i64: 3, 256, 256>}, {pipeline_mode = #tpu.pipeline_mode<synchronous>, transform_indices = @transform_4, window_bounds = array<i64: 4, 1, 128>}, {pipeline_mode = #tpu.pipeline_mode<synchronous>, transform_indices = @transform_5, window_bounds = array<i64: 256, 128>}, {pipeline_mode = #tpu.pipeline_mode<synchronous>, transform_indices = @transform_6, window_bounds = array<i64: 3, 256, 256>}, {pipeline_mode = #tpu.pipeline_mode<synchronous>, transform_indices = @transform_7, window_bounds = array<i64: 1, 128>}, {pipeline_mode = #tpu.pipeline_mode<synchronous>, transform_indices = @transform_8, window_bounds = array<i64: 1, 128>}, {pipeline_mode = #tpu.pipeline_mode<synchronous>, transform_indices = @transform_9, window_bounds = array<i64: 1, 128>}, {pipeline_mode = #tpu.pipeline_mode<synchronous>, transform_indices = @transform_10, window_bounds = array<i64: 128, 256>}, {pipeline_mode = #tpu.pipeline_mode<synchronous>, transform_indices = @transform_11, window_bounds = array<i64: 3, 256, 256>}, {pipeline_mode = #tpu.pipeline_mode<synchronous>, transform_indices = @transform_12, window_bounds = array<i64: 4, 1, 128>}, {pipeline_mode = #tpu.pipeline_mode<synchronous>, transform_indices = @transform_13, window_bounds = array<i64: 256, 128>}, {pipeline_mode = #tpu.pipeline_mode<synchronous>, transform_indices = @transform_14, window_bounds = array<i64: 3, 256, 256>}, {pipeline_mode = #tpu.pipeline_mode<synchronous>, transform_indices = @transform_15, window_bounds = array<i64: 1, 128>}, {pipeline_mode = #tpu.pipeline_mode<synchronous>, transform_indices = @transform_16, window_bounds = array<i64: 1, 128>}, {pipeline_mode = #tpu.pipeline_mode<synchronous>, transform_indices = @transform_17, window_bounds = array<i64: 1, 128>}, {transform_indices = @transform_18, window_bounds = array<i64: 8, 128>}]} {
    %c0 = arith.constant 0 : index
    %c0_0 = arith.constant 0 : index
    %0 = vector.load %arg2[%c0, %c0_0] : memref<8x128xf32, #tpu.memory_space<vmem>>, vector<8x128xf32>
    %c0_1 = arith.constant 0 : index
    %c0_2 = arith.constant 0 : index
    %1 = vector.load %arg3[%c0_1, %c0_2] : memref<8x128xf32, #tpu.memory_space<vmem>>, vector<8x128xf32>
    %c0_3 = arith.constant 0 : index
    %c0_4 = arith.constant 0 : index
    %c0_5 = arith.constant 0 : index
    %2 = vector.load %arg6[%c0_3, %c0_4, %c0_5] : memref<4x1x128xf32, #tpu.memory_space<vmem>>, vector<1x1x128xf32>
    %3 = vector.shape_cast %2 : vector<1x1x128xf32> to vector<1x128xf32>
    %4 = vector.shape_cast %3 : vector<1x128xf32> to vector<1x128xf32>
    %5 = vector.broadcast %4 : vector<1x128xf32> to vector<8x128xf32>
    %c1 = arith.constant 1 : index
    %c0_6 = arith.constant 0 : index
    %c0_7 = arith.constant 0 : index
    %6 = vector.load %arg6[%c1, %c0_6, %c0_7] : memref<4x1x128xf32, #tpu.memory_space<vmem>>, vector<1x1x128xf32>
    %7 = vector.shape_cast %6 : vector<1x1x128xf32> to vector<1x128xf32>
    %8 = vector.shape_cast %7 : vector<1x128xf32> to vector<1x128xf32>
    %9 = vector.broadcast %8 : vector<1x128xf32> to vector<8x128xf32>
    %c2 = arith.constant 2 : index
    %c0_8 = arith.constant 0 : index
    %c0_9 = arith.constant 0 : index
    %10 = vector.load %arg6[%c2, %c0_8, %c0_9] : memref<4x1x128xf32, #tpu.memory_space<vmem>>, vector<1x1x128xf32>
    %11 = vector.shape_cast %10 : vector<1x1x128xf32> to vector<1x128xf32>
    %12 = vector.shape_cast %11 : vector<1x128xf32> to vector<1x128xf32>
    %13 = vector.broadcast %12 : vector<1x128xf32> to vector<8x128xf32>
    %c3 = arith.constant 3 : index
    %c0_10 = arith.constant 0 : index
    %c0_11 = arith.constant 0 : index
    %14 = vector.load %arg6[%c3, %c0_10, %c0_11] : memref<4x1x128xf32, #tpu.memory_space<vmem>>, vector<1x1x128xf32>
    %15 = vector.shape_cast %14 : vector<1x1x128xf32> to vector<1x128xf32>
    %16 = vector.shape_cast %15 : vector<1x128xf32> to vector<1x128xf32>
    %17 = vector.broadcast %16 : vector<1x128xf32> to vector<8x128xf32>
    %c0_12 = arith.constant 0 : index
    %c0_13 = arith.constant 0 : index
    %c0_14 = arith.constant 0 : index
    %18 = vector.load %arg14[%c0_12, %c0_13, %c0_14] : memref<4x1x128xf32, #tpu.memory_space<vmem>>, vector<1x1x128xf32>
    %19 = vector.shape_cast %18 : vector<1x1x128xf32> to vector<1x128xf32>
    %20 = vector.shape_cast %19 : vector<1x128xf32> to vector<1x128xf32>
    %21 = vector.broadcast %20 : vector<1x128xf32> to vector<8x128xf32>
    %c1_15 = arith.constant 1 : index
    %c0_16 = arith.constant 0 : index
    %c0_17 = arith.constant 0 : index
    %22 = vector.load %arg14[%c1_15, %c0_16, %c0_17] : memref<4x1x128xf32, #tpu.memory_space<vmem>>, vector<1x1x128xf32>
    %23 = vector.shape_cast %22 : vector<1x1x128xf32> to vector<1x128xf32>
    %24 = vector.shape_cast %23 : vector<1x128xf32> to vector<1x128xf32>
    %25 = vector.broadcast %24 : vector<1x128xf32> to vector<8x128xf32>
    %c2_18 = arith.constant 2 : index
    %c0_19 = arith.constant 0 : index
    %c0_20 = arith.constant 0 : index
    %26 = vector.load %arg14[%c2_18, %c0_19, %c0_20] : memref<4x1x128xf32, #tpu.memory_space<vmem>>, vector<1x1x128xf32>
    %27 = vector.shape_cast %26 : vector<1x1x128xf32> to vector<1x128xf32>
    %28 = vector.shape_cast %27 : vector<1x128xf32> to vector<1x128xf32>
    %29 = vector.broadcast %28 : vector<1x128xf32> to vector<8x128xf32>
    %c3_21 = arith.constant 3 : index
    %c0_22 = arith.constant 0 : index
    %c0_23 = arith.constant 0 : index
    %30 = vector.load %arg14[%c3_21, %c0_22, %c0_23] : memref<4x1x128xf32, #tpu.memory_space<vmem>>, vector<1x1x128xf32>
    %31 = vector.shape_cast %30 : vector<1x1x128xf32> to vector<1x128xf32>
    %32 = vector.shape_cast %31 : vector<1x128xf32> to vector<1x128xf32>
    %33 = vector.broadcast %32 : vector<1x128xf32> to vector<8x128xf32>
    %c0_24 = arith.constant 0 : index
    %c0_25 = arith.constant 0 : index
    %34 = vector.load %arg9[%c0_24, %c0_25] : memref<1x128xf32, #tpu.memory_space<vmem>>, vector<1x128xf32>
    %35 = vector.shape_cast %34 : vector<1x128xf32> to vector<1x128xf32>
    %36 = vector.broadcast %35 : vector<1x128xf32> to vector<8x128xf32>
    %c0_26 = arith.constant 0 : index
    %c0_27 = arith.constant 0 : index
    %37 = vector.load %arg10[%c0_26, %c0_27] : memref<1x128xf32, #tpu.memory_space<vmem>>, vector<1x128xf32>
    %38 = vector.shape_cast %37 : vector<1x128xf32> to vector<1x128xf32>
    %39 = vector.broadcast %38 : vector<1x128xf32> to vector<8x128xf32>
    %c0_28 = arith.constant 0 : index
    %c0_29 = arith.constant 0 : index
    %40 = vector.load %arg11[%c0_28, %c0_29] : memref<1x128xf32, #tpu.memory_space<vmem>>, vector<1x128xf32>
    %41 = vector.shape_cast %40 : vector<1x128xf32> to vector<1x128xf32>
    %42 = vector.broadcast %41 : vector<1x128xf32> to vector<8x128xf32>
    %c0_30 = arith.constant 0 : index
    %c0_31 = arith.constant 0 : index
    %43 = vector.load %arg17[%c0_30, %c0_31] : memref<1x128xf32, #tpu.memory_space<vmem>>, vector<1x128xf32>
    %44 = vector.shape_cast %43 : vector<1x128xf32> to vector<1x128xf32>
    %45 = vector.broadcast %44 : vector<1x128xf32> to vector<8x128xf32>
    %c0_32 = arith.constant 0 : index
    %c0_33 = arith.constant 0 : index
    %46 = vector.load %arg18[%c0_32, %c0_33] : memref<1x128xf32, #tpu.memory_space<vmem>>, vector<1x128xf32>
    %47 = vector.shape_cast %46 : vector<1x128xf32> to vector<1x128xf32>
    %48 = vector.broadcast %47 : vector<1x128xf32> to vector<8x128xf32>
    %c0_34 = arith.constant 0 : index
    %c0_35 = arith.constant 0 : index
    %49 = vector.load %arg19[%c0_34, %c0_35] : memref<1x128xf32, #tpu.memory_space<vmem>>, vector<1x128xf32>
    %50 = vector.shape_cast %49 : vector<1x128xf32> to vector<1x128xf32>
    %51 = vector.broadcast %50 : vector<1x128xf32> to vector<8x128xf32>
    %c0_36 = arith.constant 0 : index
    %c0_37 = arith.constant 0 : index
    %52 = vector.load %arg4[%c0_36, %c0_37] : memref<128x256xf32, #tpu.memory_space<vmem>>, vector<128x256xf32>
    %cst = arith.constant dense<0.000000e+00> : vector<8x256xf32>
    %53 = tpu.matmul %0, %52, %cst {dimension_numbers = #tpu.dot_dimension_numbers<[1], [0], [0], [1], [0, 0, 1, 1], [], []>} : vector<8x128xf32>, vector<128x256xf32>, vector<8x256xf32> -> vector<8x256xf32>
    %54 = vector.extract_strided_slice %53 {offsets = [0, 0], sizes = [8, 128], strides = [1, 1]} : vector<8x256xf32> to vector<8x128xf32>
    %55 = arith.mulf %54, %54 : vector<8x128xf32>
    %56 = vector.extract_strided_slice %53 {offsets = [0, 128], sizes = [8, 128], strides = [1, 1]} : vector<8x256xf32> to vector<8x128xf32>
    %57 = arith.addf %55, %56 : vector<8x128xf32>
    %58 = arith.addf %57, %5 : vector<8x128xf32>
    %cst_38 = arith.constant 0.000000e+00 : f32
    %59 = vector.broadcast %cst_38 : f32 to vector<8x128xf32>
    %60 = arith.cmpf ogt, %58, %59 : vector<8x128xf32>
    %cst_39 = arith.constant 2.000000e-01 : f32
    %61 = vector.broadcast %cst_39 : f32 to vector<8x128xf32>
    %62 = arith.mulf %61, %58 : vector<8x128xf32>
    %63 = arith.select %60, %58, %62 : vector<8x128xi1>, vector<8x128xf32>
    %cst_40 = arith.constant 0.000000e+00 : f32
    %64 = vector.broadcast %cst_40 : f32 to vector<8x128xf32>
    %65 = arith.cmpf ogt, %58, %64 : vector<8x128xf32>
    %cst_41 = arith.constant 1.000000e+00 : f32
    %cst_42 = arith.constant 2.000000e-01 : f32
    %66 = vector.broadcast %cst_41 : f32 to vector<8x128xf32>
    %67 = vector.broadcast %cst_42 : f32 to vector<8x128xf32>
    %68 = arith.select %65, %66, %67 : vector<8x128xi1>, vector<8x128xf32>
    %69 = tpu.concatenate %0, %63 in 1 : vector<8x128xf32>, vector<8x128xf32> -> vector<8x256xf32>
    %c0_43 = arith.constant 0 : index
    %c0_44 = arith.constant 0 : index
    %c0_45 = arith.constant 0 : index
    %70 = vector.load %arg5[%c0_43, %c0_44, %c0_45] : memref<3x256x256xf32, #tpu.memory_space<vmem>>, vector<1x256x256xf32>
    %71 = vector.shape_cast %70 : vector<1x256x256xf32> to vector<256x256xf32>
    %cst_46 = arith.constant dense<0.000000e+00> : vector<8x256xf32>
    %72 = tpu.matmul %69, %71, %cst_46 {dimension_numbers = #tpu.dot_dimension_numbers<[1], [0], [0], [1], [0, 0, 1, 1], [], []>} : vector<8x256xf32>, vector<256x256xf32>, vector<8x256xf32> -> vector<8x256xf32>
    %73 = vector.extract_strided_slice %72 {offsets = [0, 0], sizes = [8, 128], strides = [1, 1]} : vector<8x256xf32> to vector<8x128xf32>
    %74 = arith.mulf %73, %73 : vector<8x128xf32>
    %75 = vector.extract_strided_slice %72 {offsets = [0, 128], sizes = [8, 128], strides = [1, 1]} : vector<8x256xf32> to vector<8x128xf32>
    %76 = arith.addf %74, %75 : vector<8x128xf32>
    %77 = arith.addf %76, %9 : vector<8x128xf32>
    %cst_47 = arith.constant 0.000000e+00 : f32
    %78 = vector.broadcast %cst_47 : f32 to vector<8x128xf32>
    %79 = arith.cmpf ogt, %77, %78 : vector<8x128xf32>
    %cst_48 = arith.constant 2.000000e-01 : f32
    %80 = vector.broadcast %cst_48 : f32 to vector<8x128xf32>
    %81 = arith.mulf %80, %77 : vector<8x128xf32>
    %82 = arith.select %79, %77, %81 : vector<8x128xi1>, vector<8x128xf32>
    %cst_49 = arith.constant 0.000000e+00 : f32
    %83 = vector.broadcast %cst_49 : f32 to vector<8x128xf32>
    %84 = arith.cmpf ogt, %77, %83 : vector<8x128xf32>
    %cst_50 = arith.constant 1.000000e+00 : f32
    %cst_51 = arith.constant 2.000000e-01 : f32
    %85 = vector.broadcast %cst_50 : f32 to vector<8x128xf32>
    %86 = vector.broadcast %cst_51 : f32 to vector<8x128xf32>
    %87 = arith.select %84, %85, %86 : vector<8x128xi1>, vector<8x128xf32>
    %88 = tpu.concatenate %0, %82 in 1 : vector<8x128xf32>, vector<8x128xf32> -> vector<8x256xf32>
    %c1_52 = arith.constant 1 : index
    %c0_53 = arith.constant 0 : index
    %c0_54 = arith.constant 0 : index
    %89 = vector.load %arg5[%c1_52, %c0_53, %c0_54] : memref<3x256x256xf32, #tpu.memory_space<vmem>>, vector<1x256x256xf32>
    %90 = vector.shape_cast %89 : vector<1x256x256xf32> to vector<256x256xf32>
    %cst_55 = arith.constant dense<0.000000e+00> : vector<8x256xf32>
    %91 = tpu.matmul %88, %90, %cst_55 {dimension_numbers = #tpu.dot_dimension_numbers<[1], [0], [0], [1], [0, 0, 1, 1], [], []>} : vector<8x256xf32>, vector<256x256xf32>, vector<8x256xf32> -> vector<8x256xf32>
    %92 = vector.extract_strided_slice %91 {offsets = [0, 0], sizes = [8, 128], strides = [1, 1]} : vector<8x256xf32> to vector<8x128xf32>
    %93 = arith.mulf %92, %92 : vector<8x128xf32>
    %94 = vector.extract_strided_slice %91 {offsets = [0, 128], sizes = [8, 128], strides = [1, 1]} : vector<8x256xf32> to vector<8x128xf32>
    %95 = arith.addf %93, %94 : vector<8x128xf32>
    %96 = arith.addf %95, %13 : vector<8x128xf32>
    %cst_56 = arith.constant 0.000000e+00 : f32
    %97 = vector.broadcast %cst_56 : f32 to vector<8x128xf32>
    %98 = arith.cmpf ogt, %96, %97 : vector<8x128xf32>
    %cst_57 = arith.constant 2.000000e-01 : f32
    %99 = vector.broadcast %cst_57 : f32 to vector<8x128xf32>
    %100 = arith.mulf %99, %96 : vector<8x128xf32>
    %101 = arith.select %98, %96, %100 : vector<8x128xi1>, vector<8x128xf32>
    %cst_58 = arith.constant 0.000000e+00 : f32
    %102 = vector.broadcast %cst_58 : f32 to vector<8x128xf32>
    %103 = arith.cmpf ogt, %96, %102 : vector<8x128xf32>
    %cst_59 = arith.constant 1.000000e+00 : f32
    %cst_60 = arith.constant 2.000000e-01 : f32
    %104 = vector.broadcast %cst_59 : f32 to vector<8x128xf32>
    %105 = vector.broadcast %cst_60 : f32 to vector<8x128xf32>
    %106 = arith.select %103, %104, %105 : vector<8x128xi1>, vector<8x128xf32>
    %107 = tpu.concatenate %0, %101 in 1 : vector<8x128xf32>, vector<8x128xf32> -> vector<8x256xf32>
    %c2_61 = arith.constant 2 : index
    %c0_62 = arith.constant 0 : index
    %c0_63 = arith.constant 0 : index
    %108 = vector.load %arg5[%c2_61, %c0_62, %c0_63] : memref<3x256x256xf32, #tpu.memory_space<vmem>>, vector<1x256x256xf32>
    %109 = vector.shape_cast %108 : vector<1x256x256xf32> to vector<256x256xf32>
    %cst_64 = arith.constant dense<0.000000e+00> : vector<8x256xf32>
    %110 = tpu.matmul %107, %109, %cst_64 {dimension_numbers = #tpu.dot_dimension_numbers<[1], [0], [0], [1], [0, 0, 1, 1], [], []>} : vector<8x256xf32>, vector<256x256xf32>, vector<8x256xf32> -> vector<8x256xf32>
    %111 = vector.extract_strided_slice %110 {offsets = [0, 0], sizes = [8, 128], strides = [1, 1]} : vector<8x256xf32> to vector<8x128xf32>
    %112 = arith.mulf %111, %111 : vector<8x128xf32>
    %113 = vector.extract_strided_slice %110 {offsets = [0, 128], sizes = [8, 128], strides = [1, 1]} : vector<8x256xf32> to vector<8x128xf32>
    %114 = arith.addf %112, %113 : vector<8x128xf32>
    %115 = arith.addf %114, %17 : vector<8x128xf32>
    %cst_65 = arith.constant 0.000000e+00 : f32
    %116 = vector.broadcast %cst_65 : f32 to vector<8x128xf32>
    %117 = arith.cmpf ogt, %115, %116 : vector<8x128xf32>
    %cst_66 = arith.constant 1.000000e+00 : f32
    %cst_67 = arith.constant 2.000000e-01 : f32
    %118 = vector.broadcast %cst_66 : f32 to vector<8x128xf32>
    %119 = vector.broadcast %cst_67 : f32 to vector<8x128xf32>
    %120 = arith.select %117, %118, %119 : vector<8x128xi1>, vector<8x128xf32>
    %121 = arith.mulf %0, %36 : vector<8x128xf32>
    %cst_68 = arith.constant dense<0.000000e+00> : vector<8xf32>
    %122 = vector.multi_reduction <add>, %121, %cst_68 [1] : vector<8x128xf32> to vector<8xf32>
    %123 = vector.shape_cast %122 : vector<8xf32> to vector<8x1xf32>
    %cst_69 = arith.constant 2.000000e+00 : f32
    %124 = vector.broadcast %cst_69 : f32 to vector<8x1xf32>
    %125 = arith.mulf %124, %123 : vector<8x1xf32>
    %126 = vector.broadcast %125 : vector<8x1xf32> to vector<8x128xf32>
    %127 = arith.mulf %126, %36 : vector<8x128xf32>
    %128 = arith.addf %127, %39 : vector<8x128xf32>
    %129 = arith.mulf %42, %120 : vector<8x128xf32>
    %cst_70 = arith.constant 2.000000e+00 : f32
    %130 = vector.broadcast %cst_70 : f32 to vector<8x128xf32>
    %131 = arith.mulf %130, %111 : vector<8x128xf32>
    %132 = arith.mulf %131, %129 : vector<8x128xf32>
    %133 = tpu.concatenate %132, %129 in 1 : vector<8x128xf32>, vector<8x128xf32> -> vector<8x256xf32>
    %c2_71 = arith.constant 2 : index
    %c0_72 = arith.constant 0 : index
    %c0_73 = arith.constant 0 : index
    %134 = vector.load %arg8[%c2_71, %c0_72, %c0_73] : memref<3x256x256xf32, #tpu.memory_space<vmem>>, vector<1x256x256xf32>
    %135 = vector.shape_cast %134 : vector<1x256x256xf32> to vector<256x256xf32>
    %cst_74 = arith.constant dense<0.000000e+00> : vector<8x256xf32>
    %136 = tpu.matmul %133, %135, %cst_74 {dimension_numbers = #tpu.dot_dimension_numbers<[1], [0], [0], [1], [0, 0, 1, 1], [], []>} : vector<8x256xf32>, vector<256x256xf32>, vector<8x256xf32> -> vector<8x256xf32>
    %137 = vector.extract_strided_slice %136 {offsets = [0, 0], sizes = [8, 128], strides = [1, 1]} : vector<8x256xf32> to vector<8x128xf32>
    %138 = arith.addf %128, %137 : vector<8x128xf32>
    %139 = vector.extract_strided_slice %136 {offsets = [0, 128], sizes = [8, 128], strides = [1, 1]} : vector<8x256xf32> to vector<8x128xf32>
    %140 = arith.mulf %139, %106 : vector<8x128xf32>
    %cst_75 = arith.constant 2.000000e+00 : f32
    %141 = vector.broadcast %cst_75 : f32 to vector<8x128xf32>
    %142 = arith.mulf %141, %92 : vector<8x128xf32>
    %143 = arith.mulf %142, %140 : vector<8x128xf32>
    %144 = tpu.concatenate %143, %140 in 1 : vector<8x128xf32>, vector<8x128xf32> -> vector<8x256xf32>
    %c1_76 = arith.constant 1 : index
    %c0_77 = arith.constant 0 : index
    %c0_78 = arith.constant 0 : index
    %145 = vector.load %arg8[%c1_76, %c0_77, %c0_78] : memref<3x256x256xf32, #tpu.memory_space<vmem>>, vector<1x256x256xf32>
    %146 = vector.shape_cast %145 : vector<1x256x256xf32> to vector<256x256xf32>
    %cst_79 = arith.constant dense<0.000000e+00> : vector<8x256xf32>
    %147 = tpu.matmul %144, %146, %cst_79 {dimension_numbers = #tpu.dot_dimension_numbers<[1], [0], [0], [1], [0, 0, 1, 1], [], []>} : vector<8x256xf32>, vector<256x256xf32>, vector<8x256xf32> -> vector<8x256xf32>
    %148 = vector.extract_strided_slice %147 {offsets = [0, 0], sizes = [8, 128], strides = [1, 1]} : vector<8x256xf32> to vector<8x128xf32>
    %149 = arith.addf %138, %148 : vector<8x128xf32>
    %150 = vector.extract_strided_slice %147 {offsets = [0, 128], sizes = [8, 128], strides = [1, 1]} : vector<8x256xf32> to vector<8x128xf32>
    %151 = arith.mulf %150, %87 : vector<8x128xf32>
    %cst_80 = arith.constant 2.000000e+00 : f32
    %152 = vector.broadcast %cst_80 : f32 to vector<8x128xf32>
    %153 = arith.mulf %152, %73 : vector<8x128xf32>
    %154 = arith.mulf %153, %151 : vector<8x128xf32>
    %155 = tpu.concatenate %154, %151 in 1 : vector<8x128xf32>, vector<8x128xf32> -> vector<8x256xf32>
    %c0_81 = arith.constant 0 : index
    %c0_82 = arith.constant 0 : index
    %c0_83 = arith.constant 0 : index
    %156 = vector.load %arg8[%c0_81, %c0_82, %c0_83] : memref<3x256x256xf32, #tpu.memory_space<vmem>>, vector<1x256x256xf32>
    %157 = vector.shape_cast %156 : vector<1x256x256xf32> to vector<256x256xf32>
    %cst_84 = arith.constant dense<0.000000e+00> : vector<8x256xf32>
    %158 = tpu.matmul %155, %157, %cst_84 {dimension_numbers = #tpu.dot_dimension_numbers<[1], [0], [0], [1], [0, 0, 1, 1], [], []>} : vector<8x256xf32>, vector<256x256xf32>, vector<8x256xf32> -> vector<8x256xf32>
    %159 = vector.extract_strided_slice %158 {offsets = [0, 0], sizes = [8, 128], strides = [1, 1]} : vector<8x256xf32> to vector<8x128xf32>
    %160 = arith.addf %149, %159 : vector<8x128xf32>
    %161 = vector.extract_strided_slice %158 {offsets = [0, 128], sizes = [8, 128], strides = [1, 1]} : vector<8x256xf32> to vector<8x128xf32>
    %162 = arith.mulf %161, %68 : vector<8x128xf32>
    %cst_85 = arith.constant 2.000000e+00 : f32
    %163 = vector.broadcast %cst_85 : f32 to vector<8x128xf32>
    %164 = arith.mulf %163, %54 : vector<8x128xf32>
    %165 = arith.mulf %164, %162 : vector<8x128xf32>
    %166 = tpu.concatenate %165, %162 in 1 : vector<8x128xf32>, vector<8x128xf32> -> vector<8x256xf32>
    %c0_86 = arith.constant 0 : index
    %c0_87 = arith.constant 0 : index
    %167 = vector.load %arg7[%c0_86, %c0_87] : memref<256x128xf32, #tpu.memory_space<vmem>>, vector<256x128xf32>
    %cst_88 = arith.constant dense<0.000000e+00> : vector<8x128xf32>
    %168 = tpu.matmul %166, %167, %cst_88 {dimension_numbers = #tpu.dot_dimension_numbers<[1], [0], [0], [1], [0, 0, 1, 1], [], []>} : vector<8x256xf32>, vector<256x128xf32>, vector<8x128xf32> -> vector<8x128xf32>
    %169 = arith.addf %160, %168 : vector<8x128xf32>
    %cst_89 = arith.constant 5.000000e-01 : f32
    %170 = vector.broadcast %cst_89 : f32 to vector<8x128xf32>
    %171 = arith.mulf %170, %169 : vector<8x128xf32>
    %cst_90 = arith.constant 5.000000e-01 : f32
    %172 = vector.broadcast %cst_90 : f32 to vector<8x128xf32>
    %173 = arith.mulf %172, %0 : vector<8x128xf32>
    %174 = arith.addf %171, %173 : vector<8x128xf32>
    %c0_i32 = arith.constant 0 : i32
    %175 = arith.index_cast %c0_i32 : i32 to index
    %176 = memref.load %arg1[%175] : memref<3xf32, #tpu.memory_space<smem>>
    %177 = arith.subf %0, %1 : vector<8x128xf32>
    %178 = vector.broadcast %176 : f32 to vector<8x128xf32>
    %179 = arith.mulf %178, %177 : vector<8x128xf32>
    %180 = arith.subf %174, %179 : vector<8x128xf32>
    %c0_91 = arith.constant 0 : index
    %c0_92 = arith.constant 0 : index
    %181 = vector.load %arg12[%c0_91, %c0_92] : memref<128x256xf32, #tpu.memory_space<vmem>>, vector<128x256xf32>
    %cst_93 = arith.constant dense<0.000000e+00> : vector<8x256xf32>
    %182 = tpu.matmul %180, %181, %cst_93 {dimension_numbers = #tpu.dot_dimension_numbers<[1], [0], [0], [1], [0, 0, 1, 1], [], []>} : vector<8x128xf32>, vector<128x256xf32>, vector<8x256xf32> -> vector<8x256xf32>
    %183 = vector.extract_strided_slice %182 {offsets = [0, 0], sizes = [8, 128], strides = [1, 1]} : vector<8x256xf32> to vector<8x128xf32>
    %184 = arith.mulf %183, %183 : vector<8x128xf32>
    %185 = vector.extract_strided_slice %182 {offsets = [0, 128], sizes = [8, 128], strides = [1, 1]} : vector<8x256xf32> to vector<8x128xf32>
    %186 = arith.addf %184, %185 : vector<8x128xf32>
    %187 = arith.addf %186, %21 : vector<8x128xf32>
    %cst_94 = arith.constant 0.000000e+00 : f32
    %188 = vector.broadcast %cst_94 : f32 to vector<8x128xf32>
    %189 = arith.cmpf ogt, %187, %188 : vector<8x128xf32>
    %cst_95 = arith.constant 2.000000e-01 : f32
    %190 = vector.broadcast %cst_95 : f32 to vector<8x128xf32>
    %191 = arith.mulf %190, %187 : vector<8x128xf32>
    %192 = arith.select %189, %187, %191 : vector<8x128xi1>, vector<8x128xf32>
    %cst_96 = arith.constant 0.000000e+00 : f32
    %193 = vector.broadcast %cst_96 : f32 to vector<8x128xf32>
    %194 = arith.cmpf ogt, %187, %193 : vector<8x128xf32>
    %cst_97 = arith.constant 1.000000e+00 : f32
    %cst_98 = arith.constant 2.000000e-01 : f32
    %195 = vector.broadcast %cst_97 : f32 to vector<8x128xf32>
    %196 = vector.broadcast %cst_98 : f32 to vector<8x128xf32>
    %197 = arith.select %194, %195, %196 : vector<8x128xi1>, vector<8x128xf32>
    %198 = tpu.concatenate %180, %192 in 1 : vector<8x128xf32>, vector<8x128xf32> -> vector<8x256xf32>
    %c0_99 = arith.constant 0 : index
    %c0_100 = arith.constant 0 : index
    %c0_101 = arith.constant 0 : index
    %199 = vector.load %arg13[%c0_99, %c0_100, %c0_101] : memref<3x256x256xf32, #tpu.memory_space<vmem>>, vector<1x256x256xf32>
    %200 = vector.shape_cast %199 : vector<1x256x256xf32> to vector<256x256xf32>
    %cst_102 = arith.constant dense<0.000000e+00> : vector<8x256xf32>
    %201 = tpu.matmul %198, %200, %cst_102 {dimension_numbers = #tpu.dot_dimension_numbers<[1], [0], [0], [1], [0, 0, 1, 1], [], []>} : vector<8x256xf32>, vector<256x256xf32>, vector<8x256xf32> -> vector<8x256xf32>
    %202 = vector.extract_strided_slice %201 {offsets = [0, 0], sizes = [8, 128], strides = [1, 1]} : vector<8x256xf32> to vector<8x128xf32>
    %203 = arith.mulf %202, %202 : vector<8x128xf32>
    %204 = vector.extract_strided_slice %201 {offsets = [0, 128], sizes = [8, 128], strides = [1, 1]} : vector<8x256xf32> to vector<8x128xf32>
    %205 = arith.addf %203, %204 : vector<8x128xf32>
    %206 = arith.addf %205, %25 : vector<8x128xf32>
    %cst_103 = arith.constant 0.000000e+00 : f32
    %207 = vector.broadcast %cst_103 : f32 to vector<8x128xf32>
    %208 = arith.cmpf ogt, %206, %207 : vector<8x128xf32>
    %cst_104 = arith.constant 2.000000e-01 : f32
    %209 = vector.broadcast %cst_104 : f32 to vector<8x128xf32>
    %210 = arith.mulf %209, %206 : vector<8x128xf32>
    %211 = arith.select %208, %206, %210 : vector<8x128xi1>, vector<8x128xf32>
    %cst_105 = arith.constant 0.000000e+00 : f32
    %212 = vector.broadcast %cst_105 : f32 to vector<8x128xf32>
    %213 = arith.cmpf ogt, %206, %212 : vector<8x128xf32>
    %cst_106 = arith.constant 1.000000e+00 : f32
    %cst_107 = arith.constant 2.000000e-01 : f32
    %214 = vector.broadcast %cst_106 : f32 to vector<8x128xf32>
    %215 = vector.broadcast %cst_107 : f32 to vector<8x128xf32>
    %216 = arith.select %213, %214, %215 : vector<8x128xi1>, vector<8x128xf32>
    %217 = tpu.concatenate %180, %211 in 1 : vector<8x128xf32>, vector<8x128xf32> -> vector<8x256xf32>
    %c1_108 = arith.constant 1 : index
    %c0_109 = arith.constant 0 : index
    %c0_110 = arith.constant 0 : index
    %218 = vector.load %arg13[%c1_108, %c0_109, %c0_110] : memref<3x256x256xf32, #tpu.memory_space<vmem>>, vector<1x256x256xf32>
    %219 = vector.shape_cast %218 : vector<1x256x256xf32> to vector<256x256xf32>
    %cst_111 = arith.constant dense<0.000000e+00> : vector<8x256xf32>
    %220 = tpu.matmul %217, %219, %cst_111 {dimension_numbers = #tpu.dot_dimension_numbers<[1], [0], [0], [1], [0, 0, 1, 1], [], []>} : vector<8x256xf32>, vector<256x256xf32>, vector<8x256xf32> -> vector<8x256xf32>
    %221 = vector.extract_strided_slice %220 {offsets = [0, 0], sizes = [8, 128], strides = [1, 1]} : vector<8x256xf32> to vector<8x128xf32>
    %222 = arith.mulf %221, %221 : vector<8x128xf32>
    %223 = vector.extract_strided_slice %220 {offsets = [0, 128], sizes = [8, 128], strides = [1, 1]} : vector<8x256xf32> to vector<8x128xf32>
    %224 = arith.addf %222, %223 : vector<8x128xf32>
    %225 = arith.addf %224, %29 : vector<8x128xf32>
    %cst_112 = arith.constant 0.000000e+00 : f32
    %226 = vector.broadcast %cst_112 : f32 to vector<8x128xf32>
    %227 = arith.cmpf ogt, %225, %226 : vector<8x128xf32>
    %cst_113 = arith.constant 2.000000e-01 : f32
    %228 = vector.broadcast %cst_113 : f32 to vector<8x128xf32>
    %229 = arith.mulf %228, %225 : vector<8x128xf32>
    %230 = arith.select %227, %225, %229 : vector<8x128xi1>, vector<8x128xf32>
    %cst_114 = arith.constant 0.000000e+00 : f32
    %231 = vector.broadcast %cst_114 : f32 to vector<8x128xf32>
    %232 = arith.cmpf ogt, %225, %231 : vector<8x128xf32>
    %cst_115 = arith.constant 1.000000e+00 : f32
    %cst_116 = arith.constant 2.000000e-01 : f32
    %233 = vector.broadcast %cst_115 : f32 to vector<8x128xf32>
    %234 = vector.broadcast %cst_116 : f32 to vector<8x128xf32>
    %235 = arith.select %232, %233, %234 : vector<8x128xi1>, vector<8x128xf32>
    %236 = tpu.concatenate %180, %230 in 1 : vector<8x128xf32>, vector<8x128xf32> -> vector<8x256xf32>
    %c2_117 = arith.constant 2 : index
    %c0_118 = arith.constant 0 : index
    %c0_119 = arith.constant 0 : index
    %237 = vector.load %arg13[%c2_117, %c0_118, %c0_119] : memref<3x256x256xf32, #tpu.memory_space<vmem>>, vector<1x256x256xf32>
    %238 = vector.shape_cast %237 : vector<1x256x256xf32> to vector<256x256xf32>
    %cst_120 = arith.constant dense<0.000000e+00> : vector<8x256xf32>
    %239 = tpu.matmul %236, %238, %cst_120 {dimension_numbers = #tpu.dot_dimension_numbers<[1], [0], [0], [1], [0, 0, 1, 1], [], []>} : vector<8x256xf32>, vector<256x256xf32>, vector<8x256xf32> -> vector<8x256xf32>
    %240 = vector.extract_strided_slice %239 {offsets = [0, 0], sizes = [8, 128], strides = [1, 1]} : vector<8x256xf32> to vector<8x128xf32>
    %241 = arith.mulf %240, %240 : vector<8x128xf32>
    %242 = vector.extract_strided_slice %239 {offsets = [0, 128], sizes = [8, 128], strides = [1, 1]} : vector<8x256xf32> to vector<8x128xf32>
    %243 = arith.addf %241, %242 : vector<8x128xf32>
    %244 = arith.addf %243, %33 : vector<8x128xf32>
    %cst_121 = arith.constant 0.000000e+00 : f32
    %245 = vector.broadcast %cst_121 : f32 to vector<8x128xf32>
    %246 = arith.cmpf ogt, %244, %245 : vector<8x128xf32>
    %cst_122 = arith.constant 1.000000e+00 : f32
    %cst_123 = arith.constant 2.000000e-01 : f32
    %247 = vector.broadcast %cst_122 : f32 to vector<8x128xf32>
    %248 = vector.broadcast %cst_123 : f32 to vector<8x128xf32>
    %249 = arith.select %246, %247, %248 : vector<8x128xi1>, vector<8x128xf32>
    %250 = arith.mulf %180, %45 : vector<8x128xf32>
    %cst_124 = arith.constant dense<0.000000e+00> : vector<8xf32>
    %251 = vector.multi_reduction <add>, %250, %cst_124 [1] : vector<8x128xf32> to vector<8xf32>
    %252 = vector.shape_cast %251 : vector<8xf32> to vector<8x1xf32>
    %cst_125 = arith.constant 2.000000e+00 : f32
    %253 = vector.broadcast %cst_125 : f32 to vector<8x1xf32>
    %254 = arith.mulf %253, %252 : vector<8x1xf32>
    %255 = vector.broadcast %254 : vector<8x1xf32> to vector<8x128xf32>
    %256 = arith.mulf %255, %45 : vector<8x128xf32>
    %257 = arith.addf %256, %48 : vector<8x128xf32>
    %258 = arith.mulf %51, %249 : vector<8x128xf32>
    %cst_126 = arith.constant 2.000000e+00 : f32
    %259 = vector.broadcast %cst_126 : f32 to vector<8x128xf32>
    %260 = arith.mulf %259, %240 : vector<8x128xf32>
    %261 = arith.mulf %260, %258 : vector<8x128xf32>
    %262 = tpu.concatenate %261, %258 in 1 : vector<8x128xf32>, vector<8x128xf32> -> vector<8x256xf32>
    %c2_127 = arith.constant 2 : index
    %c0_128 = arith.constant 0 : index
    %c0_129 = arith.constant 0 : index
    %263 = vector.load %arg16[%c2_127, %c0_128, %c0_129] : memref<3x256x256xf32, #tpu.memory_space<vmem>>, vector<1x256x256xf32>
    %264 = vector.shape_cast %263 : vector<1x256x256xf32> to vector<256x256xf32>
    %cst_130 = arith.constant dense<0.000000e+00> : vector<8x256xf32>
    %265 = tpu.matmul %262, %264, %cst_130 {dimension_numbers = #tpu.dot_dimension_numbers<[1], [0], [0], [1], [0, 0, 1, 1], [], []>} : vector<8x256xf32>, vector<256x256xf32>, vector<8x256xf32> -> vector<8x256xf32>
    %266 = vector.extract_strided_slice %265 {offsets = [0, 0], sizes = [8, 128], strides = [1, 1]} : vector<8x256xf32> to vector<8x128xf32>
    %267 = arith.addf %257, %266 : vector<8x128xf32>
    %268 = vector.extract_strided_slice %265 {offsets = [0, 128], sizes = [8, 128], strides = [1, 1]} : vector<8x256xf32> to vector<8x128xf32>
    %269 = arith.mulf %268, %235 : vector<8x128xf32>
    %cst_131 = arith.constant 2.000000e+00 : f32
    %270 = vector.broadcast %cst_131 : f32 to vector<8x128xf32>
    %271 = arith.mulf %270, %221 : vector<8x128xf32>
    %272 = arith.mulf %271, %269 : vector<8x128xf32>
    %273 = tpu.concatenate %272, %269 in 1 : vector<8x128xf32>, vector<8x128xf32> -> vector<8x256xf32>
    %c1_132 = arith.constant 1 : index
    %c0_133 = arith.constant 0 : index
    %c0_134 = arith.constant 0 : index
    %274 = vector.load %arg16[%c1_132, %c0_133, %c0_134] : memref<3x256x256xf32, #tpu.memory_space<vmem>>, vector<1x256x256xf32>
    %275 = vector.shape_cast %274 : vector<1x256x256xf32> to vector<256x256xf32>
    %cst_135 = arith.constant dense<0.000000e+00> : vector<8x256xf32>
    %276 = tpu.matmul %273, %275, %cst_135 {dimension_numbers = #tpu.dot_dimension_numbers<[1], [0], [0], [1], [0, 0, 1, 1], [], []>} : vector<8x256xf32>, vector<256x256xf32>, vector<8x256xf32> -> vector<8x256xf32>
    %277 = vector.extract_strided_slice %276 {offsets = [0, 0], sizes = [8, 128], strides = [1, 1]} : vector<8x256xf32> to vector<8x128xf32>
    %278 = arith.addf %267, %277 : vector<8x128xf32>
    %279 = vector.extract_strided_slice %276 {offsets = [0, 128], sizes = [8, 128], strides = [1, 1]} : vector<8x256xf32> to vector<8x128xf32>
    %280 = arith.mulf %279, %216 : vector<8x128xf32>
    %cst_136 = arith.constant 2.000000e+00 : f32
    %281 = vector.broadcast %cst_136 : f32 to vector<8x128xf32>
    %282 = arith.mulf %281, %202 : vector<8x128xf32>
    %283 = arith.mulf %282, %280 : vector<8x128xf32>
    %284 = tpu.concatenate %283, %280 in 1 : vector<8x128xf32>, vector<8x128xf32> -> vector<8x256xf32>
    %c0_137 = arith.constant 0 : index
    %c0_138 = arith.constant 0 : index
    %c0_139 = arith.constant 0 : index
    %285 = vector.load %arg16[%c0_137, %c0_138, %c0_139] : memref<3x256x256xf32, #tpu.memory_space<vmem>>, vector<1x256x256xf32>
    %286 = vector.shape_cast %285 : vector<1x256x256xf32> to vector<256x256xf32>
    %cst_140 = arith.constant dense<0.000000e+00> : vector<8x256xf32>
    %287 = tpu.matmul %284, %286, %cst_140 {dimension_numbers = #tpu.dot_dimension_numbers<[1], [0], [0], [1], [0, 0, 1, 1], [], []>} : vector<8x256xf32>, vector<256x256xf32>, vector<8x256xf32> -> vector<8x256xf32>
    %288 = vector.extract_strided_slice %287 {offsets = [0, 0], sizes = [8, 128], strides = [1, 1]} : vector<8x256xf32> to vector<8x128xf32>
    %289 = arith.addf %278, %288 : vector<8x128xf32>
    %290 = vector.extract_strided_slice %287 {offsets = [0, 128], sizes = [8, 128], strides = [1, 1]} : vector<8x256xf32> to vector<8x128xf32>
    %291 = arith.mulf %290, %197 : vector<8x128xf32>
    %cst_141 = arith.constant 2.000000e+00 : f32
    %292 = vector.broadcast %cst_141 : f32 to vector<8x128xf32>
    %293 = arith.mulf %292, %183 : vector<8x128xf32>
    %294 = arith.mulf %293, %291 : vector<8x128xf32>
    %295 = tpu.concatenate %294, %291 in 1 : vector<8x128xf32>, vector<8x128xf32> -> vector<8x256xf32>
    %c0_142 = arith.constant 0 : index
    %c0_143 = arith.constant 0 : index
    %296 = vector.load %arg15[%c0_142, %c0_143] : memref<256x128xf32, #tpu.memory_space<vmem>>, vector<256x128xf32>
    %cst_144 = arith.constant dense<0.000000e+00> : vector<8x128xf32>
    %297 = tpu.matmul %295, %296, %cst_144 {dimension_numbers = #tpu.dot_dimension_numbers<[1], [0], [0], [1], [0, 0, 1, 1], [], []>} : vector<8x256xf32>, vector<256x128xf32>, vector<8x128xf32> -> vector<8x128xf32>
    %298 = arith.addf %289, %297 : vector<8x128xf32>
    %cst_145 = arith.constant 5.000000e-01 : f32
    %299 = vector.broadcast %cst_145 : f32 to vector<8x128xf32>
    %300 = arith.mulf %299, %298 : vector<8x128xf32>
    %cst_146 = arith.constant 5.000000e-01 : f32
    %301 = vector.broadcast %cst_146 : f32 to vector<8x128xf32>
    %302 = arith.mulf %301, %180 : vector<8x128xf32>
    %303 = arith.addf %300, %302 : vector<8x128xf32>
    %c1_i32 = arith.constant 1 : i32
    %304 = arith.index_cast %c1_i32 : i32 to index
    %305 = memref.load %arg1[%304] : memref<3xf32, #tpu.memory_space<smem>>
    %306 = arith.subf %303, %1 : vector<8x128xf32>
    %307 = vector.broadcast %305 : f32 to vector<8x128xf32>
    %308 = arith.mulf %307, %306 : vector<8x128xf32>
    %309 = arith.subf %174, %308 : vector<8x128xf32>
    %c0_147 = arith.constant 0 : index
    %c0_148 = arith.constant 0 : index
    %310 = vector.load %arg12[%c0_147, %c0_148] : memref<128x256xf32, #tpu.memory_space<vmem>>, vector<128x256xf32>
    %cst_149 = arith.constant dense<0.000000e+00> : vector<8x256xf32>
    %311 = tpu.matmul %309, %310, %cst_149 {dimension_numbers = #tpu.dot_dimension_numbers<[1], [0], [0], [1], [0, 0, 1, 1], [], []>} : vector<8x128xf32>, vector<128x256xf32>, vector<8x256xf32> -> vector<8x256xf32>
    %312 = vector.extract_strided_slice %311 {offsets = [0, 0], sizes = [8, 128], strides = [1, 1]} : vector<8x256xf32> to vector<8x128xf32>
    %313 = arith.mulf %312, %312 : vector<8x128xf32>
    %314 = vector.extract_strided_slice %311 {offsets = [0, 128], sizes = [8, 128], strides = [1, 1]} : vector<8x256xf32> to vector<8x128xf32>
    %315 = arith.addf %313, %314 : vector<8x128xf32>
    %316 = arith.addf %315, %21 : vector<8x128xf32>
    %cst_150 = arith.constant 0.000000e+00 : f32
    %317 = vector.broadcast %cst_150 : f32 to vector<8x128xf32>
    %318 = arith.cmpf ogt, %316, %317 : vector<8x128xf32>
    %cst_151 = arith.constant 2.000000e-01 : f32
    %319 = vector.broadcast %cst_151 : f32 to vector<8x128xf32>
    %320 = arith.mulf %319, %316 : vector<8x128xf32>
    %321 = arith.select %318, %316, %320 : vector<8x128xi1>, vector<8x128xf32>
    %cst_152 = arith.constant 0.000000e+00 : f32
    %322 = vector.broadcast %cst_152 : f32 to vector<8x128xf32>
    %323 = arith.cmpf ogt, %316, %322 : vector<8x128xf32>
    %cst_153 = arith.constant 1.000000e+00 : f32
    %cst_154 = arith.constant 2.000000e-01 : f32
    %324 = vector.broadcast %cst_153 : f32 to vector<8x128xf32>
    %325 = vector.broadcast %cst_154 : f32 to vector<8x128xf32>
    %326 = arith.select %323, %324, %325 : vector<8x128xi1>, vector<8x128xf32>
    %327 = tpu.concatenate %309, %321 in 1 : vector<8x128xf32>, vector<8x128xf32> -> vector<8x256xf32>
    %c0_155 = arith.constant 0 : index
    %c0_156 = arith.constant 0 : index
    %c0_157 = arith.constant 0 : index
    %328 = vector.load %arg13[%c0_155, %c0_156, %c0_157] : memref<3x256x256xf32, #tpu.memory_space<vmem>>, vector<1x256x256xf32>
    %329 = vector.shape_cast %328 : vector<1x256x256xf32> to vector<256x256xf32>
    %cst_158 = arith.constant dense<0.000000e+00> : vector<8x256xf32>
    %330 = tpu.matmul %327, %329, %cst_158 {dimension_numbers = #tpu.dot_dimension_numbers<[1], [0], [0], [1], [0, 0, 1, 1], [], []>} : vector<8x256xf32>, vector<256x256xf32>, vector<8x256xf32> -> vector<8x256xf32>
    %331 = vector.extract_strided_slice %330 {offsets = [0, 0], sizes = [8, 128], strides = [1, 1]} : vector<8x256xf32> to vector<8x128xf32>
    %332 = arith.mulf %331, %331 : vector<8x128xf32>
    %333 = vector.extract_strided_slice %330 {offsets = [0, 128], sizes = [8, 128], strides = [1, 1]} : vector<8x256xf32> to vector<8x128xf32>
    %334 = arith.addf %332, %333 : vector<8x128xf32>
    %335 = arith.addf %334, %25 : vector<8x128xf32>
    %cst_159 = arith.constant 0.000000e+00 : f32
    %336 = vector.broadcast %cst_159 : f32 to vector<8x128xf32>
    %337 = arith.cmpf ogt, %335, %336 : vector<8x128xf32>
    %cst_160 = arith.constant 2.000000e-01 : f32
    %338 = vector.broadcast %cst_160 : f32 to vector<8x128xf32>
    %339 = arith.mulf %338, %335 : vector<8x128xf32>
    %340 = arith.select %337, %335, %339 : vector<8x128xi1>, vector<8x128xf32>
    %cst_161 = arith.constant 0.000000e+00 : f32
    %341 = vector.broadcast %cst_161 : f32 to vector<8x128xf32>
    %342 = arith.cmpf ogt, %335, %341 : vector<8x128xf32>
    %cst_162 = arith.constant 1.000000e+00 : f32
    %cst_163 = arith.constant 2.000000e-01 : f32
    %343 = vector.broadcast %cst_162 : f32 to vector<8x128xf32>
    %344 = vector.broadcast %cst_163 : f32 to vector<8x128xf32>
    %345 = arith.select %342, %343, %344 : vector<8x128xi1>, vector<8x128xf32>
    %346 = tpu.concatenate %309, %340 in 1 : vector<8x128xf32>, vector<8x128xf32> -> vector<8x256xf32>
    %c1_164 = arith.constant 1 : index
    %c0_165 = arith.constant 0 : index
    %c0_166 = arith.constant 0 : index
    %347 = vector.load %arg13[%c1_164, %c0_165, %c0_166] : memref<3x256x256xf32, #tpu.memory_space<vmem>>, vector<1x256x256xf32>
    %348 = vector.shape_cast %347 : vector<1x256x256xf32> to vector<256x256xf32>
    %cst_167 = arith.constant dense<0.000000e+00> : vector<8x256xf32>
    %349 = tpu.matmul %346, %348, %cst_167 {dimension_numbers = #tpu.dot_dimension_numbers<[1], [0], [0], [1], [0, 0, 1, 1], [], []>} : vector<8x256xf32>, vector<256x256xf32>, vector<8x256xf32> -> vector<8x256xf32>
    %350 = vector.extract_strided_slice %349 {offsets = [0, 0], sizes = [8, 128], strides = [1, 1]} : vector<8x256xf32> to vector<8x128xf32>
    %351 = arith.mulf %350, %350 : vector<8x128xf32>
    %352 = vector.extract_strided_slice %349 {offsets = [0, 128], sizes = [8, 128], strides = [1, 1]} : vector<8x256xf32> to vector<8x128xf32>
    %353 = arith.addf %351, %352 : vector<8x128xf32>
    %354 = arith.addf %353, %29 : vector<8x128xf32>
    %cst_168 = arith.constant 0.000000e+00 : f32
    %355 = vector.broadcast %cst_168 : f32 to vector<8x128xf32>
    %356 = arith.cmpf ogt, %354, %355 : vector<8x128xf32>
    %cst_169 = arith.constant 2.000000e-01 : f32
    %357 = vector.broadcast %cst_169 : f32 to vector<8x128xf32>
    %358 = arith.mulf %357, %354 : vector<8x128xf32>
    %359 = arith.select %356, %354, %358 : vector<8x128xi1>, vector<8x128xf32>
    %cst_170 = arith.constant 0.000000e+00 : f32
    %360 = vector.broadcast %cst_170 : f32 to vector<8x128xf32>
    %361 = arith.cmpf ogt, %354, %360 : vector<8x128xf32>
    %cst_171 = arith.constant 1.000000e+00 : f32
    %cst_172 = arith.constant 2.000000e-01 : f32
    %362 = vector.broadcast %cst_171 : f32 to vector<8x128xf32>
    %363 = vector.broadcast %cst_172 : f32 to vector<8x128xf32>
    %364 = arith.select %361, %362, %363 : vector<8x128xi1>, vector<8x128xf32>
    %365 = tpu.concatenate %309, %359 in 1 : vector<8x128xf32>, vector<8x128xf32> -> vector<8x256xf32>
    %c2_173 = arith.constant 2 : index
    %c0_174 = arith.constant 0 : index
    %c0_175 = arith.constant 0 : index
    %366 = vector.load %arg13[%c2_173, %c0_174, %c0_175] : memref<3x256x256xf32, #tpu.memory_space<vmem>>, vector<1x256x256xf32>
    %367 = vector.shape_cast %366 : vector<1x256x256xf32> to vector<256x256xf32>
    %cst_176 = arith.constant dense<0.000000e+00> : vector<8x256xf32>
    %368 = tpu.matmul %365, %367, %cst_176 {dimension_numbers = #tpu.dot_dimension_numbers<[1], [0], [0], [1], [0, 0, 1, 1], [], []>} : vector<8x256xf32>, vector<256x256xf32>, vector<8x256xf32> -> vector<8x256xf32>
    %369 = vector.extract_strided_slice %368 {offsets = [0, 0], sizes = [8, 128], strides = [1, 1]} : vector<8x256xf32> to vector<8x128xf32>
    %370 = arith.mulf %369, %369 : vector<8x128xf32>
    %371 = vector.extract_strided_slice %368 {offsets = [0, 128], sizes = [8, 128], strides = [1, 1]} : vector<8x256xf32> to vector<8x128xf32>
    %372 = arith.addf %370, %371 : vector<8x128xf32>
    %373 = arith.addf %372, %33 : vector<8x128xf32>
    %cst_177 = arith.constant 0.000000e+00 : f32
    %374 = vector.broadcast %cst_177 : f32 to vector<8x128xf32>
    %375 = arith.cmpf ogt, %373, %374 : vector<8x128xf32>
    %cst_178 = arith.constant 1.000000e+00 : f32
    %cst_179 = arith.constant 2.000000e-01 : f32
    %376 = vector.broadcast %cst_178 : f32 to vector<8x128xf32>
    %377 = vector.broadcast %cst_179 : f32 to vector<8x128xf32>
    %378 = arith.select %375, %376, %377 : vector<8x128xi1>, vector<8x128xf32>
    %379 = arith.mulf %309, %45 : vector<8x128xf32>
    %cst_180 = arith.constant dense<0.000000e+00> : vector<8xf32>
    %380 = vector.multi_reduction <add>, %379, %cst_180 [1] : vector<8x128xf32> to vector<8xf32>
    %381 = vector.shape_cast %380 : vector<8xf32> to vector<8x1xf32>
    %cst_181 = arith.constant 2.000000e+00 : f32
    %382 = vector.broadcast %cst_181 : f32 to vector<8x1xf32>
    %383 = arith.mulf %382, %381 : vector<8x1xf32>
    %384 = vector.broadcast %383 : vector<8x1xf32> to vector<8x128xf32>
    %385 = arith.mulf %384, %45 : vector<8x128xf32>
    %386 = arith.addf %385, %48 : vector<8x128xf32>
    %387 = arith.mulf %51, %378 : vector<8x128xf32>
    %cst_182 = arith.constant 2.000000e+00 : f32
    %388 = vector.broadcast %cst_182 : f32 to vector<8x128xf32>
    %389 = arith.mulf %388, %369 : vector<8x128xf32>
    %390 = arith.mulf %389, %387 : vector<8x128xf32>
    %391 = tpu.concatenate %390, %387 in 1 : vector<8x128xf32>, vector<8x128xf32> -> vector<8x256xf32>
    %c2_183 = arith.constant 2 : index
    %c0_184 = arith.constant 0 : index
    %c0_185 = arith.constant 0 : index
    %392 = vector.load %arg16[%c2_183, %c0_184, %c0_185] : memref<3x256x256xf32, #tpu.memory_space<vmem>>, vector<1x256x256xf32>
    %393 = vector.shape_cast %392 : vector<1x256x256xf32> to vector<256x256xf32>
    %cst_186 = arith.constant dense<0.000000e+00> : vector<8x256xf32>
    %394 = tpu.matmul %391, %393, %cst_186 {dimension_numbers = #tpu.dot_dimension_numbers<[1], [0], [0], [1], [0, 0, 1, 1], [], []>} : vector<8x256xf32>, vector<256x256xf32>, vector<8x256xf32> -> vector<8x256xf32>
    %395 = vector.extract_strided_slice %394 {offsets = [0, 0], sizes = [8, 128], strides = [1, 1]} : vector<8x256xf32> to vector<8x128xf32>
    %396 = arith.addf %386, %395 : vector<8x128xf32>
    %397 = vector.extract_strided_slice %394 {offsets = [0, 128], sizes = [8, 128], strides = [1, 1]} : vector<8x256xf32> to vector<8x128xf32>
    %398 = arith.mulf %397, %364 : vector<8x128xf32>
    %cst_187 = arith.constant 2.000000e+00 : f32
    %399 = vector.broadcast %cst_187 : f32 to vector<8x128xf32>
    %400 = arith.mulf %399, %350 : vector<8x128xf32>
    %401 = arith.mulf %400, %398 : vector<8x128xf32>
    %402 = tpu.concatenate %401, %398 in 1 : vector<8x128xf32>, vector<8x128xf32> -> vector<8x256xf32>
    %c1_188 = arith.constant 1 : index
    %c0_189 = arith.constant 0 : index
    %c0_190 = arith.constant 0 : index
    %403 = vector.load %arg16[%c1_188, %c0_189, %c0_190] : memref<3x256x256xf32, #tpu.memory_space<vmem>>, vector<1x256x256xf32>
    %404 = vector.shape_cast %403 : vector<1x256x256xf32> to vector<256x256xf32>
    %cst_191 = arith.constant dense<0.000000e+00> : vector<8x256xf32>
    %405 = tpu.matmul %402, %404, %cst_191 {dimension_numbers = #tpu.dot_dimension_numbers<[1], [0], [0], [1], [0, 0, 1, 1], [], []>} : vector<8x256xf32>, vector<256x256xf32>, vector<8x256xf32> -> vector<8x256xf32>
    %406 = vector.extract_strided_slice %405 {offsets = [0, 0], sizes = [8, 128], strides = [1, 1]} : vector<8x256xf32> to vector<8x128xf32>
    %407 = arith.addf %396, %406 : vector<8x128xf32>
    %408 = vector.extract_strided_slice %405 {offsets = [0, 128], sizes = [8, 128], strides = [1, 1]} : vector<8x256xf32> to vector<8x128xf32>
    %409 = arith.mulf %408, %345 : vector<8x128xf32>
    %cst_192 = arith.constant 2.000000e+00 : f32
    %410 = vector.broadcast %cst_192 : f32 to vector<8x128xf32>
    %411 = arith.mulf %410, %331 : vector<8x128xf32>
    %412 = arith.mulf %411, %409 : vector<8x128xf32>
    %413 = tpu.concatenate %412, %409 in 1 : vector<8x128xf32>, vector<8x128xf32> -> vector<8x256xf32>
    %c0_193 = arith.constant 0 : index
    %c0_194 = arith.constant 0 : index
    %c0_195 = arith.constant 0 : index
    %414 = vector.load %arg16[%c0_193, %c0_194, %c0_195] : memref<3x256x256xf32, #tpu.memory_space<vmem>>, vector<1x256x256xf32>
    %415 = vector.shape_cast %414 : vector<1x256x256xf32> to vector<256x256xf32>
    %cst_196 = arith.constant dense<0.000000e+00> : vector<8x256xf32>
    %416 = tpu.matmul %413, %415, %cst_196 {dimension_numbers = #tpu.dot_dimension_numbers<[1], [0], [0], [1], [0, 0, 1, 1], [], []>} : vector<8x256xf32>, vector<256x256xf32>, vector<8x256xf32> -> vector<8x256xf32>
    %417 = vector.extract_strided_slice %416 {offsets = [0, 0], sizes = [8, 128], strides = [1, 1]} : vector<8x256xf32> to vector<8x128xf32>
    %418 = arith.addf %407, %417 : vector<8x128xf32>
    %419 = vector.extract_strided_slice %416 {offsets = [0, 128], sizes = [8, 128], strides = [1, 1]} : vector<8x256xf32> to vector<8x128xf32>
    %420 = arith.mulf %419, %326 : vector<8x128xf32>
    %cst_197 = arith.constant 2.000000e+00 : f32
    %421 = vector.broadcast %cst_197 : f32 to vector<8x128xf32>
    %422 = arith.mulf %421, %312 : vector<8x128xf32>
    %423 = arith.mulf %422, %420 : vector<8x128xf32>
    %424 = tpu.concatenate %423, %420 in 1 : vector<8x128xf32>, vector<8x128xf32> -> vector<8x256xf32>
    %c0_198 = arith.constant 0 : index
    %c0_199 = arith.constant 0 : index
    %425 = vector.load %arg15[%c0_198, %c0_199] : memref<256x128xf32, #tpu.memory_space<vmem>>, vector<256x128xf32>
    %cst_200 = arith.constant dense<0.000000e+00> : vector<8x128xf32>
    %426 = tpu.matmul %424, %425, %cst_200 {dimension_numbers = #tpu.dot_dimension_numbers<[1], [0], [0], [1], [0, 0, 1, 1], [], []>} : vector<8x256xf32>, vector<256x128xf32>, vector<8x128xf32> -> vector<8x128xf32>
    %427 = arith.addf %418, %426 : vector<8x128xf32>
    %cst_201 = arith.constant 5.000000e-01 : f32
    %428 = vector.broadcast %cst_201 : f32 to vector<8x128xf32>
    %429 = arith.mulf %428, %427 : vector<8x128xf32>
    %cst_202 = arith.constant 5.000000e-01 : f32
    %430 = vector.broadcast %cst_202 : f32 to vector<8x128xf32>
    %431 = arith.mulf %430, %309 : vector<8x128xf32>
    %432 = arith.addf %429, %431 : vector<8x128xf32>
    %c2_i32 = arith.constant 2 : i32
    %433 = arith.index_cast %c2_i32 : i32 to index
    %434 = memref.load %arg1[%433] : memref<3xf32, #tpu.memory_space<smem>>
    %435 = arith.subf %432, %1 : vector<8x128xf32>
    %436 = vector.broadcast %434 : f32 to vector<8x128xf32>
    %437 = arith.mulf %436, %435 : vector<8x128xf32>
    %438 = arith.subf %174, %437 : vector<8x128xf32>
    %c0_203 = arith.constant 0 : index
    %c0_204 = arith.constant 0 : index
    %439 = vector.load %arg12[%c0_203, %c0_204] : memref<128x256xf32, #tpu.memory_space<vmem>>, vector<128x256xf32>
    %cst_205 = arith.constant dense<0.000000e+00> : vector<8x256xf32>
    %440 = tpu.matmul %438, %439, %cst_205 {dimension_numbers = #tpu.dot_dimension_numbers<[1], [0], [0], [1], [0, 0, 1, 1], [], []>} : vector<8x128xf32>, vector<128x256xf32>, vector<8x256xf32> -> vector<8x256xf32>
    %441 = vector.extract_strided_slice %440 {offsets = [0, 0], sizes = [8, 128], strides = [1, 1]} : vector<8x256xf32> to vector<8x128xf32>
    %442 = arith.mulf %441, %441 : vector<8x128xf32>
    %443 = vector.extract_strided_slice %440 {offsets = [0, 128], sizes = [8, 128], strides = [1, 1]} : vector<8x256xf32> to vector<8x128xf32>
    %444 = arith.addf %442, %443 : vector<8x128xf32>
    %445 = arith.addf %444, %21 : vector<8x128xf32>
    %cst_206 = arith.constant 0.000000e+00 : f32
    %446 = vector.broadcast %cst_206 : f32 to vector<8x128xf32>
    %447 = arith.cmpf ogt, %445, %446 : vector<8x128xf32>
    %cst_207 = arith.constant 2.000000e-01 : f32
    %448 = vector.broadcast %cst_207 : f32 to vector<8x128xf32>
    %449 = arith.mulf %448, %445 : vector<8x128xf32>
    %450 = arith.select %447, %445, %449 : vector<8x128xi1>, vector<8x128xf32>
    %cst_208 = arith.constant 0.000000e+00 : f32
    %451 = vector.broadcast %cst_208 : f32 to vector<8x128xf32>
    %452 = arith.cmpf ogt, %445, %451 : vector<8x128xf32>
    %cst_209 = arith.constant 1.000000e+00 : f32
    %cst_210 = arith.constant 2.000000e-01 : f32
    %453 = vector.broadcast %cst_209 : f32 to vector<8x128xf32>
    %454 = vector.broadcast %cst_210 : f32 to vector<8x128xf32>
    %455 = arith.select %452, %453, %454 : vector<8x128xi1>, vector<8x128xf32>
    %456 = tpu.concatenate %438, %450 in 1 : vector<8x128xf32>, vector<8x128xf32> -> vector<8x256xf32>
    %c0_211 = arith.constant 0 : index
    %c0_212 = arith.constant 0 : index
    %c0_213 = arith.constant 0 : index
    %457 = vector.load %arg13[%c0_211, %c0_212, %c0_213] : memref<3x256x256xf32, #tpu.memory_space<vmem>>, vector<1x256x256xf32>
    %458 = vector.shape_cast %457 : vector<1x256x256xf32> to vector<256x256xf32>
    %cst_214 = arith.constant dense<0.000000e+00> : vector<8x256xf32>
    %459 = tpu.matmul %456, %458, %cst_214 {dimension_numbers = #tpu.dot_dimension_numbers<[1], [0], [0], [1], [0, 0, 1, 1], [], []>} : vector<8x256xf32>, vector<256x256xf32>, vector<8x256xf32> -> vector<8x256xf32>
    %460 = vector.extract_strided_slice %459 {offsets = [0, 0], sizes = [8, 128], strides = [1, 1]} : vector<8x256xf32> to vector<8x128xf32>
    %461 = arith.mulf %460, %460 : vector<8x128xf32>
    %462 = vector.extract_strided_slice %459 {offsets = [0, 128], sizes = [8, 128], strides = [1, 1]} : vector<8x256xf32> to vector<8x128xf32>
    %463 = arith.addf %461, %462 : vector<8x128xf32>
    %464 = arith.addf %463, %25 : vector<8x128xf32>
    %cst_215 = arith.constant 0.000000e+00 : f32
    %465 = vector.broadcast %cst_215 : f32 to vector<8x128xf32>
    %466 = arith.cmpf ogt, %464, %465 : vector<8x128xf32>
    %cst_216 = arith.constant 2.000000e-01 : f32
    %467 = vector.broadcast %cst_216 : f32 to vector<8x128xf32>
    %468 = arith.mulf %467, %464 : vector<8x128xf32>
    %469 = arith.select %466, %464, %468 : vector<8x128xi1>, vector<8x128xf32>
    %cst_217 = arith.constant 0.000000e+00 : f32
    %470 = vector.broadcast %cst_217 : f32 to vector<8x128xf32>
    %471 = arith.cmpf ogt, %464, %470 : vector<8x128xf32>
    %cst_218 = arith.constant 1.000000e+00 : f32
    %cst_219 = arith.constant 2.000000e-01 : f32
    %472 = vector.broadcast %cst_218 : f32 to vector<8x128xf32>
    %473 = vector.broadcast %cst_219 : f32 to vector<8x128xf32>
    %474 = arith.select %471, %472, %473 : vector<8x128xi1>, vector<8x128xf32>
    %475 = tpu.concatenate %438, %469 in 1 : vector<8x128xf32>, vector<8x128xf32> -> vector<8x256xf32>
    %c1_220 = arith.constant 1 : index
    %c0_221 = arith.constant 0 : index
    %c0_222 = arith.constant 0 : index
    %476 = vector.load %arg13[%c1_220, %c0_221, %c0_222] : memref<3x256x256xf32, #tpu.memory_space<vmem>>, vector<1x256x256xf32>
    %477 = vector.shape_cast %476 : vector<1x256x256xf32> to vector<256x256xf32>
    %cst_223 = arith.constant dense<0.000000e+00> : vector<8x256xf32>
    %478 = tpu.matmul %475, %477, %cst_223 {dimension_numbers = #tpu.dot_dimension_numbers<[1], [0], [0], [1], [0, 0, 1, 1], [], []>} : vector<8x256xf32>, vector<256x256xf32>, vector<8x256xf32> -> vector<8x256xf32>
    %479 = vector.extract_strided_slice %478 {offsets = [0, 0], sizes = [8, 128], strides = [1, 1]} : vector<8x256xf32> to vector<8x128xf32>
    %480 = arith.mulf %479, %479 : vector<8x128xf32>
    %481 = vector.extract_strided_slice %478 {offsets = [0, 128], sizes = [8, 128], strides = [1, 1]} : vector<8x256xf32> to vector<8x128xf32>
    %482 = arith.addf %480, %481 : vector<8x128xf32>
    %483 = arith.addf %482, %29 : vector<8x128xf32>
    %cst_224 = arith.constant 0.000000e+00 : f32
    %484 = vector.broadcast %cst_224 : f32 to vector<8x128xf32>
    %485 = arith.cmpf ogt, %483, %484 : vector<8x128xf32>
    %cst_225 = arith.constant 2.000000e-01 : f32
    %486 = vector.broadcast %cst_225 : f32 to vector<8x128xf32>
    %487 = arith.mulf %486, %483 : vector<8x128xf32>
    %488 = arith.select %485, %483, %487 : vector<8x128xi1>, vector<8x128xf32>
    %cst_226 = arith.constant 0.000000e+00 : f32
    %489 = vector.broadcast %cst_226 : f32 to vector<8x128xf32>
    %490 = arith.cmpf ogt, %483, %489 : vector<8x128xf32>
    %cst_227 = arith.constant 1.000000e+00 : f32
    %cst_228 = arith.constant 2.000000e-01 : f32
    %491 = vector.broadcast %cst_227 : f32 to vector<8x128xf32>
    %492 = vector.broadcast %cst_228 : f32 to vector<8x128xf32>
    %493 = arith.select %490, %491, %492 : vector<8x128xi1>, vector<8x128xf32>
    %494 = tpu.concatenate %438, %488 in 1 : vector<8x128xf32>, vector<8x128xf32> -> vector<8x256xf32>
    %c2_229 = arith.constant 2 : index
    %c0_230 = arith.constant 0 : index
    %c0_231 = arith.constant 0 : index
    %495 = vector.load %arg13[%c2_229, %c0_230, %c0_231] : memref<3x256x256xf32, #tpu.memory_space<vmem>>, vector<1x256x256xf32>
    %496 = vector.shape_cast %495 : vector<1x256x256xf32> to vector<256x256xf32>
    %cst_232 = arith.constant dense<0.000000e+00> : vector<8x256xf32>
    %497 = tpu.matmul %494, %496, %cst_232 {dimension_numbers = #tpu.dot_dimension_numbers<[1], [0], [0], [1], [0, 0, 1, 1], [], []>} : vector<8x256xf32>, vector<256x256xf32>, vector<8x256xf32> -> vector<8x256xf32>
    %498 = vector.extract_strided_slice %497 {offsets = [0, 0], sizes = [8, 128], strides = [1, 1]} : vector<8x256xf32> to vector<8x128xf32>
    %499 = arith.mulf %498, %498 : vector<8x128xf32>
    %500 = vector.extract_strided_slice %497 {offsets = [0, 128], sizes = [8, 128], strides = [1, 1]} : vector<8x256xf32> to vector<8x128xf32>
    %501 = arith.addf %499, %500 : vector<8x128xf32>
    %502 = arith.addf %501, %33 : vector<8x128xf32>
    %cst_233 = arith.constant 0.000000e+00 : f32
    %503 = vector.broadcast %cst_233 : f32 to vector<8x128xf32>
    %504 = arith.cmpf ogt, %502, %503 : vector<8x128xf32>
    %cst_234 = arith.constant 1.000000e+00 : f32
    %cst_235 = arith.constant 2.000000e-01 : f32
    %505 = vector.broadcast %cst_234 : f32 to vector<8x128xf32>
    %506 = vector.broadcast %cst_235 : f32 to vector<8x128xf32>
    %507 = arith.select %504, %505, %506 : vector<8x128xi1>, vector<8x128xf32>
    %508 = arith.mulf %438, %45 : vector<8x128xf32>
    %cst_236 = arith.constant dense<0.000000e+00> : vector<8xf32>
    %509 = vector.multi_reduction <add>, %508, %cst_236 [1] : vector<8x128xf32> to vector<8xf32>
    %510 = vector.shape_cast %509 : vector<8xf32> to vector<8x1xf32>
    %cst_237 = arith.constant 2.000000e+00 : f32
    %511 = vector.broadcast %cst_237 : f32 to vector<8x1xf32>
    %512 = arith.mulf %511, %510 : vector<8x1xf32>
    %513 = vector.broadcast %512 : vector<8x1xf32> to vector<8x128xf32>
    %514 = arith.mulf %513, %45 : vector<8x128xf32>
    %515 = arith.addf %514, %48 : vector<8x128xf32>
    %516 = arith.mulf %51, %507 : vector<8x128xf32>
    %cst_238 = arith.constant 2.000000e+00 : f32
    %517 = vector.broadcast %cst_238 : f32 to vector<8x128xf32>
    %518 = arith.mulf %517, %498 : vector<8x128xf32>
    %519 = arith.mulf %518, %516 : vector<8x128xf32>
    %520 = tpu.concatenate %519, %516 in 1 : vector<8x128xf32>, vector<8x128xf32> -> vector<8x256xf32>
    %c2_239 = arith.constant 2 : index
    %c0_240 = arith.constant 0 : index
    %c0_241 = arith.constant 0 : index
    %521 = vector.load %arg16[%c2_239, %c0_240, %c0_241] : memref<3x256x256xf32, #tpu.memory_space<vmem>>, vector<1x256x256xf32>
    %522 = vector.shape_cast %521 : vector<1x256x256xf32> to vector<256x256xf32>
    %cst_242 = arith.constant dense<0.000000e+00> : vector<8x256xf32>
    %523 = tpu.matmul %520, %522, %cst_242 {dimension_numbers = #tpu.dot_dimension_numbers<[1], [0], [0], [1], [0, 0, 1, 1], [], []>} : vector<8x256xf32>, vector<256x256xf32>, vector<8x256xf32> -> vector<8x256xf32>
    %524 = vector.extract_strided_slice %523 {offsets = [0, 0], sizes = [8, 128], strides = [1, 1]} : vector<8x256xf32> to vector<8x128xf32>
    %525 = arith.addf %515, %524 : vector<8x128xf32>
    %526 = vector.extract_strided_slice %523 {offsets = [0, 128], sizes = [8, 128], strides = [1, 1]} : vector<8x256xf32> to vector<8x128xf32>
    %527 = arith.mulf %526, %493 : vector<8x128xf32>
    %cst_243 = arith.constant 2.000000e+00 : f32
    %528 = vector.broadcast %cst_243 : f32 to vector<8x128xf32>
    %529 = arith.mulf %528, %479 : vector<8x128xf32>
    %530 = arith.mulf %529, %527 : vector<8x128xf32>
    %531 = tpu.concatenate %530, %527 in 1 : vector<8x128xf32>, vector<8x128xf32> -> vector<8x256xf32>
    %c1_244 = arith.constant 1 : index
    %c0_245 = arith.constant 0 : index
    %c0_246 = arith.constant 0 : index
    %532 = vector.load %arg16[%c1_244, %c0_245, %c0_246] : memref<3x256x256xf32, #tpu.memory_space<vmem>>, vector<1x256x256xf32>
    %533 = vector.shape_cast %532 : vector<1x256x256xf32> to vector<256x256xf32>
    %cst_247 = arith.constant dense<0.000000e+00> : vector<8x256xf32>
    %534 = tpu.matmul %531, %533, %cst_247 {dimension_numbers = #tpu.dot_dimension_numbers<[1], [0], [0], [1], [0, 0, 1, 1], [], []>} : vector<8x256xf32>, vector<256x256xf32>, vector<8x256xf32> -> vector<8x256xf32>
    %535 = vector.extract_strided_slice %534 {offsets = [0, 0], sizes = [8, 128], strides = [1, 1]} : vector<8x256xf32> to vector<8x128xf32>
    %536 = arith.addf %525, %535 : vector<8x128xf32>
    %537 = vector.extract_strided_slice %534 {offsets = [0, 128], sizes = [8, 128], strides = [1, 1]} : vector<8x256xf32> to vector<8x128xf32>
    %538 = arith.mulf %537, %474 : vector<8x128xf32>
    %cst_248 = arith.constant 2.000000e+00 : f32
    %539 = vector.broadcast %cst_248 : f32 to vector<8x128xf32>
    %540 = arith.mulf %539, %460 : vector<8x128xf32>
    %541 = arith.mulf %540, %538 : vector<8x128xf32>
    %542 = tpu.concatenate %541, %538 in 1 : vector<8x128xf32>, vector<8x128xf32> -> vector<8x256xf32>
    %c0_249 = arith.constant 0 : index
    %c0_250 = arith.constant 0 : index
    %c0_251 = arith.constant 0 : index
    %543 = vector.load %arg16[%c0_249, %c0_250, %c0_251] : memref<3x256x256xf32, #tpu.memory_space<vmem>>, vector<1x256x256xf32>
    %544 = vector.shape_cast %543 : vector<1x256x256xf32> to vector<256x256xf32>
    %cst_252 = arith.constant dense<0.000000e+00> : vector<8x256xf32>
    %545 = tpu.matmul %542, %544, %cst_252 {dimension_numbers = #tpu.dot_dimension_numbers<[1], [0], [0], [1], [0, 0, 1, 1], [], []>} : vector<8x256xf32>, vector<256x256xf32>, vector<8x256xf32> -> vector<8x256xf32>
    %546 = vector.extract_strided_slice %545 {offsets = [0, 0], sizes = [8, 128], strides = [1, 1]} : vector<8x256xf32> to vector<8x128xf32>
    %547 = arith.addf %536, %546 : vector<8x128xf32>
    %548 = vector.extract_strided_slice %545 {offsets = [0, 128], sizes = [8, 128], strides = [1, 1]} : vector<8x256xf32> to vector<8x128xf32>
    %549 = arith.mulf %548, %455 : vector<8x128xf32>
    %cst_253 = arith.constant 2.000000e+00 : f32
    %550 = vector.broadcast %cst_253 : f32 to vector<8x128xf32>
    %551 = arith.mulf %550, %441 : vector<8x128xf32>
    %552 = arith.mulf %551, %549 : vector<8x128xf32>
    %553 = tpu.concatenate %552, %549 in 1 : vector<8x128xf32>, vector<8x128xf32> -> vector<8x256xf32>
    %c0_254 = arith.constant 0 : index
    %c0_255 = arith.constant 0 : index
    %554 = vector.load %arg15[%c0_254, %c0_255] : memref<256x128xf32, #tpu.memory_space<vmem>>, vector<256x128xf32>
    %cst_256 = arith.constant dense<0.000000e+00> : vector<8x128xf32>
    %555 = tpu.matmul %553, %554, %cst_256 {dimension_numbers = #tpu.dot_dimension_numbers<[1], [0], [0], [1], [0, 0, 1, 1], [], []>} : vector<8x256xf32>, vector<256x128xf32>, vector<8x128xf32> -> vector<8x128xf32>
    %556 = arith.addf %547, %555 : vector<8x128xf32>
    %cst_257 = arith.constant 5.000000e-01 : f32
    %557 = vector.broadcast %cst_257 : f32 to vector<8x128xf32>
    %558 = arith.mulf %557, %556 : vector<8x128xf32>
    %cst_258 = arith.constant 5.000000e-01 : f32
    %559 = vector.broadcast %cst_258 : f32 to vector<8x128xf32>
    %560 = arith.mulf %559, %438 : vector<8x128xf32>
    %561 = arith.addf %558, %560 : vector<8x128xf32>
    %c3_i32 = arith.constant 3 : i32
    %c0_259 = arith.constant 0 : index
    %c0_260 = arith.constant 0 : index
    %562 = vector.load %arg20[%c0_259, %c0_260] : memref<8x128xf32, #tpu.memory_space<vmem>>, vector<8x128xf32>
    tpu.vector_store %arg20[%c0_259, %c0_260], %561 {strides = array<i32>} : memref<8x128xf32, #tpu.memory_space<vmem>>, vector<8x128xf32>,
    return
  }
  func.func @transform_0(%arg0: i32, %arg1: memref<3xf32, #tpu.memory_space<smem>>) -> (i32, i32) {
    %c0_i32 = arith.constant 0 : i32
    %c0_i32_0 = arith.constant 0 : i32
    return %arg0, %c0_i32 : i32, i32
  }
  func.func @transform_1(%arg0: i32, %arg1: memref<3xf32, #tpu.memory_space<smem>>) -> (i32, i32) {
    %c0_i32 = arith.constant 0 : i32
    %c0_i32_0 = arith.constant 0 : i32
    return %arg0, %c0_i32 : i32, i32
  }
  func.func @transform_2(%arg0: i32, %arg1: memref<3xf32, #tpu.memory_space<smem>>) -> (i32, i32) {
    %c0_i32 = arith.constant 0 : i32
    %c0_i32_0 = arith.constant 0 : i32
    %c0_i32_1 = arith.constant 0 : i32
    return %c0_i32, %c0_i32_0 : i32, i32
  }
  func.func @transform_3(%arg0: i32, %arg1: memref<3xf32, #tpu.memory_space<smem>>) -> (i32, i32, i32) {
    %c0_i32 = arith.constant 0 : i32
    %c0_i32_0 = arith.constant 0 : i32
    %c0_i32_1 = arith.constant 0 : i32
    %c0_i32_2 = arith.constant 0 : i32
    return %c0_i32, %c0_i32_0, %c0_i32_1 : i32, i32, i32
  }
  func.func @transform_4(%arg0: i32, %arg1: memref<3xf32, #tpu.memory_space<smem>>) -> (i32, i32, i32) {
    %c0_i32 = arith.constant 0 : i32
    %c0_i32_0 = arith.constant 0 : i32
    %c0_i32_1 = arith.constant 0 : i32
    %c0_i32_2 = arith.constant 0 : i32
    return %c0_i32, %c0_i32_0, %c0_i32_1 : i32, i32, i32
  }
  func.func @transform_5(%arg0: i32, %arg1: memref<3xf32, #tpu.memory_space<smem>>) -> (i32, i32) {
    %c0_i32 = arith.constant 0 : i32
    %c0_i32_0 = arith.constant 0 : i32
    %c0_i32_1 = arith.constant 0 : i32
    return %c0_i32, %c0_i32_0 : i32, i32
  }
  func.func @transform_6(%arg0: i32, %arg1: memref<3xf32, #tpu.memory_space<smem>>) -> (i32, i32, i32) {
    %c0_i32 = arith.constant 0 : i32
    %c0_i32_0 = arith.constant 0 : i32
    %c0_i32_1 = arith.constant 0 : i32
    %c0_i32_2 = arith.constant 0 : i32
    return %c0_i32, %c0_i32_0, %c0_i32_1 : i32, i32, i32
  }
  func.func @transform_7(%arg0: i32, %arg1: memref<3xf32, #tpu.memory_space<smem>>) -> (i32, i32) {
    %c0_i32 = arith.constant 0 : i32
    %c0_i32_0 = arith.constant 0 : i32
    %c0_i32_1 = arith.constant 0 : i32
    return %c0_i32, %c0_i32_0 : i32, i32
  }
  func.func @transform_8(%arg0: i32, %arg1: memref<3xf32, #tpu.memory_space<smem>>) -> (i32, i32) {
    %c0_i32 = arith.constant 0 : i32
    %c0_i32_0 = arith.constant 0 : i32
    %c0_i32_1 = arith.constant 0 : i32
    return %c0_i32, %c0_i32_0 : i32, i32
  }
  func.func @transform_9(%arg0: i32, %arg1: memref<3xf32, #tpu.memory_space<smem>>) -> (i32, i32) {
    %c0_i32 = arith.constant 0 : i32
    %c0_i32_0 = arith.constant 0 : i32
    %c0_i32_1 = arith.constant 0 : i32
    return %c0_i32, %c0_i32_0 : i32, i32
  }
  func.func @transform_10(%arg0: i32, %arg1: memref<3xf32, #tpu.memory_space<smem>>) -> (i32, i32) {
    %c0_i32 = arith.constant 0 : i32
    %c0_i32_0 = arith.constant 0 : i32
    %c0_i32_1 = arith.constant 0 : i32
    return %c0_i32, %c0_i32_0 : i32, i32
  }
  func.func @transform_11(%arg0: i32, %arg1: memref<3xf32, #tpu.memory_space<smem>>) -> (i32, i32, i32) {
    %c0_i32 = arith.constant 0 : i32
    %c0_i32_0 = arith.constant 0 : i32
    %c0_i32_1 = arith.constant 0 : i32
    %c0_i32_2 = arith.constant 0 : i32
    return %c0_i32, %c0_i32_0, %c0_i32_1 : i32, i32, i32
  }
  func.func @transform_12(%arg0: i32, %arg1: memref<3xf32, #tpu.memory_space<smem>>) -> (i32, i32, i32) {
    %c0_i32 = arith.constant 0 : i32
    %c0_i32_0 = arith.constant 0 : i32
    %c0_i32_1 = arith.constant 0 : i32
    %c0_i32_2 = arith.constant 0 : i32
    return %c0_i32, %c0_i32_0, %c0_i32_1 : i32, i32, i32
  }
  func.func @transform_13(%arg0: i32, %arg1: memref<3xf32, #tpu.memory_space<smem>>) -> (i32, i32) {
    %c0_i32 = arith.constant 0 : i32
    %c0_i32_0 = arith.constant 0 : i32
    %c0_i32_1 = arith.constant 0 : i32
    return %c0_i32, %c0_i32_0 : i32, i32
  }
  func.func @transform_14(%arg0: i32, %arg1: memref<3xf32, #tpu.memory_space<smem>>) -> (i32, i32, i32) {
    %c0_i32 = arith.constant 0 : i32
    %c0_i32_0 = arith.constant 0 : i32
    %c0_i32_1 = arith.constant 0 : i32
    %c0_i32_2 = arith.constant 0 : i32
    return %c0_i32, %c0_i32_0, %c0_i32_1 : i32, i32, i32
  }
  func.func @transform_15(%arg0: i32, %arg1: memref<3xf32, #tpu.memory_space<smem>>) -> (i32, i32) {
    %c0_i32 = arith.constant 0 : i32
    %c0_i32_0 = arith.constant 0 : i32
    %c0_i32_1 = arith.constant 0 : i32
    return %c0_i32, %c0_i32_0 : i32, i32
  }
  func.func @transform_16(%arg0: i32, %arg1: memref<3xf32, #tpu.memory_space<smem>>) -> (i32, i32) {
    %c0_i32 = arith.constant 0 : i32
    %c0_i32_0 = arith.constant 0 : i32
    %c0_i32_1 = arith.constant 0 : i32
    return %c0_i32, %c0_i32_0 : i32, i32
  }
  func.func @transform_17(%arg0: i32, %arg1: memref<3xf32, #tpu.memory_space<smem>>) -> (i32, i32) {
    %c0_i32 = arith.constant 0 : i32
    %c0_i32_0 = arith.constant 0 : i32
    %c0_i32_1 = arith.constant 0 : i32
    return %c0_i32, %c0_i32_0 : i32, i32
  }
  func.func @transform_18(%arg0: i32, %arg1: memref<3xf32, #tpu.memory_space<smem>>) -> (i32, i32) {
    %c0_i32 = arith.constant 0 : i32
    %c0_i32_0 = arith.constant 0 : i32
    return %arg0, %c0_i32 : i32, i32
  }
}

</mosaic_0001>

<bundles_post_ra>
// kernel: icnn_couple_forward.1
= control target key start
LH: loop header
LB: loop body
LE: loop exit
PB: predicated region body
PF: predicated region fallthrough
CT: control target
= control target key end

     0   :  { %s11059_s0 = inlined_call_operand.vmem [shape: f32[3], index: 0, kind: input, shape index: {}]   ;;  %s11060_s1 = inlined_call_operand.vmem [shape: f32[8,128], index: 1, kind: input, shape index: {}]   ;;  %s11061_s2 = inlined_call_operand.vmem [shape: f32[8,128], index: 2, kind: input, shape index: {}]   ;;  %s11062_s3 = inlined_call_operand.vmem [shape: f32[128,256], index: 3, kind: input, shape index: {}]   ;;  %s11063_s4 = inlined_call_operand.vmem [shape: f32[3,256,256], index: 4, kind: input, shape index: {}]   ;;  %s11064_s5 = inlined_call_operand.vmem [shape: f32[4,1,128], index: 5, kind: input, shape index: {}]   ;;  %s11065_s6 = inlined_call_operand.vmem [shape: f32[256,128], index: 6, kind: input, shape index: {}]   ;;  %s11066_s7 = inlined_call_operand.vmem [shape: f32[3,256,256], index: 7, kind: input, shape index: {}]   ;;  %s11067_s8 = inlined_call_operand.vmem [shape: f32[1,128], index: 8, kind: input, shape index: {}]   ;;  %s11068_s9 = inlined_call_operand.vmem [shape: f32[1,128], index: 9, kind: input, shape index: {}]   ;;  %s11069_s10 = inlined_call_operand.vmem [shape: f32[1,128], index: 10, kind: input, shape index: {}]   ;;  %s11070_s11 = inlined_call_operand.vmem [shape: f32[128,256], index: 11, kind: input, shape index: {}]   ;;  %s11071_s12 = inlined_call_operand.vmem [shape: f32[3,256,256], index: 12, kind: input, shape index: {}]   ;;  %s11072_s13 = inlined_call_operand.vmem [shape: f32[4,1,128], index: 13, kind: input, shape index: {}]   ;;  %s11073_s14 = inlined_call_operand.vmem [shape: f32[256,128], index: 14, kind: input, shape index: {}]   ;;  %s11074_s15 = inlined_call_operand.vmem [shape: f32[3,256,256], index: 15, kind: input, shape index: {}]   ;;  %s11075_s16 = inlined_call_operand.vmem [shape: f32[1,128], index: 16, kind: input, shape index: {}]   ;;  %s11076_s17 = inlined_call_operand.vmem [shape: f32[1,128], index: 17, kind: input, shape index: {}]   ;;  %s11077_s18 = inlined_call_operand.vmem [shape: f32[1,128], index: 18, kind: input, shape index: {}]   ;;  %s11078_s19 = inlined_call_operand.hbm [shape: f32[8,128], index: 19, kind: output, shape index: {}]  }
   0x1   :  { %11083 = sst [smem:[#allocation8_spill]] %s11059_s0 }
   0x2   :  { %11084 = sst [smem:[#allocation9_spill]] %s11060_s1 }
   0x3   :  { %11085 = sst [smem:[#allocation10_spill]] %s11061_s2 }
   0x4   :  { %11086 = sst [smem:[#allocation11_spill]] %s11062_s3 }
   0x5   :  { %11087 = sst [smem:[#allocation12_spill]] %s11072_s13 }
   0x6   :  { %s11088_s20 = sld [smem:[#allocation8_spill]] }
   0xc   :  { %s24_s13 = sshll.u32 %s11088_s20, 4  ;;  %s25_s13 = int_to_ptr.vmem [resolvable:$true] %s24_s13 }
   0xd   :  { %s5162_s21 = scalar_lea.vmem %s25_s13, 16  ;;  %p5167_p1 = scmp.lt.s32.totalorder %s25_s13, %s25_s13 }
   0xe   :  { %p5163_p0 = scmp.ne.s32.totalorder %s25_s13, %s5162_s21  ;;  %p5168_p2 = scmp.lt.s32.totalorder %s5162_s21, %s5162_s21 }
  0x10   :  { %p5169_p3 = por %p5168_p2, %p5167_p1 }
  0x12   :  { %p5170_p4 = pnand %p5169_p3, %p5163_p0 }
  0x14   :  { %5173 = shalt.err (!%p5170_p4)  }
  0x15   :  { %s5198_s1 = smov [#allocation3]  }
  0x16   :  { %27 = dma.vmem_to_smem %s25_s13, 16, %s5198_s1, [#allocation2] }
  0x17   :  { %5194 = dma.done.wait [#allocation2], 16 }
  0x18   :  { %5195 = vsyncadd [#allocation2], 4294967280 }
  0x19   :  { %29 = sfence }
  0x1a   :  { %s11089_s23 = sld [smem:[#allocation11_spill]]  ;;  %v5199_v4 = vmov 0.0   ;;  %v314_v15 = vld [vmem:[%s11063_s4 + $0xf8] sm:$0xff]  ;;  %v313_v16 = vld [vmem:[%s11063_s4 + $0xf0] sm:$0xff]  ;;  %v312_v17 = vld [vmem:[%s11063_s4 + $0xe8] sm:$0xff] }
  0x1b   :  { %269 = vmatprep.mubr.f32.mxu0 %v5199_v4  ;;  %347 = vmatprep.subr.mxu1 %v314_v15  ;;  %v311_v19 = vld [vmem:[%s11063_s4 + $0xe0] sm:$0xff]  ;;  %v310_v21 = vld [vmem:[%s11063_s4 + $0xd8] sm:$0xff]  ;;  %v309_v23 = vld [vmem:[%s11063_s4 + $0xd0] sm:$0xff] }
  0x1c   :  { %348 = vmatpush1.msra.mxu1 %v313_v16  ;;  %v308_v25 = vld [vmem:[%s11063_s4 + $0xc8] sm:$0xff]  ;;  %v307_v27 = vld [vmem:[%s11063_s4 + $0xc0] sm:$0xff]  ;;  %v306_v29 = vld [vmem:[%s11063_s4 + $0xb8] sm:$0xff] }
  0x1d   :  { %349 = vmatprep.subr.mxu1 %v312_v17  ;;  %v305_v31 = vld [vmem:[%s11063_s4 + $0xb0] sm:$0xff]  ;;  %v304_v33 = vld [vmem:[%s11063_s4 + $0xa8] sm:$0xff]  ;;  %v303_v35 = vld [vmem:[%s11063_s4 + $0xa0] sm:$0xff] }
  0x1e   :  { %350 = vmatpush1.msra.mxu1 %v311_v19  ;;  %v302_v37 = vld [vmem:[%s11063_s4 + $0x98] sm:$0xff]  ;;  %v301_v39 = vld [vmem:[%s11063_s4 + $0x90] sm:$0xff]  ;;  %v300_v41 = vld [vmem:[%s11063_s4 + $0x88] sm:$0xff] }
  0x1f   :  { %351 = vmatprep.subr.mxu1 %v310_v21  ;;  %v299_v43 = vld [vmem:[%s11063_s4 + $0x80] sm:$0xff]  ;;  %v298_v45 = vld [vmem:[%s11063_s4 + $0x78] sm:$0xff]  ;;  %v297_v47 = vld [vmem:[%s11063_s4 + $0x70] sm:$0xff] }
  0x20   :  { %v204_v0 = vld [vmem:[%s11089_s23 + $0xf8] sm:$0xff]  ;;  %v203_v1 = vld [vmem:[%s11089_s23 + $0xf0] sm:$0xff]  ;;  %v202_v2 = vld [vmem:[%s11089_s23 + $0xe8] sm:$0xff]  ;;  %352 = vmatpush1.msra.mxu1 %v309_v23 }
  0x21   :  { %205 = vmatprep.subr.mxu0 %v204_v0  ;;  %v201_v3 = vld [vmem:[%s11089_s23 + $0xe0] sm:$0xff]  ;;  %v200_v5 = vld [vmem:[%s11089_s23 + $0xd8] sm:$0xff]  ;;  %v199_v6 = vld [vmem:[%s11089_s23 + $0xd0] sm:$0xff]  ;;  %353 = vmatprep.subr.mxu1 %v308_v25 }
  0x22   :  { %206 = vmatpush1.msra.mxu0 %v203_v1  ;;  %v198_v7 = vld [vmem:[%s11089_s23 + $0xc8] sm:$0xff]  ;;  %v197_v8 = vld [vmem:[%s11089_s23 + $0xc0] sm:$0xff]  ;;  %v196_v9 = vld [vmem:[%s11089_s23 + $0xb8] sm:$0xff]  ;;  %354 = vmatpush1.msra.mxu1 %v307_v27 }
  0x23   :  { %207 = vmatprep.subr.mxu0 %v202_v2  ;;  %v195_v10 = vld [vmem:[%s11089_s23 + $0xb0] sm:$0xff]  ;;  %v194_v11 = vld [vmem:[%s11089_s23 + $0xa8] sm:$0xff]  ;;  %v193_v12 = vld [vmem:[%s11089_s23 + $0xa0] sm:$0xff]  ;;  %355 = vmatprep.subr.mxu1 %v306_v29 }
  0x24   :  { %208 = vmatpush1.msra.mxu0 %v201_v3  ;;  %v192_v13 = vld [vmem:[%s11089_s23 + $0x98] sm:$0xff]  ;;  %v191_v14 = vld [vmem:[%s11089_s23 + $0x90] sm:$0xff]  ;;  %v190_v18 = vld [vmem:[%s11089_s23 + $0x88] sm:$0xff]  ;;  %356 = vmatpush1.msra.mxu1 %v305_v31 }
  0x25   :  { %209 = vmatprep.subr.mxu0 %v200_v5  ;;  %v189_v20 = vld [vmem:[%s11089_s23 + $0x80] sm:$0xff]  ;;  %v188_v22 = vld [vmem:[%s11089_s23 + $0x78] sm:$0xff]  ;;  %v187_v24 = vld [vmem:[%s11089_s23 + $0x70] sm:$0xff]  ;;  %357 = vmatprep.subr.mxu1 %v304_v33 }
  0x26   :  { %210 = vmatpush1.msra.mxu0 %v199_v6  ;;  %v186_v26 = vld [vmem:[%s11089_s23 + $0x68] sm:$0xff]  ;;  %v185_v28 = vld [vmem:[%s11089_s23 + $0x60] sm:$0xff]  ;;  %v184_v30 = vld [vmem:[%s11089_s23 + $0x58] sm:$0xff]  ;;  %358 = vmatpush1.msra.mxu1 %v303_v35 }
  0x27   :  { %211 = vmatprep.subr.mxu0 %v198_v7  ;;  %v183_v32 = vld [vmem:[%s11089_s23 + $0x50] sm:$0xff]  ;;  %v182_v34 = vld [vmem:[%s11089_s23 + $0x48] sm:$0xff]  ;;  %v181_v36 = vld [vmem:[%s11089_s23 + $0x40] sm:$0xff]  ;;  %359 = vmatprep.subr.mxu1 %v302_v37 }
  0x28   :  { %212 = vmatpush1.msra.mxu0 %v197_v8  ;;  %v180_v38 = vld [vmem:[%s11089_s23 + $0x38] sm:$0xff]  ;;  %v179_v40 = vld [vmem:[%s11089_s23 + $0x30] sm:$0xff]  ;;  %v178_v42 = vld [vmem:[%s11089_s23 + $0x28] sm:$0xff]  ;;  %360 = vmatpush1.msra.mxu1 %v301_v39 }
  0x29   :  { %213 = vmatprep.subr.mxu0 %v196_v9  ;;  %v177_v44 = vld [vmem:[%s11089_s23 + $0x20] sm:$0xff]  ;;  %v176_v46 = vld [vmem:[%s11089_s23 + $0x18] sm:$0xff]  ;;  %361 = vmatprep.subr.mxu1 %v300_v41  ;;  %v175_v48 = vld [vmem:[%s11089_s23 + $0x10] sm:$0xff] }
  0x2a   :  { %214 = vmatpush1.msra.mxu0 %v195_v10  ;;  %362 = vmatpush1.msra.mxu1 %v299_v43  ;;  %v296_v49 = vld [vmem:[%s11063_s4 + $0x68] sm:$0xff]  ;;  %v295_v51 = vld [vmem:[%s11063_s4 + $0x60] sm:$0xff] }
  0x2b   :  { %215 = vmatprep.subr.mxu0 %v194_v11  ;;  %v174_v50 = vld [vmem:[%s11089_s23 + $0x8] sm:$0xff]  ;;  %363 = vmatprep.subr.mxu1 %v298_v45 }
  0x2c   :  { %216 = vmatpush1.msra.mxu0 %v193_v12 }
  0x2d   :  { %217 = vmatprep.subr.mxu0 %v192_v13 }
  0x2e   :  { %218 = vmatpush1.msra.mxu0 %v191_v14 }
  0x2f   :  { %219 = vmatprep.subr.mxu0 %v190_v18 }
  0x30   :  { %220 = vmatpush1.msra.mxu0 %v189_v20 }
  0x31   :  { %221 = vmatprep.subr.mxu0 %v188_v22 }
  0x32   :  { %222 = vmatpush1.msra.mxu0 %v187_v24 }
  0x33   :  { %223 = vmatprep.subr.mxu0 %v186_v26 }
  0x34   :  { %224 = vmatpush1.msra.mxu0 %v185_v28 }
  0x35   :  { %225 = vmatprep.subr.mxu0 %v184_v30 }
  0x36   :  { %226 = vmatpush1.msra.mxu0 %v183_v32 }
  0x37   :  { %227 = vmatprep.subr.mxu0 %v182_v34 }
  0x38   :  { %228 = vmatpush1.msra.mxu0 %v181_v36 }
  0x39   :  { %229 = vmatprep.subr.mxu0 %v180_v38 }
  0x3a   :  { %230 = vmatpush1.msra.mxu0 %v179_v40 }
  0x3b   :  { %231 = vmatprep.subr.mxu0 %v178_v42 }
  0x3c   :  { %232 = vmatpush1.msra.mxu0 %v177_v44 }
  0x3d   :  { %30 = vsyncpa [#allocation5], 0  ;;  %233 = vmatprep.subr.mxu0 %v176_v46  ;;  %v173_v52 = vld [vmem:[%s11089_s23] sm:$0xff]  ;;  %364 = vmatpush1.msra.mxu1 %v297_v47  ;;  %v294_v53 = vld [vmem:[%s11063_s4 + $0x58] sm:$0xff]  ;;  %s11090_s25 = sld [smem:[#allocation9_spill]] }
  0x3e   :  { %234 = vmatpush1.msra.mxu0 %v175_v48  ;;  %365 = vmatprep.subr.mxu1 %v296_v49  ;;  %v293_v55 = vld [vmem:[%s11063_s4 + $0x50] sm:$0xff]  ;;  %v292_v56 = vld [vmem:[%s11063_s4 + $0x48] sm:$0xff]  ;;  %v291_v57 = vld [vmem:[%s11063_s4 + $0x40] sm:$0xff]  ;;  %s1243_s3 = sld [smem:[#allocation3]] }
  0x3f   :  { %235 = vmatprep.subr.mxu0 %v174_v50  ;;  %366 = vmatpush1.msra.mxu1 %v295_v51  ;;  %v290_v58 = vld [vmem:[%s11063_s4 + $0x38] sm:$0xff]  ;;  %v289_v59 = vld [vmem:[%s11063_s4 + $0x30] sm:$0xff]  ;;  %v288_v60 = vld [vmem:[%s11063_s4 + $0x28] sm:$0xff]  ;;  %s11092_s2 = sld [smem:[#allocation12_spill]] }
  0x40   :  { %236 = vmatpush1.msra.mxu0 %v173_v52  ;;  %367 = vmatprep.subr.mxu1 %v294_v53  ;;  %v287_v61 = vld [vmem:[%s11063_s4 + $0x20] sm:$0xff]  ;;  %v286_v62 = vld [vmem:[%s11063_s4 + $0x18] sm:$0xff]  ;;  %v285_v63 = vld [vmem:[%s11063_s4 + $0x10] sm:$0xff]  ;;  %s4111_s13 = sld [smem:[#allocation3 + $0x1]] }
  0x41   :  { %368 = vmatpush1.msra.mxu1 %v293_v55  ;;  %v284_v0 = vld [vmem:[%s11063_s4 + $0x8] sm:$0xff]  ;;  %v283_v1 = vld [vmem:[%s11063_s4] sm:$0xff]  ;;  %v346_v2 = vld [vmem:[%s11063_s4 + $0x1f8] sm:$0xff] }
  0x42   :  { %369 = vmatprep.subr.mxu1 %v292_v56  ;;  %v345_v3 = vld [vmem:[%s11063_s4 + $0x1f0] sm:$0xff]  ;;  %v344_v5 = vld [vmem:[%s11063_s4 + $0x1e8] sm:$0xff]  ;;  %v343_v6 = vld [vmem:[%s11063_s4 + $0x1e0] sm:$0xff] }
  0x43   :  { %v5468_v54 = vld [vmem:[%s11090_s25] sm:$0xff]  ;;  %370 = vmatpush1.msra.mxu1 %v291_v57  ;;  %v342_v7 = vld [vmem:[%s11063_s4 + $0x1d8] sm:$0xff]  ;;  %v341_v8 = vld [vmem:[%s11063_s4 + $0x1d0] sm:$0xff] }
  0x44   :  { %270 = vmatmul.mubr.f32.vlgmr.msra.gmra.mxu0 %v5468_v54  ;;  %371 = vmatprep.subr.mxu1 %v290_v58  ;;  %v340_v9 = vld [vmem:[%s11063_s4 + $0x1c8] sm:$0xff]  ;;  %v339_v10 = vld [vmem:[%s11063_s4 + $0x1c0] sm:$0xff]  ;;  %v338_v11 = vld [vmem:[%s11063_s4 + $0x1b8] sm:$0xff] }
  0x45   :  { %372 = vmatpush1.msra.mxu1 %v289_v59  ;;  %v337_v12 = vld [vmem:[%s11063_s4 + $0x1b0] sm:$0xff]  ;;  %v336_v13 = vld [vmem:[%s11063_s4 + $0x1a8] sm:$0xff]  ;;  %v335_v14 = vld [vmem:[%s11063_s4 + $0x1a0] sm:$0xff] }
  0x46   :  { %373 = vmatprep.subr.mxu1 %v288_v60  ;;  %v334_v15 = vld [vmem:[%s11063_s4 + $0x198] sm:$0xff]  ;;  %v333_v16 = vld [vmem:[%s11063_s4 + $0x190] sm:$0xff]  ;;  %v332_v17 = vld [vmem:[%s11063_s4 + $0x188] sm:$0xff] }
  0x47   :  { %374 = vmatpush1.msra.mxu1 %v287_v61  ;;  %v331_v18 = vld [vmem:[%s11063_s4 + $0x180] sm:$0xff]  ;;  %v330_v19 = vld [vmem:[%s11063_s4 + $0x178] sm:$0xff]  ;;  %v329_v20 = vld [vmem:[%s11063_s4 + $0x170] sm:$0xff] }
  0x48   :  { %375 = vmatprep.subr.mxu1 %v286_v62  ;;  %v328_v21 = vld [vmem:[%s11063_s4 + $0x168] sm:$0xff]  ;;  %v327_v22 = vld [vmem:[%s11063_s4 + $0x160] sm:$0xff]  ;;  %v326_v23 = vld [vmem:[%s11063_s4 + $0x158] sm:$0xff] }
  0x49   :  { %376 = vmatpush1.msra.mxu1 %v285_v63  ;;  %v325_v24 = vld [vmem:[%s11063_s4 + $0x150] sm:$0xff]  ;;  %v324_v25 = vld [vmem:[%s11063_s4 + $0x148] sm:$0xff]  ;;  %v323_v26 = vld [vmem:[%s11063_s4 + $0x140] sm:$0xff] }
  0x4a   :  { %377 = vmatprep.subr.mxu1 %v284_v0  ;;  %v322_v27 = vld [vmem:[%s11063_s4 + $0x138] sm:$0xff]  ;;  %v321_v28 = vld [vmem:[%s11063_s4 + $0x130] sm:$0xff]  ;;  %v320_v29 = vld [vmem:[%s11063_s4 + $0x128] sm:$0xff] }
  0x4b   :  { %378 = vmatpush1.msra.mxu1 %v283_v1  ;;  %v319_v30 = vld [vmem:[%s11063_s4 + $0x120] sm:$0xff]  ;;  %v318_v31 = vld [vmem:[%s11063_s4 + $0x118] sm:$0xff]  ;;  %v317_v32 = vld [vmem:[%s11063_s4 + $0x110] sm:$0xff] }
  0x4c   :  { %379 = vmatprep.subr.mxu1 %v346_v2  ;;  %v316_v33 = vld [vmem:[%s11063_s4 + $0x108] sm:$0xff]  ;;  %v315_v34 = vld [vmem:[%s11063_s4 + $0x100] sm:$0xff]  ;;  %v3630_v35 = vld [vmem:[%s11063_s4 + $0x2f8] sm:$0xff] }
  0x4d   :  { %380 = vmatpush2.msra.mxu1 %v345_v3  ;;  %v3629_v36 = vld [vmem:[%s11063_s4 + $0x2f0] sm:$0xff]  ;;  %v3628_v37 = vld [vmem:[%s11063_s4 + $0x2e8] sm:$0xff]  ;;  %490 = vmatprep.subr.mxu0 %v3630_v35  ;;  %v3627_v38 = vld [vmem:[%s11063_s4 + $0x2e0] sm:$0xff] }
  0x4e   :  { %381 = vmatprep.subr.mxu1 %v344_v5  ;;  %491 = vmatpush1.msra.mxu0 %v3629_v36  ;;  %v3626_v39 = vld [vmem:[%s11063_s4 + $0x2d8] sm:$0xff]  ;;  %v3625_v40 = vld [vmem:[%s11063_s4 + $0x2d0] sm:$0xff]  ;;  %v3624_v41 = vld [vmem:[%s11063_s4 + $0x2c8] sm:$0xff] }
  0x4f   :  { %382 = vmatpush2.msra.mxu1 %v343_v6  ;;  %492 = vmatprep.subr.mxu0 %v3628_v37  ;;  %v3623_v42 = vld [vmem:[%s11063_s4 + $0x2c0] sm:$0xff]  ;;  %v3622_v43 = vld [vmem:[%s11063_s4 + $0x2b8] sm:$0xff]  ;;  %v3621_v44 = vld [vmem:[%s11063_s4 + $0x2b0] sm:$0xff] }
  0x50   :  { %383 = vmatprep.subr.mxu1 %v342_v7  ;;  %493 = vmatpush1.msra.mxu0 %v3627_v38  ;;  %v3620_v45 = vld [vmem:[%s11063_s4 + $0x2a8] sm:$0xff]  ;;  %v3619_v46 = vld [vmem:[%s11063_s4 + $0x2a0] sm:$0xff]  ;;  %v3618_v47 = vld [vmem:[%s11063_s4 + $0x298] sm:$0xff] }
  0x51   :  { %384 = vmatpush2.msra.mxu1 %v341_v8  ;;  %494 = vmatprep.subr.mxu0 %v3626_v39  ;;  %v3617_v48 = vld [vmem:[%s11063_s4 + $0x290] sm:$0xff]  ;;  %v3616_v49 = vld [vmem:[%s11063_s4 + $0x288] sm:$0xff]  ;;  %v3615_v50 = vld [vmem:[%s11063_s4 + $0x280] sm:$0xff] }
  0x52   :  { %385 = vmatprep.subr.mxu1 %v340_v9  ;;  %495 = vmatpush1.msra.mxu0 %v3625_v40  ;;  %v3614_v51 = vld [vmem:[%s11063_s4 + $0x278] sm:$0xff]  ;;  %v3613_v52 = vld [vmem:[%s11063_s4 + $0x270] sm:$0xff]  ;;  %v3612_v53 = vld [vmem:[%s11063_s4 + $0x268] sm:$0xff] }
  0x53   :  { %386 = vmatpush2.msra.mxu1 %v339_v10  ;;  %496 = vmatprep.subr.mxu0 %v3624_v41  ;;  %v3611_v55 = vld [vmem:[%s11063_s4 + $0x260] sm:$0xff]  ;;  %v3610_v56 = vld [vmem:[%s11063_s4 + $0x258] sm:$0xff]  ;;  %v3609_v57 = vld [vmem:[%s11063_s4 + $0x250] sm:$0xff] }
  0x54   :  { %387 = vmatprep.subr.mxu1 %v338_v11  ;;  %497 = vmatpush1.msra.mxu0 %v3623_v42  ;;  %v3608_v58 = vld [vmem:[%s11063_s4 + $0x248] sm:$0xff]  ;;  %v3607_v59 = vld [vmem:[%s11063_s4 + $0x240] sm:$0xff]  ;;  %v3606_v60 = vld [vmem:[%s11063_s4 + $0x238] sm:$0xff] }
  0x55   :  { %388 = vmatpush2.msra.mxu1 %v337_v12  ;;  %498 = vmatprep.subr.mxu0 %v3622_v43  ;;  %v3605_v61 = vld [vmem:[%s11063_s4 + $0x230] sm:$0xff]  ;;  %v3604_v62 = vld [vmem:[%s11063_s4 + $0x228] sm:$0xff]  ;;  %v3603_v63 = vld [vmem:[%s11063_s4 + $0x220] sm:$0xff] }
  0x56   :  { %389 = vmatprep.subr.mxu1 %v336_v13  ;;  %499 = vmatpush1.msra.mxu0 %v3621_v44  ;;  %v3602_v0 = vld [vmem:[%s11063_s4 + $0x218] sm:$0xff]  ;;  %v3601_v1 = vld [vmem:[%s11063_s4 + $0x210] sm:$0xff]  ;;  %v3600_v2 = vld [vmem:[%s11063_s4 + $0x208] sm:$0xff] }
  0x57   :  { %390 = vmatpush2.msra.mxu1 %v335_v14  ;;  %500 = vmatprep.subr.mxu0 %v3620_v45  ;;  %v3599_v3 = vld [vmem:[%s11063_s4 + $0x200] sm:$0xff]  ;;  %v3662_v5 = vld [vmem:[%s11063_s4 + $0x3f8] sm:$0xff]  ;;  %v3661_v6 = vld [vmem:[%s11063_s4 + $0x3f0] sm:$0xff] }
  0x58   :  { %391 = vmatprep.subr.mxu1 %v334_v15  ;;  %501 = vmatpush1.msra.mxu0 %v3619_v46  ;;  %v3660_v7 = vld [vmem:[%s11063_s4 + $0x3e8] sm:$0xff]  ;;  %v3659_v8 = vld [vmem:[%s11063_s4 + $0x3e0] sm:$0xff]  ;;  %v3658_v9 = vld [vmem:[%s11063_s4 + $0x3d8] sm:$0xff] }
  0x59   :  { %392 = vmatpush2.msra.mxu1 %v333_v16  ;;  %502 = vmatprep.subr.mxu0 %v3618_v47  ;;  %v3657_v10 = vld [vmem:[%s11063_s4 + $0x3d0] sm:$0xff]  ;;  %v3656_v11 = vld [vmem:[%s11063_s4 + $0x3c8] sm:$0xff]  ;;  %v3655_v12 = vld [vmem:[%s11063_s4 + $0x3c0] sm:$0xff] }
  0x5a   :  { %393 = vmatprep.subr.mxu1 %v332_v17  ;;  %503 = vmatpush1.msra.mxu0 %v3617_v48  ;;  %v3654_v13 = vld [vmem:[%s11063_s4 + $0x3b8] sm:$0xff]  ;;  %v3653_v14 = vld [vmem:[%s11063_s4 + $0x3b0] sm:$0xff]  ;;  %v3652_v15 = vld [vmem:[%s11063_s4 + $0x3a8] sm:$0xff] }
  0x5b   :  { %394 = vmatpush2.msra.mxu1 %v331_v18  ;;  %504 = vmatprep.subr.mxu0 %v3616_v49  ;;  %v3651_v16 = vld [vmem:[%s11063_s4 + $0x3a0] sm:$0xff]  ;;  %v3650_v17 = vld [vmem:[%s11063_s4 + $0x398] sm:$0xff]  ;;  %v3649_v18 = vld [vmem:[%s11063_s4 + $0x390] sm:$0xff] }
  0x5c   :  { %395 = vmatprep.subr.mxu1 %v330_v19  ;;  %505 = vmatpush1.msra.mxu0 %v3615_v50  ;;  %v3648_v19 = vld [vmem:[%s11063_s4 + $0x388] sm:$0xff]  ;;  %v3639_v36 = vld [vmem:[%s11063_s4 + $0x340] sm:$0xff]  ;;  %v3638_v37 = vld [vmem:[%s11063_s4 + $0x338] sm:$0xff] }
  0x5d   :  { %396 = vmatpush2.msra.mxu1 %v329_v20  ;;  %506 = vmatprep.subr.mxu0 %v3614_v51  ;;  %v3647_v20 = vld [vmem:[%s11063_s4 + $0x380] sm:$0xff]  ;;  %v3640_v35 = vld [vmem:[%s11063_s4 + $0x348] sm:$0xff]  ;;  %v3637_v38 = vld [vmem:[%s11063_s4 + $0x330] sm:$0xff] }
  0x5e   :  { %397 = vmatprep.subr.mxu1 %v328_v21  ;;  %507 = vmatpush1.msra.mxu0 %v3613_v52  ;;  %v3646_v21 = vld [vmem:[%s11063_s4 + $0x378] sm:$0xff]  ;;  %v3636_v39 = vld [vmem:[%s11063_s4 + $0x328] sm:$0xff]  ;;  %v3635_v40 = vld [vmem:[%s11063_s4 + $0x320] sm:$0xff] }
  0x5f   :  { %398 = vmatpush2.msra.mxu1 %v327_v22  ;;  %508 = vmatprep.subr.mxu0 %v3612_v53  ;;  %v3645_v22 = vld [vmem:[%s11063_s4 + $0x370] sm:$0xff]  ;;  %v3634_v41 = vld [vmem:[%s11063_s4 + $0x318] sm:$0xff]  ;;  %v3632_v43 = vld [vmem:[%s11063_s4 + $0x308] sm:$0xff] }
  0x60   :  { %399 = vmatprep.subr.mxu1 %v326_v23  ;;  %509 = vmatpush1.msra.mxu0 %v3611_v55  ;;  %v3644_v23 = vld [vmem:[%s11063_s4 + $0x368] sm:$0xff]  ;;  %v3633_v42 = vld [vmem:[%s11063_s4 + $0x310] sm:$0xff]  ;;  %v3631_v44 = vld [vmem:[%s11063_s4 + $0x300] sm:$0xff] }
  0x61   :  { %400 = vmatpush2.msra.mxu1 %v325_v24  ;;  %510 = vmatprep.subr.mxu0 %v3610_v56  ;;  %v3643_v24 = vld [vmem:[%s11063_s4 + $0x360] sm:$0xff]  ;;  %v3694_v45 = vld [vmem:[%s11063_s4 + $0x4f8] sm:$0xff]  ;;  %v3693_v46 = vld [vmem:[%s11063_s4 + $0x4f0] sm:$0xff] }
  0x62   :  { %401 = vmatprep.subr.mxu1 %v324_v25  ;;  %511 = vmatpush1.msra.mxu0 %v3609_v57  ;;  %v3642_v25 = vld [vmem:[%s11063_s4 + $0x358] sm:$0xff]  ;;  %v3692_v47 = vld [vmem:[%s11063_s4 + $0x4e8] sm:$0xff]  ;;  %v3691_v48 = vld [vmem:[%s11063_s4 + $0x4e0] sm:$0xff] }
  0x63   :  { %402 = vmatpush2.msra.mxu1 %v323_v26  ;;  %512 = vmatprep.subr.mxu0 %v3608_v58  ;;  %v3690_v49 = vld [vmem:[%s11063_s4 + $0x4d8] sm:$0xff]  ;;  %v3689_v50 = vld [vmem:[%s11063_s4 + $0x4d0] sm:$0xff]  ;;  %v3688_v51 = vld [vmem:[%s11063_s4 + $0x4c8] sm:$0xff] }
  0x64   :  { %403 = vmatprep.subr.mxu1 %v322_v27  ;;  %513 = vmatpush1.msra.mxu0 %v3607_v59  ;;  %v3687_v52 = vld [vmem:[%s11063_s4 + $0x4c0] sm:$0xff]  ;;  %v3686_v53 = vld [vmem:[%s11063_s4 + $0x4b8] sm:$0xff]  ;;  %v3685_v55 = vld [vmem:[%s11063_s4 + $0x4b0] sm:$0xff] }
  0x65   :  { %404 = vmatpush2.msra.mxu1 %v321_v28  ;;  %514 = vmatprep.subr.mxu0 %v3606_v60  ;;  %v3579_v28 = vld [vmem:[%s11064_s5] ss:$0 sm:$0xff]  ;;  %v3684_v56 = vld [vmem:[%s11063_s4 + $0x4a8] sm:$0xff]  ;;  %v3682_v58 = vld [vmem:[%s11063_s4 + $0x498] sm:$0xff] }
  0x66   :  { %405 = vmatprep.subr.mxu1 %v320_v29  ;;  %515 = vmatpush1.msra.mxu0 %v3605_v61  ;;  %v3683_v57 = vld [vmem:[%s11063_s4 + $0x4a0] sm:$0xff]  ;;  %v3681_v59 = vld [vmem:[%s11063_s4 + $0x490] sm:$0xff]  ;;  %v3680_v60 = vld [vmem:[%s11063_s4 + $0x488] sm:$0xff] }
  0x67   :  { %406 = vmatpush2.msra.mxu1 %v319_v30  ;;  %516 = vmatprep.subr.mxu0 %v3604_v62  ;;  %v3679_v61 = vld [vmem:[%s11063_s4 + $0x480] sm:$0xff]  ;;  %v3678_v62 = vld [vmem:[%s11063_s4 + $0x478] sm:$0xff] }
  0x68   :  { %407 = vmatprep.subr.mxu1 %v318_v31  ;;  %517 = vmatpush1.msra.mxu0 %v3603_v63  ;;  %v3677_v63 = vld [vmem:[%s11063_s4 + $0x470] sm:$0xff] }
  0x69   :  { %408 = vmatpush2.msra.mxu1 %v317_v32  ;;  %518 = vmatprep.subr.mxu0 %v3602_v0  ;;  %v3676_v0 = vld [vmem:[%s11063_s4 + $0x468] sm:$0xff] }
  0x6a   :  { %409 = vmatprep.subr.mxu1 %v316_v33  ;;  %519 = vmatpush1.msra.mxu0 %v3601_v1  ;;  %v3675_v1 = vld [vmem:[%s11063_s4 + $0x460] sm:$0xff] }
  0x6b   :  { %410 = vmatpush2.msra.mxu1 %v315_v34  ;;  %520 = vmatprep.subr.mxu0 %v3600_v2  ;;  %v3641_v34 = vld [vmem:[%s11063_s4 + $0x350] sm:$0xff]  ;;  %v3674_v2 = vld [vmem:[%s11063_s4 + $0x458] sm:$0xff] }
  0x6c   :  { %521 = vmatpush1.msra.mxu0 %v3599_v3  ;;  %633 = vmatprep.subr.mxu1 %v3694_v45  ;;  %v3673_v3 = vld [vmem:[%s11063_s4 + $0x450] sm:$0xff] }
  0x6d   :  { %522 = vmatprep.subr.mxu0 %v3662_v5  ;;  %v3672_v5 = vld [vmem:[%s11063_s4 + $0x448] sm:$0xff] }
  0x6e   :  { %523 = vmatpush2.msra.mxu0 %v3661_v6  ;;  %v3671_v6 = vld [vmem:[%s11063_s4 + $0x440] sm:$0xff] }
  0x6f   :  { %524 = vmatprep.subr.mxu0 %v3660_v7  ;;  %v3670_v7 = vld [vmem:[%s11063_s4 + $0x438] sm:$0xff] }
  0x70   :  { %525 = vmatpush2.msra.mxu0 %v3659_v8  ;;  %v3669_v8 = vld [vmem:[%s11063_s4 + $0x430] sm:$0xff] }
  0x71   :  { %526 = vmatprep.subr.mxu0 %v3658_v9  ;;  %v3668_v9 = vld [vmem:[%s11063_s4 + $0x428] sm:$0xff] }
  0x72   :  { %527 = vmatpush2.msra.mxu0 %v3657_v10  ;;  %v3667_v10 = vld [vmem:[%s11063_s4 + $0x420] sm:$0xff] }
  0x73   :  { %528 = vmatprep.subr.mxu0 %v3656_v11  ;;  %v3666_v11 = vld [vmem:[%s11063_s4 + $0x418] sm:$0xff] }
  0x74   :  { %529 = vmatpush2.msra.mxu0 %v3655_v12  ;;  %v3665_v12 = vld [vmem:[%s11063_s4 + $0x410] sm:$0xff] }
  0x75   :  { %530 = vmatprep.subr.mxu0 %v3654_v13  ;;  %v3664_v13 = vld [vmem:[%s11063_s4 + $0x408] sm:$0xff] }
  0x76   :  { %531 = vmatpush2.msra.mxu0 %v3653_v14  ;;  %v3663_v14 = vld [vmem:[%s11063_s4 + $0x400] sm:$0xff] }
  0x77   :  { %532 = vmatprep.subr.mxu0 %v3652_v15  ;;  %v3726_v15 = vld [vmem:[%s11063_s4 + $0x5f8] sm:$0xff] }
  0x78   :  { %533 = vmatpush2.msra.mxu0 %v3651_v16  ;;  %v3725_v16 = vld [vmem:[%s11063_s4 + $0x5f0] sm:$0xff] }
  0x79   :  { %534 = vmatprep.subr.mxu0 %v3650_v17  ;;  %v3724_v17 = vld [vmem:[%s11063_s4 + $0x5e8] sm:$0xff] }
  0x7a   :  { %535 = vmatpush2.msra.mxu0 %v3649_v18  ;;  %v3723_v18 = vld [vmem:[%s11063_s4 + $0x5e0] sm:$0xff] }
  0x7b   :  { %536 = vmatprep.subr.mxu0 %v3648_v19  ;;  %v3722_v19 = vld [vmem:[%s11063_s4 + $0x5d8] sm:$0xff] }
  0x7c   :  { %537 = vmatpush2.msra.mxu0 %v3647_v20  ;;  %v3721_v20 = vld [vmem:[%s11063_s4 + $0x5d0] sm:$0xff] }
  0x7d   :  { %538 = vmatprep.subr.mxu0 %v3646_v21  ;;  %v3720_v21 = vld [vmem:[%s11063_s4 + $0x5c8] sm:$0xff] }
  0x7e   :  { %539 = vmatpush2.msra.mxu0 %v3645_v22  ;;  %v3719_v22 = vld [vmem:[%s11063_s4 + $0x5c0] sm:$0xff] }
  0x7f   :  { %540 = vmatprep.subr.mxu0 %v3644_v23  ;;  %v3718_v23 = vld [vmem:[%s11063_s4 + $0x5b8] sm:$0xff] }
  0x80   :  { %541 = vmatpush2.msra.mxu0 %v3643_v24  ;;  %v3717_v24 = vld [vmem:[%s11063_s4 + $0x5b0] sm:$0xff] }
  0x81   :  { %542 = vmatprep.subr.mxu0 %v3642_v25  ;;  %v3716_v25 = vld [vmem:[%s11063_s4 + $0x5a8] sm:$0xff] }
  0x82   :  { %543 = vmatpush2.msra.mxu0 %v3641_v34  ;;  %v3709_v34 = vld [vmem:[%s11063_s4 + $0x570] sm:$0xff] }
  0x83   :  { %544 = vmatprep.subr.mxu0 %v3640_v35  ;;  %v3708_v35 = vld [vmem:[%s11063_s4 + $0x568] sm:$0xff] }
  0x84   :  { %545 = vmatpush2.msra.mxu0 %v3639_v36  ;;  %v3707_v36 = vld [vmem:[%s11063_s4 + $0x560] sm:$0xff] }
  0x85   :  { %546 = vmatprep.subr.mxu0 %v3638_v37  ;;  %v3706_v37 = vld [vmem:[%s11063_s4 + $0x558] sm:$0xff] }
  0x86   :  { %547 = vmatpush2.msra.mxu0 %v3637_v38 }
  0x87   :  { %548 = vmatprep.subr.mxu0 %v3636_v39 }
  0x88   :  { %549 = vmatpush2.msra.mxu0 %v3635_v40  ;;  %v3581_v40 = vld [vmem:[%s11064_s5 + $0x1] ss:$0 sm:$0xff] }
  0x89   :  { %550 = vmatprep.subr.mxu0 %v3634_v41 }
  0x8a   :  { %551 = vmatpush2.msra.mxu0 %v3633_v42 }
  0x8b   :  { %552 = vmatprep.subr.mxu0 %v3632_v43 }
  0x8c   :  { %553 = vmatpush2.msra.mxu0 %v3631_v44 }
 0x104   :  { %v5759_v26 = vpop.f32.mrf.mxu0 }
 0x105   :  { %v276_v27 = vmul.f32 %v5759_v26, %v5759_v26 }
 0x106   :  { %v273_v29 = vpop.f32.mrf.mxu0 }
 0x107   :  { %v277_v30 = vadd.f32 %v276_v27, %v273_v29  ;;  %v3715_v27 = vld [vmem:[%s11063_s4 + $0x5a0] sm:$0xff]  ;;  %v3713_v29 = vld [vmem:[%s11063_s4 + $0x590] sm:$0xff] }
 0x109   :  { %v5766_v31 = vadd.f32 %v3579_v28, %v277_v30  ;;  %v3714_v28 = vld [vmem:[%s11063_s4 + $0x598] sm:$0xff]  ;;  %v3712_v30 = vld [vmem:[%s11063_s4 + $0x588] sm:$0xff] }
 0x10b   :  { %vm279_vm0 = vcmp.gt.f32.partialorder %v5766_v31, 0.0  ;;  %v280_v32 = vmul.f32 0.2, %v5766_v31 }
 0x10d   :  { %v281_v33 = vsel %vm279_vm0, %v5766_v31, %v280_v32  ;;  %v3711_v32 = vld [vmem:[%s11063_s4 + $0x580] sm:$0xff]  ;;  %v1258_v31 = vld [vmem:[%s11070_s11 + $0x50] sm:$0xff] }
 0x10e   :  { %411 = vmatprep.mubr.f32.mxu1 %v281_v33  ;;  %v3710_v33 = vld [vmem:[%s11063_s4 + $0x578] sm:$0xff] }
 0x10f   :  { %412 = vmatmul.mubr.f32.vlgmr.msra.gmra.mxu1 %v5468_v54 }
 0x110   :  { %634 = vmatpush1.msra.mxu1 %v3693_v46  ;;  %v3705_v46 = vld [vmem:[%s11063_s4 + $0x550] sm:$0xff] }
 0x111   :  { %635 = vmatprep.subr.mxu1 %v3692_v47  ;;  %v3704_v47 = vld [vmem:[%s11063_s4 + $0x548] sm:$0xff] }
 0x112   :  { %636 = vmatpush1.msra.mxu1 %v3691_v48  ;;  %v3703_v48 = vld [vmem:[%s11063_s4 + $0x540] sm:$0xff] }
 0x113   :  { %637 = vmatprep.subr.mxu1 %v3690_v49  ;;  %v3702_v49 = vld [vmem:[%s11063_s4 + $0x538] sm:$0xff] }
 0x114   :  { %638 = vmatpush1.msra.mxu1 %v3689_v50  ;;  %v3701_v50 = vld [vmem:[%s11063_s4 + $0x530] sm:$0xff] }
 0x115   :  { %639 = vmatprep.subr.mxu1 %v3688_v51  ;;  %v3700_v51 = vld [vmem:[%s11063_s4 + $0x528] sm:$0xff] }
 0x116   :  { %640 = vmatpush1.msra.mxu1 %v3687_v52  ;;  %v3699_v52 = vld [vmem:[%s11063_s4 + $0x520] sm:$0xff] }
 0x117   :  { %641 = vmatprep.subr.mxu1 %v3686_v53  ;;  %v3698_v53 = vld [vmem:[%s11063_s4 + $0x518] sm:$0xff] }
 0x118   :  { %642 = vmatpush1.msra.mxu1 %v3685_v55  ;;  %v3697_v55 = vld [vmem:[%s11063_s4 + $0x510] sm:$0xff] }
 0x119   :  { %643 = vmatprep.subr.mxu1 %v3684_v56  ;;  %v3696_v56 = vld [vmem:[%s11063_s4 + $0x508] sm:$0xff] }
 0x11a   :  { %644 = vmatpush1.msra.mxu1 %v3683_v57  ;;  %v3695_v57 = vld [vmem:[%s11063_s4 + $0x500] sm:$0xff]  ;;  %s4112_s4 = sld [smem:[#allocation3 + $0x2]] }
 0x11b   :  { %645 = vmatprep.subr.mxu1 %v3682_v58  ;;  %v3758_v58 = vld [vmem:[%s11066_s7 + $0x4f8] sm:$0xff] }
 0x11c   :  { %646 = vmatpush1.msra.mxu1 %v3681_v59  ;;  %v3757_v59 = vld [vmem:[%s11066_s7 + $0x4f0] sm:$0xff]  ;;  %783 = vmatprep.subr.mxu0 %v3758_v58 }
 0x11d   :  { %647 = vmatprep.subr.mxu1 %v3680_v60  ;;  %v3756_v60 = vld [vmem:[%s11066_s7 + $0x4e8] sm:$0xff] }
 0x11e   :  { %648 = vmatpush1.msra.mxu1 %v3679_v61  ;;  %v3755_v61 = vld [vmem:[%s11066_s7 + $0x4e0] sm:$0xff] }
 0x11f   :  { %649 = vmatprep.subr.mxu1 %v3678_v62  ;;  %v3754_v62 = vld [vmem:[%s11066_s7 + $0x4d8] sm:$0xff] }
 0x120   :  { %650 = vmatpush1.msra.mxu1 %v3677_v63  ;;  %v3753_v63 = vld [vmem:[%s11066_s7 + $0x4d0] sm:$0xff] }
 0x121   :  { %651 = vmatprep.subr.mxu1 %v3676_v0  ;;  %v3752_v0 = vld [vmem:[%s11066_s7 + $0x4c8] sm:$0xff] }
 0x122   :  { %652 = vmatpush1.msra.mxu1 %v3675_v1  ;;  %v3751_v1 = vld [vmem:[%s11066_s7 + $0x4c0] sm:$0xff] }
 0x123   :  { %653 = vmatprep.subr.mxu1 %v3674_v2  ;;  %v3750_v2 = vld [vmem:[%s11066_s7 + $0x4b8] sm:$0xff] }
 0x124   :  { %654 = vmatpush1.msra.mxu1 %v3673_v3  ;;  %v3749_v3 = vld [vmem:[%s11066_s7 + $0x4b0] sm:$0xff] }
 0x125   :  { %655 = vmatprep.subr.mxu1 %v3672_v5  ;;  %v3748_v5 = vld [vmem:[%s11066_s7 + $0x4a8] sm:$0xff] }
 0x126   :  { %656 = vmatpush1.msra.mxu1 %v3671_v6  ;;  %v3747_v6 = vld [vmem:[%s11066_s7 + $0x4a0] sm:$0xff] }
 0x127   :  { %657 = vmatprep.subr.mxu1 %v3670_v7  ;;  %v3746_v7 = vld [vmem:[%s11066_s7 + $0x498] sm:$0xff] }
 0x128   :  { %658 = vmatpush1.msra.mxu1 %v3669_v8  ;;  %v3745_v8 = vld [vmem:[%s11066_s7 + $0x490] sm:$0xff] }
 0x129   :  { %659 = vmatprep.subr.mxu1 %v3668_v9  ;;  %v3744_v9 = vld [vmem:[%s11066_s7 + $0x488] sm:$0xff] }
 0x12a   :  { %660 = vmatpush1.msra.mxu1 %v3667_v10  ;;  %v3743_v10 = vld [vmem:[%s11066_s7 + $0x480] sm:$0xff] }
 0x12b   :  { %661 = vmatprep.subr.mxu1 %v3666_v11  ;;  %v3742_v11 = vld [vmem:[%s11066_s7 + $0x478] sm:$0xff] }
 0x12c   :  { %662 = vmatpush1.msra.mxu1 %v3665_v12  ;;  %v3741_v12 = vld [vmem:[%s11066_s7 + $0x470] sm:$0xff] }
 0x12d   :  { %663 = vmatprep.subr.mxu1 %v3664_v13  ;;  %v3740_v13 = vld [vmem:[%s11066_s7 + $0x468] sm:$0xff] }
 0x12e   :  { %664 = vmatpush1.msra.mxu1 %v3663_v14  ;;  %v3739_v14 = vld [vmem:[%s11066_s7 + $0x460] sm:$0xff] }
 0x12f   :  { %665 = vmatprep.subr.mxu1 %v3726_v15  ;;  %v3738_v15 = vld [vmem:[%s11066_s7 + $0x458] sm:$0xff] }
 0x130   :  { %666 = vmatpush2.msra.mxu1 %v3725_v16  ;;  %v3737_v16 = vld [vmem:[%s11066_s7 + $0x450] sm:$0xff] }
 0x131   :  { %667 = vmatprep.subr.mxu1 %v3724_v17  ;;  %v3736_v17 = vld [vmem:[%s11066_s7 + $0x448] sm:$0xff] }
 0x132   :  { %668 = vmatpush2.msra.mxu1 %v3723_v18  ;;  %v3735_v18 = vld [vmem:[%s11066_s7 + $0x440] sm:$0xff] }
 0x133   :  { %669 = vmatprep.subr.mxu1 %v3722_v19  ;;  %v3734_v19 = vld [vmem:[%s11066_s7 + $0x438] sm:$0xff] }
 0x134   :  { %670 = vmatpush2.msra.mxu1 %v3721_v20  ;;  %v3733_v20 = vld [vmem:[%s11066_s7 + $0x430] sm:$0xff] }
 0x135   :  { %671 = vmatprep.subr.mxu1 %v3720_v21  ;;  %v3732_v21 = vld [vmem:[%s11066_s7 + $0x428] sm:$0xff] }
 0x136   :  { %672 = vmatpush2.msra.mxu1 %v3719_v22  ;;  %v3731_v22 = vld [vmem:[%s11066_s7 + $0x420] sm:$0xff] }
 0x137   :  { %673 = vmatprep.subr.mxu1 %v3718_v23  ;;  %v3730_v23 = vld [vmem:[%s11066_s7 + $0x418] sm:$0xff] }
 0x138   :  { %674 = vmatpush2.msra.mxu1 %v3717_v24  ;;  %v3729_v24 = vld [vmem:[%s11066_s7 + $0x410] sm:$0xff] }
 0x139   :  { %675 = vmatprep.subr.mxu1 %v3716_v25  ;;  %v3728_v25 = vld [vmem:[%s11066_s7 + $0x408] sm:$0xff] }
 0x13a   :  { %676 = vmatpush2.msra.mxu1 %v3715_v27  ;;  %v3727_v27 = vld [vmem:[%s11066_s7 + $0x400] sm:$0xff] }
 0x13b   :  { %677 = vmatprep.subr.mxu1 %v3714_v28  ;;  %v3790_v28 = vld [vmem:[%s11066_s7 + $0x5f8] sm:$0xff] }
 0x13c   :  { %678 = vmatpush2.msra.mxu1 %v3713_v29  ;;  %v3789_v29 = vld [vmem:[%s11066_s7 + $0x5f0] sm:$0xff] }
 0x13d   :  { %679 = vmatprep.subr.mxu1 %v3712_v30  ;;  %v3788_v30 = vld [vmem:[%s11066_s7 + $0x5e8] sm:$0xff] }
 0x13e   :  { %680 = vmatpush2.msra.mxu1 %v3711_v32  ;;  %v3787_v32 = vld [vmem:[%s11066_s7 + $0x5e0] sm:$0xff] }
 0x13f   :  { %681 = vmatprep.subr.mxu1 %v3710_v33  ;;  %v3786_v33 = vld [vmem:[%s11066_s7 + $0x5d8] sm:$0xff] }
 0x140   :  { %682 = vmatpush2.msra.mxu1 %v3709_v34  ;;  %v3785_v34 = vld [vmem:[%s11066_s7 + $0x5d0] sm:$0xff] }
 0x141   :  { %683 = vmatprep.subr.mxu1 %v3708_v35  ;;  %v3784_v35 = vld [vmem:[%s11066_s7 + $0x5c8] sm:$0xff] }
 0x142   :  { %684 = vmatpush2.msra.mxu1 %v3707_v36  ;;  %v3783_v36 = vld [vmem:[%s11066_s7 + $0x5c0] sm:$0xff] }
 0x143   :  { %685 = vmatprep.subr.mxu1 %v3706_v37  ;;  %v3782_v37 = vld [vmem:[%s11066_s7 + $0x5b8] sm:$0xff] }
 0x144   :  { %686 = vmatpush2.msra.mxu1 %v3705_v46  ;;  %v3775_v46 = vld [vmem:[%s11066_s7 + $0x580] sm:$0xff] }
 0x145   :  { %687 = vmatprep.subr.mxu1 %v3704_v47  ;;  %v3774_v47 = vld [vmem:[%s11066_s7 + $0x578] sm:$0xff] }
 0x146   :  { %688 = vmatpush2.msra.mxu1 %v3703_v48  ;;  %v3773_v48 = vld [vmem:[%s11066_s7 + $0x570] sm:$0xff] }
 0x147   :  { %689 = vmatprep.subr.mxu1 %v3702_v49  ;;  %v3772_v49 = vld [vmem:[%s11066_s7 + $0x568] sm:$0xff] }
 0x148   :  { %690 = vmatpush2.msra.mxu1 %v3701_v50 }
 0x149   :  { %691 = vmatprep.subr.mxu1 %v3700_v51 }
 0x14a   :  { %692 = vmatpush2.msra.mxu1 %v3699_v52  ;;  %v3583_v52 = vld [vmem:[%s11064_s5 + $0x2] ss:$0 sm:$0xff] }
 0x14b   :  { %693 = vmatprep.subr.mxu1 %v3698_v53 }
 0x14c   :  { %694 = vmatpush2.msra.mxu1 %v3697_v55 }
 0x14d   :  { %695 = vmatprep.subr.mxu1 %v3696_v56 }
 0x14e   :  { %696 = vmatpush2.msra.mxu1 %v3695_v57 }
 0x1cf   :  { %v5966_v38 = vpop.f32.mrf.mxu1 }
 0x1d0   :  { %v418_v39 = vmul.f32 %v5966_v38, %v5966_v38 }
 0x1d1   :  { %v415_v41 = vpop.f32.mrf.mxu1 }
 0x1d2   :  { %v419_v42 = vadd.f32 %v418_v39, %v415_v41  ;;  %v3781_v39 = vld [vmem:[%s11066_s7 + $0x5b0] sm:$0xff]  ;;  %v3779_v41 = vld [vmem:[%s11066_s7 + $0x5a0] sm:$0xff] }
 0x1d4   :  { %v5973_v43 = vadd.f32 %v3581_v40, %v419_v42  ;;  %v3780_v40 = vld [vmem:[%s11066_s7 + $0x5a8] sm:$0xff]  ;;  %v3778_v42 = vld [vmem:[%s11066_s7 + $0x598] sm:$0xff] }
 0x1d6   :  { %vm421_vm1 = vcmp.gt.f32.partialorder %v5973_v43, 0.0  ;;  %v422_v44 = vmul.f32 0.2, %v5973_v43 }
 0x1d8   :  { %v423_v45 = vsel %vm421_vm1, %v5973_v43, %v422_v44  ;;  %v3777_v44 = vld [vmem:[%s11066_s7 + $0x590] sm:$0xff]  ;;  %v1154_v43 = vld [vmem:[%s11065_s6 + $0x88] sm:$0xff] }
 0x1d9   :  { %554 = vmatprep.mubr.f32.mxu0 %v423_v45  ;;  %v3776_v45 = vld [vmem:[%s11066_s7 + $0x588] sm:$0xff] }
 0x1da   :  { %555 = vmatmul.mubr.f32.vlgmr.msra.gmra.mxu0 %v5468_v54 }
 0x1db   :  { %784 = vmatpush1.msra.mxu0 %v3757_v59  ;;  %v3771_v59 = vld [vmem:[%s11066_s7 + $0x560] sm:$0xff] }
 0x1dc   :  { %785 = vmatprep.subr.mxu0 %v3756_v60  ;;  %v3770_v60 = vld [vmem:[%s11066_s7 + $0x558] sm:$0xff] }
 0x1dd   :  { %786 = vmatpush1.msra.mxu0 %v3755_v61  ;;  %v3769_v61 = vld [vmem:[%s11066_s7 + $0x550] sm:$0xff] }
 0x1de   :  { %787 = vmatprep.subr.mxu0 %v3754_v62  ;;  %v3768_v62 = vld [vmem:[%s11066_s7 + $0x548] sm:$0xff] }
 0x1df   :  { %788 = vmatpush1.msra.mxu0 %v3753_v63  ;;  %v3766_v63 = vld [vmem:[%s11066_s7 + $0x538] sm:$0xff] }
 0x1e0   :  { %789 = vmatprep.subr.mxu0 %v3752_v0  ;;  %v3765_v0 = vld [vmem:[%s11066_s7 + $0x530] sm:$0xff] }
 0x1e1   :  { %790 = vmatpush1.msra.mxu0 %v3751_v1  ;;  %v3764_v1 = vld [vmem:[%s11066_s7 + $0x528] sm:$0xff] }
 0x1e2   :  { %791 = vmatprep.subr.mxu0 %v3750_v2  ;;  %v3763_v2 = vld [vmem:[%s11066_s7 + $0x520] sm:$0xff] }
 0x1e3   :  { %792 = vmatpush1.msra.mxu0 %v3749_v3  ;;  %v3762_v3 = vld [vmem:[%s11066_s7 + $0x518] sm:$0xff] }
 0x1e4   :  { %793 = vmatprep.subr.mxu0 %v3748_v5  ;;  %v3761_v5 = vld [vmem:[%s11066_s7 + $0x510] sm:$0xff] }
 0x1e5   :  { %794 = vmatpush1.msra.mxu0 %v3747_v6  ;;  %v3760_v6 = vld [vmem:[%s11066_s7 + $0x508] sm:$0xff] }
 0x1e6   :  { %795 = vmatprep.subr.mxu0 %v3746_v7  ;;  %v3759_v7 = vld [vmem:[%s11066_s7 + $0x500] sm:$0xff] }
 0x1e7   :  { %796 = vmatpush1.msra.mxu0 %v3745_v8  ;;  %v6224_v8 = vld [vmem:[%s11067_s8] ss:$0 sm:$0xff] }
 0x1e8   :  { %797 = vmatprep.subr.mxu0 %v3744_v9  ;;  %v3822_v9 = vld [vmem:[%s11066_s7 + $0x2f8] sm:$0xff] }
 0x1e9   :  { %798 = vmatpush1.msra.mxu0 %v3743_v10  ;;  %v3821_v10 = vld [vmem:[%s11066_s7 + $0x2f0] sm:$0xff]  ;;  %923 = vmatprep.subr.mxu1 %v3822_v9  ;;  %v3832_v9 = vld [vmem:[%s11066_s7 + $0x348] sm:$0xff] }
 0x1ea   :  { %799 = vmatprep.subr.mxu0 %v3742_v11  ;;  %v6235_v11 = vld [vmem:[%s11090_s25] sm:$0xff] }
 0x1eb   :  { %800 = vmatpush1.msra.mxu0 %v3741_v12  ;;  %v709_v12 = vmul.f32 %v6235_v11, %v6224_v8 }
 0x1ec   :  { %801 = vmatprep.subr.mxu0 %v3740_v13  ;;  %v3820_v13 = vld [vmem:[%s11066_s7 + $0x2e8] sm:$0xff] }
 0x1ed   :  { %802 = vmatpush1.msra.mxu0 %v3739_v14  ;;  %v3819_v14 = vld [vmem:[%s11066_s7 + $0x2e0] sm:$0xff]  ;;  %710 = vadd.xlane.f32.xlu0 %v709_v12  ;;  %v3830_v12 = vld [vmem:[%s11066_s7 + $0x338] sm:$0xff] }
 0x1ee   :  { %803 = vmatprep.subr.mxu0 %v3738_v15  ;;  %v3818_v15 = vld [vmem:[%s11066_s7 + $0x2d8] sm:$0xff] }
 0x1ef   :  { %804 = vmatpush1.msra.mxu0 %v3737_v16  ;;  %v3817_v16 = vld [vmem:[%s11066_s7 + $0x2d0] sm:$0xff] }
 0x1f0   :  { %805 = vmatprep.subr.mxu0 %v3736_v17  ;;  %v3816_v17 = vld [vmem:[%s11066_s7 + $0x2c8] sm:$0xff] }
 0x1f1   :  { %806 = vmatpush1.msra.mxu0 %v3735_v18  ;;  %v3815_v18 = vld [vmem:[%s11066_s7 + $0x2c0] sm:$0xff] }
 0x1f2   :  { %807 = vmatprep.subr.mxu0 %v3734_v19  ;;  %v3814_v19 = vld [vmem:[%s11066_s7 + $0x2b8] sm:$0xff] }
 0x1f3   :  { %808 = vmatpush1.msra.mxu0 %v3733_v20  ;;  %v3813_v20 = vld [vmem:[%s11066_s7 + $0x2b0] sm:$0xff] }
 0x1f4   :  { %809 = vmatprep.subr.mxu0 %v3732_v21  ;;  %v3812_v21 = vld [vmem:[%s11066_s7 + $0x2a8] sm:$0xff] }
 0x1f5   :  { %810 = vmatpush1.msra.mxu0 %v3731_v22  ;;  %v3811_v22 = vld [vmem:[%s11066_s7 + $0x2a0] sm:$0xff] }
 0x1f6   :  { %811 = vmatprep.subr.mxu0 %v3730_v23  ;;  %v3810_v23 = vld [vmem:[%s11066_s7 + $0x298] sm:$0xff] }
 0x1f7   :  { %812 = vmatpush1.msra.mxu0 %v3729_v24  ;;  %v3809_v24 = vld [vmem:[%s11066_s7 + $0x290] sm:$0xff] }
 0x1f8   :  { %813 = vmatprep.subr.mxu0 %v3728_v25  ;;  %v3808_v25 = vld [vmem:[%s11066_s7 + $0x288] sm:$0xff] }
 0x1f9   :  { %814 = vmatpush1.msra.mxu0 %v3727_v27  ;;  %v3807_v27 = vld [vmem:[%s11066_s7 + $0x280] sm:$0xff] }
 0x1fa   :  { %815 = vmatprep.subr.mxu0 %v3790_v28  ;;  %v3806_v28 = vld [vmem:[%s11066_s7 + $0x278] sm:$0xff] }
 0x1fb   :  { %816 = vmatpush2.msra.mxu0 %v3789_v29  ;;  %v3805_v29 = vld [vmem:[%s11066_s7 + $0x270] sm:$0xff] }
 0x1fc   :  { %817 = vmatprep.subr.mxu0 %v3788_v30  ;;  %v3804_v30 = vld [vmem:[%s11066_s7 + $0x268] sm:$0xff] }
 0x1fd   :  { %818 = vmatpush2.msra.mxu0 %v3787_v32  ;;  %v3803_v32 = vld [vmem:[%s11066_s7 + $0x260] sm:$0xff] }
 0x1fe   :  { %819 = vmatprep.subr.mxu0 %v3786_v33  ;;  %v3802_v33 = vld [vmem:[%s11066_s7 + $0x258] sm:$0xff] }
 0x1ff   :  { %820 = vmatpush2.msra.mxu0 %v3785_v34  ;;  %v3801_v34 = vld [vmem:[%s11066_s7 + $0x250] sm:$0xff] }
 0x200   :  { %821 = vmatprep.subr.mxu0 %v3784_v35  ;;  %v3800_v35 = vld [vmem:[%s11066_s7 + $0x248] sm:$0xff] }
 0x201   :  { %822 = vmatpush2.msra.mxu0 %v3783_v36  ;;  %v3799_v36 = vld [vmem:[%s11066_s7 + $0x240] sm:$0xff] }
 0x202   :  { %823 = vmatprep.subr.mxu0 %v3782_v37  ;;  %v3798_v37 = vld [vmem:[%s11066_s7 + $0x238] sm:$0xff] }
 0x203   :  { %824 = vmatpush2.msra.mxu0 %v3781_v39  ;;  %v3797_v39 = vld [vmem:[%s11066_s7 + $0x230] sm:$0xff] }
 0x204   :  { %825 = vmatprep.subr.mxu0 %v3780_v40  ;;  %v3796_v40 = vld [vmem:[%s11066_s7 + $0x228] sm:$0xff] }
 0x205   :  { %826 = vmatpush2.msra.mxu0 %v3779_v41  ;;  %v3795_v41 = vld [vmem:[%s11066_s7 + $0x220] sm:$0xff] }
 0x206   :  { %827 = vmatprep.subr.mxu0 %v3778_v42  ;;  %v3794_v42 = vld [vmem:[%s11066_s7 + $0x218] sm:$0xff] }
 0x207   :  { %828 = vmatpush2.msra.mxu0 %v3777_v44  ;;  %v3793_v44 = vld [vmem:[%s11066_s7 + $0x210] sm:$0xff] }
 0x208   :  { %829 = vmatprep.subr.mxu0 %v3776_v45  ;;  %v3792_v45 = vld [vmem:[%s11066_s7 + $0x208] sm:$0xff] }
 0x209   :  { %830 = vmatpush2.msra.mxu0 %v3775_v46  ;;  %v3791_v46 = vld [vmem:[%s11066_s7 + $0x200] sm:$0xff] }
 0x20a   :  { %831 = vmatprep.subr.mxu0 %v3774_v47  ;;  %v3854_v47 = vld [vmem:[%s11066_s7 + $0x3f8] sm:$0xff] }
 0x20b   :  { %832 = vmatpush2.msra.mxu0 %v3773_v48  ;;  %v3853_v48 = vld [vmem:[%s11066_s7 + $0x3f0] sm:$0xff] }
 0x20c   :  { %833 = vmatprep.subr.mxu0 %v3772_v49  ;;  %v3852_v49 = vld [vmem:[%s11066_s7 + $0x3e8] sm:$0xff] }
 0x20d   :  { %834 = vmatpush2.msra.mxu0 %v3771_v59  ;;  %v3845_v59 = vld [vmem:[%s11066_s7 + $0x3b0] sm:$0xff] }
 0x20e   :  { %835 = vmatprep.subr.mxu0 %v3770_v60  ;;  %v3844_v60 = vld [vmem:[%s11066_s7 + $0x3a8] sm:$0xff] }
 0x20f   :  { %836 = vmatpush2.msra.mxu0 %v3769_v61  ;;  %v3843_v61 = vld [vmem:[%s11066_s7 + $0x3a0] sm:$0xff] }
 0x210   :  { %837 = vmatprep.subr.mxu0 %v3768_v62  ;;  %v3842_v62 = vld [vmem:[%s11066_s7 + $0x398] sm:$0xff] }
 0x29a   :  { %v6167_v50 = vpop.f32.mrf.mxu0 }
 0x29b   :  { %v561_v51 = vmul.f32 %v6167_v50, %v6167_v50 }
 0x29c   :  { %v558_v53 = vpop.f32.mrf.mxu0 }
 0x29d   :  { %v562_v55 = vadd.f32 %v561_v51, %v558_v53  ;;  %v3851_v51 = vld [vmem:[%s11066_s7 + $0x3e0] sm:$0xff]  ;;  %v3849_v53 = vld [vmem:[%s11066_s7 + $0x3d0] sm:$0xff] }
 0x29f   :  { %v6174_v56 = vadd.f32 %v3583_v52, %v562_v55  ;;  %v3850_v52 = vld [vmem:[%s11066_s7 + $0x3d8] sm:$0xff]  ;;  %v3848_v55 = vld [vmem:[%s11066_s7 + $0x3c8] sm:$0xff] }
 0x2a1   :  { %vm564_vm2 = vcmp.gt.f32.partialorder %v6174_v56, 0.0  ;;  %v565_v57 = vmul.f32 0.2, %v6174_v56 }
 0x2a3   :  { %v566_v58 = vsel %vm564_vm2, %v6174_v56, %v565_v57  ;;  %v3847_v57 = vld [vmem:[%s11066_s7 + $0x3c0] sm:$0xff] }
 0x2a4   :  { %697 = vmatprep.mubr.f32.mxu1 %v566_v58  ;;  %v3846_v58 = vld [vmem:[%s11066_s7 + $0x3b8] sm:$0xff]  ;;  %v1034_v56 = vld [vmem:[%s11066_s7 + $0x120] sm:$0xff] }
 0x2a5   :  { %698 = vmatmul.mubr.f32.vlgmr.msra.gmra.mxu1 %v5468_v54  ;;  %v3767_v54 = vld [vmem:[%s11066_s7 + $0x540] sm:$0xff] }
 0x2a6   :  { %838 = vmatpush2.msra.mxu0 %v3767_v54  ;;  %924 = vmatpush1.msra.mxu1 %v3821_v10  ;;  %v3841_v54 = vld [vmem:[%s11066_s7 + $0x390] sm:$0xff]  ;;  %v3831_v10 = vld [vmem:[%s11066_s7 + $0x340] sm:$0xff] }
 0x2a7   :  { %839 = vmatprep.subr.mxu0 %v3766_v63  ;;  %925 = vmatprep.subr.mxu1 %v3820_v13  ;;  %v3840_v63 = vld [vmem:[%s11066_s7 + $0x388] sm:$0xff] }
 0x2a8   :  { %840 = vmatpush2.msra.mxu0 %v3765_v0  ;;  %926 = vmatpush1.msra.mxu1 %v3819_v14  ;;  %v3839_v0 = vld [vmem:[%s11066_s7 + $0x380] sm:$0xff] }
 0x2a9   :  { %841 = vmatprep.subr.mxu0 %v3764_v1  ;;  %927 = vmatprep.subr.mxu1 %v3818_v15  ;;  %v3838_v1 = vld [vmem:[%s11066_s7 + $0x378] sm:$0xff]  ;;  %v3585_v15 = vld [vmem:[%s11064_s5 + $0x3] ss:$0 sm:$0xff] }
 0x2aa   :  { %842 = vmatpush2.msra.mxu0 %v3763_v2  ;;  %928 = vmatpush1.msra.mxu1 %v3817_v16  ;;  %v3837_v2 = vld [vmem:[%s11066_s7 + $0x370] sm:$0xff] }
 0x2ab   :  { %843 = vmatprep.subr.mxu0 %v3762_v3  ;;  %929 = vmatprep.subr.mxu1 %v3816_v17  ;;  %v3836_v3 = vld [vmem:[%s11066_s7 + $0x368] sm:$0xff] }
 0x2ac   :  { %844 = vmatpush2.msra.mxu0 %v3761_v5  ;;  %930 = vmatpush1.msra.mxu1 %v3815_v18  ;;  %v3835_v5 = vld [vmem:[%s11066_s7 + $0x360] sm:$0xff] }
 0x2ad   :  { %845 = vmatprep.subr.mxu0 %v3760_v6  ;;  %931 = vmatprep.subr.mxu1 %v3814_v19  ;;  %v3834_v6 = vld [vmem:[%s11066_s7 + $0x358] sm:$0xff]  ;;  %v3595_v19 = vld [vmem:[%s11069_s10] ss:$0 sm:$0xff]  ;;  %s11091_s10 = sld [smem:[#allocation10_spill]] }
 0x2ae   :  { %846 = vmatpush2.msra.mxu0 %v3759_v7  ;;  %932 = vmatpush1.msra.mxu1 %v3813_v20  ;;  %v3833_v7 = vld [vmem:[%s11066_s7 + $0x350] sm:$0xff]  ;;  %v5200_v20 = vmov 0.2  }
 0x2af   :  { %933 = vmatprep.subr.mxu1 %v3812_v21 }
 0x2b0   :  { %934 = vmatpush1.msra.mxu1 %v3811_v22 }
 0x2b1   :  { %935 = vmatprep.subr.mxu1 %v3810_v23 }
 0x2b2   :  { %936 = vmatpush1.msra.mxu1 %v3809_v24 }
 0x2b3   :  { %937 = vmatprep.subr.mxu1 %v3808_v25  ;;  %v3829_v25 = vld [vmem:[%s11066_s7 + $0x330] sm:$0xff] }
 0x2b4   :  { %938 = vmatpush1.msra.mxu1 %v3807_v27  ;;  %v3828_v27 = vld [vmem:[%s11066_s7 + $0x328] sm:$0xff] }
 0x2b5   :  { %939 = vmatprep.subr.mxu1 %v3806_v28  ;;  %v3827_v28 = vld [vmem:[%s11066_s7 + $0x320] sm:$0xff] }
 0x2b6   :  { %940 = vmatpush1.msra.mxu1 %v3805_v29  ;;  %v3826_v29 = vld [vmem:[%s11066_s7 + $0x318] sm:$0xff] }
 0x2b7   :  { %941 = vmatprep.subr.mxu1 %v3804_v30  ;;  %v3825_v30 = vld [vmem:[%s11066_s7 + $0x310] sm:$0xff] }
 0x2b8   :  { %942 = vmatpush1.msra.mxu1 %v3803_v32  ;;  %v3824_v32 = vld [vmem:[%s11066_s7 + $0x308] sm:$0xff] }
 0x2b9   :  { %943 = vmatprep.subr.mxu1 %v3802_v33  ;;  %v3823_v33 = vld [vmem:[%s11066_s7 + $0x300] sm:$0xff] }
 0x2ba   :  { %944 = vmatpush1.msra.mxu1 %v3801_v34  ;;  %v1029_v34 = vld [vmem:[%s11066_s7 + $0xf8] sm:$0xff] }
 0x2bb   :  { %945 = vmatprep.subr.mxu1 %v3800_v35  ;;  %v1028_v35 = vld [vmem:[%s11066_s7 + $0xf0] sm:$0xff]  ;;  %1062 = vmatprep.subr.mxu0 %v1029_v34  ;;  %v1039_v34 = vld [vmem:[%s11066_s7 + $0x148] sm:$0xff] }
 0x2bc   :  { %946 = vmatpush1.msra.mxu1 %v3799_v36  ;;  %v1027_v36 = vld [vmem:[%s11066_s7 + $0xe8] sm:$0xff] }
 0x2bd   :  { %947 = vmatprep.subr.mxu1 %v3798_v37  ;;  %v1026_v37 = vld [vmem:[%s11066_s7 + $0xe0] sm:$0xff] }
 0x2be   :  { %948 = vmatpush1.msra.mxu1 %v3797_v39  ;;  %v1025_v39 = vld [vmem:[%s11066_s7 + $0xd8] sm:$0xff] }
 0x2bf   :  { %949 = vmatprep.subr.mxu1 %v3796_v40  ;;  %v1024_v40 = vld [vmem:[%s11066_s7 + $0xd0] sm:$0xff] }
 0x2c0   :  { %950 = vmatpush1.msra.mxu1 %v3795_v41  ;;  %v1023_v41 = vld [vmem:[%s11066_s7 + $0xc8] sm:$0xff] }
 0x2c1   :  { %951 = vmatprep.subr.mxu1 %v3794_v42  ;;  %v1022_v42 = vld [vmem:[%s11066_s7 + $0xc0] sm:$0xff] }
 0x2c2   :  { %952 = vmatpush1.msra.mxu1 %v3793_v44  ;;  %v1021_v44 = vld [vmem:[%s11066_s7 + $0xb8] sm:$0xff] }
 0x2c3   :  { %953 = vmatprep.subr.mxu1 %v3792_v45  ;;  %v1020_v45 = vld [vmem:[%s11066_s7 + $0xb0] sm:$0xff] }
 0x2c4   :  { %954 = vmatpush1.msra.mxu1 %v3791_v46  ;;  %v1019_v46 = vld [vmem:[%s11066_s7 + $0xa8] sm:$0xff] }
 0x2c5   :  { %955 = vmatprep.subr.mxu1 %v3854_v47  ;;  %v1018_v47 = vld [vmem:[%s11066_s7 + $0xa0] sm:$0xff] }
 0x2c6   :  { %956 = vmatpush2.msra.mxu1 %v3853_v48  ;;  %v1017_v48 = vld [vmem:[%s11066_s7 + $0x98] sm:$0xff] }
 0x2c7   :  { %957 = vmatprep.subr.mxu1 %v3852_v49  ;;  %v1016_v49 = vld [vmem:[%s11066_s7 + $0x90] sm:$0xff] }
 0x2c8   :  { %958 = vmatpush2.msra.mxu1 %v3851_v51  ;;  %v1015_v51 = vld [vmem:[%s11066_s7 + $0x88] sm:$0xff] }
 0x2c9   :  { %959 = vmatprep.subr.mxu1 %v3850_v52  ;;  %v1014_v52 = vld [vmem:[%s11066_s7 + $0x80] sm:$0xff] }
 0x2ca   :  { %960 = vmatpush2.msra.mxu1 %v3849_v53  ;;  %v1013_v53 = vld [vmem:[%s11066_s7 + $0x78] sm:$0xff] }
 0x2cb   :  { %961 = vmatprep.subr.mxu1 %v3848_v55  ;;  %v1012_v55 = vld [vmem:[%s11066_s7 + $0x70] sm:$0xff] }
 0x2cc   :  { %962 = vmatpush2.msra.mxu1 %v3847_v57  ;;  %v1011_v57 = vld [vmem:[%s11066_s7 + $0x68] sm:$0xff] }
 0x2cd   :  { %963 = vmatprep.subr.mxu1 %v3846_v58  ;;  %v1010_v58 = vld [vmem:[%s11066_s7 + $0x60] sm:$0xff] }
 0x2ce   :  { %964 = vmatpush2.msra.mxu1 %v3845_v59  ;;  %v1009_v59 = vld [vmem:[%s11066_s7 + $0x58] sm:$0xff] }
 0x2cf   :  { %965 = vmatprep.subr.mxu1 %v3844_v60  ;;  %v1008_v60 = vld [vmem:[%s11066_s7 + $0x50] sm:$0xff] }
 0x2d0   :  { %966 = vmatpush2.msra.mxu1 %v3843_v61  ;;  %v1007_v61 = vld [vmem:[%s11066_s7 + $0x48] sm:$0xff] }
 0x2d1   :  { %967 = vmatprep.subr.mxu1 %v3842_v62  ;;  %v1006_v62 = vld [vmem:[%s11066_s7 + $0x40] sm:$0xff] }
 0x2d2   :  { %968 = vmatpush2.msra.mxu1 %v3841_v54  ;;  %v1005_v54 = vld [vmem:[%s11066_s7 + $0x38] sm:$0xff] }
 0x2d3   :  { %969 = vmatprep.subr.mxu1 %v3840_v63  ;;  %v1004_v63 = vld [vmem:[%s11066_s7 + $0x30] sm:$0xff] }
 0x2d4   :  { %970 = vmatpush2.msra.mxu1 %v3839_v0  ;;  %v1003_v0 = vld [vmem:[%s11066_s7 + $0x28] sm:$0xff] }
 0x2d5   :  { %971 = vmatprep.subr.mxu1 %v3838_v1  ;;  %v1002_v1 = vld [vmem:[%s11066_s7 + $0x20] sm:$0xff] }
 0x2d6   :  { %972 = vmatpush2.msra.mxu1 %v3837_v2  ;;  %v1001_v2 = vld [vmem:[%s11066_s7 + $0x18] sm:$0xff] }
 0x2d7   :  { %973 = vmatprep.subr.mxu1 %v3836_v3  ;;  %v1000_v3 = vld [vmem:[%s11066_s7 + $0x10] sm:$0xff] }
 0x2d8   :  { %974 = vmatpush2.msra.mxu1 %v3835_v5  ;;  %v999_v5 = vld [vmem:[%s11066_s7 + $0x8] sm:$0xff] }
 0x2d9   :  { %975 = vmatprep.subr.mxu1 %v3834_v6  ;;  %v998_v6 = vld [vmem:[%s11066_s7] sm:$0xff] }
 0x2da   :  { %976 = vmatpush2.msra.mxu1 %v3833_v7  ;;  %v1061_v7 = vld [vmem:[%s11066_s7 + $0x1f8] sm:$0xff] }
 0x2db   :  { %977 = vmatprep.subr.mxu1 %v3832_v9  ;;  %v1060_v9 = vld [vmem:[%s11066_s7 + $0x1f0] sm:$0xff] }
 0x2dc   :  { %978 = vmatpush2.msra.mxu1 %v3831_v10  ;;  %v1059_v10 = vld [vmem:[%s11066_s7 + $0x1e8] sm:$0xff] }
 0x2dd   :  { %979 = vmatprep.subr.mxu1 %v3830_v12  ;;  %v1058_v12 = vld [vmem:[%s11066_s7 + $0x1e0] sm:$0xff] }
 0x2de   :  { %980 = vmatpush2.msra.mxu1 %v3829_v25  ;;  %v1046_v25 = vld [vmem:[%s11066_s7 + $0x180] sm:$0xff] }
 0x2df   :  { %981 = vmatprep.subr.mxu1 %v3828_v27  ;;  %v1045_v27 = vld [vmem:[%s11066_s7 + $0x178] sm:$0xff] }
 0x2e0   :  { %982 = vmatpush2.msra.mxu1 %v3827_v28  ;;  %v1044_v28 = vld [vmem:[%s11066_s7 + $0x170] sm:$0xff] }
 0x2e1   :  { %983 = vmatprep.subr.mxu1 %v3826_v29  ;;  %v1043_v29 = vld [vmem:[%s11066_s7 + $0x168] sm:$0xff] }
 0x2e2   :  { %984 = vmatpush2.msra.mxu1 %v3825_v30  ;;  %v1042_v30 = vld [vmem:[%s11066_s7 + $0x160] sm:$0xff] }
 0x2e3   :  { %985 = vmatprep.subr.mxu1 %v3824_v32  ;;  %v1041_v32 = vld [vmem:[%s11066_s7 + $0x158] sm:$0xff] }
 0x2e4   :  { %986 = vmatpush2.msra.mxu1 %v3823_v33  ;;  %v1040_v33 = vld [vmem:[%s11066_s7 + $0x150] sm:$0xff] }
 0x365   :  { %v699_v13 = vpop.f32.mrf.mxu1 }
 0x366   :  { %v704_v14 = vmul.f32 %v699_v13, %v699_v13  ;;  %v716_v22 = vmul.f32 2.0, %v699_v13  ;;  %v1057_v13 = vld [vmem:[%s11066_s7 + $0x1d8] sm:$0xff] }
 0x367   :  { %v701_v16 = vpop.f32.mrf.mxu1 }
 0x368   :  { %v705_v17 = vadd.f32 %v704_v14, %v701_v16  ;;  %v1056_v14 = vld [vmem:[%s11066_s7 + $0x1d0] sm:$0xff]  ;;  %v1054_v16 = vld [vmem:[%s11066_s7 + $0x1c0] sm:$0xff] }
 0x36a   :  { %v706_v18 = vadd.f32 %v3585_v15, %v705_v17  ;;  %v1055_v15 = vld [vmem:[%s11066_s7 + $0x1c8] sm:$0xff]  ;;  %v1053_v17 = vld [vmem:[%s11066_s7 + $0x1b8] sm:$0xff] }
 0x36c   :  { %vm707_vm3 = vcmp.gt.f32.partialorder %v706_v18, 0.0  ;;  %v1052_v18 = vld [vmem:[%s11066_s7 + $0x1b0] sm:$0xff] }
 0x36d   :  { %v708_v21 = vsel %vm707_vm3, 1.0, %v5200_v20 }
 0x36e   :  { %v715_v23 = vmul.f32 %v3595_v19, %v708_v21  ;;  %v1051_v19 = vld [vmem:[%s11066_s7 + $0x1a8] sm:$0xff]  ;;  %v1050_v21 = vld [vmem:[%s11066_s7 + $0x1a0] sm:$0xff] }
 0x370   :  { %v717_v24 = vmul.f32 %v716_v22, %v715_v23  ;;  %847 = vmatprep.mubr.f32.mxu0 %v715_v23  ;;  %v1049_v22 = vld [vmem:[%s11066_s7 + $0x198] sm:$0xff]  ;;  %v1048_v23 = vld [vmem:[%s11066_s7 + $0x190] sm:$0xff] }
 0x372   :  { %848 = vmatmul.mubr.f32.vlgmr.msra.gmra.mxu0 %v717_v24  ;;  %v1047_v24 = vld [vmem:[%s11066_s7 + $0x188] sm:$0xff] }
 0x373   :  { %1063 = vmatpush1.msra.mxu0 %v1028_v35  ;;  %v1038_v35 = vld [vmem:[%s11066_s7 + $0x140] sm:$0xff] }
 0x374   :  { %1064 = vmatprep.subr.mxu0 %v1027_v36  ;;  %v1037_v36 = vld [vmem:[%s11066_s7 + $0x138] sm:$0xff] }
 0x375   :  { %1065 = vmatpush1.msra.mxu0 %v1026_v37 }
 0x376   :  { %1066 = vmatprep.subr.mxu0 %v1025_v39  ;;  %v567_v39 = vsel %vm564_vm2, 1.0, %v5200_v20 }
 0x377   :  { %1067 = vmatpush1.msra.mxu0 %v1024_v40 }
 0x378   :  { %1068 = vmatprep.subr.mxu0 %v1023_v41  ;;  %v856_v41 = vmul.f32 2.0, %v6167_v50  ;;  %v1033_v50 = vld [vmem:[%s11066_s7 + $0x118] sm:$0xff] }
 0x379   :  { %1069 = vmatpush1.msra.mxu0 %v1022_v42 }
 0x37a   :  { %1070 = vmatprep.subr.mxu0 %v1021_v44 }
 0x37b   :  { %1071 = vmatpush1.msra.mxu0 %v1020_v45  ;;  %v1036_v45 = vld [vmem:[%s11066_s7 + $0x130] sm:$0xff] }
 0x37c   :  { %1072 = vmatprep.subr.mxu0 %v1019_v46  ;;  %v1035_v46 = vld [vmem:[%s11066_s7 + $0x128] sm:$0xff] }
 0x37d   :  { %1073 = vmatpush1.msra.mxu0 %v1018_v47  ;;  %v1032_v47 = vld [vmem:[%s11066_s7 + $0x110] sm:$0xff] }
 0x37e   :  { %1074 = vmatprep.subr.mxu0 %v1017_v48  ;;  %v1031_v48 = vld [vmem:[%s11066_s7 + $0x108] sm:$0xff] }
 0x37f   :  { %1075 = vmatpush1.msra.mxu0 %v1016_v49  ;;  %v1030_v49 = vld [vmem:[%s11066_s7 + $0x100] sm:$0xff] }
 0x380   :  { %1076 = vmatprep.subr.mxu0 %v1015_v51  ;;  %v1168_v51 = vld [vmem:[%s11065_s6 + $0xf8] sm:$0xff] }
 0x381   :  { %1077 = vmatpush1.msra.mxu0 %v1014_v52  ;;  %v1152_v52 = vld [vmem:[%s11065_s6 + $0x78] sm:$0xff]  ;;  %4113 = vmatprep.subr.mxu1 %v1168_v51  ;;  %v1265_v51 = vld [vmem:[%s11070_s11 + $0x88] sm:$0xff] }
 0x382   :  { %1078 = vmatprep.subr.mxu0 %v1013_v53  ;;  %v1167_v53 = vld [vmem:[%s11065_s6 + $0xf0] sm:$0xff] }
 0x383   :  { %1079 = vmatpush1.msra.mxu0 %v1012_v55  ;;  %v1151_v55 = vld [vmem:[%s11065_s6 + $0x70] sm:$0xff] }
 0x384   :  { %1080 = vmatprep.subr.mxu0 %v1011_v57  ;;  %v1166_v57 = vld [vmem:[%s11065_s6 + $0xe8] sm:$0xff] }
 0x385   :  { %1081 = vmatpush1.msra.mxu0 %v1010_v58  ;;  %v1150_v58 = vld [vmem:[%s11065_s6 + $0x68] sm:$0xff] }
 0x386   :  { %1082 = vmatprep.subr.mxu0 %v1009_v59  ;;  %v1165_v59 = vld [vmem:[%s11065_s6 + $0xe0] sm:$0xff] }
 0x387   :  { %1083 = vmatpush1.msra.mxu0 %v1008_v60  ;;  %v1149_v60 = vld [vmem:[%s11065_s6 + $0x60] sm:$0xff] }
 0x388   :  { %1084 = vmatprep.subr.mxu0 %v1007_v61  ;;  %v1164_v61 = vld [vmem:[%s11065_s6 + $0xd8] sm:$0xff] }
 0x389   :  { %1085 = vmatpush1.msra.mxu0 %v1006_v62  ;;  %v1148_v62 = vld [vmem:[%s11065_s6 + $0x58] sm:$0xff] }
 0x38a   :  { %1086 = vmatprep.subr.mxu0 %v1005_v54  ;;  %v1163_v54 = vld [vmem:[%s11065_s6 + $0xd0] sm:$0xff] }
 0x38b   :  { %1087 = vmatpush1.msra.mxu0 %v1004_v63  ;;  %v1147_v63 = vld [vmem:[%s11065_s6 + $0x50] sm:$0xff] }
 0x38c   :  { %1088 = vmatprep.subr.mxu0 %v1003_v0  ;;  %v1162_v0 = vld [vmem:[%s11065_s6 + $0xc8] sm:$0xff] }
 0x38d   :  { %1089 = vmatpush1.msra.mxu0 %v1002_v1  ;;  %v1146_v1 = vld [vmem:[%s11065_s6 + $0x48] sm:$0xff] }
 0x38e   :  { %1090 = vmatprep.subr.mxu0 %v1001_v2  ;;  %v1161_v2 = vld [vmem:[%s11065_s6 + $0xc0] sm:$0xff] }
 0x38f   :  { %1091 = vmatpush1.msra.mxu0 %v1000_v3  ;;  %v1145_v3 = vld [vmem:[%s11065_s6 + $0x40] sm:$0xff] }
 0x390   :  { %1092 = vmatprep.subr.mxu0 %v999_v5  ;;  %v1160_v5 = vld [vmem:[%s11065_s6 + $0xb8] sm:$0xff] }
 0x391   :  { %1093 = vmatpush1.msra.mxu0 %v998_v6  ;;  %v1144_v6 = vld [vmem:[%s11065_s6 + $0x38] sm:$0xff] }
 0x392   :  { %1094 = vmatprep.subr.mxu0 %v1061_v7  ;;  %v1159_v7 = vld [vmem:[%s11065_s6 + $0xb0] sm:$0xff] }
 0x393   :  { %1095 = vmatpush2.msra.mxu0 %v1060_v9  ;;  %v1143_v9 = vld [vmem:[%s11065_s6 + $0x30] sm:$0xff] }
 0x394   :  { %1096 = vmatprep.subr.mxu0 %v1059_v10  ;;  %v1158_v10 = vld [vmem:[%s11065_s6 + $0xa8] sm:$0xff] }
 0x395   :  { %1097 = vmatpush2.msra.mxu0 %v1058_v12  ;;  %v1142_v12 = vld [vmem:[%s11065_s6 + $0x28] sm:$0xff] }
 0x396   :  { %1098 = vmatprep.subr.mxu0 %v1057_v13  ;;  %v1157_v13 = vld [vmem:[%s11065_s6 + $0xa0] sm:$0xff] }
 0x397   :  { %1099 = vmatpush2.msra.mxu0 %v1056_v14  ;;  %v1141_v14 = vld [vmem:[%s11065_s6 + $0x20] sm:$0xff] }
 0x398   :  { %1100 = vmatprep.subr.mxu0 %v1055_v15  ;;  %v1156_v15 = vld [vmem:[%s11065_s6 + $0x98] sm:$0xff] }
 0x399   :  { %1101 = vmatpush2.msra.mxu0 %v1054_v16  ;;  %v711_v16 = vpop.xlane.xlu0 %710 }
 0x39a   :  { %1102 = vmatprep.subr.mxu0 %v1053_v17  ;;  %v712_v17 = vmul.f32 2.0, %v711_v16  ;;  %v68_v16 = vld [vmem:[%s11091_s10] sm:$0xff] }
 0x39b   :  { %1103 = vmatpush2.msra.mxu0 %v1052_v18 }
 0x39c   :  { %1104 = vmatprep.subr.mxu0 %v1051_v19  ;;  %v713_v18 = vmul.f32 %v6224_v8, %v712_v17  ;;  %v3594_v19 = vld [vmem:[%s11068_s9] ss:$0 sm:$0xff]  ;;  %v1140_v8 = vld [vmem:[%s11065_s6 + $0x18] sm:$0xff] }
 0x39d   :  { %1105 = vmatpush2.msra.mxu0 %v1050_v21 }
 0x39e   :  { %1106 = vmatprep.subr.mxu0 %v1049_v22  ;;  %v714_v21 = vadd.f32 %v3594_v19, %v713_v18  ;;  %v1244_v19 = vsub.f32 %v6235_v11, %v68_v16  ;;  %v1403_v16 = vld [vmem:[%s11071_s12 + $0x168] sm:$0xff] }
 0x39f   :  { %1107 = vmatpush2.msra.mxu0 %v1048_v23 }
 0x3a0   :  { %1108 = vmatprep.subr.mxu0 %v1047_v24 }
 0x3a1   :  { %1109 = vmatpush2.msra.mxu0 %v1046_v25  ;;  %v424_v25 = vsel %vm421_vm1, 1.0, %v5200_v20 }
 0x3a2   :  { %1110 = vmatprep.subr.mxu0 %v1045_v27 }
 0x3a3   :  { %1111 = vmatpush2.msra.mxu0 %v1044_v28  ;;  %v996_v28 = vmul.f32 2.0, %v5966_v38  ;;  %v1139_v38 = vld [vmem:[%s11065_s6 + $0x10] sm:$0xff] }
 0x3a4   :  { %1112 = vmatprep.subr.mxu0 %v1043_v29 }
 0x3a5   :  { %1113 = vmatpush2.msra.mxu0 %v1042_v30 }
 0x3a6   :  { %1114 = vmatprep.subr.mxu0 %v1041_v32  ;;  %v1155_v32 = vld [vmem:[%s11065_s6 + $0x90] sm:$0xff] }
 0x3a7   :  { %1115 = vmatpush2.msra.mxu0 %v1040_v33  ;;  %v1138_v33 = vld [vmem:[%s11065_s6 + $0x8] sm:$0xff] }
 0x3a8   :  { %1116 = vmatprep.subr.mxu0 %v1039_v34  ;;  %v1153_v34 = vld [vmem:[%s11065_s6 + $0x80] sm:$0xff] }
 0x3a9   :  { %1117 = vmatpush2.msra.mxu0 %v1038_v35  ;;  %v1137_v35 = vld [vmem:[%s11065_s6] sm:$0xff] }
 0x3aa   :  { %1118 = vmatprep.subr.mxu0 %v1037_v36  ;;  %v1279_v36 = vld [vmem:[%s11070_s11 + $0xf8] sm:$0xff] }
 0x3ab   :  { %1119 = vmatpush2.msra.mxu0 %v1036_v45  ;;  %v1272_v45 = vld [vmem:[%s11070_s11 + $0xc0] sm:$0xff] }
 0x3ac   :  { %1120 = vmatprep.subr.mxu0 %v1035_v46  ;;  %v1271_v46 = vld [vmem:[%s11070_s11 + $0xb8] sm:$0xff] }
 0x3ad   :  { %1121 = vmatpush2.msra.mxu0 %v1034_v56  ;;  %v1270_v56 = vld [vmem:[%s11070_s11 + $0xb0] sm:$0xff] }
 0x3ae   :  { %1122 = vmatprep.subr.mxu0 %v1033_v50  ;;  %v1269_v50 = vld [vmem:[%s11070_s11 + $0xa8] sm:$0xff] }
 0x3af   :  { %1123 = vmatpush2.msra.mxu0 %v1032_v47  ;;  %v1268_v47 = vld [vmem:[%s11070_s11 + $0xa0] sm:$0xff] }
 0x3b0   :  { %1124 = vmatprep.subr.mxu0 %v1031_v48  ;;  %v1267_v48 = vld [vmem:[%s11070_s11 + $0x98] sm:$0xff] }
 0x3b1   :  { %1125 = vmatpush2.msra.mxu0 %v1030_v49  ;;  %v1266_v49 = vld [vmem:[%s11070_s11 + $0x90] sm:$0xff] }
 0x3b2   :  { %1280 = vmatprep.subr.mxu0 %v1279_v36  ;;  %v1380_v36 = vld [vmem:[%s11071_s12 + $0xb0] sm:$0xff] }
 0x432   :  { %v6603_v37 = vpop.f32.mrf.mxu0 }
 0x433   :  { %v854_v22 = vadd.f32 %v6603_v37, %v714_v21  ;;  %v1278_v37 = vld [vmem:[%s11070_s11 + $0xf0] sm:$0xff]  ;;  %v1245_v21 = vstv %s1243_s3 }
 0x434   :  { %v851_v40 = vpop.f32.mrf.mxu0 }
 0x435   :  { %v855_v42 = vmul.f32 %v851_v40, %v567_v39  ;;  %v1277_v39 = vld [vmem:[%s11070_s11 + $0xe8] sm:$0xff]  ;;  %v1276_v40 = vld [vmem:[%s11070_s11 + $0xe0] sm:$0xff] }
 0x437   :  { %v857_v44 = vmul.f32 %v856_v41, %v855_v42  ;;  %987 = vmatprep.mubr.f32.mxu1 %v855_v42  ;;  %v1275_v41 = vld [vmem:[%s11070_s11 + $0xd8] sm:$0xff]  ;;  %v1274_v42 = vld [vmem:[%s11070_s11 + $0xd0] sm:$0xff] }
 0x439   :  { %988 = vmatmul.mubr.f32.vlgmr.msra.gmra.mxu1 %v857_v44  ;;  %v1273_v44 = vld [vmem:[%s11070_s11 + $0xc8] sm:$0xff] }
 0x43a   :  { %4114 = vmatpush3.msra.mxu1 %v1152_v52  ;;  %v1264_v52 = vld [vmem:[%s11070_s11 + $0x80] sm:$0xff] }
 0x43b   :  { %4115 = vmatprep.subr.mxu1 %v1167_v53  ;;  %v1263_v53 = vld [vmem:[%s11070_s11 + $0x78] sm:$0xff] }
 0x43c   :  { %4116 = vmatpush3.msra.mxu1 %v1151_v55  ;;  %v1262_v55 = vld [vmem:[%s11070_s11 + $0x70] sm:$0xff] }
 0x43d   :  { %4117 = vmatprep.subr.mxu1 %v1166_v57  ;;  %v1261_v57 = vld [vmem:[%s11070_s11 + $0x68] sm:$0xff] }
 0x43e   :  { %4118 = vmatpush3.msra.mxu1 %v1150_v58 }
 0x43f   :  { %4119 = vmatprep.subr.mxu1 %v1165_v59 }
 0x440   :  { %4120 = vmatpush3.msra.mxu1 %v1149_v60  ;;  %v282_v60 = vsel %vm279_vm0, 1.0, %v5200_v20 }
 0x441   :  { %4121 = vmatprep.subr.mxu1 %v1164_v61 }
 0x442   :  { %4122 = vmatpush3.msra.mxu1 %v1148_v62  ;;  %v1135_v62 = vmul.f32 2.0, %v5759_v26  ;;  %v1257_v26 = vld [vmem:[%s11070_s11 + $0x48] sm:$0xff] }
 0x443   :  { %4123 = vmatprep.subr.mxu1 %v1163_v54 }
 0x444   :  { %4124 = vmatpush3.msra.mxu1 %v1147_v63 }
 0x445   :  { %4125 = vmatprep.subr.mxu1 %v1162_v0  ;;  %v1260_v0 = vld [vmem:[%s11070_s11 + $0x60] sm:$0xff] }
 0x446   :  { %4126 = vmatpush3.msra.mxu1 %v1146_v1  ;;  %v1259_v1 = vld [vmem:[%s11070_s11 + $0x58] sm:$0xff] }
 0x447   :  { %4127 = vmatprep.subr.mxu1 %v1161_v2  ;;  %v1256_v2 = vld [vmem:[%s11070_s11 + $0x40] sm:$0xff] }
 0x448   :  { %4128 = vmatpush3.msra.mxu1 %v1145_v3  ;;  %v1255_v3 = vld [vmem:[%s11070_s11 + $0x38] sm:$0xff] }
 0x449   :  { %4129 = vmatprep.subr.mxu1 %v1160_v5  ;;  %v1254_v5 = vld [vmem:[%s11070_s11 + $0x30] sm:$0xff] }
 0x44a   :  { %4130 = vmatpush3.msra.mxu1 %v1144_v6  ;;  %v1253_v6 = vld [vmem:[%s11070_s11 + $0x28] sm:$0xff] }
 0x44b   :  { %4131 = vmatprep.subr.mxu1 %v1159_v7  ;;  %v1252_v7 = vld [vmem:[%s11070_s11 + $0x20] sm:$0xff] }
 0x44c   :  { %4132 = vmatpush3.msra.mxu1 %v1143_v9  ;;  %v1251_v9 = vld [vmem:[%s11070_s11 + $0x18] sm:$0xff] }
 0x44d   :  { %4133 = vmatprep.subr.mxu1 %v1158_v10  ;;  %v1250_v10 = vld [vmem:[%s11070_s11 + $0x10] sm:$0xff] }
 0x44e   :  { %4134 = vmatpush3.msra.mxu1 %v1142_v12  ;;  %v1249_v12 = vld [vmem:[%s11070_s11 + $0x8] sm:$0xff] }
 0x44f   :  { %4135 = vmatprep.subr.mxu1 %v1157_v13  ;;  %v1248_v13 = vld [vmem:[%s11070_s11] sm:$0xff] }
 0x450   :  { %4136 = vmatpush3.msra.mxu1 %v1141_v14  ;;  %v1389_v14 = vld [vmem:[%s11071_s12 + $0xf8] sm:$0xff] }
 0x451   :  { %4137 = vmatprep.subr.mxu1 %v1156_v15 }
 0x452   :  { %4138 = vmatpush3.msra.mxu1 %v1140_v8  ;;  %v1387_v8 = vld [vmem:[%s11071_s12 + $0xe8] sm:$0xff] }
 0x453   :  { %4139 = vmatprep.subr.mxu1 %v1155_v32  ;;  %v1386_v32 = vld [vmem:[%s11071_s12 + $0xe0] sm:$0xff] }
 0x454   :  { %4140 = vmatpush3.msra.mxu1 %v1139_v38  ;;  %v1385_v38 = vld [vmem:[%s11071_s12 + $0xd8] sm:$0xff] }
 0x455   :  { %4141 = vmatprep.subr.mxu1 %v1154_v43  ;;  %v1384_v43 = vld [vmem:[%s11071_s12 + $0xd0] sm:$0xff] }
 0x456   :  { %4142 = vmatpush3.msra.mxu1 %v1138_v33  ;;  %v1383_v33 = vld [vmem:[%s11071_s12 + $0xc8] sm:$0xff] }
 0x457   :  { %4143 = vmatprep.subr.mxu1 %v1153_v34  ;;  %v1382_v34 = vld [vmem:[%s11071_s12 + $0xc0] sm:$0xff] }
 0x458   :  { %4144 = vmatpush3.msra.mxu1 %v1137_v35  ;;  %v1381_v35 = vld [vmem:[%s11071_s12 + $0xb8] sm:$0xff] }
 0x459   :  { %1422 = vmatprep.subr.mxu1 %v1389_v14  ;;  %v1405_v14 = vld [vmem:[%s11071_s12 + $0x178] sm:$0xff] }
 0x4f9   :  { %v989_v23 = vpop.f32.mrf.mxu1 }
 0x4fa   :  { %v994_v24 = vadd.f32 %v989_v23, %v854_v22  ;;  %v1241_v23 = vmul.f32 0.5, %v6235_v11  ;;  %v1388_v11 = vld [vmem:[%s11071_s12 + $0xf0] sm:$0xff] }
 0x4fb   :  { %v991_v27 = vpop.f32.mrf.mxu1 }
 0x4fc   :  { %v995_v29 = vmul.f32 %v991_v27, %v424_v25  ;;  %v1246_v25 = vmul.f32 %v1245_v21, %v1244_v19  ;;  %v1400_v19 = vld [vmem:[%s11071_s12 + $0x150] sm:$0xff]  ;;  %v1399_v21 = vld [vmem:[%s11071_s12 + $0x148] sm:$0xff] }
 0x4fe   :  { %v997_v30 = vmul.f32 %v996_v28, %v995_v29  ;;  %1126 = vmatprep.mubr.f32.mxu0 %v995_v29  ;;  %v3596_v28 = vld [vmem:[%s11075_s16] ss:$0 sm:$0xff] }
 0x500   :  { %1127 = vmatmul.mubr.f32.vlgmr.msra.gmra.mxu0 %v997_v30 }
 0x501   :  { %1344 = vmatprep.mubr.f32.mxu0 %v5199_v4  ;;  %1281 = vmatpush1.msra.mxu0 %v1278_v37  ;;  %v1379_v37 = vld [vmem:[%s11071_s12 + $0xa8] sm:$0xff] }
 0x502   :  { %1282 = vmatprep.subr.mxu0 %v1277_v39  ;;  %v1378_v39 = vld [vmem:[%s11071_s12 + $0xa0] sm:$0xff] }
 0x503   :  { %1283 = vmatpush1.msra.mxu0 %v1276_v40  ;;  %v1377_v40 = vld [vmem:[%s11071_s12 + $0x98] sm:$0xff] }
 0x504   :  { %1284 = vmatprep.subr.mxu0 %v1275_v41  ;;  %v1376_v41 = vld [vmem:[%s11071_s12 + $0x90] sm:$0xff] }
 0x505   :  { %1285 = vmatpush1.msra.mxu0 %v1274_v42  ;;  %v1375_v42 = vld [vmem:[%s11071_s12 + $0x88] sm:$0xff] }
 0x506   :  { %1286 = vmatprep.subr.mxu0 %v1273_v44  ;;  %v1374_v44 = vld [vmem:[%s11071_s12 + $0x80] sm:$0xff] }
 0x507   :  { %1287 = vmatpush1.msra.mxu0 %v1272_v45  ;;  %v1373_v45 = vld [vmem:[%s11071_s12 + $0x78] sm:$0xff] }
 0x508   :  { %1288 = vmatprep.subr.mxu0 %v1271_v46  ;;  %v1372_v46 = vld [vmem:[%s11071_s12 + $0x70] sm:$0xff] }
 0x509   :  { %1289 = vmatpush1.msra.mxu0 %v1270_v56  ;;  %v1371_v56 = vld [vmem:[%s11071_s12 + $0x68] sm:$0xff] }
 0x50a   :  { %1290 = vmatprep.subr.mxu0 %v1269_v50  ;;  %v1370_v50 = vld [vmem:[%s11071_s12 + $0x60] sm:$0xff] }
 0x50b   :  { %1291 = vmatpush1.msra.mxu0 %v1268_v47  ;;  %v1369_v47 = vld [vmem:[%s11071_s12 + $0x58] sm:$0xff] }
 0x50c   :  { %1292 = vmatprep.subr.mxu0 %v1267_v48  ;;  %v1368_v48 = vld [vmem:[%s11071_s12 + $0x50] sm:$0xff] }
 0x50d   :  { %1293 = vmatpush1.msra.mxu0 %v1266_v49  ;;  %v1367_v49 = vld [vmem:[%s11071_s12 + $0x48] sm:$0xff] }
 0x50e   :  { %1294 = vmatprep.subr.mxu0 %v1265_v51  ;;  %v1366_v51 = vld [vmem:[%s11071_s12 + $0x40] sm:$0xff] }
 0x50f   :  { %1295 = vmatpush1.msra.mxu0 %v1264_v52  ;;  %v1365_v52 = vld [vmem:[%s11071_s12 + $0x38] sm:$0xff] }
 0x510   :  { %1296 = vmatprep.subr.mxu0 %v1263_v53  ;;  %v1364_v53 = vld [vmem:[%s11071_s12 + $0x30] sm:$0xff] }
 0x511   :  { %1297 = vmatpush1.msra.mxu0 %v1262_v55  ;;  %v1363_v55 = vld [vmem:[%s11071_s12 + $0x28] sm:$0xff] }
 0x512   :  { %1298 = vmatprep.subr.mxu0 %v1261_v57  ;;  %v1362_v57 = vld [vmem:[%s11071_s12 + $0x20] sm:$0xff] }
 0x513   :  { %1299 = vmatpush1.msra.mxu0 %v1260_v0  ;;  %v1418_v0 = vld [vmem:[%s11071_s12 + $0x1e0] sm:$0xff] }
 0x514   :  { %1300 = vmatprep.subr.mxu0 %v1259_v1  ;;  %v1417_v1 = vld [vmem:[%s11071_s12 + $0x1d8] sm:$0xff] }
 0x515   :  { %1301 = vmatpush1.msra.mxu0 %v1258_v31  ;;  %v1416_v31 = vld [vmem:[%s11071_s12 + $0x1d0] sm:$0xff] }
 0x516   :  { %1302 = vmatprep.subr.mxu0 %v1257_v26  ;;  %v1415_v26 = vld [vmem:[%s11071_s12 + $0x1c8] sm:$0xff] }
 0x517   :  { %1303 = vmatpush1.msra.mxu0 %v1256_v2  ;;  %v1414_v2 = vld [vmem:[%s11071_s12 + $0x1c0] sm:$0xff] }
 0x518   :  { %1304 = vmatprep.subr.mxu0 %v1255_v3  ;;  %v1413_v3 = vld [vmem:[%s11071_s12 + $0x1b8] sm:$0xff] }
 0x519   :  { %1305 = vmatpush1.msra.mxu0 %v1254_v5  ;;  %v1412_v5 = vld [vmem:[%s11071_s12 + $0x1b0] sm:$0xff] }
 0x51a   :  { %1306 = vmatprep.subr.mxu0 %v1253_v6  ;;  %v1411_v6 = vld [vmem:[%s11071_s12 + $0x1a8] sm:$0xff] }
 0x51b   :  { %1307 = vmatpush1.msra.mxu0 %v1252_v7  ;;  %v1410_v7 = vld [vmem:[%s11071_s12 + $0x1a0] sm:$0xff] }
 0x51c   :  { %1308 = vmatprep.subr.mxu0 %v1251_v9  ;;  %v1409_v9 = vld [vmem:[%s11071_s12 + $0x198] sm:$0xff] }
 0x51d   :  { %1309 = vmatpush1.msra.mxu0 %v1250_v10  ;;  %v1408_v10 = vld [vmem:[%s11071_s12 + $0x190] sm:$0xff] }
 0x51e   :  { %1310 = vmatprep.subr.mxu0 %v1249_v12  ;;  %v1407_v12 = vld [vmem:[%s11071_s12 + $0x188] sm:$0xff] }
 0x51f   :  { %1311 = vmatpush1.msra.mxu0 %v1248_v13  ;;  %v1406_v13 = vld [vmem:[%s11071_s12 + $0x180] sm:$0xff] }
 0x5c0   :  { %v1128_v58 = vpop.f32.mrf.mxu0 }
 0x5c1   :  { %v1133_v59 = vadd.f32 %v1128_v58, %v994_v24  ;;  %v1361_v58 = vld [vmem:[%s11071_s12 + $0x18] sm:$0xff] }
 0x5c2   :  { %v1130_v61 = vpop.f32.mrf.mxu0 }
 0x5c3   :  { %v1134_v54 = vmul.f32 %v1130_v61, %v282_v60  ;;  %v1359_v60 = vld [vmem:[%s11071_s12 + $0x8] sm:$0xff]  ;;  %v1358_v61 = vld [vmem:[%s11071_s12] sm:$0xff] }
 0x5c5   :  { %v1136_v63 = vmul.f32 %v1135_v62, %v1134_v54  ;;  %1233 = vmatprep.mubr.f32.mxu1 %v1134_v54  ;;  %v1421_v62 = vld [vmem:[%s11071_s12 + $0x1f8] sm:$0xff]  ;;  %v1420_v54 = vld [vmem:[%s11071_s12 + $0x1f0] sm:$0xff] }
 0x5c7   :  { %1234 = vmatmul.mubr.f32.vlgmr.msra.gmra.mxu1 %v1136_v63  ;;  %v1419_v63 = vld [vmem:[%s11071_s12 + $0x1e8] sm:$0xff] }
 0x5c8   :  { %1423 = vmatpush1.msra.mxu1 %v1388_v11  ;;  %v1392_v11 = vld [vmem:[%s11071_s12 + $0x110] sm:$0xff] }
 0x5c9   :  { %1424 = vmatprep.subr.mxu1 %v1387_v8  ;;  %v1391_v8 = vld [vmem:[%s11071_s12 + $0x108] sm:$0xff] }
 0x5ca   :  { %1425 = vmatpush1.msra.mxu1 %v1386_v32  ;;  %v1390_v32 = vld [vmem:[%s11071_s12 + $0x100] sm:$0xff] }
 0x5cb   :  { %1426 = vmatprep.subr.mxu1 %v1385_v38  ;;  %v3886_v38 = vld [vmem:[%s11071_s12 + $0x2f8] sm:$0xff] }
 0x5cc   :  { %1427 = vmatpush1.msra.mxu1 %v1384_v43  ;;  %v3885_v43 = vld [vmem:[%s11071_s12 + $0x2f0] sm:$0xff]  ;;  %1565 = vmatprep.subr.mxu0 %v3886_v38 }
 0x5cd   :  { %1428 = vmatprep.subr.mxu1 %v1383_v33  ;;  %v3884_v33 = vld [vmem:[%s11071_s12 + $0x2e8] sm:$0xff] }
 0x5ce   :  { %1429 = vmatpush1.msra.mxu1 %v1382_v34  ;;  %v3883_v34 = vld [vmem:[%s11071_s12 + $0x2e0] sm:$0xff] }
 0x5cf   :  { %1430 = vmatprep.subr.mxu1 %v1381_v35  ;;  %v3882_v35 = vld [vmem:[%s11071_s12 + $0x2d8] sm:$0xff] }
 0x5d0   :  { %1431 = vmatpush1.msra.mxu1 %v1380_v36  ;;  %v3881_v36 = vld [vmem:[%s11071_s12 + $0x2d0] sm:$0xff] }
 0x5d1   :  { %1432 = vmatprep.subr.mxu1 %v1379_v37  ;;  %v3880_v37 = vld [vmem:[%s11071_s12 + $0x2c8] sm:$0xff] }
 0x5d2   :  { %1433 = vmatpush1.msra.mxu1 %v1378_v39  ;;  %v3879_v39 = vld [vmem:[%s11071_s12 + $0x2c0] sm:$0xff] }
 0x5d3   :  { %1434 = vmatprep.subr.mxu1 %v1377_v40  ;;  %v3878_v40 = vld [vmem:[%s11071_s12 + $0x2b8] sm:$0xff] }
 0x5d4   :  { %1435 = vmatpush1.msra.mxu1 %v1376_v41  ;;  %v3877_v41 = vld [vmem:[%s11071_s12 + $0x2b0] sm:$0xff] }
 0x5d5   :  { %1436 = vmatprep.subr.mxu1 %v1375_v42  ;;  %v3876_v42 = vld [vmem:[%s11071_s12 + $0x2a8] sm:$0xff] }
 0x5d6   :  { %1437 = vmatpush1.msra.mxu1 %v1374_v44  ;;  %v3875_v44 = vld [vmem:[%s11071_s12 + $0x2a0] sm:$0xff] }
 0x5d7   :  { %1438 = vmatprep.subr.mxu1 %v1373_v45  ;;  %v3874_v45 = vld [vmem:[%s11071_s12 + $0x298] sm:$0xff] }
 0x5d8   :  { %1439 = vmatpush1.msra.mxu1 %v1372_v46  ;;  %v3873_v46 = vld [vmem:[%s11071_s12 + $0x290] sm:$0xff] }
 0x5d9   :  { %1440 = vmatprep.subr.mxu1 %v1371_v56  ;;  %v3872_v56 = vld [vmem:[%s11071_s12 + $0x288] sm:$0xff] }
 0x5da   :  { %1441 = vmatpush1.msra.mxu1 %v1370_v50  ;;  %v3871_v50 = vld [vmem:[%s11071_s12 + $0x280] sm:$0xff] }
 0x5db   :  { %1442 = vmatprep.subr.mxu1 %v1369_v47  ;;  %v3870_v47 = vld [vmem:[%s11071_s12 + $0x278] sm:$0xff] }
 0x5dc   :  { %1443 = vmatpush1.msra.mxu1 %v1368_v48  ;;  %v3869_v48 = vld [vmem:[%s11071_s12 + $0x270] sm:$0xff] }
 0x5dd   :  { %1444 = vmatprep.subr.mxu1 %v1367_v49  ;;  %v3868_v49 = vld [vmem:[%s11071_s12 + $0x268] sm:$0xff] }
 0x5de   :  { %1445 = vmatpush1.msra.mxu1 %v1366_v51  ;;  %v3867_v51 = vld [vmem:[%s11071_s12 + $0x260] sm:$0xff] }
 0x5df   :  { %1446 = vmatprep.subr.mxu1 %v1365_v52  ;;  %v3866_v52 = vld [vmem:[%s11071_s12 + $0x258] sm:$0xff] }
 0x5e0   :  { %1447 = vmatpush1.msra.mxu1 %v1364_v53  ;;  %v3865_v53 = vld [vmem:[%s11071_s12 + $0x250] sm:$0xff] }
 0x5e1   :  { %1448 = vmatprep.subr.mxu1 %v1363_v55  ;;  %v3864_v55 = vld [vmem:[%s11071_s12 + $0x248] sm:$0xff] }
 0x5e2   :  { %1449 = vmatpush1.msra.mxu1 %v1362_v57  ;;  %v3863_v57 = vld [vmem:[%s11071_s12 + $0x240] sm:$0xff] }
 0x5e3   :  { %1450 = vmatprep.subr.mxu1 %v1361_v58  ;;  %v3862_v58 = vld [vmem:[%s11071_s12 + $0x238] sm:$0xff] }
 0x687   :  { %v4145_v15 = vpop.f32.mrf.mxu1 }
 0x689   :  { %v4146_v17 = vpop.f32.mrf.mxu1 }
 0x68a   :  { %v4147_v18 = vadd.f32 %v4146_v17, %v4145_v15  ;;  %v1404_v15 = vld [vmem:[%s11071_s12 + $0x170] sm:$0xff]  ;;  %v1402_v17 = vld [vmem:[%s11071_s12 + $0x160] sm:$0xff] }
 0x68c   :  { %v1239_v22 = vadd.f32 %v4147_v18, %v1133_v59  ;;  %v1360_v59 = vld [vmem:[%s11071_s12 + $0x10] sm:$0xff]  ;;  %v1401_v18 = vld [vmem:[%s11071_s12 + $0x158] sm:$0xff] }
 0x68d   :  { %1451 = vmatpush1.msra.mxu1 %v1360_v59  ;;  %v3861_v59 = vld [vmem:[%s11071_s12 + $0x230] sm:$0xff] }
 0x68e   :  { %v1240_v24 = vmul.f32 0.5, %v1239_v22  ;;  %1452 = vmatprep.subr.mxu1 %v1359_v60  ;;  %v1398_v22 = vld [vmem:[%s11071_s12 + $0x140] sm:$0xff]  ;;  %v3860_v60 = vld [vmem:[%s11071_s12 + $0x228] sm:$0xff] }
 0x68f   :  { %1453 = vmatpush1.msra.mxu1 %v1358_v61  ;;  %v3859_v61 = vld [vmem:[%s11071_s12 + $0x220] sm:$0xff] }
 0x690   :  { %v6844_v27 = vadd.f32 %v1241_v23, %v1240_v24  ;;  %1454 = vmatprep.subr.mxu1 %v1421_v62  ;;  %v1397_v23 = vld [vmem:[%s11071_s12 + $0x138] sm:$0xff]  ;;  %v1396_v24 = vld [vmem:[%s11071_s12 + $0x130] sm:$0xff] }
 0x691   :  { %1455 = vmatpush2.msra.mxu1 %v1420_v54  ;;  %v3858_v62 = vld [vmem:[%s11071_s12 + $0x218] sm:$0xff]  ;;  %v3857_v54 = vld [vmem:[%s11071_s12 + $0x210] sm:$0xff] }
 0x692   :  { %v6850_v29 = vsub.f32 %v6844_v27, %v1246_v25  ;;  %1456 = vmatprep.subr.mxu1 %v1419_v63  ;;  %v1395_v25 = vld [vmem:[%s11071_s12 + $0x128] sm:$0xff] }
 0x693   :  { %1457 = vmatpush2.msra.mxu1 %v1418_v0  ;;  %v3856_v63 = vld [vmem:[%s11071_s12 + $0x208] sm:$0xff]  ;;  %v3855_v0 = vld [vmem:[%s11071_s12 + $0x200] sm:$0xff] }
 0x694   :  { %1345 = vmatmul.mubr.f32.vlgmr.msra.gmra.mxu0 %v6850_v29  ;;  %v1784_v30 = vmul.f32 %v3596_v28, %v6850_v29  ;;  %1458 = vmatprep.subr.mxu1 %v1417_v1  ;;  %v1394_v28 = vld [vmem:[%s11071_s12 + $0x120] sm:$0xff]  ;;  %v3918_v1 = vld [vmem:[%s11071_s12 + $0x3f8] sm:$0xff] }
 0x695   :  { %1459 = vmatpush2.msra.mxu1 %v1416_v31  ;;  %1566 = vmatpush1.msra.mxu0 %v3885_v43  ;;  %v3917_v31 = vld [vmem:[%s11071_s12 + $0x3f0] sm:$0xff] }
 0x696   :  { %1785 = vadd.xlane.f32.xlu0 %v1784_v30  ;;  %1460 = vmatprep.subr.mxu1 %v1415_v26  ;;  %v1393_v30 = vld [vmem:[%s11071_s12 + $0x118] sm:$0xff]  ;;  %v3916_v26 = vld [vmem:[%s11071_s12 + $0x3e8] sm:$0xff]  ;;  %v3897_v43 = vld [vmem:[%s11071_s12 + $0x350] sm:$0xff] }
 0x697   :  { %1461 = vmatpush2.msra.mxu1 %v1414_v2  ;;  %1567 = vmatprep.subr.mxu0 %v3884_v33  ;;  %v3915_v2 = vld [vmem:[%s11071_s12 + $0x3e0] sm:$0xff]  ;;  %v3896_v33 = vld [vmem:[%s11071_s12 + $0x348] sm:$0xff] }
 0x698   :  { %1462 = vmatprep.subr.mxu1 %v1413_v3  ;;  %1568 = vmatpush1.msra.mxu0 %v3883_v34  ;;  %v3914_v3 = vld [vmem:[%s11071_s12 + $0x3d8] sm:$0xff]  ;;  %v3895_v34 = vld [vmem:[%s11071_s12 + $0x340] sm:$0xff] }
 0x699   :  { %1463 = vmatpush2.msra.mxu1 %v1412_v5  ;;  %1569 = vmatprep.subr.mxu0 %v3882_v35  ;;  %v3913_v5 = vld [vmem:[%s11071_s12 + $0x3d0] sm:$0xff]  ;;  %v3894_v35 = vld [vmem:[%s11071_s12 + $0x338] sm:$0xff] }
 0x69a   :  { %1464 = vmatprep.subr.mxu1 %v1411_v6  ;;  %1570 = vmatpush1.msra.mxu0 %v3881_v36  ;;  %v3912_v6 = vld [vmem:[%s11071_s12 + $0x3c8] sm:$0xff]  ;;  %v3893_v36 = vld [vmem:[%s11071_s12 + $0x330] sm:$0xff] }
 0x69b   :  { %1465 = vmatpush2.msra.mxu1 %v1410_v7  ;;  %1571 = vmatprep.subr.mxu0 %v3880_v37  ;;  %v3911_v7 = vld [vmem:[%s11071_s12 + $0x3c0] sm:$0xff]  ;;  %v3892_v37 = vld [vmem:[%s11071_s12 + $0x328] sm:$0xff] }
 0x69c   :  { %1466 = vmatprep.subr.mxu1 %v1409_v9  ;;  %1572 = vmatpush1.msra.mxu0 %v3879_v39  ;;  %v3910_v9 = vld [vmem:[%s11071_s12 + $0x3b8] sm:$0xff]  ;;  %v3891_v39 = vld [vmem:[%s11071_s12 + $0x320] sm:$0xff] }
 0x69d   :  { %1467 = vmatpush2.msra.mxu1 %v1408_v10  ;;  %1573 = vmatprep.subr.mxu0 %v3878_v40  ;;  %v3909_v10 = vld [vmem:[%s11071_s12 + $0x3b0] sm:$0xff]  ;;  %v3890_v40 = vld [vmem:[%s11071_s12 + $0x318] sm:$0xff] }
 0x69e   :  { %1468 = vmatprep.subr.mxu1 %v1407_v12  ;;  %1574 = vmatpush1.msra.mxu0 %v3877_v41  ;;  %v3908_v12 = vld [vmem:[%s11071_s12 + $0x3a8] sm:$0xff]  ;;  %v3889_v41 = vld [vmem:[%s11071_s12 + $0x310] sm:$0xff] }
 0x69f   :  { %1469 = vmatpush2.msra.mxu1 %v1406_v13  ;;  %1575 = vmatprep.subr.mxu0 %v3876_v42  ;;  %v3907_v13 = vld [vmem:[%s11071_s12 + $0x3a0] sm:$0xff]  ;;  %v3888_v42 = vld [vmem:[%s11071_s12 + $0x308] sm:$0xff] }
 0x6a0   :  { %1470 = vmatprep.subr.mxu1 %v1405_v14  ;;  %1576 = vmatpush1.msra.mxu0 %v3875_v44  ;;  %v3906_v14 = vld [vmem:[%s11071_s12 + $0x398] sm:$0xff]  ;;  %v3887_v44 = vld [vmem:[%s11071_s12 + $0x300] sm:$0xff] }
 0x6a1   :  { %1471 = vmatpush2.msra.mxu1 %v1404_v15  ;;  %1577 = vmatprep.subr.mxu0 %v3874_v45  ;;  %v3905_v15 = vld [vmem:[%s11071_s12 + $0x390] sm:$0xff]  ;;  %v3950_v45 = vld [vmem:[%s11071_s12 + $0x4f8] sm:$0xff] }
 0x6a2   :  { %1472 = vmatprep.subr.mxu1 %v1403_v16  ;;  %1578 = vmatpush1.msra.mxu0 %v3873_v46  ;;  %v3904_v16 = vld [vmem:[%s11071_s12 + $0x388] sm:$0xff]  ;;  %v3949_v46 = vld [vmem:[%s11071_s12 + $0x4f0] sm:$0xff] }
 0x6a3   :  { %1473 = vmatpush2.msra.mxu1 %v1402_v17  ;;  %1579 = vmatprep.subr.mxu0 %v3872_v56  ;;  %v3903_v17 = vld [vmem:[%s11071_s12 + $0x380] sm:$0xff]  ;;  %v3948_v56 = vld [vmem:[%s11071_s12 + $0x4e8] sm:$0xff] }
 0x6a4   :  { %1474 = vmatprep.subr.mxu1 %v1401_v18  ;;  %1580 = vmatpush1.msra.mxu0 %v3871_v50  ;;  %v3902_v18 = vld [vmem:[%s11071_s12 + $0x378] sm:$0xff]  ;;  %v3947_v50 = vld [vmem:[%s11071_s12 + $0x4e0] sm:$0xff] }
 0x6a5   :  { %1475 = vmatpush2.msra.mxu1 %v1400_v19  ;;  %1581 = vmatprep.subr.mxu0 %v3870_v47  ;;  %v3901_v19 = vld [vmem:[%s11071_s12 + $0x370] sm:$0xff]  ;;  %v3946_v47 = vld [vmem:[%s11071_s12 + $0x4d8] sm:$0xff] }
 0x6a6   :  { %1476 = vmatprep.subr.mxu1 %v1399_v21  ;;  %1582 = vmatpush1.msra.mxu0 %v3869_v48  ;;  %v3900_v21 = vld [vmem:[%s11071_s12 + $0x368] sm:$0xff]  ;;  %v3945_v48 = vld [vmem:[%s11071_s12 + $0x4d0] sm:$0xff] }
 0x6a7   :  { %1477 = vmatpush2.msra.mxu1 %v1398_v22  ;;  %1583 = vmatprep.subr.mxu0 %v3868_v49  ;;  %v3899_v22 = vld [vmem:[%s11071_s12 + $0x360] sm:$0xff]  ;;  %v3944_v49 = vld [vmem:[%s11071_s12 + $0x4c8] sm:$0xff] }
 0x6a8   :  { %1478 = vmatprep.subr.mxu1 %v1397_v23  ;;  %1584 = vmatpush1.msra.mxu0 %v3867_v51  ;;  %v3898_v23 = vld [vmem:[%s11071_s12 + $0x358] sm:$0xff]  ;;  %v3943_v51 = vld [vmem:[%s11071_s12 + $0x4c0] sm:$0xff] }
 0x6a9   :  { %1479 = vmatpush2.msra.mxu1 %v1396_v24  ;;  %1585 = vmatprep.subr.mxu0 %v3866_v52  ;;  %v3942_v52 = vld [vmem:[%s11071_s12 + $0x4b8] sm:$0xff] }
 0x6aa   :  { %1480 = vmatprep.subr.mxu1 %v1395_v25  ;;  %1586 = vmatpush1.msra.mxu0 %v3865_v53  ;;  %v3941_v53 = vld [vmem:[%s11071_s12 + $0x4b0] sm:$0xff] }
 0x6ab   :  { %1481 = vmatpush2.msra.mxu1 %v1394_v28  ;;  %1587 = vmatprep.subr.mxu0 %v3864_v55  ;;  %v3586_v28 = vld [vmem:[%s11092_s2] ss:$0 sm:$0xff]  ;;  %v3940_v55 = vld [vmem:[%s11071_s12 + $0x4a8] sm:$0xff] }
 0x6ac   :  { %1482 = vmatprep.subr.mxu1 %v1393_v30  ;;  %1588 = vmatpush1.msra.mxu0 %v3863_v57  ;;  %v3939_v57 = vld [vmem:[%s11071_s12 + $0x4a0] sm:$0xff] }
 0x6ad   :  { %1483 = vmatpush2.msra.mxu1 %v1392_v11  ;;  %1589 = vmatprep.subr.mxu0 %v3862_v58  ;;  %v3938_v58 = vld [vmem:[%s11071_s12 + $0x498] sm:$0xff] }
 0x6ae   :  { %1484 = vmatprep.subr.mxu1 %v1391_v8  ;;  %1590 = vmatpush1.msra.mxu0 %v3861_v59  ;;  %v3937_v59 = vld [vmem:[%s11071_s12 + $0x490] sm:$0xff] }
 0x6af   :  { %1485 = vmatpush2.msra.mxu1 %v1390_v32  ;;  %1591 = vmatprep.subr.mxu0 %v3860_v60  ;;  %v3936_v60 = vld [vmem:[%s11071_s12 + $0x488] sm:$0xff] }
 0x6b0   :  { %1592 = vmatpush1.msra.mxu0 %v3859_v61  ;;  %1708 = vmatprep.subr.mxu1 %v3950_v45  ;;  %v3935_v61 = vld [vmem:[%s11071_s12 + $0x480] sm:$0xff] }
 0x6b1   :  { %1593 = vmatprep.subr.mxu0 %v3858_v62  ;;  %v3934_v62 = vld [vmem:[%s11071_s12 + $0x478] sm:$0xff] }
 0x6b2   :  { %1594 = vmatpush1.msra.mxu0 %v3857_v54  ;;  %v3933_v54 = vld [vmem:[%s11071_s12 + $0x470] sm:$0xff] }
 0x6b3   :  { %1595 = vmatprep.subr.mxu0 %v3856_v63  ;;  %v3932_v63 = vld [vmem:[%s11071_s12 + $0x468] sm:$0xff] }
 0x6b4   :  { %1596 = vmatpush1.msra.mxu0 %v3855_v0  ;;  %v3931_v0 = vld [vmem:[%s11071_s12 + $0x460] sm:$0xff] }
 0x6b5   :  { %1597 = vmatprep.subr.mxu0 %v3918_v1  ;;  %v3930_v1 = vld [vmem:[%s11071_s12 + $0x458] sm:$0xff] }
 0x6b6   :  { %1598 = vmatpush2.msra.mxu0 %v3917_v31  ;;  %v3929_v31 = vld [vmem:[%s11071_s12 + $0x450] sm:$0xff] }
 0x6b7   :  { %1599 = vmatprep.subr.mxu0 %v3916_v26  ;;  %v3928_v26 = vld [vmem:[%s11071_s12 + $0x448] sm:$0xff] }
 0x6b8   :  { %1600 = vmatpush2.msra.mxu0 %v3915_v2  ;;  %v3927_v2 = vld [vmem:[%s11071_s12 + $0x440] sm:$0xff] }
 0x6b9   :  { %1601 = vmatprep.subr.mxu0 %v3914_v3  ;;  %v3926_v3 = vld [vmem:[%s11071_s12 + $0x438] sm:$0xff] }
 0x6ba   :  { %1602 = vmatpush2.msra.mxu0 %v3913_v5  ;;  %v3925_v5 = vld [vmem:[%s11071_s12 + $0x430] sm:$0xff] }
 0x6bb   :  { %1603 = vmatprep.subr.mxu0 %v3912_v6  ;;  %v3924_v6 = vld [vmem:[%s11071_s12 + $0x428] sm:$0xff] }
 0x6bc   :  { %1604 = vmatpush2.msra.mxu0 %v3911_v7  ;;  %v3923_v7 = vld [vmem:[%s11071_s12 + $0x420] sm:$0xff] }
 0x6bd   :  { %1605 = vmatprep.subr.mxu0 %v3910_v9  ;;  %v3922_v9 = vld [vmem:[%s11071_s12 + $0x418] sm:$0xff] }
 0x6be   :  { %1606 = vmatpush2.msra.mxu0 %v3909_v10  ;;  %v3921_v10 = vld [vmem:[%s11071_s12 + $0x410] sm:$0xff] }
 0x6bf   :  { %1607 = vmatprep.subr.mxu0 %v3908_v12  ;;  %v3920_v12 = vld [vmem:[%s11071_s12 + $0x408] sm:$0xff] }
 0x6c0   :  { %1608 = vmatpush2.msra.mxu0 %v3907_v13  ;;  %v3919_v13 = vld [vmem:[%s11071_s12 + $0x400] sm:$0xff] }
 0x6c1   :  { %1609 = vmatprep.subr.mxu0 %v3906_v14  ;;  %v3982_v14 = vld [vmem:[%s11071_s12 + $0x5f8] sm:$0xff] }
 0x6c2   :  { %1610 = vmatpush2.msra.mxu0 %v3905_v15  ;;  %v3981_v15 = vld [vmem:[%s11071_s12 + $0x5f0] sm:$0xff] }
 0x6c3   :  { %1611 = vmatprep.subr.mxu0 %v3904_v16  ;;  %v3980_v16 = vld [vmem:[%s11071_s12 + $0x5e8] sm:$0xff] }
 0x6c4   :  { %1612 = vmatpush2.msra.mxu0 %v3903_v17  ;;  %v3979_v17 = vld [vmem:[%s11071_s12 + $0x5e0] sm:$0xff] }
 0x6c5   :  { %1613 = vmatprep.subr.mxu0 %v3902_v18  ;;  %v3978_v18 = vld [vmem:[%s11071_s12 + $0x5d8] sm:$0xff] }
 0x6c6   :  { %1614 = vmatpush2.msra.mxu0 %v3901_v19  ;;  %v3977_v19 = vld [vmem:[%s11071_s12 + $0x5d0] sm:$0xff] }
 0x6c7   :  { %1615 = vmatprep.subr.mxu0 %v3900_v21  ;;  %v3976_v21 = vld [vmem:[%s11071_s12 + $0x5c8] sm:$0xff] }
 0x6c8   :  { %1616 = vmatpush2.msra.mxu0 %v3899_v22  ;;  %v3975_v22 = vld [vmem:[%s11071_s12 + $0x5c0] sm:$0xff] }
 0x6c9   :  { %1617 = vmatprep.subr.mxu0 %v3898_v23  ;;  %v3974_v23 = vld [vmem:[%s11071_s12 + $0x5b8] sm:$0xff] }
 0x6ca   :  { %1618 = vmatpush2.msra.mxu0 %v3897_v43  ;;  %v3967_v43 = vld [vmem:[%s11071_s12 + $0x580] sm:$0xff] }
 0x6cb   :  { %1619 = vmatprep.subr.mxu0 %v3896_v33  ;;  %v3966_v33 = vld [vmem:[%s11071_s12 + $0x578] sm:$0xff] }
 0x6cc   :  { %1620 = vmatpush2.msra.mxu0 %v3895_v34  ;;  %v3965_v34 = vld [vmem:[%s11071_s12 + $0x570] sm:$0xff] }
 0x6cd   :  { %1621 = vmatprep.subr.mxu0 %v3894_v35  ;;  %v3964_v35 = vld [vmem:[%s11071_s12 + $0x568] sm:$0xff] }
 0x6ce   :  { %1622 = vmatpush2.msra.mxu0 %v3893_v36  ;;  %v3963_v36 = vld [vmem:[%s11071_s12 + $0x560] sm:$0xff] }
 0x6cf   :  { %1623 = vmatprep.subr.mxu0 %v3892_v37  ;;  %v3962_v37 = vld [vmem:[%s11071_s12 + $0x558] sm:$0xff] }
 0x6d0   :  { %1624 = vmatpush2.msra.mxu0 %v3891_v39 }
 0x6d1   :  { %1625 = vmatprep.subr.mxu0 %v3890_v40 }
 0x6d2   :  { %1626 = vmatpush2.msra.mxu0 %v3889_v41  ;;  %v3588_v41 = vld [vmem:[%s11092_s2 + $0x1] ss:$0 sm:$0xff] }
 0x6d3   :  { %1627 = vmatprep.subr.mxu0 %v3888_v42 }
 0x6d4   :  { %1628 = vmatpush2.msra.mxu0 %v3887_v44 }
 0x754   :  { %v7202_v24 = vpop.f32.mrf.mxu0 }
 0x755   :  { %v1351_v25 = vmul.f32 %v7202_v24, %v7202_v24 }
 0x756   :  { %v1348_v30 = vpop.f32.mrf.mxu0 }
 0x757   :  { %v1352_v11 = vadd.f32 %v1351_v25, %v1348_v30  ;;  %v3973_v25 = vld [vmem:[%s11071_s12 + $0x5b0] sm:$0xff]  ;;  %v3971_v30 = vld [vmem:[%s11071_s12 + $0x5a0] sm:$0xff] }
 0x759   :  { %v7209_v8 = vadd.f32 %v3586_v28, %v1352_v11  ;;  %v3972_v28 = vld [vmem:[%s11071_s12 + $0x5a8] sm:$0xff]  ;;  %v3970_v11 = vld [vmem:[%s11071_s12 + $0x598] sm:$0xff] }
 0x75b   :  { %vm1354_vm4 = vcmp.gt.f32.partialorder %v7209_v8, 0.0  ;;  %v1355_v32 = vmul.f32 0.2, %v7209_v8 }
 0x75d   :  { %v1356_v38 = vsel %vm1354_vm4, %v7209_v8, %v1355_v32  ;;  %v3969_v32 = vld [vmem:[%s11071_s12 + $0x590] sm:$0xff]  ;;  %v4295_v8 = vld [vmem:[%s11071_s12 + $0xe0] sm:$0xff] }
 0x75e   :  { %1486 = vmatprep.mubr.f32.mxu1 %v1356_v38  ;;  %v3968_v38 = vld [vmem:[%s11071_s12 + $0x588] sm:$0xff] }
 0x75f   :  { %1487 = vmatmul.mubr.f32.vlgmr.msra.gmra.mxu1 %v6850_v29 }
 0x760   :  { %1709 = vmatpush1.msra.mxu1 %v3949_v46 }
 0x761   :  { %1710 = vmatprep.subr.mxu1 %v3948_v56 }
 0x762   :  { %1711 = vmatpush1.msra.mxu1 %v3947_v50  ;;  %v3961_v50 = vld [vmem:[%s11071_s12 + $0x550] sm:$0xff] }
 0x763   :  { %1712 = vmatprep.subr.mxu1 %v3946_v47  ;;  %v3960_v47 = vld [vmem:[%s11071_s12 + $0x548] sm:$0xff] }
 0x764   :  { %1713 = vmatpush1.msra.mxu1 %v3945_v48  ;;  %v3959_v48 = vld [vmem:[%s11071_s12 + $0x540] sm:$0xff] }
 0x765   :  { %1714 = vmatprep.subr.mxu1 %v3944_v49  ;;  %v3958_v49 = vld [vmem:[%s11071_s12 + $0x538] sm:$0xff] }
 0x766   :  { %1715 = vmatpush1.msra.mxu1 %v3943_v51  ;;  %v3957_v51 = vld [vmem:[%s11071_s12 + $0x530] sm:$0xff] }
 0x767   :  { %1716 = vmatprep.subr.mxu1 %v3942_v52  ;;  %v3956_v52 = vld [vmem:[%s11071_s12 + $0x528] sm:$0xff] }
 0x768   :  { %1717 = vmatpush1.msra.mxu1 %v3941_v53  ;;  %v3955_v53 = vld [vmem:[%s11071_s12 + $0x520] sm:$0xff] }
 0x769   :  { %1718 = vmatprep.subr.mxu1 %v3940_v55  ;;  %v3954_v55 = vld [vmem:[%s11071_s12 + $0x518] sm:$0xff] }
 0x76a   :  { %1719 = vmatpush1.msra.mxu1 %v3939_v57  ;;  %v3953_v57 = vld [vmem:[%s11071_s12 + $0x510] sm:$0xff] }
 0x76b   :  { %1720 = vmatprep.subr.mxu1 %v3938_v58  ;;  %v3952_v58 = vld [vmem:[%s11071_s12 + $0x508] sm:$0xff] }
 0x76c   :  { %1721 = vmatpush1.msra.mxu1 %v3937_v59  ;;  %v3951_v59 = vld [vmem:[%s11071_s12 + $0x500] sm:$0xff] }
 0x76d   :  { %1722 = vmatprep.subr.mxu1 %v3936_v60  ;;  %v4014_v60 = vld [vmem:[%s11074_s15 + $0x4f8] sm:$0xff] }
 0x76e   :  { %1723 = vmatpush1.msra.mxu1 %v3935_v61  ;;  %v4013_v61 = vld [vmem:[%s11074_s15 + $0x4f0] sm:$0xff]  ;;  %1858 = vmatprep.subr.mxu0 %v4014_v60 }
 0x76f   :  { %1724 = vmatprep.subr.mxu1 %v3934_v62  ;;  %v4012_v62 = vld [vmem:[%s11074_s15 + $0x4e8] sm:$0xff] }
 0x770   :  { %1725 = vmatpush1.msra.mxu1 %v3933_v54  ;;  %v4011_v54 = vld [vmem:[%s11074_s15 + $0x4e0] sm:$0xff] }
 0x771   :  { %1726 = vmatprep.subr.mxu1 %v3932_v63  ;;  %v4010_v63 = vld [vmem:[%s11074_s15 + $0x4d8] sm:$0xff] }
 0x772   :  { %1727 = vmatpush1.msra.mxu1 %v3931_v0  ;;  %v4009_v0 = vld [vmem:[%s11074_s15 + $0x4d0] sm:$0xff] }
 0x773   :  { %1728 = vmatprep.subr.mxu1 %v3930_v1  ;;  %v4008_v1 = vld [vmem:[%s11074_s15 + $0x4c8] sm:$0xff] }
 0x774   :  { %1729 = vmatpush1.msra.mxu1 %v3929_v31  ;;  %v4007_v31 = vld [vmem:[%s11074_s15 + $0x4c0] sm:$0xff] }
 0x775   :  { %1730 = vmatprep.subr.mxu1 %v3928_v26  ;;  %v4006_v26 = vld [vmem:[%s11074_s15 + $0x4b8] sm:$0xff] }
 0x776   :  { %1731 = vmatpush1.msra.mxu1 %v3927_v2  ;;  %v4005_v2 = vld [vmem:[%s11074_s15 + $0x4b0] sm:$0xff] }
 0x777   :  { %1732 = vmatprep.subr.mxu1 %v3926_v3  ;;  %v4004_v3 = vld [vmem:[%s11074_s15 + $0x4a8] sm:$0xff] }
 0x778   :  { %1733 = vmatpush1.msra.mxu1 %v3925_v5  ;;  %v4003_v5 = vld [vmem:[%s11074_s15 + $0x4a0] sm:$0xff] }
 0x779   :  { %1734 = vmatprep.subr.mxu1 %v3924_v6  ;;  %v4002_v6 = vld [vmem:[%s11074_s15 + $0x498] sm:$0xff] }
 0x77a   :  { %1735 = vmatpush1.msra.mxu1 %v3923_v7  ;;  %v4001_v7 = vld [vmem:[%s11074_s15 + $0x490] sm:$0xff] }
 0x77b   :  { %1736 = vmatprep.subr.mxu1 %v3922_v9  ;;  %v4000_v9 = vld [vmem:[%s11074_s15 + $0x488] sm:$0xff] }
 0x77c   :  { %1737 = vmatpush1.msra.mxu1 %v3921_v10  ;;  %v3999_v10 = vld [vmem:[%s11074_s15 + $0x480] sm:$0xff] }
 0x77d   :  { %1738 = vmatprep.subr.mxu1 %v3920_v12  ;;  %v3998_v12 = vld [vmem:[%s11074_s15 + $0x478] sm:$0xff] }
 0x77e   :  { %1739 = vmatpush1.msra.mxu1 %v3919_v13  ;;  %v3997_v13 = vld [vmem:[%s11074_s15 + $0x470] sm:$0xff] }
 0x77f   :  { %1740 = vmatprep.subr.mxu1 %v3982_v14  ;;  %v3996_v14 = vld [vmem:[%s11074_s15 + $0x468] sm:$0xff] }
 0x780   :  { %1741 = vmatpush2.msra.mxu1 %v3981_v15  ;;  %v3995_v15 = vld [vmem:[%s11074_s15 + $0x460] sm:$0xff] }
 0x781   :  { %1742 = vmatprep.subr.mxu1 %v3980_v16  ;;  %v3994_v16 = vld [vmem:[%s11074_s15 + $0x458] sm:$0xff] }
 0x782   :  { %1743 = vmatpush2.msra.mxu1 %v3979_v17  ;;  %v3993_v17 = vld [vmem:[%s11074_s15 + $0x450] sm:$0xff] }
 0x783   :  { %1744 = vmatprep.subr.mxu1 %v3978_v18  ;;  %v3992_v18 = vld [vmem:[%s11074_s15 + $0x448] sm:$0xff] }
 0x784   :  { %1745 = vmatpush2.msra.mxu1 %v3977_v19  ;;  %v3991_v19 = vld [vmem:[%s11074_s15 + $0x440] sm:$0xff] }
 0x785   :  { %1746 = vmatprep.subr.mxu1 %v3976_v21  ;;  %v3990_v21 = vld [vmem:[%s11074_s15 + $0x438] sm:$0xff] }
 0x786   :  { %1747 = vmatpush2.msra.mxu1 %v3975_v22  ;;  %v3989_v22 = vld [vmem:[%s11074_s15 + $0x430] sm:$0xff] }
 0x787   :  { %1748 = vmatprep.subr.mxu1 %v3974_v23  ;;  %v3988_v23 = vld [vmem:[%s11074_s15 + $0x428] sm:$0xff] }
 0x788   :  { %1749 = vmatpush2.msra.mxu1 %v3973_v25  ;;  %v3987_v25 = vld [vmem:[%s11074_s15 + $0x420] sm:$0xff] }
 0x789   :  { %1750 = vmatprep.subr.mxu1 %v3972_v28  ;;  %v3986_v28 = vld [vmem:[%s11074_s15 + $0x418] sm:$0xff] }
 0x78a   :  { %1751 = vmatpush2.msra.mxu1 %v3971_v30  ;;  %v3985_v30 = vld [vmem:[%s11074_s15 + $0x410] sm:$0xff] }
 0x78b   :  { %1752 = vmatprep.subr.mxu1 %v3970_v11  ;;  %v3984_v11 = vld [vmem:[%s11074_s15 + $0x408] sm:$0xff] }
 0x78c   :  { %1753 = vmatpush2.msra.mxu1 %v3969_v32  ;;  %v3983_v32 = vld [vmem:[%s11074_s15 + $0x400] sm:$0xff] }
 0x78d   :  { %1754 = vmatprep.subr.mxu1 %v3968_v38  ;;  %v4046_v38 = vld [vmem:[%s11074_s15 + $0x5f8] sm:$0xff] }
 0x78e   :  { %1755 = vmatpush2.msra.mxu1 %v3967_v43  ;;  %v4045_v43 = vld [vmem:[%s11074_s15 + $0x5f0] sm:$0xff] }
 0x78f   :  { %1756 = vmatprep.subr.mxu1 %v3966_v33  ;;  %v4044_v33 = vld [vmem:[%s11074_s15 + $0x5e8] sm:$0xff] }
 0x790   :  { %1757 = vmatpush2.msra.mxu1 %v3965_v34  ;;  %v4043_v34 = vld [vmem:[%s11074_s15 + $0x5e0] sm:$0xff] }
 0x791   :  { %1758 = vmatprep.subr.mxu1 %v3964_v35  ;;  %v4042_v35 = vld [vmem:[%s11074_s15 + $0x5d8] sm:$0xff] }
 0x792   :  { %1759 = vmatpush2.msra.mxu1 %v3963_v36  ;;  %v4041_v36 = vld [vmem:[%s11074_s15 + $0x5d0] sm:$0xff] }
 0x793   :  { %1760 = vmatprep.subr.mxu1 %v3962_v37  ;;  %v4040_v37 = vld [vmem:[%s11074_s15 + $0x5c8] sm:$0xff] }
 0x794   :  { %1761 = vmatpush2.msra.mxu1 %v3961_v50  ;;  %v4033_v50 = vld [vmem:[%s11074_s15 + $0x590] sm:$0xff] }
 0x795   :  { %1762 = vmatprep.subr.mxu1 %v3960_v47  ;;  %v4032_v47 = vld [vmem:[%s11074_s15 + $0x588] sm:$0xff] }
 0x796   :  { %1763 = vmatpush2.msra.mxu1 %v3959_v48  ;;  %v4031_v48 = vld [vmem:[%s11074_s15 + $0x580] sm:$0xff] }
 0x797   :  { %1764 = vmatprep.subr.mxu1 %v3958_v49  ;;  %v4030_v49 = vld [vmem:[%s11074_s15 + $0x578] sm:$0xff] }
 0x798   :  { %1765 = vmatpush2.msra.mxu1 %v3957_v51  ;;  %v4029_v51 = vld [vmem:[%s11074_s15 + $0x570] sm:$0xff] }
 0x799   :  { %1766 = vmatprep.subr.mxu1 %v3956_v52  ;;  %v4028_v52 = vld [vmem:[%s11074_s15 + $0x568] sm:$0xff] }
 0x79a   :  { %1767 = vmatpush2.msra.mxu1 %v3955_v53 }
 0x79b   :  { %1768 = vmatprep.subr.mxu1 %v3954_v55 }
 0x79c   :  { %1769 = vmatpush2.msra.mxu1 %v3953_v57  ;;  %v3590_v57 = vld [vmem:[%s11092_s2 + $0x2] ss:$0 sm:$0xff] }
 0x79d   :  { %1770 = vmatprep.subr.mxu1 %v3952_v58 }
 0x79e   :  { %1771 = vmatpush2.msra.mxu1 %v3951_v59 }
 0x81f   :  { %v7409_v39 = vpop.f32.mrf.mxu1 }
 0x820   :  { %v1493_v40 = vmul.f32 %v7409_v39, %v7409_v39 }
 0x821   :  { %v1490_v42 = vpop.f32.mrf.mxu1 }
 0x822   :  { %v1494_v44 = vadd.f32 %v1493_v40, %v1490_v42  ;;  %v4039_v40 = vld [vmem:[%s11074_s15 + $0x5c0] sm:$0xff]  ;;  %v4037_v42 = vld [vmem:[%s11074_s15 + $0x5b0] sm:$0xff] }
 0x824   :  { %v7416_v45 = vadd.f32 %v3588_v41, %v1494_v44  ;;  %v4038_v41 = vld [vmem:[%s11074_s15 + $0x5b8] sm:$0xff]  ;;  %v4036_v44 = vld [vmem:[%s11074_s15 + $0x5a8] sm:$0xff] }
 0x826   :  { %vm1496_vm5 = vcmp.gt.f32.partialorder %v7416_v45, 0.0  ;;  %v1497_v46 = vmul.f32 0.2, %v7416_v45 }
 0x828   :  { %v1498_v56 = vsel %vm1496_vm5, %v7416_v45, %v1497_v46  ;;  %v4035_v46 = vld [vmem:[%s11074_s15 + $0x5a0] sm:$0xff]  ;;  %v4263_v45 = vld [vmem:[%s11070_s11 + $0xd8] sm:$0xff] }
 0x829   :  { %1629 = vmatprep.mubr.f32.mxu0 %v1498_v56  ;;  %v4034_v56 = vld [vmem:[%s11074_s15 + $0x598] sm:$0xff] }
 0x82a   :  { %1630 = vmatmul.mubr.f32.vlgmr.msra.gmra.mxu0 %v6850_v29 }
 0x82b   :  { %1859 = vmatpush1.msra.mxu0 %v4013_v61 }
 0x82c   :  { %1860 = vmatprep.subr.mxu0 %v4012_v62 }
 0x82d   :  { %1861 = vmatpush1.msra.mxu0 %v4011_v54  ;;  %v4027_v54 = vld [vmem:[%s11074_s15 + $0x560] sm:$0xff] }
 0x82e   :  { %1862 = vmatprep.subr.mxu0 %v4010_v63  ;;  %v4026_v63 = vld [vmem:[%s11074_s15 + $0x558] sm:$0xff] }
 0x82f   :  { %1863 = vmatpush1.msra.mxu0 %v4009_v0  ;;  %v4025_v0 = vld [vmem:[%s11074_s15 + $0x550] sm:$0xff] }
 0x830   :  { %1864 = vmatprep.subr.mxu0 %v4008_v1  ;;  %v4024_v1 = vld [vmem:[%s11074_s15 + $0x548] sm:$0xff] }
 0x831   :  { %1865 = vmatpush1.msra.mxu0 %v4007_v31  ;;  %v4023_v31 = vld [vmem:[%s11074_s15 + $0x540] sm:$0xff] }
 0x832   :  { %1866 = vmatprep.subr.mxu0 %v4006_v26  ;;  %v4022_v26 = vld [vmem:[%s11074_s15 + $0x538] sm:$0xff] }
 0x833   :  { %1867 = vmatpush1.msra.mxu0 %v4005_v2  ;;  %v4021_v2 = vld [vmem:[%s11074_s15 + $0x530] sm:$0xff] }
 0x834   :  { %1868 = vmatprep.subr.mxu0 %v4004_v3  ;;  %v4020_v3 = vld [vmem:[%s11074_s15 + $0x528] sm:$0xff] }
 0x835   :  { %1869 = vmatpush1.msra.mxu0 %v4003_v5  ;;  %v4019_v5 = vld [vmem:[%s11074_s15 + $0x520] sm:$0xff] }
 0x836   :  { %1870 = vmatprep.subr.mxu0 %v4002_v6  ;;  %v4018_v6 = vld [vmem:[%s11074_s15 + $0x518] sm:$0xff] }
 0x837   :  { %1871 = vmatpush1.msra.mxu0 %v4001_v7  ;;  %v4017_v7 = vld [vmem:[%s11074_s15 + $0x510] sm:$0xff] }
 0x838   :  { %1872 = vmatprep.subr.mxu0 %v4000_v9  ;;  %v4016_v9 = vld [vmem:[%s11074_s15 + $0x508] sm:$0xff] }
 0x839   :  { %1873 = vmatpush1.msra.mxu0 %v3999_v10  ;;  %v4015_v10 = vld [vmem:[%s11074_s15 + $0x500] sm:$0xff] }
 0x83a   :  { %1874 = vmatprep.subr.mxu0 %v3998_v12  ;;  %v4078_v12 = vld [vmem:[%s11074_s15 + $0x2f8] sm:$0xff] }
 0x83b   :  { %1875 = vmatpush1.msra.mxu0 %v3997_v13  ;;  %v4077_v13 = vld [vmem:[%s11074_s15 + $0x2f0] sm:$0xff]  ;;  %1998 = vmatprep.subr.mxu1 %v4078_v12  ;;  %v4088_v12 = vld [vmem:[%s11074_s15 + $0x348] sm:$0xff] }
 0x83c   :  { %1876 = vmatprep.subr.mxu0 %v3996_v14  ;;  %v4076_v14 = vld [vmem:[%s11074_s15 + $0x2e8] sm:$0xff] }
 0x83d   :  { %1877 = vmatpush1.msra.mxu0 %v3995_v15  ;;  %v4075_v15 = vld [vmem:[%s11074_s15 + $0x2e0] sm:$0xff] }
 0x83e   :  { %1878 = vmatprep.subr.mxu0 %v3994_v16  ;;  %v4074_v16 = vld [vmem:[%s11074_s15 + $0x2d8] sm:$0xff] }
 0x83f   :  { %1879 = vmatpush1.msra.mxu0 %v3993_v17  ;;  %v4073_v17 = vld [vmem:[%s11074_s15 + $0x2d0] sm:$0xff] }
 0x840   :  { %1880 = vmatprep.subr.mxu0 %v3992_v18  ;;  %v4072_v18 = vld [vmem:[%s11074_s15 + $0x2c8] sm:$0xff] }
 0x841   :  { %1881 = vmatpush1.msra.mxu0 %v3991_v19  ;;  %v4071_v19 = vld [vmem:[%s11074_s15 + $0x2c0] sm:$0xff] }
 0x842   :  { %1882 = vmatprep.subr.mxu0 %v3990_v21  ;;  %v4070_v21 = vld [vmem:[%s11074_s15 + $0x2b8] sm:$0xff] }
 0x843   :  { %1883 = vmatpush1.msra.mxu0 %v3989_v22  ;;  %v4069_v22 = vld [vmem:[%s11074_s15 + $0x2b0] sm:$0xff] }
 0x844   :  { %1884 = vmatprep.subr.mxu0 %v3988_v23  ;;  %v4068_v23 = vld [vmem:[%s11074_s15 + $0x2a8] sm:$0xff] }
 0x845   :  { %1885 = vmatpush1.msra.mxu0 %v3987_v25  ;;  %v4067_v25 = vld [vmem:[%s11074_s15 + $0x2a0] sm:$0xff] }
 0x846   :  { %1886 = vmatprep.subr.mxu0 %v3986_v28  ;;  %v4066_v28 = vld [vmem:[%s11074_s15 + $0x298] sm:$0xff] }
 0x847   :  { %1887 = vmatpush1.msra.mxu0 %v3985_v30  ;;  %v4065_v30 = vld [vmem:[%s11074_s15 + $0x290] sm:$0xff] }
 0x848   :  { %1888 = vmatprep.subr.mxu0 %v3984_v11  ;;  %v4064_v11 = vld [vmem:[%s11074_s15 + $0x288] sm:$0xff] }
 0x849   :  { %1889 = vmatpush1.msra.mxu0 %v3983_v32  ;;  %v4063_v32 = vld [vmem:[%s11074_s15 + $0x280] sm:$0xff] }
 0x84a   :  { %1890 = vmatprep.subr.mxu0 %v4046_v38  ;;  %v4062_v38 = vld [vmem:[%s11074_s15 + $0x278] sm:$0xff] }
 0x84b   :  { %1891 = vmatpush2.msra.mxu0 %v4045_v43  ;;  %v4061_v43 = vld [vmem:[%s11074_s15 + $0x270] sm:$0xff] }
 0x84c   :  { %1892 = vmatprep.subr.mxu0 %v4044_v33  ;;  %v4060_v33 = vld [vmem:[%s11074_s15 + $0x268] sm:$0xff] }
 0x84d   :  { %1893 = vmatpush2.msra.mxu0 %v4043_v34  ;;  %v4059_v34 = vld [vmem:[%s11074_s15 + $0x260] sm:$0xff] }
 0x84e   :  { %1894 = vmatprep.subr.mxu0 %v4042_v35  ;;  %v4058_v35 = vld [vmem:[%s11074_s15 + $0x258] sm:$0xff] }
 0x84f   :  { %1895 = vmatpush2.msra.mxu0 %v4041_v36  ;;  %v4057_v36 = vld [vmem:[%s11074_s15 + $0x250] sm:$0xff] }
 0x850   :  { %1896 = vmatprep.subr.mxu0 %v4040_v37  ;;  %v4056_v37 = vld [vmem:[%s11074_s15 + $0x248] sm:$0xff] }
 0x851   :  { %1897 = vmatpush2.msra.mxu0 %v4039_v40  ;;  %v4055_v40 = vld [vmem:[%s11074_s15 + $0x240] sm:$0xff] }
 0x852   :  { %1898 = vmatprep.subr.mxu0 %v4038_v41  ;;  %v4054_v41 = vld [vmem:[%s11074_s15 + $0x238] sm:$0xff] }
 0x853   :  { %1899 = vmatpush2.msra.mxu0 %v4037_v42  ;;  %v4053_v42 = vld [vmem:[%s11074_s15 + $0x230] sm:$0xff] }
 0x854   :  { %1900 = vmatprep.subr.mxu0 %v4036_v44  ;;  %v4052_v44 = vld [vmem:[%s11074_s15 + $0x228] sm:$0xff] }
 0x855   :  { %1901 = vmatpush2.msra.mxu0 %v4035_v46  ;;  %v4051_v46 = vld [vmem:[%s11074_s15 + $0x220] sm:$0xff] }
 0x856   :  { %1902 = vmatprep.subr.mxu0 %v4034_v56  ;;  %v4050_v56 = vld [vmem:[%s11074_s15 + $0x218] sm:$0xff] }
 0x857   :  { %1903 = vmatpush2.msra.mxu0 %v4033_v50  ;;  %v4049_v50 = vld [vmem:[%s11074_s15 + $0x210] sm:$0xff] }
 0x858   :  { %1904 = vmatprep.subr.mxu0 %v4032_v47  ;;  %v4048_v47 = vld [vmem:[%s11074_s15 + $0x208] sm:$0xff] }
 0x859   :  { %1905 = vmatpush2.msra.mxu0 %v4031_v48  ;;  %v4047_v48 = vld [vmem:[%s11074_s15 + $0x200] sm:$0xff] }
 0x85a   :  { %1906 = vmatprep.subr.mxu0 %v4030_v49  ;;  %v4110_v49 = vld [vmem:[%s11074_s15 + $0x3f8] sm:$0xff] }
 0x85b   :  { %1907 = vmatpush2.msra.mxu0 %v4029_v51  ;;  %v4109_v51 = vld [vmem:[%s11074_s15 + $0x3f0] sm:$0xff] }
 0x85c   :  { %1908 = vmatprep.subr.mxu0 %v4028_v52  ;;  %v4108_v52 = vld [vmem:[%s11074_s15 + $0x3e8] sm:$0xff] }
 0x85d   :  { %1909 = vmatpush2.msra.mxu0 %v4027_v54  ;;  %v4101_v54 = vld [vmem:[%s11074_s15 + $0x3b0] sm:$0xff] }
 0x85e   :  { %1910 = vmatprep.subr.mxu0 %v4026_v63  ;;  %v4100_v63 = vld [vmem:[%s11074_s15 + $0x3a8] sm:$0xff] }
 0x85f   :  { %1911 = vmatpush2.msra.mxu0 %v4025_v0  ;;  %v4099_v0 = vld [vmem:[%s11074_s15 + $0x3a0] sm:$0xff] }
 0x860   :  { %1912 = vmatprep.subr.mxu0 %v4024_v1  ;;  %v4098_v1 = vld [vmem:[%s11074_s15 + $0x398] sm:$0xff] }
 0x861   :  { %1913 = vmatpush2.msra.mxu0 %v4023_v31  ;;  %v4097_v31 = vld [vmem:[%s11074_s15 + $0x390] sm:$0xff] }
 0x862   :  { %1914 = vmatprep.subr.mxu0 %v4022_v26  ;;  %v4096_v26 = vld [vmem:[%s11074_s15 + $0x388] sm:$0xff] }
 0x863   :  { %1915 = vmatpush2.msra.mxu0 %v4021_v2  ;;  %v4095_v2 = vld [vmem:[%s11074_s15 + $0x380] sm:$0xff] }
 0x864   :  { %1916 = vmatprep.subr.mxu0 %v4020_v3  ;;  %v4094_v3 = vld [vmem:[%s11074_s15 + $0x378] sm:$0xff] }
 0x865   :  { %1917 = vmatpush2.msra.mxu0 %v4019_v5  ;;  %v4093_v5 = vld [vmem:[%s11074_s15 + $0x370] sm:$0xff] }
 0x866   :  { %1918 = vmatprep.subr.mxu0 %v4018_v6  ;;  %v4092_v6 = vld [vmem:[%s11074_s15 + $0x368] sm:$0xff] }
 0x867   :  { %1919 = vmatpush2.msra.mxu0 %v4017_v7  ;;  %v4091_v7 = vld [vmem:[%s11074_s15 + $0x360] sm:$0xff] }
 0x868   :  { %1920 = vmatprep.subr.mxu0 %v4016_v9  ;;  %v4090_v9 = vld [vmem:[%s11074_s15 + $0x358] sm:$0xff] }
 0x869   :  { %1921 = vmatpush2.msra.mxu0 %v4015_v10  ;;  %v4089_v10 = vld [vmem:[%s11074_s15 + $0x350] sm:$0xff] }
 0x8ea   :  { %v7610_v53 = vpop.f32.mrf.mxu0 }
 0x8eb   :  { %v1636_v55 = vmul.f32 %v7610_v53, %v7610_v53 }
 0x8ec   :  { %v1633_v58 = vpop.f32.mrf.mxu0 }
 0x8ed   :  { %v1637_v59 = vadd.f32 %v1636_v55, %v1633_v58  ;;  %v4107_v55 = vld [vmem:[%s11074_s15 + $0x3e0] sm:$0xff]  ;;  %v4105_v58 = vld [vmem:[%s11074_s15 + $0x3d0] sm:$0xff] }
 0x8ef   :  { %v7617_v60 = vadd.f32 %v3590_v57, %v1637_v59  ;;  %v4106_v57 = vld [vmem:[%s11074_s15 + $0x3d8] sm:$0xff]  ;;  %v4104_v59 = vld [vmem:[%s11074_s15 + $0x3c8] sm:$0xff] }
 0x8f1   :  { %vm1639_vm6 = vcmp.gt.f32.partialorder %v7617_v60, 0.0  ;;  %v1640_v61 = vmul.f32 0.2, %v7617_v60 }
 0x8f3   :  { %v1641_v62 = vsel %vm1639_vm6, %v7617_v60, %v1640_v61  ;;  %v4103_v61 = vld [vmem:[%s11074_s15 + $0x3c0] sm:$0xff] }
 0x8f4   :  { %1772 = vmatprep.mubr.f32.mxu1 %v1641_v62  ;;  %v4102_v62 = vld [vmem:[%s11074_s15 + $0x3b8] sm:$0xff]  ;;  %v2109_v60 = vld [vmem:[%s11074_s15 + $0x120] sm:$0xff] }
 0x8f5   :  { %1773 = vmatmul.mubr.f32.vlgmr.msra.gmra.mxu1 %v6850_v29 }
 0x8f6   :  { %1999 = vmatpush1.msra.mxu1 %v4077_v13  ;;  %v4087_v13 = vld [vmem:[%s11074_s15 + $0x340] sm:$0xff] }
 0x8f7   :  { %2000 = vmatprep.subr.mxu1 %v4076_v14  ;;  %v4086_v14 = vld [vmem:[%s11074_s15 + $0x338] sm:$0xff] }
 0x8f8   :  { %2001 = vmatpush1.msra.mxu1 %v4075_v15 }
 0x8f9   :  { %2002 = vmatprep.subr.mxu1 %v4074_v16 }
 0x8fa   :  { %2003 = vmatpush1.msra.mxu1 %v4073_v17  ;;  %v3592_v17 = vld [vmem:[%s11092_s2 + $0x3] ss:$0 sm:$0xff] }
 0x8fb   :  { %2004 = vmatprep.subr.mxu1 %v4072_v18 }
 0x8fc   :  { %2005 = vmatpush1.msra.mxu1 %v4071_v19 }
 0x8fd   :  { %2006 = vmatprep.subr.mxu1 %v4070_v21 }
 0x8fe   :  { %2007 = vmatpush1.msra.mxu1 %v4069_v22  ;;  %v3598_v22 = vld [vmem:[%s11077_s18] ss:$0 sm:$0xff] }
 0x8ff   :  { %2008 = vmatprep.subr.mxu1 %v4068_v23 }
 0x900   :  { %2009 = vmatpush1.msra.mxu1 %v4067_v25 }
 0x901   :  { %2010 = vmatprep.subr.mxu1 %v4066_v28 }
 0x902   :  { %2011 = vmatpush1.msra.mxu1 %v4065_v30 }
 0x903   :  { %2012 = vmatprep.subr.mxu1 %v4064_v11  ;;  %v4085_v11 = vld [vmem:[%s11074_s15 + $0x330] sm:$0xff] }
 0x904   :  { %2013 = vmatpush1.msra.mxu1 %v4063_v32  ;;  %v4084_v32 = vld [vmem:[%s11074_s15 + $0x328] sm:$0xff] }
 0x905   :  { %2014 = vmatprep.subr.mxu1 %v4062_v38  ;;  %v4083_v38 = vld [vmem:[%s11074_s15 + $0x320] sm:$0xff] }
 0x906   :  { %2015 = vmatpush1.msra.mxu1 %v4061_v43  ;;  %v4082_v43 = vld [vmem:[%s11074_s15 + $0x318] sm:$0xff] }
 0x907   :  { %2016 = vmatprep.subr.mxu1 %v4060_v33  ;;  %v4081_v33 = vld [vmem:[%s11074_s15 + $0x310] sm:$0xff] }
 0x908   :  { %2017 = vmatpush1.msra.mxu1 %v4059_v34  ;;  %v4080_v34 = vld [vmem:[%s11074_s15 + $0x308] sm:$0xff] }
 0x909   :  { %2018 = vmatprep.subr.mxu1 %v4058_v35  ;;  %v4079_v35 = vld [vmem:[%s11074_s15 + $0x300] sm:$0xff] }
 0x90a   :  { %2019 = vmatpush1.msra.mxu1 %v4057_v36  ;;  %v2104_v36 = vld [vmem:[%s11074_s15 + $0xf8] sm:$0xff] }
 0x90b   :  { %2020 = vmatprep.subr.mxu1 %v4056_v37  ;;  %v2103_v37 = vld [vmem:[%s11074_s15 + $0xf0] sm:$0xff]  ;;  %2137 = vmatprep.subr.mxu0 %v2104_v36  ;;  %v2114_v36 = vld [vmem:[%s11074_s15 + $0x148] sm:$0xff] }
 0x90c   :  { %2021 = vmatpush1.msra.mxu1 %v4055_v40  ;;  %v2102_v40 = vld [vmem:[%s11074_s15 + $0xe8] sm:$0xff] }
 0x90d   :  { %2022 = vmatprep.subr.mxu1 %v4054_v41  ;;  %v2101_v41 = vld [vmem:[%s11074_s15 + $0xe0] sm:$0xff] }
 0x90e   :  { %2023 = vmatpush1.msra.mxu1 %v4053_v42  ;;  %v2100_v42 = vld [vmem:[%s11074_s15 + $0xd8] sm:$0xff] }
 0x90f   :  { %2024 = vmatprep.subr.mxu1 %v4052_v44  ;;  %v2099_v44 = vld [vmem:[%s11074_s15 + $0xd0] sm:$0xff] }
 0x910   :  { %2025 = vmatpush1.msra.mxu1 %v4051_v46  ;;  %v2098_v46 = vld [vmem:[%s11074_s15 + $0xc8] sm:$0xff] }
 0x911   :  { %2026 = vmatprep.subr.mxu1 %v4050_v56  ;;  %v2097_v56 = vld [vmem:[%s11074_s15 + $0xc0] sm:$0xff] }
 0x912   :  { %2027 = vmatpush1.msra.mxu1 %v4049_v50  ;;  %v2096_v50 = vld [vmem:[%s11074_s15 + $0xb8] sm:$0xff] }
 0x913   :  { %2028 = vmatprep.subr.mxu1 %v4048_v47  ;;  %v2095_v47 = vld [vmem:[%s11074_s15 + $0xb0] sm:$0xff] }
 0x914   :  { %2029 = vmatpush1.msra.mxu1 %v4047_v48  ;;  %v2094_v48 = vld [vmem:[%s11074_s15 + $0xa8] sm:$0xff] }
 0x915   :  { %2030 = vmatprep.subr.mxu1 %v4110_v49  ;;  %v2093_v49 = vld [vmem:[%s11074_s15 + $0xa0] sm:$0xff] }
 0x916   :  { %2031 = vmatpush2.msra.mxu1 %v4109_v51  ;;  %v2092_v51 = vld [vmem:[%s11074_s15 + $0x98] sm:$0xff] }
 0x917   :  { %2032 = vmatprep.subr.mxu1 %v4108_v52  ;;  %v2091_v52 = vld [vmem:[%s11074_s15 + $0x90] sm:$0xff] }
 0x918   :  { %2033 = vmatpush2.msra.mxu1 %v4107_v55  ;;  %v2090_v55 = vld [vmem:[%s11074_s15 + $0x88] sm:$0xff] }
 0x919   :  { %2034 = vmatprep.subr.mxu1 %v4106_v57  ;;  %v2089_v57 = vld [vmem:[%s11074_s15 + $0x80] sm:$0xff] }
 0x91a   :  { %2035 = vmatpush2.msra.mxu1 %v4105_v58  ;;  %v2088_v58 = vld [vmem:[%s11074_s15 + $0x78] sm:$0xff] }
 0x91b   :  { %2036 = vmatprep.subr.mxu1 %v4104_v59  ;;  %v2087_v59 = vld [vmem:[%s11074_s15 + $0x70] sm:$0xff] }
 0x91c   :  { %2037 = vmatpush2.msra.mxu1 %v4103_v61  ;;  %v2086_v61 = vld [vmem:[%s11074_s15 + $0x68] sm:$0xff] }
 0x91d   :  { %2038 = vmatprep.subr.mxu1 %v4102_v62  ;;  %v2085_v62 = vld [vmem:[%s11074_s15 + $0x60] sm:$0xff] }
 0x91e   :  { %2039 = vmatpush2.msra.mxu1 %v4101_v54  ;;  %v2084_v54 = vld [vmem:[%s11074_s15 + $0x58] sm:$0xff] }
 0x91f   :  { %2040 = vmatprep.subr.mxu1 %v4100_v63  ;;  %v2083_v63 = vld [vmem:[%s11074_s15 + $0x50] sm:$0xff] }
 0x920   :  { %2041 = vmatpush2.msra.mxu1 %v4099_v0  ;;  %v2082_v0 = vld [vmem:[%s11074_s15 + $0x48] sm:$0xff] }
 0x921   :  { %2042 = vmatprep.subr.mxu1 %v4098_v1  ;;  %v2081_v1 = vld [vmem:[%s11074_s15 + $0x40] sm:$0xff] }
 0x922   :  { %2043 = vmatpush2.msra.mxu1 %v4097_v31  ;;  %v2080_v31 = vld [vmem:[%s11074_s15 + $0x38] sm:$0xff] }
 0x923   :  { %2044 = vmatprep.subr.mxu1 %v4096_v26  ;;  %v2079_v26 = vld [vmem:[%s11074_s15 + $0x30] sm:$0xff] }
 0x924   :  { %2045 = vmatpush2.msra.mxu1 %v4095_v2  ;;  %v2078_v2 = vld [vmem:[%s11074_s15 + $0x28] sm:$0xff] }
 0x925   :  { %2046 = vmatprep.subr.mxu1 %v4094_v3  ;;  %v2077_v3 = vld [vmem:[%s11074_s15 + $0x20] sm:$0xff] }
 0x926   :  { %2047 = vmatpush2.msra.mxu1 %v4093_v5  ;;  %v2076_v5 = vld [vmem:[%s11074_s15 + $0x18] sm:$0xff] }
 0x927   :  { %2048 = vmatprep.subr.mxu1 %v4092_v6  ;;  %v2075_v6 = vld [vmem:[%s11074_s15 + $0x10] sm:$0xff] }
 0x928   :  { %2049 = vmatpush2.msra.mxu1 %v4091_v7  ;;  %v2074_v7 = vld [vmem:[%s11074_s15 + $0x8] sm:$0xff] }
 0x929   :  { %2050 = vmatprep.subr.mxu1 %v4090_v9  ;;  %v2073_v9 = vld [vmem:[%s11074_s15] sm:$0xff] }
 0x92a   :  { %2051 = vmatpush2.msra.mxu1 %v4089_v10  ;;  %v2136_v10 = vld [vmem:[%s11074_s15 + $0x1f8] sm:$0xff] }
 0x92b   :  { %2052 = vmatprep.subr.mxu1 %v4088_v12  ;;  %v2135_v12 = vld [vmem:[%s11074_s15 + $0x1f0] sm:$0xff] }
 0x92c   :  { %2053 = vmatpush2.msra.mxu1 %v4087_v13  ;;  %v2134_v13 = vld [vmem:[%s11074_s15 + $0x1e8] sm:$0xff] }
 0x92d   :  { %2054 = vmatprep.subr.mxu1 %v4086_v14  ;;  %v2133_v14 = vld [vmem:[%s11074_s15 + $0x1e0] sm:$0xff] }
 0x92e   :  { %2055 = vmatpush2.msra.mxu1 %v4085_v11  ;;  %v2121_v11 = vld [vmem:[%s11074_s15 + $0x180] sm:$0xff] }
 0x92f   :  { %2056 = vmatprep.subr.mxu1 %v4084_v32  ;;  %v2120_v32 = vld [vmem:[%s11074_s15 + $0x178] sm:$0xff] }
 0x930   :  { %2057 = vmatpush2.msra.mxu1 %v4083_v38  ;;  %v2119_v38 = vld [vmem:[%s11074_s15 + $0x170] sm:$0xff] }
 0x931   :  { %2058 = vmatprep.subr.mxu1 %v4082_v43  ;;  %v2118_v43 = vld [vmem:[%s11074_s15 + $0x168] sm:$0xff] }
 0x932   :  { %2059 = vmatpush2.msra.mxu1 %v4081_v33  ;;  %v2117_v33 = vld [vmem:[%s11074_s15 + $0x160] sm:$0xff] }
 0x933   :  { %2060 = vmatprep.subr.mxu1 %v4080_v34  ;;  %v2116_v34 = vld [vmem:[%s11074_s15 + $0x158] sm:$0xff] }
 0x934   :  { %2061 = vmatpush2.msra.mxu1 %v4079_v35  ;;  %v2115_v35 = vld [vmem:[%s11074_s15 + $0x150] sm:$0xff] }
 0x9b5   :  { %v1774_v15 = vpop.f32.mrf.mxu1 }
 0x9b6   :  { %v1779_v16 = vmul.f32 %v1774_v15, %v1774_v15  ;;  %v1791_v25 = vmul.f32 2.0, %v1774_v15  ;;  %v2132_v15 = vld [vmem:[%s11074_s15 + $0x1d8] sm:$0xff] }
 0x9b7   :  { %v1776_v18 = vpop.f32.mrf.mxu1 }
 0x9b8   :  { %v1780_v19 = vadd.f32 %v1779_v16, %v1776_v18  ;;  %v2131_v16 = vld [vmem:[%s11074_s15 + $0x1d0] sm:$0xff]  ;;  %v2129_v18 = vld [vmem:[%s11074_s15 + $0x1c0] sm:$0xff] }
 0x9ba   :  { %v1781_v21 = vadd.f32 %v3592_v17, %v1780_v19  ;;  %v2130_v17 = vld [vmem:[%s11074_s15 + $0x1c8] sm:$0xff]  ;;  %v2128_v19 = vld [vmem:[%s11074_s15 + $0x1b8] sm:$0xff] }
 0x9bc   :  { %vm1782_vm7 = vcmp.gt.f32.partialorder %v1781_v21, 0.0  ;;  %v2127_v21 = vld [vmem:[%s11074_s15 + $0x1b0] sm:$0xff] }
 0x9bd   :  { %v1783_v23 = vsel %vm1782_vm7, 1.0, %v5200_v20 }
 0x9be   :  { %v1790_v28 = vmul.f32 %v3598_v22, %v1783_v23  ;;  %v2126_v22 = vld [vmem:[%s11074_s15 + $0x1a8] sm:$0xff]  ;;  %v2125_v23 = vld [vmem:[%s11074_s15 + $0x1a0] sm:$0xff] }
 0x9c0   :  { %v1792_v30 = vmul.f32 %v1791_v25, %v1790_v28  ;;  %1922 = vmatprep.mubr.f32.mxu0 %v1790_v28  ;;  %v2124_v25 = vld [vmem:[%s11074_s15 + $0x198] sm:$0xff]  ;;  %v2123_v28 = vld [vmem:[%s11074_s15 + $0x190] sm:$0xff] }
 0x9c2   :  { %1923 = vmatmul.mubr.f32.vlgmr.msra.gmra.mxu0 %v1792_v30  ;;  %v2122_v30 = vld [vmem:[%s11074_s15 + $0x188] sm:$0xff] }
 0x9c3   :  { %2138 = vmatpush1.msra.mxu0 %v2103_v37  ;;  %v2113_v37 = vld [vmem:[%s11074_s15 + $0x140] sm:$0xff] }
 0x9c4   :  { %2139 = vmatprep.subr.mxu0 %v2102_v40  ;;  %v2112_v40 = vld [vmem:[%s11074_s15 + $0x138] sm:$0xff] }
 0x9c5   :  { %2140 = vmatpush1.msra.mxu0 %v2101_v41 }
 0x9c6   :  { %2141 = vmatprep.subr.mxu0 %v2100_v42  ;;  %v1642_v42 = vsel %vm1639_vm6, 1.0, %v5200_v20 }
 0x9c7   :  { %2142 = vmatpush1.msra.mxu0 %v2099_v44 }
 0x9c8   :  { %2143 = vmatprep.subr.mxu0 %v2098_v46  ;;  %v1931_v46 = vmul.f32 2.0, %v7610_v53  ;;  %v2108_v53 = vld [vmem:[%s11074_s15 + $0x118] sm:$0xff] }
 0x9c9   :  { %2144 = vmatpush1.msra.mxu0 %v2097_v56 }
 0x9ca   :  { %2145 = vmatprep.subr.mxu0 %v2096_v50 }
 0x9cb   :  { %2146 = vmatpush1.msra.mxu0 %v2095_v47  ;;  %v2111_v47 = vld [vmem:[%s11074_s15 + $0x130] sm:$0xff] }
 0x9cc   :  { %2147 = vmatprep.subr.mxu0 %v2094_v48  ;;  %v2110_v48 = vld [vmem:[%s11074_s15 + $0x128] sm:$0xff] }
 0x9cd   :  { %2148 = vmatpush1.msra.mxu0 %v2093_v49  ;;  %v2107_v49 = vld [vmem:[%s11074_s15 + $0x110] sm:$0xff] }
 0x9ce   :  { %2149 = vmatprep.subr.mxu0 %v2092_v51  ;;  %v2106_v51 = vld [vmem:[%s11074_s15 + $0x108] sm:$0xff] }
 0x9cf   :  { %2150 = vmatpush1.msra.mxu0 %v2091_v52  ;;  %v2105_v52 = vld [vmem:[%s11074_s15 + $0x100] sm:$0xff] }
 0x9d0   :  { %2151 = vmatprep.subr.mxu0 %v2090_v55  ;;  %v8064_v55 = vld [vmem:[%s11073_s14 + $0xf8] sm:$0xff] }
 0x9d1   :  { %2152 = vmatpush1.msra.mxu0 %v2089_v57  ;;  %v2227_v57 = vld [vmem:[%s11073_s14 + $0x78] sm:$0xff]  ;;  %4148 = vmatprep.subr.mxu1 %v8064_v55 }
 0x9d2   :  { %2153 = vmatprep.subr.mxu0 %v2088_v58  ;;  %v2242_v58 = vld [vmem:[%s11073_s14 + $0xf0] sm:$0xff] }
 0x9d3   :  { %2154 = vmatpush1.msra.mxu0 %v2087_v59  ;;  %v4258_v59 = vld [vmem:[%s11070_s11 + $0xf8] sm:$0xff] }
 0x9d4   :  { %2155 = vmatprep.subr.mxu0 %v2086_v61  ;;  %v2226_v61 = vld [vmem:[%s11073_s14 + $0x70] sm:$0xff] }
 0x9d5   :  { %2156 = vmatpush1.msra.mxu0 %v2085_v62  ;;  %v2241_v62 = vld [vmem:[%s11073_s14 + $0xe8] sm:$0xff] }
 0x9d6   :  { %2157 = vmatprep.subr.mxu0 %v2084_v54  ;;  %v2225_v54 = vld [vmem:[%s11073_s14 + $0x68] sm:$0xff] }
 0x9d7   :  { %2158 = vmatpush1.msra.mxu0 %v2083_v63  ;;  %v2240_v63 = vld [vmem:[%s11073_s14 + $0xe0] sm:$0xff] }
 0x9d8   :  { %2159 = vmatprep.subr.mxu0 %v2082_v0  ;;  %v2224_v0 = vld [vmem:[%s11073_s14 + $0x60] sm:$0xff] }
 0x9d9   :  { %2160 = vmatpush1.msra.mxu0 %v2081_v1  ;;  %v2239_v1 = vld [vmem:[%s11073_s14 + $0xd8] sm:$0xff] }
 0x9da   :  { %2161 = vmatprep.subr.mxu0 %v2080_v31  ;;  %v2223_v31 = vld [vmem:[%s11073_s14 + $0x58] sm:$0xff] }
 0x9db   :  { %2162 = vmatpush1.msra.mxu0 %v2079_v26  ;;  %v2238_v26 = vld [vmem:[%s11073_s14 + $0xd0] sm:$0xff] }
 0x9dc   :  { %2163 = vmatprep.subr.mxu0 %v2078_v2  ;;  %v2222_v2 = vld [vmem:[%s11073_s14 + $0x50] sm:$0xff] }
 0x9dd   :  { %2164 = vmatpush1.msra.mxu0 %v2077_v3  ;;  %v2237_v3 = vld [vmem:[%s11073_s14 + $0xc8] sm:$0xff] }
 0x9de   :  { %2165 = vmatprep.subr.mxu0 %v2076_v5  ;;  %v2221_v5 = vld [vmem:[%s11073_s14 + $0x48] sm:$0xff] }
 0x9df   :  { %2166 = vmatpush1.msra.mxu0 %v2075_v6  ;;  %v2236_v6 = vld [vmem:[%s11073_s14 + $0xc0] sm:$0xff] }
 0x9e0   :  { %2167 = vmatprep.subr.mxu0 %v2074_v7  ;;  %v2220_v7 = vld [vmem:[%s11073_s14 + $0x40] sm:$0xff] }
 0x9e1   :  { %2168 = vmatpush1.msra.mxu0 %v2073_v9  ;;  %v2235_v9 = vld [vmem:[%s11073_s14 + $0xb8] sm:$0xff] }
 0x9e2   :  { %2169 = vmatprep.subr.mxu0 %v2136_v10  ;;  %v2219_v10 = vld [vmem:[%s11073_s14 + $0x38] sm:$0xff] }
 0x9e3   :  { %2170 = vmatpush2.msra.mxu0 %v2135_v12  ;;  %v2234_v12 = vld [vmem:[%s11073_s14 + $0xb0] sm:$0xff] }
 0x9e4   :  { %2171 = vmatprep.subr.mxu0 %v2134_v13  ;;  %v2218_v13 = vld [vmem:[%s11073_s14 + $0x30] sm:$0xff] }
 0x9e5   :  { %2172 = vmatpush2.msra.mxu0 %v2133_v14  ;;  %v2233_v14 = vld [vmem:[%s11073_s14 + $0xa8] sm:$0xff] }
 0x9e6   :  { %2173 = vmatprep.subr.mxu0 %v2132_v15  ;;  %v2217_v15 = vld [vmem:[%s11073_s14 + $0x28] sm:$0xff] }
 0x9e7   :  { %2174 = vmatpush2.msra.mxu0 %v2131_v16  ;;  %v2232_v16 = vld [vmem:[%s11073_s14 + $0xa0] sm:$0xff] }
 0x9e8   :  { %2175 = vmatprep.subr.mxu0 %v2130_v17  ;;  %v2216_v17 = vld [vmem:[%s11073_s14 + $0x20] sm:$0xff] }
 0x9e9   :  { %2176 = vmatpush2.msra.mxu0 %v2129_v18  ;;  %v2231_v18 = vld [vmem:[%s11073_s14 + $0x98] sm:$0xff] }
 0x9ea   :  { %2177 = vmatprep.subr.mxu0 %v2128_v19  ;;  %v1786_v19 = vpop.xlane.xlu0 %1785 }
 0x9eb   :  { %2178 = vmatpush2.msra.mxu0 %v2127_v21  ;;  %v1787_v21 = vmul.f32 2.0, %v1786_v19 }
 0x9ec   :  { %2179 = vmatprep.subr.mxu0 %v2126_v22  ;;  %v8145_v22 = vld [vmem:[%s11075_s16] ss:$0 sm:$0xff] }
 0x9ed   :  { %2180 = vmatpush2.msra.mxu0 %v2125_v23  ;;  %v1788_v23 = vmul.f32 %v8145_v22, %v1787_v21  ;;  %v2210_v21 = vmul.f32 2.0, %v7202_v24  ;;  %v4296_v24 = vld [vmem:[%s11071_s12 + $0xd8] sm:$0xff] }
 0x9ee   :  { %2181 = vmatprep.subr.mxu0 %v2124_v25  ;;  %v3597_v25 = vld [vmem:[%s11076_s17] ss:$0 sm:$0xff] }
 0x9ef   :  { %2182 = vmatpush2.msra.mxu0 %v2123_v28  ;;  %v1789_v28 = vadd.f32 %v3597_v25, %v1788_v23 }
 0x9f0   :  { %2183 = vmatprep.subr.mxu0 %v2122_v30 }
 0x9f1   :  { %2184 = vmatpush2.msra.mxu0 %v2121_v11 }
 0x9f2   :  { %2185 = vmatprep.subr.mxu0 %v2120_v32 }
 0x9f3   :  { %2186 = vmatpush2.msra.mxu0 %v2119_v38  ;;  %v1499_v38 = vsel %vm1496_vm5, 1.0, %v5200_v20 }
 0x9f4   :  { %2187 = vmatprep.subr.mxu0 %v2118_v43 }
 0x9f5   :  { %2188 = vmatpush2.msra.mxu0 %v2117_v33  ;;  %v2071_v33 = vmul.f32 2.0, %v7409_v39  ;;  %v4262_v39 = vld [vmem:[%s11070_s11 + $0xe0] sm:$0xff] }
 0x9f6   :  { %2189 = vmatprep.subr.mxu0 %v2116_v34 }
 0x9f7   :  { %2190 = vmatpush2.msra.mxu0 %v2115_v35 }
 0x9f8   :  { %2191 = vmatprep.subr.mxu0 %v2114_v36  ;;  %v4260_v36 = vld [vmem:[%s11070_s11 + $0xf0] sm:$0xff] }
 0x9f9   :  { %2192 = vmatpush2.msra.mxu0 %v2113_v37  ;;  %v4261_v37 = vld [vmem:[%s11070_s11 + $0xe8] sm:$0xff] }
 0x9fa   :  { %2193 = vmatprep.subr.mxu0 %v2112_v40  ;;  %v4264_v40 = vld [vmem:[%s11070_s11 + $0xd0] sm:$0xff] }
 0x9fb   :  { %2194 = vmatpush2.msra.mxu0 %v2111_v47  ;;  %v4271_v47 = vld [vmem:[%s11070_s11 + $0x98] sm:$0xff] }
 0x9fc   :  { %2195 = vmatprep.subr.mxu0 %v2110_v48  ;;  %v4272_v48 = vld [vmem:[%s11070_s11 + $0x90] sm:$0xff] }
 0x9fd   :  { %2196 = vmatpush2.msra.mxu0 %v2109_v60  ;;  %v4273_v60 = vld [vmem:[%s11070_s11 + $0x88] sm:$0xff] }
 0x9fe   :  { %2197 = vmatprep.subr.mxu0 %v2108_v53  ;;  %v4274_v53 = vld [vmem:[%s11070_s11 + $0x80] sm:$0xff] }
 0x9ff   :  { %2198 = vmatpush2.msra.mxu0 %v2107_v49  ;;  %v4275_v49 = vld [vmem:[%s11070_s11 + $0x78] sm:$0xff] }
 0xa00   :  { %2199 = vmatprep.subr.mxu0 %v2106_v51  ;;  %v4276_v51 = vld [vmem:[%s11070_s11 + $0x70] sm:$0xff] }
 0xa01   :  { %2200 = vmatpush2.msra.mxu0 %v2105_v52  ;;  %v4277_v52 = vld [vmem:[%s11070_s11 + $0x68] sm:$0xff] }
 0xa02   :  { %2323 = vmatprep.subr.mxu0 %v4258_v59  ;;  %v4280_v59 = vld [vmem:[%s11070_s11 + $0x50] sm:$0xff] }
 0xa82   :  { %v8034_v41 = vpop.f32.mrf.mxu0 }
 0xa83   :  { %v1929_v30 = vadd.f32 %v8034_v41, %v1789_v28  ;;  %v4265_v41 = vld [vmem:[%s11070_s11 + $0xc8] sm:$0xff]  ;;  %v4293_v28 = vld [vmem:[%s11071_s12 + $0xf0] sm:$0xff] }
 0xa84   :  { %v1926_v44 = vpop.f32.mrf.mxu0 }
 0xa85   :  { %v1930_v56 = vmul.f32 %v1926_v44, %v1642_v42  ;;  %v4266_v42 = vld [vmem:[%s11070_s11 + $0xc0] sm:$0xff]  ;;  %v4267_v44 = vld [vmem:[%s11070_s11 + $0xb8] sm:$0xff] }
 0xa87   :  { %v1932_v50 = vmul.f32 %v1931_v46, %v1930_v56  ;;  %2062 = vmatprep.mubr.f32.mxu1 %v1930_v56  ;;  %v4268_v46 = vld [vmem:[%s11070_s11 + $0xb0] sm:$0xff]  ;;  %v4269_v56 = vld [vmem:[%s11070_s11 + $0xa8] sm:$0xff] }
 0xa89   :  { %2063 = vmatmul.mubr.f32.vlgmr.msra.gmra.mxu1 %v1932_v50  ;;  %v4270_v50 = vld [vmem:[%s11070_s11 + $0xa0] sm:$0xff] }
 0xa8a   :  { %4149 = vmatpush3.msra.mxu1 %v2227_v57  ;;  %v4278_v57 = vld [vmem:[%s11070_s11 + $0x60] sm:$0xff] }
 0xa8b   :  { %4150 = vmatprep.subr.mxu1 %v2242_v58  ;;  %v4279_v58 = vld [vmem:[%s11070_s11 + $0x58] sm:$0xff] }
 0xa8c   :  { %4151 = vmatpush3.msra.mxu1 %v2226_v61  ;;  %v4281_v61 = vld [vmem:[%s11070_s11 + $0x48] sm:$0xff] }
 0xa8d   :  { %4152 = vmatprep.subr.mxu1 %v2241_v62  ;;  %v4282_v62 = vld [vmem:[%s11070_s11 + $0x40] sm:$0xff] }
 0xa8e   :  { %4153 = vmatpush3.msra.mxu1 %v2225_v54  ;;  %v4283_v54 = vld [vmem:[%s11070_s11 + $0x38] sm:$0xff] }
 0xa8f   :  { %4154 = vmatprep.subr.mxu1 %v2240_v63  ;;  %v4284_v63 = vld [vmem:[%s11070_s11 + $0x30] sm:$0xff] }
 0xa90   :  { %4155 = vmatpush3.msra.mxu1 %v2224_v0  ;;  %v4285_v0 = vld [vmem:[%s11070_s11 + $0x28] sm:$0xff] }
 0xa91   :  { %4156 = vmatprep.subr.mxu1 %v2239_v1  ;;  %v4286_v1 = vld [vmem:[%s11070_s11 + $0x20] sm:$0xff] }
 0xa92   :  { %4157 = vmatpush3.msra.mxu1 %v2223_v31  ;;  %v4287_v31 = vld [vmem:[%s11070_s11 + $0x18] sm:$0xff] }
 0xa93   :  { %4158 = vmatprep.subr.mxu1 %v2238_v26  ;;  %v4288_v26 = vld [vmem:[%s11070_s11 + $0x10] sm:$0xff] }
 0xa94   :  { %4159 = vmatpush3.msra.mxu1 %v2222_v2  ;;  %v4289_v2 = vld [vmem:[%s11070_s11 + $0x8] sm:$0xff] }
 0xa95   :  { %4160 = vmatprep.subr.mxu1 %v2237_v3  ;;  %v4290_v3 = vld [vmem:[%s11070_s11] sm:$0xff] }
 0xa96   :  { %4161 = vmatpush3.msra.mxu1 %v2221_v5  ;;  %v4291_v5 = vld [vmem:[%s11071_s12 + $0x2f8] sm:$0xff] }
 0xa97   :  { %4162 = vmatprep.subr.mxu1 %v2236_v6  ;;  %v8258_v6 = vld [vmem:[%s11073_s14 + $0x18] sm:$0xff] }
 0xa98   :  { %4163 = vmatpush3.msra.mxu1 %v2220_v7  ;;  %v8264_v7 = vld [vmem:[%s11073_s14 + $0x90] sm:$0xff] }
 0xa99   :  { %4164 = vmatprep.subr.mxu1 %v2235_v9  ;;  %v8270_v9 = vld [vmem:[%s11073_s14 + $0x10] sm:$0xff] }
 0xa9a   :  { %4165 = vmatpush3.msra.mxu1 %v2219_v10  ;;  %v8276_v10 = vld [vmem:[%s11073_s14 + $0x88] sm:$0xff] }
 0xa9b   :  { %4166 = vmatprep.subr.mxu1 %v2234_v12  ;;  %v8282_v12 = vld [vmem:[%s11073_s14 + $0x8] sm:$0xff] }
 0xa9c   :  { %4167 = vmatpush3.msra.mxu1 %v2218_v13  ;;  %v8288_v13 = vld [vmem:[%s11073_s14 + $0x80] sm:$0xff] }
 0xa9d   :  { %4168 = vmatprep.subr.mxu1 %v2233_v14  ;;  %v8294_v14 = vld [vmem:[%s11073_s14] sm:$0xff] }
 0xa9e   :  { %4169 = vmatpush3.msra.mxu1 %v2217_v15  ;;  %v8300_v15 = vld [vmem:[%s11071_s12 + $0xf8] sm:$0xff] }
 0xa9f   :  { %4170 = vmatprep.subr.mxu1 %v2232_v16 }
 0xaa0   :  { %4171 = vmatpush3.msra.mxu1 %v2216_v17 }
 0xaa1   :  { %4172 = vmatprep.subr.mxu1 %v2231_v18  ;;  %v1357_v18 = vsel %vm1354_vm4, 1.0, %v5200_v20 }
 0xaa2   :  { %4173 = vmatpush3.msra.mxu1 %v8258_v6 }
 0xaa3   :  { %4174 = vmatprep.subr.mxu1 %v8264_v7 }
 0xaa4   :  { %4175 = vmatpush3.msra.mxu1 %v8270_v9 }
 0xaa5   :  { %4176 = vmatprep.subr.mxu1 %v8276_v10 }
 0xaa6   :  { %4177 = vmatpush3.msra.mxu1 %v8282_v12 }
 0xaa7   :  { %4178 = vmatprep.subr.mxu1 %v8288_v13 }
 0xaa8   :  { %4179 = vmatpush3.msra.mxu1 %v8294_v14 }
 0xaa9   :  { %2401 = vmatprep.subr.mxu1 %v8300_v15 }
 0xb49   :  { %v2064_v11 = vpop.f32.mrf.mxu1 }
 0xb4a   :  { %v8152_v32 = vadd.f32 %v2064_v11, %v1929_v30  ;;  %v4294_v30 = vld [vmem:[%s11071_s12 + $0xe8] sm:$0xff]  ;;  %v4297_v11 = vld [vmem:[%s11071_s12 + $0xd0] sm:$0xff] }
 0xb4b   :  { %v2066_v43 = vpop.f32.mrf.mxu1 }
 0xb4c   :  { %v2070_v34 = vmul.f32 %v2066_v43, %v1499_v38  ;;  %v4299_v38 = vld [vmem:[%s11071_s12 + $0xc0] sm:$0xff]  ;;  %v4300_v43 = vld [vmem:[%s11071_s12 + $0xb8] sm:$0xff] }
 0xb4e   :  { %v2072_v35 = vmul.f32 %v2071_v33, %v2070_v34  ;;  %2201 = vmatprep.mubr.f32.mxu0 %v2070_v34  ;;  %v4301_v33 = vld [vmem:[%s11071_s12 + $0xb0] sm:$0xff]  ;;  %v4302_v34 = vld [vmem:[%s11071_s12 + $0xa8] sm:$0xff] }
 0xb50   :  { %2202 = vmatmul.mubr.f32.vlgmr.msra.gmra.mxu0 %v2072_v35  ;;  %v4303_v35 = vld [vmem:[%s11071_s12 + $0xa0] sm:$0xff] }
 0xb51   :  { %2324 = vmatpush1.msra.mxu0 %v4260_v36  ;;  %2387 = vmatprep.mubr.f32.mxu0 %v5199_v4  ;;  %v4304_v36 = vld [vmem:[%s11071_s12 + $0x98] sm:$0xff] }
 0xb52   :  { %2325 = vmatprep.subr.mxu0 %v4261_v37  ;;  %v4305_v37 = vld [vmem:[%s11071_s12 + $0x90] sm:$0xff] }
 0xb53   :  { %2326 = vmatpush1.msra.mxu0 %v4262_v39  ;;  %v4306_v39 = vld [vmem:[%s11071_s12 + $0x88] sm:$0xff] }
 0xb54   :  { %2327 = vmatprep.subr.mxu0 %v4263_v45  ;;  %v4307_v45 = vld [vmem:[%s11071_s12 + $0x80] sm:$0xff] }
 0xb55   :  { %2328 = vmatpush1.msra.mxu0 %v4264_v40  ;;  %v4308_v40 = vld [vmem:[%s11071_s12 + $0x78] sm:$0xff] }
 0xb56   :  { %2329 = vmatprep.subr.mxu0 %v4265_v41  ;;  %v4309_v41 = vld [vmem:[%s11071_s12 + $0x70] sm:$0xff] }
 0xb57   :  { %2330 = vmatpush1.msra.mxu0 %v4266_v42  ;;  %v4310_v42 = vld [vmem:[%s11071_s12 + $0x68] sm:$0xff] }
 0xb58   :  { %2331 = vmatprep.subr.mxu0 %v4267_v44  ;;  %v4311_v44 = vld [vmem:[%s11071_s12 + $0x60] sm:$0xff] }
 0xb59   :  { %2332 = vmatpush1.msra.mxu0 %v4268_v46  ;;  %v4312_v46 = vld [vmem:[%s11071_s12 + $0x58] sm:$0xff] }
 0xb5a   :  { %2333 = vmatprep.subr.mxu0 %v4269_v56  ;;  %v4313_v56 = vld [vmem:[%s11071_s12 + $0x50] sm:$0xff] }
 0xb5b   :  { %2334 = vmatpush1.msra.mxu0 %v4270_v50  ;;  %v4314_v50 = vld [vmem:[%s11071_s12 + $0x48] sm:$0xff] }
 0xb5c   :  { %2335 = vmatprep.subr.mxu0 %v4271_v47  ;;  %v4315_v47 = vld [vmem:[%s11071_s12 + $0x40] sm:$0xff] }
 0xb5d   :  { %2336 = vmatpush1.msra.mxu0 %v4272_v48  ;;  %v4316_v48 = vld [vmem:[%s11071_s12 + $0x38] sm:$0xff] }
 0xb5e   :  { %2337 = vmatprep.subr.mxu0 %v4273_v60  ;;  %v4317_v60 = vld [vmem:[%s11071_s12 + $0x30] sm:$0xff] }
 0xb5f   :  { %2338 = vmatpush1.msra.mxu0 %v4274_v53  ;;  %v4318_v53 = vld [vmem:[%s11071_s12 + $0x28] sm:$0xff] }
 0xb60   :  { %2339 = vmatprep.subr.mxu0 %v4275_v49  ;;  %v4319_v49 = vld [vmem:[%s11071_s12 + $0x20] sm:$0xff] }
 0xb61   :  { %2340 = vmatpush1.msra.mxu0 %v4276_v51  ;;  %v4320_v51 = vld [vmem:[%s11071_s12 + $0x18] sm:$0xff] }
 0xb62   :  { %2341 = vmatprep.subr.mxu0 %v4277_v52  ;;  %v4321_v52 = vld [vmem:[%s11071_s12 + $0x10] sm:$0xff] }
 0xb63   :  { %2342 = vmatpush1.msra.mxu0 %v4278_v57  ;;  %v4322_v57 = vld [vmem:[%s11071_s12 + $0x8] sm:$0xff] }
 0xb64   :  { %2343 = vmatprep.subr.mxu0 %v4279_v58  ;;  %v4323_v58 = vld [vmem:[%s11071_s12] sm:$0xff] }
 0xb65   :  { %2344 = vmatpush1.msra.mxu0 %v4280_v59  ;;  %v4324_v59 = vld [vmem:[%s11071_s12 + $0x1f8] sm:$0xff] }
 0xb66   :  { %2345 = vmatprep.subr.mxu0 %v4281_v61  ;;  %v4325_v61 = vld [vmem:[%s11071_s12 + $0x1f0] sm:$0xff] }
 0xb67   :  { %2346 = vmatpush1.msra.mxu0 %v4282_v62  ;;  %v4326_v62 = vld [vmem:[%s11071_s12 + $0x1e8] sm:$0xff] }
 0xb68   :  { %2347 = vmatprep.subr.mxu0 %v4283_v54  ;;  %v4327_v54 = vld [vmem:[%s11071_s12 + $0x1e0] sm:$0xff] }
 0xb69   :  { %2348 = vmatpush1.msra.mxu0 %v4284_v63  ;;  %v4328_v63 = vld [vmem:[%s11071_s12 + $0x1d8] sm:$0xff] }
 0xb6a   :  { %2349 = vmatprep.subr.mxu0 %v4285_v0  ;;  %v4329_v0 = vld [vmem:[%s11071_s12 + $0x1d0] sm:$0xff] }
 0xb6b   :  { %2350 = vmatpush1.msra.mxu0 %v4286_v1  ;;  %v4330_v1 = vld [vmem:[%s11071_s12 + $0x1c8] sm:$0xff] }
 0xb6c   :  { %2351 = vmatprep.subr.mxu0 %v4287_v31  ;;  %v4331_v31 = vld [vmem:[%s11071_s12 + $0x1c0] sm:$0xff] }
 0xb6d   :  { %2352 = vmatpush1.msra.mxu0 %v4288_v26  ;;  %v4332_v26 = vld [vmem:[%s11071_s12 + $0x1b8] sm:$0xff] }
 0xb6e   :  { %2353 = vmatprep.subr.mxu0 %v4289_v2  ;;  %v4333_v2 = vld [vmem:[%s11071_s12 + $0x1b0] sm:$0xff] }
 0xb6f   :  { %2354 = vmatpush1.msra.mxu0 %v4290_v3  ;;  %v4334_v3 = vld [vmem:[%s11071_s12 + $0x1a8] sm:$0xff] }
 0xb70   :  { %2479 = vmatprep.subr.mxu0 %v4291_v5  ;;  %v4335_v5 = vld [vmem:[%s11071_s12 + $0x1a0] sm:$0xff] }
 0xc10   :  { %v2203_v16 = vpop.f32.mrf.mxu0 }
 0xc11   :  { %v8304_v17 = vadd.f32 %v2203_v16, %v8152_v32  ;;  %v4298_v32 = vld [vmem:[%s11071_s12 + $0xc8] sm:$0xff]  ;;  %v4336_v16 = vld [vmem:[%s11071_s12 + $0x198] sm:$0xff] }
 0xc12   :  { %v2205_v19 = vpop.f32.mrf.mxu0 }
 0xc13   :  { %v2209_v23 = vmul.f32 %v2205_v19, %v1357_v18  ;;  %v4337_v18 = vld [vmem:[%s11071_s12 + $0x190] sm:$0xff]  ;;  %v4338_v19 = vld [vmem:[%s11071_s12 + $0x188] sm:$0xff] }
 0xc15   :  { %v2211_v25 = vmul.f32 %v2210_v21, %v2209_v23  ;;  %2308 = vmatprep.mubr.f32.mxu1 %v2209_v23  ;;  %v4339_v21 = vld [vmem:[%s11071_s12 + $0x180] sm:$0xff]  ;;  %v4340_v23 = vld [vmem:[%s11071_s12 + $0x178] sm:$0xff] }
 0xc17   :  { %2309 = vmatmul.mubr.f32.vlgmr.msra.gmra.mxu1 %v2211_v25  ;;  %v4341_v25 = vld [vmem:[%s11071_s12 + $0x170] sm:$0xff] }
 0xc18   :  { %2402 = vmatpush1.msra.mxu1 %v4293_v28  ;;  %v4342_v28 = vld [vmem:[%s11071_s12 + $0x168] sm:$0xff] }
 0xc19   :  { %2403 = vmatprep.subr.mxu1 %v4294_v30  ;;  %v4343_v30 = vld [vmem:[%s11071_s12 + $0x160] sm:$0xff] }
 0xc1a   :  { %2404 = vmatpush1.msra.mxu1 %v4295_v8  ;;  %v4344_v8 = vld [vmem:[%s11071_s12 + $0x158] sm:$0xff] }
 0xc1b   :  { %2405 = vmatprep.subr.mxu1 %v4296_v24  ;;  %v4345_v24 = vld [vmem:[%s11071_s12 + $0x150] sm:$0xff] }
 0xc1c   :  { %2406 = vmatpush1.msra.mxu1 %v4297_v11  ;;  %v4346_v11 = vld [vmem:[%s11071_s12 + $0x148] sm:$0xff] }
 0xc1d   :  { %2407 = vmatprep.subr.mxu1 %v4298_v32  ;;  %v4347_v32 = vld [vmem:[%s11071_s12 + $0x140] sm:$0xff] }
 0xc1e   :  { %2408 = vmatpush1.msra.mxu1 %v4299_v38  ;;  %v4348_v38 = vld [vmem:[%s11071_s12 + $0x138] sm:$0xff] }
 0xc1f   :  { %2409 = vmatprep.subr.mxu1 %v4300_v43  ;;  %v4349_v43 = vld [vmem:[%s11071_s12 + $0x130] sm:$0xff] }
 0xc20   :  { %2410 = vmatpush1.msra.mxu1 %v4301_v33  ;;  %v4350_v33 = vld [vmem:[%s11071_s12 + $0x128] sm:$0xff] }
 0xc21   :  { %2411 = vmatprep.subr.mxu1 %v4302_v34  ;;  %v4351_v34 = vld [vmem:[%s11071_s12 + $0x120] sm:$0xff] }
 0xc22   :  { %2412 = vmatpush1.msra.mxu1 %v4303_v35  ;;  %v4352_v35 = vld [vmem:[%s11071_s12 + $0x118] sm:$0xff] }
 0xc23   :  { %2413 = vmatprep.subr.mxu1 %v4304_v36  ;;  %v4353_v36 = vld [vmem:[%s11071_s12 + $0x110] sm:$0xff] }
 0xc24   :  { %2414 = vmatpush1.msra.mxu1 %v4305_v37  ;;  %v4354_v37 = vld [vmem:[%s11071_s12 + $0x108] sm:$0xff] }
 0xc25   :  { %2415 = vmatprep.subr.mxu1 %v4306_v39  ;;  %v4355_v39 = vld [vmem:[%s11071_s12 + $0x100] sm:$0xff] }
 0xc26   :  { %2416 = vmatpush1.msra.mxu1 %v4307_v45  ;;  %v4356_v45 = vld [vmem:[%s11071_s12 + $0x4f8] sm:$0xff] }
 0xc27   :  { %2417 = vmatprep.subr.mxu1 %v4308_v40 }
 0xc28   :  { %2418 = vmatpush1.msra.mxu1 %v4309_v41 }
 0xc29   :  { %2419 = vmatprep.subr.mxu1 %v4310_v42 }
 0xc2a   :  { %2420 = vmatpush1.msra.mxu1 %v4311_v44 }
 0xc2b   :  { %2421 = vmatprep.subr.mxu1 %v4312_v46 }
 0xc2c   :  { %2422 = vmatpush1.msra.mxu1 %v4313_v56  ;;  %v2316_v56 = vmul.f32 0.5, %v6850_v29  ;;  %v4358_v29 = vld [vmem:[%s11071_s12 + $0x2f0] sm:$0xff] }
 0xc2d   :  { %2423 = vmatprep.subr.mxu1 %v4314_v50 }
 0xc2e   :  { %2424 = vmatpush1.msra.mxu1 %v4315_v47  ;;  %v2320_v47 = vstv %s4111_s13 }
 0xc2f   :  { %2425 = vmatprep.subr.mxu1 %v4316_v48  ;;  %v4357_v48 = vld [vmem:[%s11091_s10] sm:$0xff] }
 0xc30   :  { %2426 = vmatpush1.msra.mxu1 %v4317_v60 }
 0xc31   :  { %2427 = vmatprep.subr.mxu1 %v4318_v53 }
 0xc32   :  { %2428 = vmatpush1.msra.mxu1 %v4319_v49 }
 0xc33   :  { %2429 = vmatprep.subr.mxu1 %v4320_v51 }
 0xc34   :  { %2430 = vmatpush1.msra.mxu1 %v4321_v52  ;;  %v4360_v52 = vld [vmem:[%s11071_s12 + $0x2e0] sm:$0xff] }
 0xc35   :  { %2431 = vmatprep.subr.mxu1 %v4322_v57  ;;  %v4362_v57 = vld [vmem:[%s11071_s12 + $0x2d0] sm:$0xff] }
 0xc36   :  { %2432 = vmatpush1.msra.mxu1 %v4323_v58  ;;  %v4363_v58 = vld [vmem:[%s11071_s12 + $0x2c8] sm:$0xff] }
 0xc37   :  { %2433 = vmatprep.subr.mxu1 %v4324_v59  ;;  %v4364_v59 = vld [vmem:[%s11071_s12 + $0x2c0] sm:$0xff] }
 0xc38   :  { %2434 = vmatpush2.msra.mxu1 %v4325_v61  ;;  %v4365_v61 = vld [vmem:[%s11071_s12 + $0x2b8] sm:$0xff] }
 0xc39   :  { %2435 = vmatprep.subr.mxu1 %v4326_v62  ;;  %v4366_v62 = vld [vmem:[%s11071_s12 + $0x2b0] sm:$0xff] }
 0xc3a   :  { %2436 = vmatpush2.msra.mxu1 %v4327_v54  ;;  %v4367_v54 = vld [vmem:[%s11071_s12 + $0x2a8] sm:$0xff] }
 0xc3b   :  { %2437 = vmatprep.subr.mxu1 %v4328_v63  ;;  %v4368_v63 = vld [vmem:[%s11071_s12 + $0x2a0] sm:$0xff] }
 0xc3c   :  { %2438 = vmatpush2.msra.mxu1 %v4329_v0  ;;  %v4369_v0 = vld [vmem:[%s11071_s12 + $0x298] sm:$0xff] }
 0xc3d   :  { %2439 = vmatprep.subr.mxu1 %v4330_v1  ;;  %v4370_v1 = vld [vmem:[%s11071_s12 + $0x290] sm:$0xff] }
 0xc3e   :  { %2440 = vmatpush2.msra.mxu1 %v4331_v31  ;;  %v4371_v31 = vld [vmem:[%s11071_s12 + $0x288] sm:$0xff] }
 0xc3f   :  { %2441 = vmatprep.subr.mxu1 %v4332_v26  ;;  %v4372_v26 = vld [vmem:[%s11071_s12 + $0x280] sm:$0xff] }
 0xc40   :  { %2442 = vmatpush2.msra.mxu1 %v4333_v2  ;;  %v4373_v2 = vld [vmem:[%s11071_s12 + $0x278] sm:$0xff] }
 0xc41   :  { %2443 = vmatprep.subr.mxu1 %v4334_v3  ;;  %v4374_v3 = vld [vmem:[%s11071_s12 + $0x270] sm:$0xff] }
 0xc42   :  { %2444 = vmatpush2.msra.mxu1 %v4335_v5  ;;  %v4375_v5 = vld [vmem:[%s11071_s12 + $0x268] sm:$0xff] }
 0xc43   :  { %2445 = vmatprep.subr.mxu1 %v4336_v16  ;;  %v4376_v16 = vld [vmem:[%s11071_s12 + $0x260] sm:$0xff] }
 0xc44   :  { %2446 = vmatpush2.msra.mxu1 %v4337_v18  ;;  %v4377_v18 = vld [vmem:[%s11071_s12 + $0x258] sm:$0xff] }
 0xc45   :  { %2447 = vmatprep.subr.mxu1 %v4338_v19  ;;  %v4378_v19 = vld [vmem:[%s11071_s12 + $0x250] sm:$0xff] }
 0xc46   :  { %2448 = vmatpush2.msra.mxu1 %v4339_v21  ;;  %v4379_v21 = vld [vmem:[%s11071_s12 + $0x248] sm:$0xff] }
 0xc47   :  { %2449 = vmatprep.subr.mxu1 %v4340_v23  ;;  %v4380_v23 = vld [vmem:[%s11071_s12 + $0x240] sm:$0xff] }
 0xc48   :  { %2450 = vmatpush2.msra.mxu1 %v4341_v25  ;;  %v4381_v25 = vld [vmem:[%s11071_s12 + $0x238] sm:$0xff] }
 0xc49   :  { %2451 = vmatprep.subr.mxu1 %v4342_v28  ;;  %v4382_v28 = vld [vmem:[%s11071_s12 + $0x230] sm:$0xff] }
 0xc4a   :  { %2452 = vmatpush2.msra.mxu1 %v4343_v30  ;;  %v4383_v30 = vld [vmem:[%s11071_s12 + $0x228] sm:$0xff] }
 0xc4b   :  { %2453 = vmatprep.subr.mxu1 %v4344_v8  ;;  %v4384_v8 = vld [vmem:[%s11071_s12 + $0x220] sm:$0xff] }
 0xc4c   :  { %2454 = vmatpush2.msra.mxu1 %v4345_v24  ;;  %v4385_v24 = vld [vmem:[%s11071_s12 + $0x218] sm:$0xff] }
 0xc4d   :  { %2455 = vmatprep.subr.mxu1 %v4346_v11  ;;  %v4386_v11 = vld [vmem:[%s11071_s12 + $0x210] sm:$0xff] }
 0xc4e   :  { %2456 = vmatpush2.msra.mxu1 %v4347_v32  ;;  %v4387_v32 = vld [vmem:[%s11071_s12 + $0x208] sm:$0xff] }
 0xc4f   :  { %2457 = vmatprep.subr.mxu1 %v4348_v38  ;;  %v4388_v38 = vld [vmem:[%s11071_s12 + $0x200] sm:$0xff] }
 0xc50   :  { %2458 = vmatpush2.msra.mxu1 %v4349_v43  ;;  %v4389_v43 = vld [vmem:[%s11071_s12 + $0x3f8] sm:$0xff] }
 0xc51   :  { %2459 = vmatprep.subr.mxu1 %v4350_v33  ;;  %v4390_v33 = vld [vmem:[%s11071_s12 + $0x3f0] sm:$0xff] }
 0xc52   :  { %2460 = vmatpush2.msra.mxu1 %v4351_v34  ;;  %v4391_v34 = vld [vmem:[%s11071_s12 + $0x3e8] sm:$0xff] }
 0xc53   :  { %2461 = vmatprep.subr.mxu1 %v4352_v35  ;;  %v4392_v35 = vld [vmem:[%s11071_s12 + $0x3e0] sm:$0xff] }
 0xc54   :  { %2462 = vmatpush2.msra.mxu1 %v4353_v36  ;;  %v4393_v36 = vld [vmem:[%s11071_s12 + $0x3d8] sm:$0xff] }
 0xc55   :  { %2463 = vmatprep.subr.mxu1 %v4354_v37  ;;  %v4394_v37 = vld [vmem:[%s11071_s12 + $0x3d0] sm:$0xff] }
 0xc56   :  { %2464 = vmatpush2.msra.mxu1 %v4355_v39  ;;  %v4395_v39 = vld [vmem:[%s11071_s12 + $0x3c8] sm:$0xff] }
 0xc57   :  { %2557 = vmatprep.subr.mxu1 %v4356_v45  ;;  %v4396_v45 = vld [vmem:[%s11071_s12 + $0x3c0] sm:$0xff] }
 0xcd7   :  { %v4180_v40 = vpop.f32.mrf.mxu1 }
 0xcd9   :  { %v4181_v41 = vpop.f32.mrf.mxu1 }
 0xcda   :  { %v4182_v42 = vadd.f32 %v4181_v41, %v4180_v40  ;;  %v4397_v40 = vld [vmem:[%s11071_s12 + $0x3b8] sm:$0xff]  ;;  %v4398_v41 = vld [vmem:[%s11071_s12 + $0x3b0] sm:$0xff] }
 0xcdc   :  { %v2314_v44 = vadd.f32 %v4182_v42, %v8304_v17  ;;  %v4359_v17 = vld [vmem:[%s11071_s12 + $0x2e8] sm:$0xff] }
 0xcdd   :  { %v4399_v42 = vld [vmem:[%s11071_s12 + $0x3a8] sm:$0xff] }
 0xcde   :  { %v2315_v46 = vmul.f32 0.5, %v2314_v44  ;;  %v4400_v44 = vld [vmem:[%s11071_s12 + $0x3a0] sm:$0xff] }
 0xce0   :  { %v2317_v50 = vadd.f32 %v2316_v56, %v2315_v46  ;;  %v4401_v46 = vld [vmem:[%s11071_s12 + $0x398] sm:$0xff]  ;;  %v4402_v56 = vld [vmem:[%s11071_s12 + $0x390] sm:$0xff] }
 0xce2   :  { %v2319_v60 = vsub.f32 %v2317_v50, %v4357_v48  ;;  %v4403_v50 = vld [vmem:[%s11071_s12 + $0x388] sm:$0xff]  ;;  %v4405_v48 = vld [vmem:[%s11071_s12 + $0x378] sm:$0xff] }
 0xce4   :  { %v2321_v53 = vmul.f32 %v2320_v47, %v2319_v60  ;;  %v4404_v47 = vld [vmem:[%s11071_s12 + $0x380] sm:$0xff]  ;;  %v4406_v60 = vld [vmem:[%s11071_s12 + $0x370] sm:$0xff] }
 0xce6   :  { %v8508_v49 = vsub.f32 %v6844_v27, %v2321_v53  ;;  %v4407_v53 = vld [vmem:[%s11071_s12 + $0x368] sm:$0xff] }
 0xce8   :  { %2388 = vmatmul.mubr.f32.vlgmr.msra.gmra.mxu0 %v8508_v49  ;;  %v2633_v51 = vmul.f32 %v8145_v22, %v8508_v49  ;;  %v4361_v22 = vld [vmem:[%s11071_s12 + $0x2d8] sm:$0xff] }
 0xce9   :  { %2480 = vmatpush1.msra.mxu0 %v4358_v29  ;;  %v4409_v29 = vld [vmem:[%s11071_s12 + $0x358] sm:$0xff] }
 0xcea   :  { %2634 = vadd.xlane.f32.xlu1 %v2633_v51  ;;  %2481 = vmatprep.subr.mxu0 %v4359_v17  ;;  %v4408_v51 = vld [vmem:[%s11071_s12 + $0x360] sm:$0xff]  ;;  %v4410_v17 = vld [vmem:[%s11071_s12 + $0x350] sm:$0xff] }
 0xceb   :  { %2482 = vmatpush1.msra.mxu0 %v4360_v52  ;;  %v4411_v52 = vld [vmem:[%s11071_s12 + $0x348] sm:$0xff] }
 0xcec   :  { %2483 = vmatprep.subr.mxu0 %v4361_v22  ;;  %v4412_v22 = vld [vmem:[%s11071_s12 + $0x340] sm:$0xff] }
 0xced   :  { %2484 = vmatpush1.msra.mxu0 %v4362_v57  ;;  %v4413_v57 = vld [vmem:[%s11071_s12 + $0x338] sm:$0xff] }
 0xcee   :  { %2485 = vmatprep.subr.mxu0 %v4363_v58  ;;  %v4414_v58 = vld [vmem:[%s11071_s12 + $0x330] sm:$0xff] }
 0xcef   :  { %2486 = vmatpush1.msra.mxu0 %v4364_v59  ;;  %v4415_v59 = vld [vmem:[%s11071_s12 + $0x328] sm:$0xff] }
 0xcf0   :  { %2487 = vmatprep.subr.mxu0 %v4365_v61  ;;  %v4416_v61 = vld [vmem:[%s11071_s12 + $0x320] sm:$0xff] }
 0xcf1   :  { %2488 = vmatpush1.msra.mxu0 %v4366_v62  ;;  %v4417_v62 = vld [vmem:[%s11071_s12 + $0x318] sm:$0xff] }
 0xcf2   :  { %2489 = vmatprep.subr.mxu0 %v4367_v54  ;;  %v4418_v54 = vld [vmem:[%s11071_s12 + $0x310] sm:$0xff] }
 0xcf3   :  { %2490 = vmatpush1.msra.mxu0 %v4368_v63  ;;  %v4419_v63 = vld [vmem:[%s11071_s12 + $0x308] sm:$0xff] }
 0xcf4   :  { %2491 = vmatprep.subr.mxu0 %v4369_v0  ;;  %v4420_v0 = vld [vmem:[%s11071_s12 + $0x300] sm:$0xff] }
 0xcf5   :  { %2492 = vmatpush1.msra.mxu0 %v4370_v1  ;;  %v4421_v1 = vld [vmem:[%s11074_s15 + $0x4f8] sm:$0xff] }
 0xcf6   :  { %2493 = vmatprep.subr.mxu0 %v4371_v31 }
 0xcf7   :  { %2494 = vmatpush1.msra.mxu0 %v4372_v26 }
 0xcf8   :  { %2495 = vmatprep.subr.mxu0 %v4373_v2 }
 0xcf9   :  { %2496 = vmatpush1.msra.mxu0 %v4374_v3 }
 0xcfa   :  { %2497 = vmatprep.subr.mxu0 %v4375_v5  ;;  %v4422_v5 = vld [vmem:[%s11092_s2] ss:$0 sm:$0xff] }
 0xcfb   :  { %2498 = vmatpush1.msra.mxu0 %v4376_v16 }
 0xcfc   :  { %2499 = vmatprep.subr.mxu0 %v4377_v18 }
 0xcfd   :  { %2500 = vmatpush1.msra.mxu0 %v4378_v19 }
 0xcfe   :  { %2501 = vmatprep.subr.mxu0 %v4379_v21  ;;  %v4423_v21 = vld [vmem:[%s11071_s12 + $0x4f0] sm:$0xff] }
 0xcff   :  { %2502 = vmatpush1.msra.mxu0 %v4380_v23  ;;  %v4424_v23 = vld [vmem:[%s11071_s12 + $0x4e8] sm:$0xff] }
 0xd00   :  { %2503 = vmatprep.subr.mxu0 %v4381_v25  ;;  %v4425_v25 = vld [vmem:[%s11071_s12 + $0x4e0] sm:$0xff] }
 0xd01   :  { %2504 = vmatpush1.msra.mxu0 %v4382_v28  ;;  %v4426_v28 = vld [vmem:[%s11071_s12 + $0x4d8] sm:$0xff] }
 0xd02   :  { %2505 = vmatprep.subr.mxu0 %v4383_v30  ;;  %v4427_v30 = vld [vmem:[%s11071_s12 + $0x4d0] sm:$0xff] }
 0xd03   :  { %2506 = vmatpush1.msra.mxu0 %v4384_v8  ;;  %v4428_v8 = vld [vmem:[%s11071_s12 + $0x4c8] sm:$0xff] }
 0xd04   :  { %2507 = vmatprep.subr.mxu0 %v4385_v24  ;;  %v4429_v24 = vld [vmem:[%s11071_s12 + $0x4c0] sm:$0xff] }
 0xd05   :  { %2508 = vmatpush1.msra.mxu0 %v4386_v11  ;;  %v4430_v11 = vld [vmem:[%s11071_s12 + $0x4b8] sm:$0xff] }
 0xd06   :  { %2509 = vmatprep.subr.mxu0 %v4387_v32  ;;  %v4431_v32 = vld [vmem:[%s11071_s12 + $0x4b0] sm:$0xff] }
 0xd07   :  { %2510 = vmatpush1.msra.mxu0 %v4388_v38  ;;  %v4432_v38 = vld [vmem:[%s11071_s12 + $0x4a8] sm:$0xff] }
 0xd08   :  { %2511 = vmatprep.subr.mxu0 %v4389_v43  ;;  %v4433_v43 = vld [vmem:[%s11071_s12 + $0x4a0] sm:$0xff] }
 0xd09   :  { %2512 = vmatpush2.msra.mxu0 %v4390_v33  ;;  %v4434_v33 = vld [vmem:[%s11071_s12 + $0x498] sm:$0xff] }
 0xd0a   :  { %2513 = vmatprep.subr.mxu0 %v4391_v34  ;;  %v4435_v34 = vld [vmem:[%s11071_s12 + $0x490] sm:$0xff] }
 0xd0b   :  { %2514 = vmatpush2.msra.mxu0 %v4392_v35  ;;  %v4436_v35 = vld [vmem:[%s11071_s12 + $0x488] sm:$0xff] }
 0xd0c   :  { %2515 = vmatprep.subr.mxu0 %v4393_v36  ;;  %v4437_v36 = vld [vmem:[%s11071_s12 + $0x480] sm:$0xff] }
 0xd0d   :  { %2516 = vmatpush2.msra.mxu0 %v4394_v37  ;;  %v4438_v37 = vld [vmem:[%s11071_s12 + $0x478] sm:$0xff] }
 0xd0e   :  { %2517 = vmatprep.subr.mxu0 %v4395_v39  ;;  %v4439_v39 = vld [vmem:[%s11071_s12 + $0x470] sm:$0xff] }
 0xd0f   :  { %2518 = vmatpush2.msra.mxu0 %v4396_v45  ;;  %v4440_v45 = vld [vmem:[%s11071_s12 + $0x468] sm:$0xff] }
 0xd10   :  { %2519 = vmatprep.subr.mxu0 %v4397_v40  ;;  %v4441_v40 = vld [vmem:[%s11071_s12 + $0x460] sm:$0xff] }
 0xd11   :  { %2520 = vmatpush2.msra.mxu0 %v4398_v41  ;;  %v4442_v41 = vld [vmem:[%s11071_s12 + $0x458] sm:$0xff] }
 0xd12   :  { %2521 = vmatprep.subr.mxu0 %v4399_v42  ;;  %v4443_v42 = vld [vmem:[%s11071_s12 + $0x450] sm:$0xff] }
 0xd13   :  { %2522 = vmatpush2.msra.mxu0 %v4400_v44  ;;  %v4444_v44 = vld [vmem:[%s11071_s12 + $0x448] sm:$0xff] }
 0xd14   :  { %2523 = vmatprep.subr.mxu0 %v4401_v46  ;;  %v4445_v46 = vld [vmem:[%s11071_s12 + $0x440] sm:$0xff] }
 0xd15   :  { %2524 = vmatpush2.msra.mxu0 %v4402_v56  ;;  %v4446_v56 = vld [vmem:[%s11071_s12 + $0x438] sm:$0xff] }
 0xd16   :  { %2525 = vmatprep.subr.mxu0 %v4403_v50  ;;  %v4447_v50 = vld [vmem:[%s11071_s12 + $0x430] sm:$0xff] }
 0xd17   :  { %2526 = vmatpush2.msra.mxu0 %v4404_v47  ;;  %v4448_v47 = vld [vmem:[%s11071_s12 + $0x428] sm:$0xff] }
 0xd18   :  { %2527 = vmatprep.subr.mxu0 %v4405_v48  ;;  %v4449_v48 = vld [vmem:[%s11071_s12 + $0x420] sm:$0xff] }
 0xd19   :  { %2528 = vmatpush2.msra.mxu0 %v4406_v60  ;;  %v4450_v60 = vld [vmem:[%s11071_s12 + $0x418] sm:$0xff] }
 0xd1a   :  { %2529 = vmatprep.subr.mxu0 %v4407_v53  ;;  %v4451_v53 = vld [vmem:[%s11071_s12 + $0x410] sm:$0xff] }
 0xd1b   :  { %2530 = vmatpush2.msra.mxu0 %v4408_v51  ;;  %v4452_v51 = vld [vmem:[%s11071_s12 + $0x408] sm:$0xff] }
 0xd1c   :  { %2531 = vmatprep.subr.mxu0 %v4409_v29  ;;  %v4453_v29 = vld [vmem:[%s11071_s12 + $0x400] sm:$0xff] }
 0xd1d   :  { %2532 = vmatpush2.msra.mxu0 %v4410_v17  ;;  %v4454_v17 = vld [vmem:[%s11071_s12 + $0x5f8] sm:$0xff] }
 0xd1e   :  { %2533 = vmatprep.subr.mxu0 %v4411_v52  ;;  %v4455_v52 = vld [vmem:[%s11071_s12 + $0x5f0] sm:$0xff] }
 0xd1f   :  { %2534 = vmatpush2.msra.mxu0 %v4412_v22  ;;  %v4456_v22 = vld [vmem:[%s11071_s12 + $0x5e8] sm:$0xff] }
 0xd20   :  { %2535 = vmatprep.subr.mxu0 %v4413_v57  ;;  %v4457_v57 = vld [vmem:[%s11071_s12 + $0x5e0] sm:$0xff] }
 0xd21   :  { %2536 = vmatpush2.msra.mxu0 %v4414_v58  ;;  %v4458_v58 = vld [vmem:[%s11071_s12 + $0x5d8] sm:$0xff] }
 0xd22   :  { %2537 = vmatprep.subr.mxu0 %v4415_v59  ;;  %v4459_v59 = vld [vmem:[%s11071_s12 + $0x5d0] sm:$0xff] }
 0xd23   :  { %2538 = vmatpush2.msra.mxu0 %v4416_v61  ;;  %v4460_v61 = vld [vmem:[%s11071_s12 + $0x5c8] sm:$0xff] }
 0xd24   :  { %2539 = vmatprep.subr.mxu0 %v4417_v62  ;;  %v4461_v62 = vld [vmem:[%s11071_s12 + $0x5c0] sm:$0xff] }
 0xd25   :  { %2540 = vmatpush2.msra.mxu0 %v4418_v54  ;;  %v4462_v54 = vld [vmem:[%s11071_s12 + $0x5b8] sm:$0xff] }
 0xd26   :  { %2541 = vmatprep.subr.mxu0 %v4419_v63  ;;  %v4463_v63 = vld [vmem:[%s11071_s12 + $0x5b0] sm:$0xff] }
 0xd27   :  { %2542 = vmatpush2.msra.mxu0 %v4420_v0  ;;  %v4464_v0 = vld [vmem:[%s11071_s12 + $0x5a8] sm:$0xff] }
 0xd28   :  { %2642 = vmatprep.subr.mxu0 %v4421_v1  ;;  %v4465_v1 = vld [vmem:[%s11071_s12 + $0x5a0] sm:$0xff] }
 0xda8   :  { %v8705_v31 = vpop.f32.mrf.mxu0 }
 0xda9   :  { %v2394_v26 = vmul.f32 %v8705_v31, %v8705_v31 }
 0xdaa   :  { %v2391_v2 = vpop.f32.mrf.mxu0 }
 0xdab   :  { %v2395_v3 = vadd.f32 %v2394_v26, %v2391_v2  ;;  %v4466_v26 = vld [vmem:[%s11071_s12 + $0x598] sm:$0xff]  ;;  %v4467_v2 = vld [vmem:[%s11071_s12 + $0x590] sm:$0xff] }
 0xdad   :  { %v8712_v16 = vadd.f32 %v4422_v5, %v2395_v3  ;;  %v4468_v3 = vld [vmem:[%s11071_s12 + $0x588] sm:$0xff]  ;;  %v4469_v5 = vld [vmem:[%s11071_s12 + $0x580] sm:$0xff] }
 0xdaf   :  { %vm2397_vm8 = vcmp.gt.f32.partialorder %v8712_v16, 0.0  ;;  %v2398_v18 = vmul.f32 0.2, %v8712_v16 }
 0xdb1   :  { %v2399_v19 = vsel %vm2397_vm8, %v8712_v16, %v2398_v18  ;;  %v4470_v18 = vld [vmem:[%s11071_s12 + $0x578] sm:$0xff]  ;;  %v4742_v16 = vld [vmem:[%s11071_s12 + $0xe0] sm:$0xff] }
 0xdb2   :  { %2465 = vmatprep.mubr.f32.mxu1 %v2399_v19  ;;  %v4471_v19 = vld [vmem:[%s11071_s12 + $0x570] sm:$0xff] }
 0xdb3   :  { %2466 = vmatmul.mubr.f32.vlgmr.msra.gmra.mxu1 %v8508_v49 }
 0xdb4   :  { %2558 = vmatpush1.msra.mxu1 %v4423_v21  ;;  %v4472_v21 = vld [vmem:[%s11071_s12 + $0x568] sm:$0xff] }
 0xdb5   :  { %2559 = vmatprep.subr.mxu1 %v4424_v23  ;;  %v4473_v23 = vld [vmem:[%s11071_s12 + $0x560] sm:$0xff] }
 0xdb6   :  { %2560 = vmatpush1.msra.mxu1 %v4425_v25  ;;  %v4474_v25 = vld [vmem:[%s11071_s12 + $0x558] sm:$0xff] }
 0xdb7   :  { %2561 = vmatprep.subr.mxu1 %v4426_v28  ;;  %v4475_v28 = vld [vmem:[%s11071_s12 + $0x550] sm:$0xff] }
 0xdb8   :  { %2562 = vmatpush1.msra.mxu1 %v4427_v30  ;;  %v4476_v30 = vld [vmem:[%s11071_s12 + $0x548] sm:$0xff] }
 0xdb9   :  { %2563 = vmatprep.subr.mxu1 %v4428_v8  ;;  %v4477_v8 = vld [vmem:[%s11071_s12 + $0x540] sm:$0xff] }
 0xdba   :  { %2564 = vmatpush1.msra.mxu1 %v4429_v24  ;;  %v4478_v24 = vld [vmem:[%s11071_s12 + $0x538] sm:$0xff] }
 0xdbb   :  { %2565 = vmatprep.subr.mxu1 %v4430_v11  ;;  %v4479_v11 = vld [vmem:[%s11071_s12 + $0x530] sm:$0xff] }
 0xdbc   :  { %2566 = vmatpush1.msra.mxu1 %v4431_v32  ;;  %v4480_v32 = vld [vmem:[%s11071_s12 + $0x528] sm:$0xff] }
 0xdbd   :  { %2567 = vmatprep.subr.mxu1 %v4432_v38  ;;  %v4481_v38 = vld [vmem:[%s11071_s12 + $0x520] sm:$0xff] }
 0xdbe   :  { %2568 = vmatpush1.msra.mxu1 %v4433_v43  ;;  %v4482_v43 = vld [vmem:[%s11071_s12 + $0x518] sm:$0xff] }
 0xdbf   :  { %2569 = vmatprep.subr.mxu1 %v4434_v33  ;;  %v4483_v33 = vld [vmem:[%s11071_s12 + $0x510] sm:$0xff] }
 0xdc0   :  { %2570 = vmatpush1.msra.mxu1 %v4435_v34  ;;  %v4484_v34 = vld [vmem:[%s11071_s12 + $0x508] sm:$0xff] }
 0xdc1   :  { %2571 = vmatprep.subr.mxu1 %v4436_v35  ;;  %v4485_v35 = vld [vmem:[%s11071_s12 + $0x500] sm:$0xff] }
 0xdc2   :  { %2572 = vmatpush1.msra.mxu1 %v4437_v36  ;;  %v4486_v36 = vld [vmem:[%s11074_s15 + $0x2f8] sm:$0xff] }
 0xdc3   :  { %2573 = vmatprep.subr.mxu1 %v4438_v37 }
 0xdc4   :  { %2574 = vmatpush1.msra.mxu1 %v4439_v39 }
 0xdc5   :  { %2575 = vmatprep.subr.mxu1 %v4440_v45 }
 0xdc6   :  { %2576 = vmatpush1.msra.mxu1 %v4441_v40 }
 0xdc7   :  { %2577 = vmatprep.subr.mxu1 %v4442_v41  ;;  %v4487_v41 = vld [vmem:[%s11092_s2 + $0x1] ss:$0 sm:$0xff] }
 0xdc8   :  { %2578 = vmatpush1.msra.mxu1 %v4443_v42 }
 0xdc9   :  { %2579 = vmatprep.subr.mxu1 %v4444_v44 }
 0xdca   :  { %2580 = vmatpush1.msra.mxu1 %v4445_v46 }
 0xdcb   :  { %2581 = vmatprep.subr.mxu1 %v4446_v56  ;;  %v4488_v56 = vld [vmem:[%s11074_s15 + $0x4f0] sm:$0xff] }
 0xdcc   :  { %2582 = vmatpush1.msra.mxu1 %v4447_v50  ;;  %v4489_v50 = vld [vmem:[%s11074_s15 + $0x4e8] sm:$0xff] }
 0xdcd   :  { %2583 = vmatprep.subr.mxu1 %v4448_v47  ;;  %v4490_v47 = vld [vmem:[%s11074_s15 + $0x4e0] sm:$0xff] }
 0xdce   :  { %2584 = vmatpush1.msra.mxu1 %v4449_v48  ;;  %v4491_v48 = vld [vmem:[%s11074_s15 + $0x4d8] sm:$0xff] }
 0xdcf   :  { %2585 = vmatprep.subr.mxu1 %v4450_v60  ;;  %v4492_v60 = vld [vmem:[%s11074_s15 + $0x4d0] sm:$0xff] }
 0xdd0   :  { %2586 = vmatpush1.msra.mxu1 %v4451_v53  ;;  %v4493_v53 = vld [vmem:[%s11074_s15 + $0x4c8] sm:$0xff] }
 0xdd1   :  { %2587 = vmatprep.subr.mxu1 %v4452_v51  ;;  %v4494_v51 = vld [vmem:[%s11074_s15 + $0x4c0] sm:$0xff] }
 0xdd2   :  { %2588 = vmatpush1.msra.mxu1 %v4453_v29  ;;  %v4495_v29 = vld [vmem:[%s11074_s15 + $0x4b8] sm:$0xff] }
 0xdd3   :  { %2589 = vmatprep.subr.mxu1 %v4454_v17  ;;  %v4496_v17 = vld [vmem:[%s11074_s15 + $0x4b0] sm:$0xff] }
 0xdd4   :  { %2590 = vmatpush2.msra.mxu1 %v4455_v52  ;;  %v4497_v52 = vld [vmem:[%s11074_s15 + $0x4a8] sm:$0xff] }
 0xdd5   :  { %2591 = vmatprep.subr.mxu1 %v4456_v22  ;;  %v4498_v22 = vld [vmem:[%s11074_s15 + $0x4a0] sm:$0xff] }
 0xdd6   :  { %2592 = vmatpush2.msra.mxu1 %v4457_v57  ;;  %v4499_v57 = vld [vmem:[%s11074_s15 + $0x498] sm:$0xff] }
 0xdd7   :  { %2593 = vmatprep.subr.mxu1 %v4458_v58  ;;  %v4500_v58 = vld [vmem:[%s11074_s15 + $0x490] sm:$0xff] }
 0xdd8   :  { %2594 = vmatpush2.msra.mxu1 %v4459_v59  ;;  %v4501_v59 = vld [vmem:[%s11074_s15 + $0x488] sm:$0xff] }
 0xdd9   :  { %2595 = vmatprep.subr.mxu1 %v4460_v61  ;;  %v4502_v61 = vld [vmem:[%s11074_s15 + $0x480] sm:$0xff] }
 0xdda   :  { %2596 = vmatpush2.msra.mxu1 %v4461_v62  ;;  %v4503_v62 = vld [vmem:[%s11074_s15 + $0x478] sm:$0xff] }
 0xddb   :  { %2597 = vmatprep.subr.mxu1 %v4462_v54  ;;  %v4504_v54 = vld [vmem:[%s11074_s15 + $0x470] sm:$0xff] }
 0xddc   :  { %2598 = vmatpush2.msra.mxu1 %v4463_v63  ;;  %v4505_v63 = vld [vmem:[%s11074_s15 + $0x468] sm:$0xff] }
 0xddd   :  { %2599 = vmatprep.subr.mxu1 %v4464_v0  ;;  %v4506_v0 = vld [vmem:[%s11074_s15 + $0x460] sm:$0xff] }
 0xdde   :  { %2600 = vmatpush2.msra.mxu1 %v4465_v1  ;;  %v4507_v1 = vld [vmem:[%s11074_s15 + $0x458] sm:$0xff] }
 0xddf   :  { %2601 = vmatprep.subr.mxu1 %v4466_v26  ;;  %v4508_v26 = vld [vmem:[%s11074_s15 + $0x450] sm:$0xff] }
 0xde0   :  { %2602 = vmatpush2.msra.mxu1 %v4467_v2  ;;  %v4509_v2 = vld [vmem:[%s11074_s15 + $0x448] sm:$0xff] }
 0xde1   :  { %2603 = vmatprep.subr.mxu1 %v4468_v3  ;;  %v4510_v3 = vld [vmem:[%s11074_s15 + $0x440] sm:$0xff] }
 0xde2   :  { %2604 = vmatpush2.msra.mxu1 %v4469_v5  ;;  %v4511_v5 = vld [vmem:[%s11074_s15 + $0x438] sm:$0xff] }
 0xde3   :  { %2605 = vmatprep.subr.mxu1 %v4470_v18  ;;  %v4512_v18 = vld [vmem:[%s11074_s15 + $0x430] sm:$0xff] }
 0xde4   :  { %2606 = vmatpush2.msra.mxu1 %v4471_v19  ;;  %v4513_v19 = vld [vmem:[%s11074_s15 + $0x428] sm:$0xff] }
 0xde5   :  { %2607 = vmatprep.subr.mxu1 %v4472_v21  ;;  %v4514_v21 = vld [vmem:[%s11074_s15 + $0x420] sm:$0xff] }
 0xde6   :  { %2608 = vmatpush2.msra.mxu1 %v4473_v23  ;;  %v4515_v23 = vld [vmem:[%s11074_s15 + $0x418] sm:$0xff] }
 0xde7   :  { %2609 = vmatprep.subr.mxu1 %v4474_v25  ;;  %v4516_v25 = vld [vmem:[%s11074_s15 + $0x410] sm:$0xff] }
 0xde8   :  { %2610 = vmatpush2.msra.mxu1 %v4475_v28  ;;  %v4517_v28 = vld [vmem:[%s11074_s15 + $0x408] sm:$0xff] }
 0xde9   :  { %2611 = vmatprep.subr.mxu1 %v4476_v30  ;;  %v4518_v30 = vld [vmem:[%s11074_s15 + $0x400] sm:$0xff] }
 0xdea   :  { %2612 = vmatpush2.msra.mxu1 %v4477_v8  ;;  %v4519_v8 = vld [vmem:[%s11074_s15 + $0x5f8] sm:$0xff] }
 0xdeb   :  { %2613 = vmatprep.subr.mxu1 %v4478_v24  ;;  %v4520_v24 = vld [vmem:[%s11074_s15 + $0x5f0] sm:$0xff] }
 0xdec   :  { %2614 = vmatpush2.msra.mxu1 %v4479_v11  ;;  %v4521_v11 = vld [vmem:[%s11074_s15 + $0x5e8] sm:$0xff] }
 0xded   :  { %2615 = vmatprep.subr.mxu1 %v4480_v32  ;;  %v4522_v32 = vld [vmem:[%s11074_s15 + $0x5e0] sm:$0xff] }
 0xdee   :  { %2616 = vmatpush2.msra.mxu1 %v4481_v38  ;;  %v4523_v38 = vld [vmem:[%s11074_s15 + $0x5d8] sm:$0xff] }
 0xdef   :  { %2617 = vmatprep.subr.mxu1 %v4482_v43  ;;  %v4524_v43 = vld [vmem:[%s11074_s15 + $0x5d0] sm:$0xff] }
 0xdf0   :  { %2618 = vmatpush2.msra.mxu1 %v4483_v33  ;;  %v4525_v33 = vld [vmem:[%s11074_s15 + $0x5c8] sm:$0xff] }
 0xdf1   :  { %2619 = vmatprep.subr.mxu1 %v4484_v34  ;;  %v4526_v34 = vld [vmem:[%s11074_s15 + $0x5c0] sm:$0xff] }
 0xdf2   :  { %2620 = vmatpush2.msra.mxu1 %v4485_v35  ;;  %v4527_v35 = vld [vmem:[%s11074_s15 + $0x5b8] sm:$0xff] }
 0xdf3   :  { %2717 = vmatprep.subr.mxu1 %v4486_v36  ;;  %v4528_v36 = vld [vmem:[%s11074_s15 + $0x5b0] sm:$0xff] }
 0xe73   :  { %v8912_v37 = vpop.f32.mrf.mxu1 }
 0xe74   :  { %v2472_v39 = vmul.f32 %v8912_v37, %v8912_v37 }
 0xe75   :  { %v2469_v45 = vpop.f32.mrf.mxu1 }
 0xe76   :  { %v2473_v40 = vadd.f32 %v2472_v39, %v2469_v45  ;;  %v4529_v39 = vld [vmem:[%s11074_s15 + $0x5a8] sm:$0xff]  ;;  %v4530_v45 = vld [vmem:[%s11074_s15 + $0x5a0] sm:$0xff] }
 0xe78   :  { %v8919_v42 = vadd.f32 %v4487_v41, %v2473_v40  ;;  %v4531_v40 = vld [vmem:[%s11074_s15 + $0x598] sm:$0xff]  ;;  %v4532_v41 = vld [vmem:[%s11074_s15 + $0x590] sm:$0xff] }
 0xe7a   :  { %vm2475_vm9 = vcmp.gt.f32.partialorder %v8919_v42, 0.0  ;;  %v2476_v44 = vmul.f32 0.2, %v8919_v42 }
 0xe7c   :  { %v2477_v46 = vsel %vm2475_vm9, %v8919_v42, %v2476_v44  ;;  %v4533_v44 = vld [vmem:[%s11074_s15 + $0x588] sm:$0xff]  ;;  %v4711_v42 = vld [vmem:[%s11070_s11 + $0xd8] sm:$0xff] }
 0xe7d   :  { %2543 = vmatprep.mubr.f32.mxu0 %v2477_v46  ;;  %v4534_v46 = vld [vmem:[%s11074_s15 + $0x580] sm:$0xff] }
 0xe7e   :  { %2544 = vmatmul.mubr.f32.vlgmr.msra.gmra.mxu0 %v8508_v49 }
 0xe7f   :  { %2643 = vmatpush1.msra.mxu0 %v4488_v56  ;;  %v4535_v56 = vld [vmem:[%s11074_s15 + $0x578] sm:$0xff] }
 0xe80   :  { %2644 = vmatprep.subr.mxu0 %v4489_v50  ;;  %v4536_v50 = vld [vmem:[%s11074_s15 + $0x570] sm:$0xff] }
 0xe81   :  { %2645 = vmatpush1.msra.mxu0 %v4490_v47  ;;  %v4537_v47 = vld [vmem:[%s11074_s15 + $0x568] sm:$0xff] }
 0xe82   :  { %2646 = vmatprep.subr.mxu0 %v4491_v48  ;;  %v4538_v48 = vld [vmem:[%s11074_s15 + $0x560] sm:$0xff] }
 0xe83   :  { %2647 = vmatpush1.msra.mxu0 %v4492_v60  ;;  %v4539_v60 = vld [vmem:[%s11074_s15 + $0x558] sm:$0xff] }
 0xe84   :  { %2648 = vmatprep.subr.mxu0 %v4493_v53  ;;  %v4540_v53 = vld [vmem:[%s11074_s15 + $0x550] sm:$0xff] }
 0xe85   :  { %2649 = vmatpush1.msra.mxu0 %v4494_v51  ;;  %v4541_v51 = vld [vmem:[%s11074_s15 + $0x548] sm:$0xff] }
 0xe86   :  { %2650 = vmatprep.subr.mxu0 %v4495_v29  ;;  %v4542_v29 = vld [vmem:[%s11074_s15 + $0x540] sm:$0xff] }
 0xe87   :  { %2651 = vmatpush1.msra.mxu0 %v4496_v17  ;;  %v4543_v17 = vld [vmem:[%s11074_s15 + $0x538] sm:$0xff] }
 0xe88   :  { %2652 = vmatprep.subr.mxu0 %v4497_v52  ;;  %v4544_v52 = vld [vmem:[%s11074_s15 + $0x530] sm:$0xff] }
 0xe89   :  { %2653 = vmatpush1.msra.mxu0 %v4498_v22  ;;  %v4545_v22 = vld [vmem:[%s11074_s15 + $0x528] sm:$0xff] }
 0xe8a   :  { %2654 = vmatprep.subr.mxu0 %v4499_v57  ;;  %v4546_v57 = vld [vmem:[%s11074_s15 + $0x520] sm:$0xff] }
 0xe8b   :  { %2655 = vmatpush1.msra.mxu0 %v4500_v58  ;;  %v4547_v58 = vld [vmem:[%s11074_s15 + $0x518] sm:$0xff] }
 0xe8c   :  { %2656 = vmatprep.subr.mxu0 %v4501_v59  ;;  %v4548_v59 = vld [vmem:[%s11074_s15 + $0x510] sm:$0xff] }
 0xe8d   :  { %2657 = vmatpush1.msra.mxu0 %v4502_v61  ;;  %v4549_v61 = vld [vmem:[%s11074_s15 + $0x508] sm:$0xff] }
 0xe8e   :  { %2658 = vmatprep.subr.mxu0 %v4503_v62  ;;  %v4550_v62 = vld [vmem:[%s11074_s15 + $0x500] sm:$0xff] }
 0xe8f   :  { %2659 = vmatpush1.msra.mxu0 %v4504_v54  ;;  %v4551_v54 = vld [vmem:[%s11074_s15 + $0xf8] sm:$0xff] }
 0xe90   :  { %2660 = vmatprep.subr.mxu0 %v4505_v63 }
 0xe91   :  { %2661 = vmatpush1.msra.mxu0 %v4506_v0 }
 0xe92   :  { %2662 = vmatprep.subr.mxu0 %v4507_v1 }
 0xe93   :  { %2663 = vmatpush1.msra.mxu0 %v4508_v26 }
 0xe94   :  { %2664 = vmatprep.subr.mxu0 %v4509_v2  ;;  %v4552_v2 = vld [vmem:[%s11092_s2 + $0x2] ss:$0 sm:$0xff] }
 0xe95   :  { %2665 = vmatpush1.msra.mxu0 %v4510_v3 }
 0xe96   :  { %2666 = vmatprep.subr.mxu0 %v4511_v5 }
 0xe97   :  { %2667 = vmatpush1.msra.mxu0 %v4512_v18 }
 0xe98   :  { %2668 = vmatprep.subr.mxu0 %v4513_v19  ;;  %v4553_v19 = vld [vmem:[%s11074_s15 + $0x2f0] sm:$0xff] }
 0xe99   :  { %2669 = vmatpush1.msra.mxu0 %v4514_v21  ;;  %v4554_v21 = vld [vmem:[%s11074_s15 + $0x2e8] sm:$0xff] }
 0xe9a   :  { %2670 = vmatprep.subr.mxu0 %v4515_v23  ;;  %v4555_v23 = vld [vmem:[%s11074_s15 + $0x2e0] sm:$0xff] }
 0xe9b   :  { %2671 = vmatpush1.msra.mxu0 %v4516_v25  ;;  %v4556_v25 = vld [vmem:[%s11074_s15 + $0x2d8] sm:$0xff] }
 0xe9c   :  { %2672 = vmatprep.subr.mxu0 %v4517_v28  ;;  %v4557_v28 = vld [vmem:[%s11074_s15 + $0x2d0] sm:$0xff] }
 0xe9d   :  { %2673 = vmatpush1.msra.mxu0 %v4518_v30  ;;  %v4558_v30 = vld [vmem:[%s11074_s15 + $0x2c8] sm:$0xff] }
 0xe9e   :  { %2674 = vmatprep.subr.mxu0 %v4519_v8  ;;  %v4559_v8 = vld [vmem:[%s11074_s15 + $0x2c0] sm:$0xff] }
 0xe9f   :  { %2675 = vmatpush2.msra.mxu0 %v4520_v24  ;;  %v4560_v24 = vld [vmem:[%s11074_s15 + $0x2b8] sm:$0xff] }
 0xea0   :  { %2676 = vmatprep.subr.mxu0 %v4521_v11  ;;  %v4561_v11 = vld [vmem:[%s11074_s15 + $0x2b0] sm:$0xff] }
 0xea1   :  { %2677 = vmatpush2.msra.mxu0 %v4522_v32  ;;  %v4562_v32 = vld [vmem:[%s11074_s15 + $0x2a8] sm:$0xff] }
 0xea2   :  { %2678 = vmatprep.subr.mxu0 %v4523_v38  ;;  %v4563_v38 = vld [vmem:[%s11074_s15 + $0x2a0] sm:$0xff] }
 0xea3   :  { %2679 = vmatpush2.msra.mxu0 %v4524_v43  ;;  %v4564_v43 = vld [vmem:[%s11074_s15 + $0x298] sm:$0xff] }
 0xea4   :  { %2680 = vmatprep.subr.mxu0 %v4525_v33  ;;  %v4565_v33 = vld [vmem:[%s11074_s15 + $0x290] sm:$0xff] }
 0xea5   :  { %2681 = vmatpush2.msra.mxu0 %v4526_v34  ;;  %v4566_v34 = vld [vmem:[%s11074_s15 + $0x288] sm:$0xff] }
 0xea6   :  { %2682 = vmatprep.subr.mxu0 %v4527_v35  ;;  %v4567_v35 = vld [vmem:[%s11074_s15 + $0x280] sm:$0xff] }
 0xea7   :  { %2683 = vmatpush2.msra.mxu0 %v4528_v36  ;;  %v4568_v36 = vld [vmem:[%s11074_s15 + $0x278] sm:$0xff] }
 0xea8   :  { %2684 = vmatprep.subr.mxu0 %v4529_v39  ;;  %v4569_v39 = vld [vmem:[%s11074_s15 + $0x270] sm:$0xff] }
 0xea9   :  { %2685 = vmatpush2.msra.mxu0 %v4530_v45  ;;  %v4570_v45 = vld [vmem:[%s11074_s15 + $0x268] sm:$0xff] }
 0xeaa   :  { %2686 = vmatprep.subr.mxu0 %v4531_v40  ;;  %v4571_v40 = vld [vmem:[%s11074_s15 + $0x260] sm:$0xff] }
 0xeab   :  { %2687 = vmatpush2.msra.mxu0 %v4532_v41  ;;  %v4572_v41 = vld [vmem:[%s11074_s15 + $0x258] sm:$0xff] }
 0xeac   :  { %2688 = vmatprep.subr.mxu0 %v4533_v44  ;;  %v4573_v44 = vld [vmem:[%s11074_s15 + $0x250] sm:$0xff] }
 0xead   :  { %2689 = vmatpush2.msra.mxu0 %v4534_v46  ;;  %v4574_v46 = vld [vmem:[%s11074_s15 + $0x248] sm:$0xff] }
 0xeae   :  { %2690 = vmatprep.subr.mxu0 %v4535_v56  ;;  %v4575_v56 = vld [vmem:[%s11074_s15 + $0x240] sm:$0xff] }
 0xeaf   :  { %2691 = vmatpush2.msra.mxu0 %v4536_v50  ;;  %v4576_v50 = vld [vmem:[%s11074_s15 + $0x238] sm:$0xff] }
 0xeb0   :  { %2692 = vmatprep.subr.mxu0 %v4537_v47  ;;  %v4577_v47 = vld [vmem:[%s11074_s15 + $0x230] sm:$0xff] }
 0xeb1   :  { %2693 = vmatpush2.msra.mxu0 %v4538_v48  ;;  %v4578_v48 = vld [vmem:[%s11074_s15 + $0x228] sm:$0xff] }
 0xeb2   :  { %2694 = vmatprep.subr.mxu0 %v4539_v60  ;;  %v4579_v60 = vld [vmem:[%s11074_s15 + $0x220] sm:$0xff] }
 0xeb3   :  { %2695 = vmatpush2.msra.mxu0 %v4540_v53  ;;  %v4580_v53 = vld [vmem:[%s11074_s15 + $0x218] sm:$0xff] }
 0xeb4   :  { %2696 = vmatprep.subr.mxu0 %v4541_v51  ;;  %v4581_v51 = vld [vmem:[%s11074_s15 + $0x210] sm:$0xff] }
 0xeb5   :  { %2697 = vmatpush2.msra.mxu0 %v4542_v29  ;;  %v4582_v29 = vld [vmem:[%s11074_s15 + $0x208] sm:$0xff] }
 0xeb6   :  { %2698 = vmatprep.subr.mxu0 %v4543_v17  ;;  %v4583_v17 = vld [vmem:[%s11074_s15 + $0x200] sm:$0xff] }
 0xeb7   :  { %2699 = vmatpush2.msra.mxu0 %v4544_v52  ;;  %v4584_v52 = vld [vmem:[%s11074_s15 + $0x3f8] sm:$0xff] }
 0xeb8   :  { %2700 = vmatprep.subr.mxu0 %v4545_v22  ;;  %v4585_v22 = vld [vmem:[%s11074_s15 + $0x3f0] sm:$0xff] }
 0xeb9   :  { %2701 = vmatpush2.msra.mxu0 %v4546_v57  ;;  %v4586_v57 = vld [vmem:[%s11074_s15 + $0x3e8] sm:$0xff] }
 0xeba   :  { %2702 = vmatprep.subr.mxu0 %v4547_v58  ;;  %v4587_v58 = vld [vmem:[%s11074_s15 + $0x3e0] sm:$0xff] }
 0xebb   :  { %2703 = vmatpush2.msra.mxu0 %v4548_v59  ;;  %v4588_v59 = vld [vmem:[%s11074_s15 + $0x3d8] sm:$0xff] }
 0xebc   :  { %2704 = vmatprep.subr.mxu0 %v4549_v61  ;;  %v4589_v61 = vld [vmem:[%s11074_s15 + $0x3d0] sm:$0xff] }
 0xebd   :  { %2705 = vmatpush2.msra.mxu0 %v4550_v62  ;;  %v4590_v62 = vld [vmem:[%s11074_s15 + $0x3c8] sm:$0xff] }
 0xebe   :  { %2792 = vmatprep.subr.mxu0 %v4551_v54  ;;  %v4591_v54 = vld [vmem:[%s11074_s15 + $0x3c0] sm:$0xff] }
 0xf3e   :  { %v9119_v63 = vpop.f32.mrf.mxu0 }
 0xf3f   :  { %v2550_v0 = vmul.f32 %v9119_v63, %v9119_v63 }
 0xf40   :  { %v2547_v1 = vpop.f32.mrf.mxu0 }
 0xf41   :  { %v2551_v26 = vadd.f32 %v2550_v0, %v2547_v1  ;;  %v4592_v0 = vld [vmem:[%s11074_s15 + $0x3b8] sm:$0xff]  ;;  %v4593_v1 = vld [vmem:[%s11074_s15 + $0x3b0] sm:$0xff] }
 0xf43   :  { %v9126_v3 = vadd.f32 %v4552_v2, %v2551_v26  ;;  %v4594_v26 = vld [vmem:[%s11074_s15 + $0x3a8] sm:$0xff]  ;;  %v4595_v2 = vld [vmem:[%s11074_s15 + $0x3a0] sm:$0xff] }
 0xf45   :  { %vm2553_vm10 = vcmp.gt.f32.partialorder %v9126_v3, 0.0  ;;  %v2554_v5 = vmul.f32 0.2, %v9126_v3 }
 0xf47   :  { %v2555_v18 = vsel %vm2553_vm10, %v9126_v3, %v2554_v5  ;;  %v4596_v5 = vld [vmem:[%s11074_s15 + $0x398] sm:$0xff]  ;;  %v4684_v3 = vld [vmem:[%s11073_s14 + $0x70] sm:$0xff] }
 0xf48   :  { %2621 = vmatprep.mubr.f32.mxu1 %v2555_v18  ;;  %v4597_v18 = vld [vmem:[%s11074_s15 + $0x390] sm:$0xff] }
 0xf49   :  { %2622 = vmatmul.mubr.f32.vlgmr.msra.gmra.mxu1 %v8508_v49 }
 0xf4a   :  { %2718 = vmatpush1.msra.mxu1 %v4553_v19  ;;  %v4598_v19 = vld [vmem:[%s11074_s15 + $0x388] sm:$0xff] }
 0xf4b   :  { %2719 = vmatprep.subr.mxu1 %v4554_v21  ;;  %v4599_v21 = vld [vmem:[%s11074_s15 + $0x380] sm:$0xff] }
 0xf4c   :  { %2720 = vmatpush1.msra.mxu1 %v4555_v23  ;;  %v4600_v23 = vld [vmem:[%s11074_s15 + $0x378] sm:$0xff] }
 0xf4d   :  { %2721 = vmatprep.subr.mxu1 %v4556_v25  ;;  %v4601_v25 = vld [vmem:[%s11074_s15 + $0x370] sm:$0xff] }
 0xf4e   :  { %2722 = vmatpush1.msra.mxu1 %v4557_v28  ;;  %v4602_v28 = vld [vmem:[%s11074_s15 + $0x368] sm:$0xff] }
 0xf4f   :  { %2723 = vmatprep.subr.mxu1 %v4558_v30  ;;  %v4603_v30 = vld [vmem:[%s11074_s15 + $0x360] sm:$0xff] }
 0xf50   :  { %2724 = vmatpush1.msra.mxu1 %v4559_v8  ;;  %v4604_v8 = vld [vmem:[%s11074_s15 + $0x358] sm:$0xff] }
 0xf51   :  { %2725 = vmatprep.subr.mxu1 %v4560_v24  ;;  %v4605_v24 = vld [vmem:[%s11074_s15 + $0x350] sm:$0xff] }
 0xf52   :  { %2726 = vmatpush1.msra.mxu1 %v4561_v11  ;;  %v4606_v11 = vld [vmem:[%s11074_s15 + $0x348] sm:$0xff] }
 0xf53   :  { %2727 = vmatprep.subr.mxu1 %v4562_v32  ;;  %v4607_v32 = vld [vmem:[%s11074_s15 + $0x340] sm:$0xff] }
 0xf54   :  { %2728 = vmatpush1.msra.mxu1 %v4563_v38  ;;  %v4608_v38 = vld [vmem:[%s11074_s15 + $0x338] sm:$0xff] }
 0xf55   :  { %2729 = vmatprep.subr.mxu1 %v4564_v43  ;;  %v4609_v43 = vld [vmem:[%s11074_s15 + $0x330] sm:$0xff] }
 0xf56   :  { %2730 = vmatpush1.msra.mxu1 %v4565_v33  ;;  %v4610_v33 = vld [vmem:[%s11074_s15 + $0x328] sm:$0xff] }
 0xf57   :  { %2731 = vmatprep.subr.mxu1 %v4566_v34  ;;  %v4611_v34 = vld [vmem:[%s11074_s15 + $0x320] sm:$0xff] }
 0xf58   :  { %2732 = vmatpush1.msra.mxu1 %v4567_v35  ;;  %v4612_v35 = vld [vmem:[%s11074_s15 + $0x318] sm:$0xff] }
 0xf59   :  { %2733 = vmatprep.subr.mxu1 %v4568_v36  ;;  %v4613_v36 = vld [vmem:[%s11074_s15 + $0x310] sm:$0xff] }
 0xf5a   :  { %2734 = vmatpush1.msra.mxu1 %v4569_v39  ;;  %v4614_v39 = vld [vmem:[%s11074_s15 + $0x308] sm:$0xff] }
 0xf5b   :  { %2735 = vmatprep.subr.mxu1 %v4570_v45  ;;  %v4615_v45 = vld [vmem:[%s11074_s15 + $0x300] sm:$0xff] }
 0xf5c   :  { %2736 = vmatpush1.msra.mxu1 %v4571_v40 }
 0xf5d   :  { %2737 = vmatprep.subr.mxu1 %v4572_v41 }
 0xf5e   :  { %2738 = vmatpush1.msra.mxu1 %v4573_v44 }
 0xf5f   :  { %2739 = vmatprep.subr.mxu1 %v4574_v46 }
 0xf60   :  { %2740 = vmatpush1.msra.mxu1 %v4575_v56  ;;  %v4616_v56 = vld [vmem:[%s11092_s2 + $0x3] ss:$0 sm:$0xff] }
 0xf61   :  { %2741 = vmatprep.subr.mxu1 %v4576_v50 }
 0xf62   :  { %2742 = vmatpush1.msra.mxu1 %v4577_v47 }
 0xf63   :  { %2743 = vmatprep.subr.mxu1 %v4578_v48 }
 0xf64   :  { %2744 = vmatpush1.msra.mxu1 %v4579_v60  ;;  %v4617_v60 = vld [vmem:[%s11077_s18] ss:$0 sm:$0xff] }
 0xf65   :  { %2745 = vmatprep.subr.mxu1 %v4580_v53 }
 0xf66   :  { %2746 = vmatpush1.msra.mxu1 %v4581_v51 }
 0xf67   :  { %2747 = vmatprep.subr.mxu1 %v4582_v29  ;;  %v4619_v29 = vld [vmem:[%s11074_s15 + $0xe8] sm:$0xff] }
 0xf68   :  { %2748 = vmatpush1.msra.mxu1 %v4583_v17  ;;  %v4620_v17 = vld [vmem:[%s11074_s15 + $0xe0] sm:$0xff] }
 0xf69   :  { %2749 = vmatprep.subr.mxu1 %v4584_v52  ;;  %v4621_v52 = vld [vmem:[%s11074_s15 + $0xd8] sm:$0xff] }
 0xf6a   :  { %2750 = vmatpush2.msra.mxu1 %v4585_v22  ;;  %v4622_v22 = vld [vmem:[%s11074_s15 + $0xd0] sm:$0xff] }
 0xf6b   :  { %2751 = vmatprep.subr.mxu1 %v4586_v57  ;;  %v4623_v57 = vld [vmem:[%s11074_s15 + $0xc8] sm:$0xff] }
 0xf6c   :  { %2752 = vmatpush2.msra.mxu1 %v4587_v58  ;;  %v4624_v58 = vld [vmem:[%s11074_s15 + $0xc0] sm:$0xff] }
 0xf6d   :  { %2753 = vmatprep.subr.mxu1 %v4588_v59  ;;  %v4625_v59 = vld [vmem:[%s11074_s15 + $0xb8] sm:$0xff] }
 0xf6e   :  { %2754 = vmatpush2.msra.mxu1 %v4589_v61  ;;  %v4626_v61 = vld [vmem:[%s11074_s15 + $0xb0] sm:$0xff] }
 0xf6f   :  { %2755 = vmatprep.subr.mxu1 %v4590_v62  ;;  %v4627_v62 = vld [vmem:[%s11074_s15 + $0xa8] sm:$0xff] }
 0xf70   :  { %2756 = vmatpush2.msra.mxu1 %v4591_v54  ;;  %v4628_v54 = vld [vmem:[%s11074_s15 + $0xa0] sm:$0xff] }
 0xf71   :  { %2757 = vmatprep.subr.mxu1 %v4592_v0  ;;  %v4629_v0 = vld [vmem:[%s11074_s15 + $0x98] sm:$0xff] }
 0xf72   :  { %2758 = vmatpush2.msra.mxu1 %v4593_v1  ;;  %v4630_v1 = vld [vmem:[%s11074_s15 + $0x90] sm:$0xff] }
 0xf73   :  { %2759 = vmatprep.subr.mxu1 %v4594_v26  ;;  %v4631_v26 = vld [vmem:[%s11074_s15 + $0x88] sm:$0xff] }
 0xf74   :  { %2760 = vmatpush2.msra.mxu1 %v4595_v2  ;;  %v4632_v2 = vld [vmem:[%s11074_s15 + $0x80] sm:$0xff] }
 0xf75   :  { %2761 = vmatprep.subr.mxu1 %v4596_v5  ;;  %v4633_v5 = vld [vmem:[%s11074_s15 + $0x78] sm:$0xff] }
 0xf76   :  { %2762 = vmatpush2.msra.mxu1 %v4597_v18  ;;  %v4634_v18 = vld [vmem:[%s11074_s15 + $0x70] sm:$0xff] }
 0xf77   :  { %2763 = vmatprep.subr.mxu1 %v4598_v19  ;;  %v4635_v19 = vld [vmem:[%s11074_s15 + $0x68] sm:$0xff] }
 0xf78   :  { %2764 = vmatpush2.msra.mxu1 %v4599_v21  ;;  %v4636_v21 = vld [vmem:[%s11074_s15 + $0x60] sm:$0xff] }
 0xf79   :  { %2765 = vmatprep.subr.mxu1 %v4600_v23  ;;  %v4637_v23 = vld [vmem:[%s11074_s15 + $0x58] sm:$0xff] }
 0xf7a   :  { %2766 = vmatpush2.msra.mxu1 %v4601_v25  ;;  %v4638_v25 = vld [vmem:[%s11074_s15 + $0x50] sm:$0xff] }
 0xf7b   :  { %2767 = vmatprep.subr.mxu1 %v4602_v28  ;;  %v4639_v28 = vld [vmem:[%s11074_s15 + $0x48] sm:$0xff] }
 0xf7c   :  { %2768 = vmatpush2.msra.mxu1 %v4603_v30  ;;  %v4640_v30 = vld [vmem:[%s11074_s15 + $0x40] sm:$0xff] }
 0xf7d   :  { %2769 = vmatprep.subr.mxu1 %v4604_v8  ;;  %v4641_v8 = vld [vmem:[%s11074_s15 + $0x38] sm:$0xff] }
 0xf7e   :  { %2770 = vmatpush2.msra.mxu1 %v4605_v24  ;;  %v4642_v24 = vld [vmem:[%s11074_s15 + $0x30] sm:$0xff] }
 0xf7f   :  { %2771 = vmatprep.subr.mxu1 %v4606_v11  ;;  %v4643_v11 = vld [vmem:[%s11074_s15 + $0x28] sm:$0xff] }
 0xf80   :  { %2772 = vmatpush2.msra.mxu1 %v4607_v32  ;;  %v4644_v32 = vld [vmem:[%s11074_s15 + $0x20] sm:$0xff] }
 0xf81   :  { %2773 = vmatprep.subr.mxu1 %v4608_v38  ;;  %v4645_v38 = vld [vmem:[%s11074_s15 + $0x18] sm:$0xff] }
 0xf82   :  { %2774 = vmatpush2.msra.mxu1 %v4609_v43  ;;  %v4646_v43 = vld [vmem:[%s11074_s15 + $0x10] sm:$0xff] }
 0xf83   :  { %2775 = vmatprep.subr.mxu1 %v4610_v33  ;;  %v4647_v33 = vld [vmem:[%s11074_s15 + $0x8] sm:$0xff] }
 0xf84   :  { %2776 = vmatpush2.msra.mxu1 %v4611_v34  ;;  %v4648_v34 = vld [vmem:[%s11074_s15] sm:$0xff] }
 0xf85   :  { %2777 = vmatprep.subr.mxu1 %v4612_v35  ;;  %v4649_v35 = vld [vmem:[%s11074_s15 + $0x1f8] sm:$0xff] }
 0xf86   :  { %2778 = vmatpush2.msra.mxu1 %v4613_v36  ;;  %v4650_v36 = vld [vmem:[%s11074_s15 + $0x1f0] sm:$0xff] }
 0xf87   :  { %2779 = vmatprep.subr.mxu1 %v4614_v39  ;;  %v4651_v39 = vld [vmem:[%s11074_s15 + $0x1e8] sm:$0xff] }
 0xf88   :  { %2780 = vmatpush2.msra.mxu1 %v4615_v45  ;;  %v4652_v45 = vld [vmem:[%s11074_s15 + $0x1e0] sm:$0xff] }
 0xf89   :  { %4183 = vmatprep.subr.mxu1 %v8064_v55  ;;  %v4618_v55 = vld [vmem:[%s11074_s15 + $0xf0] sm:$0xff] }
0x1009   :  { %v2623_v40 = vpop.f32.mrf.mxu1 }
0x100a   :  { %v2628_v41 = vmul.f32 %v2623_v40, %v2623_v40  ;;  %v2640_v48 = vmul.f32 2.0, %v2623_v40  ;;  %v4653_v40 = vld [vmem:[%s11074_s15 + $0x1d8] sm:$0xff] }
0x100b   :  { %v2625_v44 = vpop.f32.mrf.mxu1 }
0x100c   :  { %v2629_v46 = vadd.f32 %v2628_v41, %v2625_v44  ;;  %v4654_v41 = vld [vmem:[%s11074_s15 + $0x1d0] sm:$0xff]  ;;  %v4655_v44 = vld [vmem:[%s11074_s15 + $0x1c8] sm:$0xff] }
0x100e   :  { %v2630_v50 = vadd.f32 %v4616_v56, %v2629_v46  ;;  %v4656_v46 = vld [vmem:[%s11074_s15 + $0x1c0] sm:$0xff]  ;;  %v4657_v56 = vld [vmem:[%s11074_s15 + $0x1b8] sm:$0xff] }
0x1010   :  { %vm2631_vm11 = vcmp.gt.f32.partialorder %v2630_v50, 0.0  ;;  %v4658_v50 = vld [vmem:[%s11074_s15 + $0x1b0] sm:$0xff] }
0x1011   :  { %v2632_v47 = vsel %vm2631_vm11, 1.0, %v5200_v20 }
0x1012   :  { %v2639_v53 = vmul.f32 %v4617_v60, %v2632_v47  ;;  %v4659_v47 = vld [vmem:[%s11074_s15 + $0x1a8] sm:$0xff]  ;;  %v4661_v60 = vld [vmem:[%s11074_s15 + $0x198] sm:$0xff] }
0x1014   :  { %v2641_v51 = vmul.f32 %v2640_v48, %v2639_v53  ;;  %2706 = vmatprep.mubr.f32.mxu0 %v2639_v53  ;;  %v4660_v48 = vld [vmem:[%s11074_s15 + $0x1a0] sm:$0xff]  ;;  %v4662_v53 = vld [vmem:[%s11074_s15 + $0x190] sm:$0xff] }
0x1016   :  { %2707 = vmatmul.mubr.f32.vlgmr.msra.gmra.mxu0 %v2641_v51  ;;  %v4663_v51 = vld [vmem:[%s11074_s15 + $0x188] sm:$0xff] }
0x1017   :  { %2793 = vmatpush1.msra.mxu0 %v4618_v55  ;;  %v4664_v55 = vld [vmem:[%s11074_s15 + $0x180] sm:$0xff] }
0x1018   :  { %2794 = vmatprep.subr.mxu0 %v4619_v29  ;;  %v4665_v29 = vld [vmem:[%s11074_s15 + $0x178] sm:$0xff] }
0x1019   :  { %2795 = vmatpush1.msra.mxu0 %v4620_v17  ;;  %v4666_v17 = vld [vmem:[%s11074_s15 + $0x170] sm:$0xff] }
0x101a   :  { %2796 = vmatprep.subr.mxu0 %v4621_v52  ;;  %v4667_v52 = vld [vmem:[%s11074_s15 + $0x168] sm:$0xff] }
0x101b   :  { %2797 = vmatpush1.msra.mxu0 %v4622_v22  ;;  %v4668_v22 = vld [vmem:[%s11074_s15 + $0x160] sm:$0xff] }
0x101c   :  { %2798 = vmatprep.subr.mxu0 %v4623_v57  ;;  %v4669_v57 = vld [vmem:[%s11074_s15 + $0x158] sm:$0xff] }
0x101d   :  { %2799 = vmatpush1.msra.mxu0 %v4624_v58  ;;  %v4670_v58 = vld [vmem:[%s11074_s15 + $0x150] sm:$0xff] }
0x101e   :  { %2800 = vmatprep.subr.mxu0 %v4625_v59  ;;  %v4671_v59 = vld [vmem:[%s11074_s15 + $0x148] sm:$0xff] }
0x101f   :  { %2801 = vmatpush1.msra.mxu0 %v4626_v61  ;;  %v4672_v61 = vld [vmem:[%s11074_s15 + $0x140] sm:$0xff] }
0x1020   :  { %2802 = vmatprep.subr.mxu0 %v4627_v62  ;;  %v4673_v62 = vld [vmem:[%s11074_s15 + $0x138] sm:$0xff] }
0x1021   :  { %2803 = vmatpush1.msra.mxu0 %v4628_v54  ;;  %v4674_v54 = vld [vmem:[%s11074_s15 + $0x130] sm:$0xff] }
0x1022   :  { %2804 = vmatprep.subr.mxu0 %v4629_v0  ;;  %v4675_v0 = vld [vmem:[%s11074_s15 + $0x128] sm:$0xff] }
0x1023   :  { %2805 = vmatpush1.msra.mxu0 %v4630_v1  ;;  %v4676_v1 = vld [vmem:[%s11074_s15 + $0x120] sm:$0xff] }
0x1024   :  { %2806 = vmatprep.subr.mxu0 %v4631_v26  ;;  %v4677_v26 = vld [vmem:[%s11074_s15 + $0x118] sm:$0xff] }
0x1025   :  { %2807 = vmatpush1.msra.mxu0 %v4632_v2  ;;  %v4678_v2 = vld [vmem:[%s11074_s15 + $0x110] sm:$0xff] }
0x1026   :  { %2808 = vmatprep.subr.mxu0 %v4633_v5  ;;  %v4679_v5 = vld [vmem:[%s11074_s15 + $0x108] sm:$0xff] }
0x1027   :  { %2809 = vmatpush1.msra.mxu0 %v4634_v18  ;;  %v4680_v18 = vld [vmem:[%s11074_s15 + $0x100] sm:$0xff] }
0x1028   :  { %2810 = vmatprep.subr.mxu0 %v4635_v19  ;;  %v4681_v19 = vld [vmem:[%s11070_s11 + $0xf8] sm:$0xff] }
0x1029   :  { %2811 = vmatpush1.msra.mxu0 %v4636_v21 }
0x102a   :  { %2812 = vmatprep.subr.mxu0 %v4637_v23  ;;  %v2556_v23 = vsel %vm2553_vm10, 1.0, %v5200_v20 }
0x102b   :  { %2813 = vmatpush1.msra.mxu0 %v4638_v25 }
0x102c   :  { %2814 = vmatprep.subr.mxu0 %v4639_v28  ;;  %v2715_v28 = vmul.f32 2.0, %v9119_v63  ;;  %v4685_v63 = vld [vmem:[%s11073_s14 + $0xe8] sm:$0xff] }
0x102d   :  { %2815 = vmatpush1.msra.mxu0 %v4640_v30 }
0x102e   :  { %2816 = vmatprep.subr.mxu0 %v4641_v8 }
0x102f   :  { %2817 = vmatpush1.msra.mxu0 %v4642_v24  ;;  %v4682_v24 = vld [vmem:[%s11073_s14 + $0x78] sm:$0xff] }
0x1030   :  { %2818 = vmatprep.subr.mxu0 %v4643_v11  ;;  %v4683_v11 = vld [vmem:[%s11073_s14 + $0xf0] sm:$0xff] }
0x1031   :  { %2819 = vmatpush1.msra.mxu0 %v4644_v32  ;;  %v4686_v32 = vld [vmem:[%s11073_s14 + $0x68] sm:$0xff] }
0x1032   :  { %2820 = vmatprep.subr.mxu0 %v4645_v38  ;;  %v4687_v38 = vld [vmem:[%s11073_s14 + $0xe0] sm:$0xff] }
0x1033   :  { %2821 = vmatpush1.msra.mxu0 %v4646_v43  ;;  %v4688_v43 = vld [vmem:[%s11073_s14 + $0x60] sm:$0xff] }
0x1034   :  { %2822 = vmatprep.subr.mxu0 %v4647_v33  ;;  %v4689_v33 = vld [vmem:[%s11073_s14 + $0xd8] sm:$0xff] }
0x1035   :  { %2823 = vmatpush1.msra.mxu0 %v4648_v34  ;;  %v4690_v34 = vld [vmem:[%s11073_s14 + $0x58] sm:$0xff] }
0x1036   :  { %2824 = vmatprep.subr.mxu0 %v4649_v35  ;;  %v4691_v35 = vld [vmem:[%s11073_s14 + $0xd0] sm:$0xff] }
0x1037   :  { %2825 = vmatpush2.msra.mxu0 %v4650_v36  ;;  %v4692_v36 = vld [vmem:[%s11073_s14 + $0x50] sm:$0xff] }
0x1038   :  { %2826 = vmatprep.subr.mxu0 %v4651_v39  ;;  %v4693_v39 = vld [vmem:[%s11073_s14 + $0xc8] sm:$0xff] }
0x1039   :  { %2827 = vmatpush2.msra.mxu0 %v4652_v45  ;;  %v4694_v45 = vld [vmem:[%s11073_s14 + $0x48] sm:$0xff] }
0x103a   :  { %2828 = vmatprep.subr.mxu0 %v4653_v40  ;;  %v4695_v40 = vld [vmem:[%s11073_s14 + $0xc0] sm:$0xff] }
0x103b   :  { %2829 = vmatpush2.msra.mxu0 %v4654_v41  ;;  %v4696_v41 = vld [vmem:[%s11073_s14 + $0x40] sm:$0xff] }
0x103c   :  { %2830 = vmatprep.subr.mxu0 %v4655_v44  ;;  %v4697_v44 = vld [vmem:[%s11073_s14 + $0xb8] sm:$0xff] }
0x103d   :  { %2831 = vmatpush2.msra.mxu0 %v4656_v46  ;;  %v4698_v46 = vld [vmem:[%s11073_s14 + $0x38] sm:$0xff] }
0x103e   :  { %2832 = vmatprep.subr.mxu0 %v4657_v56  ;;  %v4699_v56 = vld [vmem:[%s11073_s14 + $0xb0] sm:$0xff] }
0x103f   :  { %2833 = vmatpush2.msra.mxu0 %v4658_v50  ;;  %v4700_v50 = vld [vmem:[%s11073_s14 + $0x30] sm:$0xff] }
0x1040   :  { %2834 = vmatprep.subr.mxu0 %v4659_v47  ;;  %v4701_v47 = vld [vmem:[%s11073_s14 + $0xa8] sm:$0xff] }
0x1041   :  { %2835 = vmatpush2.msra.mxu0 %v4660_v48  ;;  %v4702_v48 = vld [vmem:[%s11073_s14 + $0x28] sm:$0xff] }
0x1042   :  { %2836 = vmatprep.subr.mxu0 %v4661_v60  ;;  %v4703_v60 = vld [vmem:[%s11073_s14 + $0xa0] sm:$0xff] }
0x1043   :  { %2837 = vmatpush2.msra.mxu0 %v4662_v53  ;;  %v4704_v53 = vld [vmem:[%s11073_s14 + $0x20] sm:$0xff] }
0x1044   :  { %2838 = vmatprep.subr.mxu0 %v4663_v51  ;;  %v4705_v51 = vld [vmem:[%s11073_s14 + $0x98] sm:$0xff] }
0x1045   :  { %2839 = vmatpush2.msra.mxu0 %v4664_v55  ;;  %v2635_v55 = vpop.xlane.xlu1 %2634 }
0x1046   :  { %2840 = vmatprep.subr.mxu0 %v4665_v29  ;;  %v2636_v29 = vmul.f32 2.0, %v2635_v55  ;;  %v4748_v55 = vld [vmem:[%s11071_s12 + $0xb0] sm:$0xff] }
0x1047   :  { %2841 = vmatpush2.msra.mxu0 %v4666_v17 }
0x1048   :  { %2842 = vmatprep.subr.mxu0 %v4667_v52  ;;  %v2790_v52 = vmul.f32 2.0, %v8912_v37  ;;  %v4710_v37 = vld [vmem:[%s11070_s11 + $0xe0] sm:$0xff] }
0x1049   :  { %2843 = vmatpush2.msra.mxu0 %v4668_v22 }
0x104a   :  { %2844 = vmatprep.subr.mxu0 %v4669_v57 }
0x104b   :  { %2845 = vmatpush2.msra.mxu0 %v4670_v58  ;;  %v4708_v58 = vld [vmem:[%s11070_s11 + $0xf0] sm:$0xff] }
0x104c   :  { %2846 = vmatprep.subr.mxu0 %v4671_v59  ;;  %v4709_v59 = vld [vmem:[%s11070_s11 + $0xe8] sm:$0xff] }
0x104d   :  { %2847 = vmatpush2.msra.mxu0 %v4672_v61  ;;  %v4712_v61 = vld [vmem:[%s11070_s11 + $0xd0] sm:$0xff] }
0x104e   :  { %2848 = vmatprep.subr.mxu0 %v4673_v62  ;;  %v4714_v62 = vld [vmem:[%s11070_s11 + $0xc0] sm:$0xff] }
0x104f   :  { %2849 = vmatpush2.msra.mxu0 %v4674_v54  ;;  %v4715_v54 = vld [vmem:[%s11070_s11 + $0xb8] sm:$0xff] }
0x1050   :  { %2850 = vmatprep.subr.mxu0 %v4675_v0  ;;  %v4716_v0 = vld [vmem:[%s11070_s11 + $0xb0] sm:$0xff] }
0x1051   :  { %2851 = vmatpush2.msra.mxu0 %v4676_v1  ;;  %v4717_v1 = vld [vmem:[%s11070_s11 + $0xa8] sm:$0xff] }
0x1052   :  { %2852 = vmatprep.subr.mxu0 %v4677_v26  ;;  %v4718_v26 = vld [vmem:[%s11070_s11 + $0xa0] sm:$0xff] }
0x1053   :  { %2853 = vmatpush2.msra.mxu0 %v4678_v2  ;;  %v4719_v2 = vld [vmem:[%s11070_s11 + $0x98] sm:$0xff] }
0x1054   :  { %2854 = vmatprep.subr.mxu0 %v4679_v5  ;;  %v4720_v5 = vld [vmem:[%s11070_s11 + $0x90] sm:$0xff] }
0x1055   :  { %2855 = vmatpush2.msra.mxu0 %v4680_v18  ;;  %v4721_v18 = vld [vmem:[%s11070_s11 + $0x88] sm:$0xff] }
0x1056   :  { %2946 = vmatprep.subr.mxu0 %v4681_v19  ;;  %v4722_v19 = vld [vmem:[%s11070_s11 + $0x80] sm:$0xff] }
0x10d6   :  { %v9523_v21 = vpop.f32.mrf.mxu0 }
0x10d8   :  { %v2710_v25 = vpop.f32.mrf.mxu0 }
0x10d9   :  { %v2714_v30 = vmul.f32 %v2710_v25, %v2556_v23  ;;  %v4724_v23 = vld [vmem:[%s11070_s11 + $0x70] sm:$0xff]  ;;  %v4725_v25 = vld [vmem:[%s11070_s11 + $0x68] sm:$0xff] }
0x10db   :  { %v2716_v8 = vmul.f32 %v2715_v28, %v2714_v30  ;;  %2781 = vmatprep.mubr.f32.mxu1 %v2714_v30  ;;  %v4726_v28 = vld [vmem:[%s11070_s11 + $0x60] sm:$0xff]  ;;  %v4727_v30 = vld [vmem:[%s11070_s11 + $0x58] sm:$0xff] }
0x10dd   :  { %2782 = vmatmul.mubr.f32.vlgmr.msra.gmra.mxu1 %v2716_v8  ;;  %v4728_v8 = vld [vmem:[%s11070_s11 + $0x50] sm:$0xff] }
0x10de   :  { %4184 = vmatpush3.msra.mxu1 %v4682_v24  ;;  %v4729_v24 = vld [vmem:[%s11070_s11 + $0x48] sm:$0xff] }
0x10df   :  { %4185 = vmatprep.subr.mxu1 %v4683_v11  ;;  %v4730_v11 = vld [vmem:[%s11070_s11 + $0x40] sm:$0xff] }
0x10e0   :  { %4186 = vmatpush3.msra.mxu1 %v4684_v3  ;;  %v4731_v3 = vld [vmem:[%s11070_s11 + $0x38] sm:$0xff] }
0x10e1   :  { %4187 = vmatprep.subr.mxu1 %v4685_v63  ;;  %v4732_v63 = vld [vmem:[%s11070_s11 + $0x30] sm:$0xff] }
0x10e2   :  { %4188 = vmatpush3.msra.mxu1 %v4686_v32  ;;  %v4733_v32 = vld [vmem:[%s11070_s11 + $0x28] sm:$0xff] }
0x10e3   :  { %4189 = vmatprep.subr.mxu1 %v4687_v38  ;;  %v4734_v38 = vld [vmem:[%s11070_s11 + $0x20] sm:$0xff] }
0x10e4   :  { %4190 = vmatpush3.msra.mxu1 %v4688_v43  ;;  %v4735_v43 = vld [vmem:[%s11070_s11 + $0x18] sm:$0xff] }
0x10e5   :  { %4191 = vmatprep.subr.mxu1 %v4689_v33  ;;  %v4736_v33 = vld [vmem:[%s11070_s11 + $0x10] sm:$0xff] }
0x10e6   :  { %4192 = vmatpush3.msra.mxu1 %v4690_v34  ;;  %v4737_v34 = vld [vmem:[%s11070_s11 + $0x8] sm:$0xff] }
0x10e7   :  { %4193 = vmatprep.subr.mxu1 %v4691_v35  ;;  %v4738_v35 = vld [vmem:[%s11070_s11] sm:$0xff] }
0x10e8   :  { %4194 = vmatpush3.msra.mxu1 %v4692_v36  ;;  %v4739_v36 = vld [vmem:[%s11071_s12 + $0x2f8] sm:$0xff] }
0x10e9   :  { %4195 = vmatprep.subr.mxu1 %v4693_v39 }
0x10ea   :  { %4196 = vmatpush3.msra.mxu1 %v4694_v45 }
0x10eb   :  { %4197 = vmatprep.subr.mxu1 %v4695_v40  ;;  %v2400_v40 = vsel %vm2397_vm8, 1.0, %v5200_v20 }
0x10ec   :  { %4198 = vmatpush3.msra.mxu1 %v4696_v41 }
0x10ed   :  { %4199 = vmatprep.subr.mxu1 %v4697_v44  ;;  %v2865_v44 = vmul.f32 2.0, %v8705_v31  ;;  %v4743_v31 = vld [vmem:[%s11071_s12 + $0xd8] sm:$0xff] }
0x10ee   :  { %4200 = vmatpush3.msra.mxu1 %v4698_v46 }
0x10ef   :  { %4201 = vmatprep.subr.mxu1 %v4699_v56 }
0x10f0   :  { %4202 = vmatpush3.msra.mxu1 %v4700_v50  ;;  %v4740_v50 = vld [vmem:[%s11071_s12 + $0xf0] sm:$0xff] }
0x10f1   :  { %4203 = vmatprep.subr.mxu1 %v4701_v47  ;;  %v4741_v47 = vld [vmem:[%s11071_s12 + $0xe8] sm:$0xff] }
0x10f2   :  { %4204 = vmatpush3.msra.mxu1 %v4702_v48  ;;  %v4744_v48 = vld [vmem:[%s11071_s12 + $0xd0] sm:$0xff] }
0x10f3   :  { %4205 = vmatprep.subr.mxu1 %v4703_v60  ;;  %v4745_v60 = vld [vmem:[%s11071_s12 + $0xc8] sm:$0xff] }
0x10f4   :  { %4206 = vmatpush3.msra.mxu1 %v4704_v53  ;;  %v4746_v53 = vld [vmem:[%s11071_s12 + $0xc0] sm:$0xff] }
0x10f5   :  { %4207 = vmatprep.subr.mxu1 %v4705_v51  ;;  %v4747_v51 = vld [vmem:[%s11071_s12 + $0xb8] sm:$0xff] }
0x10f6   :  { %4208 = vmatpush3.msra.mxu1 %v8258_v6  ;;  %v9612_v6 = vld [vmem:[%s11075_s16] ss:$0 sm:$0xff] }
0x10f7   :  { %4209 = vmatprep.subr.mxu1 %v8264_v7  ;;  %v2637_v7 = vmul.f32 %v9612_v6, %v2636_v29  ;;  %v4749_v29 = vld [vmem:[%s11071_s12 + $0xa8] sm:$0xff] }
0x10f8   :  { %4210 = vmatpush3.msra.mxu1 %v8270_v9  ;;  %v4707_v9 = vld [vmem:[%s11076_s17] ss:$0 sm:$0xff] }
0x10f9   :  { %4211 = vmatprep.subr.mxu1 %v8276_v10  ;;  %v2638_v10 = vadd.f32 %v4707_v9, %v2637_v7  ;;  %v4750_v7 = vld [vmem:[%s11071_s12 + $0xa0] sm:$0xff]  ;;  %v4751_v9 = vld [vmem:[%s11071_s12 + $0x98] sm:$0xff] }
0x10fa   :  { %4212 = vmatpush3.msra.mxu1 %v8282_v12 }
0x10fb   :  { %4213 = vmatprep.subr.mxu1 %v8288_v13  ;;  %v2713_v12 = vadd.f32 %v9523_v21, %v2638_v10  ;;  %v4723_v21 = vld [vmem:[%s11070_s11 + $0x78] sm:$0xff]  ;;  %v4752_v10 = vld [vmem:[%s11071_s12 + $0x90] sm:$0xff] }
0x10fc   :  { %4214 = vmatpush3.msra.mxu1 %v8294_v14 }
0x10fd   :  { %3024 = vmatprep.subr.mxu1 %v8300_v15  ;;  %v2478_v15 = vsel %vm2475_vm9, 1.0, %v5200_v20 }
0x119d   :  { %v2783_v13 = vpop.f32.mrf.mxu1 }
0x119e   :  { %v9619_v14 = vadd.f32 %v2783_v13, %v2713_v12  ;;  %v4753_v12 = vld [vmem:[%s11071_s12 + $0x88] sm:$0xff]  ;;  %v4754_v13 = vld [vmem:[%s11071_s12 + $0x80] sm:$0xff] }
0x119f   :  { %v2785_v17 = vpop.f32.mrf.mxu1 }
0x11a0   :  { %v2789_v22 = vmul.f32 %v2785_v17, %v2478_v15  ;;  %v4756_v15 = vld [vmem:[%s11071_s12 + $0x70] sm:$0xff]  ;;  %v4757_v17 = vld [vmem:[%s11071_s12 + $0x68] sm:$0xff] }
0x11a2   :  { %v2791_v57 = vmul.f32 %v2790_v52, %v2789_v22  ;;  %2856 = vmatprep.mubr.f32.mxu0 %v2789_v22  ;;  %v4758_v52 = vld [vmem:[%s11071_s12 + $0x60] sm:$0xff]  ;;  %v4759_v22 = vld [vmem:[%s11071_s12 + $0x58] sm:$0xff] }
0x11a4   :  { %2857 = vmatmul.mubr.f32.vlgmr.msra.gmra.mxu0 %v2791_v57  ;;  %v4760_v57 = vld [vmem:[%s11071_s12 + $0x50] sm:$0xff] }
0x11a5   :  { %2947 = vmatpush1.msra.mxu0 %v4708_v58  ;;  %3010 = vmatprep.mubr.f32.mxu0 %v5199_v4  ;;  %v4713_v4 = vld [vmem:[%s11070_s11 + $0xc8] sm:$0xff] }
0x11a6   :  { %2948 = vmatprep.subr.mxu0 %v4709_v59  ;;  %v4761_v58 = vld [vmem:[%s11071_s12 + $0x48] sm:$0xff]  ;;  %v4762_v59 = vld [vmem:[%s11071_s12 + $0x40] sm:$0xff] }
0x11a7   :  { %2949 = vmatpush1.msra.mxu0 %v4710_v37  ;;  %v4763_v37 = vld [vmem:[%s11071_s12 + $0x38] sm:$0xff] }
0x11a8   :  { %2950 = vmatprep.subr.mxu0 %v4711_v42  ;;  %v4764_v42 = vld [vmem:[%s11071_s12 + $0x30] sm:$0xff] }
0x11a9   :  { %2951 = vmatpush1.msra.mxu0 %v4712_v61  ;;  %v4765_v61 = vld [vmem:[%s11071_s12 + $0x28] sm:$0xff] }
0x11aa   :  { %2952 = vmatprep.subr.mxu0 %v4713_v4  ;;  %v4766_v4 = vld [vmem:[%s11071_s12 + $0x20] sm:$0xff] }
0x11ab   :  { %2953 = vmatpush1.msra.mxu0 %v4714_v62  ;;  %v4767_v62 = vld [vmem:[%s11071_s12 + $0x18] sm:$0xff] }
0x11ac   :  { %2954 = vmatprep.subr.mxu0 %v4715_v54  ;;  %v4768_v54 = vld [vmem:[%s11071_s12 + $0x10] sm:$0xff] }
0x11ad   :  { %2955 = vmatpush1.msra.mxu0 %v4716_v0  ;;  %v4769_v0 = vld [vmem:[%s11071_s12 + $0x8] sm:$0xff] }
0x11ae   :  { %2956 = vmatprep.subr.mxu0 %v4717_v1  ;;  %v4770_v1 = vld [vmem:[%s11071_s12] sm:$0xff] }
0x11af   :  { %2957 = vmatpush1.msra.mxu0 %v4718_v26  ;;  %v4771_v26 = vld [vmem:[%s11071_s12 + $0x1f8] sm:$0xff] }
0x11b0   :  { %2958 = vmatprep.subr.mxu0 %v4719_v2  ;;  %v4772_v2 = vld [vmem:[%s11071_s12 + $0x1f0] sm:$0xff] }
0x11b1   :  { %2959 = vmatpush1.msra.mxu0 %v4720_v5  ;;  %v4773_v5 = vld [vmem:[%s11071_s12 + $0x1e8] sm:$0xff] }
0x11b2   :  { %2960 = vmatprep.subr.mxu0 %v4721_v18  ;;  %v4774_v18 = vld [vmem:[%s11071_s12 + $0x1e0] sm:$0xff] }
0x11b3   :  { %2961 = vmatpush1.msra.mxu0 %v4722_v19  ;;  %v4775_v19 = vld [vmem:[%s11071_s12 + $0x1d8] sm:$0xff] }
0x11b4   :  { %2962 = vmatprep.subr.mxu0 %v4723_v21  ;;  %v4776_v21 = vld [vmem:[%s11071_s12 + $0x1d0] sm:$0xff] }
0x11b5   :  { %2963 = vmatpush1.msra.mxu0 %v4724_v23  ;;  %v4777_v23 = vld [vmem:[%s11071_s12 + $0x1c8] sm:$0xff] }
0x11b6   :  { %2964 = vmatprep.subr.mxu0 %v4725_v25  ;;  %v4778_v25 = vld [vmem:[%s11071_s12 + $0x1c0] sm:$0xff] }
0x11b7   :  { %2965 = vmatpush1.msra.mxu0 %v4726_v28  ;;  %v4779_v28 = vld [vmem:[%s11071_s12 + $0x1b8] sm:$0xff] }
0x11b8   :  { %2966 = vmatprep.subr.mxu0 %v4727_v30  ;;  %v4780_v30 = vld [vmem:[%s11071_s12 + $0x1b0] sm:$0xff] }
0x11b9   :  { %2967 = vmatpush1.msra.mxu0 %v4728_v8  ;;  %v4781_v8 = vld [vmem:[%s11071_s12 + $0x1a8] sm:$0xff] }
0x11ba   :  { %2968 = vmatprep.subr.mxu0 %v4729_v24  ;;  %v4782_v24 = vld [vmem:[%s11071_s12 + $0x1a0] sm:$0xff] }
0x11bb   :  { %2969 = vmatpush1.msra.mxu0 %v4730_v11  ;;  %v4783_v11 = vld [vmem:[%s11071_s12 + $0x198] sm:$0xff] }
0x11bc   :  { %2970 = vmatprep.subr.mxu0 %v4731_v3  ;;  %v4784_v3 = vld [vmem:[%s11071_s12 + $0x190] sm:$0xff] }
0x11bd   :  { %2971 = vmatpush1.msra.mxu0 %v4732_v63  ;;  %v4785_v63 = vld [vmem:[%s11071_s12 + $0x188] sm:$0xff] }
0x11be   :  { %2972 = vmatprep.subr.mxu0 %v4733_v32  ;;  %v4786_v32 = vld [vmem:[%s11071_s12 + $0x180] sm:$0xff] }
0x11bf   :  { %2973 = vmatpush1.msra.mxu0 %v4734_v38  ;;  %v4787_v38 = vld [vmem:[%s11071_s12 + $0x178] sm:$0xff] }
0x11c0   :  { %2974 = vmatprep.subr.mxu0 %v4735_v43  ;;  %v4788_v43 = vld [vmem:[%s11071_s12 + $0x170] sm:$0xff] }
0x11c1   :  { %2975 = vmatpush1.msra.mxu0 %v4736_v33  ;;  %v4789_v33 = vld [vmem:[%s11071_s12 + $0x168] sm:$0xff] }
0x11c2   :  { %2976 = vmatprep.subr.mxu0 %v4737_v34  ;;  %v4790_v34 = vld [vmem:[%s11071_s12 + $0x160] sm:$0xff] }
0x11c3   :  { %2977 = vmatpush1.msra.mxu0 %v4738_v35  ;;  %v4791_v35 = vld [vmem:[%s11071_s12 + $0x158] sm:$0xff] }
0x11c4   :  { %3102 = vmatprep.subr.mxu0 %v4739_v36  ;;  %v4792_v36 = vld [vmem:[%s11071_s12 + $0x150] sm:$0xff] }
0x1264   :  { %v2858_v39 = vpop.f32.mrf.mxu0 }
0x1265   :  { %v9723_v45 = vadd.f32 %v2858_v39, %v9619_v14  ;;  %v4755_v14 = vld [vmem:[%s11071_s12 + $0x78] sm:$0xff]  ;;  %v4793_v39 = vld [vmem:[%s11071_s12 + $0x148] sm:$0xff] }
0x1266   :  { %v2860_v41 = vpop.f32.mrf.mxu0 }
0x1267   :  { %v2864_v46 = vmul.f32 %v2860_v41, %v2400_v40  ;;  %v4794_v40 = vld [vmem:[%s11071_s12 + $0x140] sm:$0xff]  ;;  %v4795_v41 = vld [vmem:[%s11071_s12 + $0x138] sm:$0xff] }
0x1269   :  { %v2866_v56 = vmul.f32 %v2865_v44, %v2864_v46  ;;  %2931 = vmatprep.mubr.f32.mxu1 %v2864_v46  ;;  %v4796_v44 = vld [vmem:[%s11071_s12 + $0x130] sm:$0xff]  ;;  %v4797_v46 = vld [vmem:[%s11071_s12 + $0x128] sm:$0xff] }
0x126b   :  { %2932 = vmatmul.mubr.f32.vlgmr.msra.gmra.mxu1 %v2866_v56  ;;  %v4798_v56 = vld [vmem:[%s11071_s12 + $0x120] sm:$0xff] }
0x126c   :  { %3025 = vmatpush1.msra.mxu1 %v4740_v50  ;;  %v4799_v50 = vld [vmem:[%s11071_s12 + $0x118] sm:$0xff] }
0x126d   :  { %3026 = vmatprep.subr.mxu1 %v4741_v47  ;;  %v4800_v47 = vld [vmem:[%s11071_s12 + $0x110] sm:$0xff] }
0x126e   :  { %3027 = vmatpush1.msra.mxu1 %v4742_v16  ;;  %v4801_v16 = vld [vmem:[%s11071_s12 + $0x108] sm:$0xff] }
0x126f   :  { %3028 = vmatprep.subr.mxu1 %v4743_v31  ;;  %v4802_v31 = vld [vmem:[%s11071_s12 + $0x100] sm:$0xff] }
0x1270   :  { %3029 = vmatpush1.msra.mxu1 %v4744_v48  ;;  %v4803_v48 = vld [vmem:[%s11071_s12 + $0x4f8] sm:$0xff] }
0x1271   :  { %3030 = vmatprep.subr.mxu1 %v4745_v60 }
0x1272   :  { %3031 = vmatpush1.msra.mxu1 %v4746_v53 }
0x1273   :  { %3032 = vmatprep.subr.mxu1 %v4747_v51 }
0x1274   :  { %3033 = vmatpush1.msra.mxu1 %v4748_v55 }
0x1275   :  { %3034 = vmatprep.subr.mxu1 %v4749_v29 }
0x1276   :  { %3035 = vmatpush1.msra.mxu1 %v4750_v7  ;;  %v2939_v7 = vmul.f32 0.5, %v8508_v49  ;;  %v4805_v49 = vld [vmem:[%s11071_s12 + $0x2f0] sm:$0xff] }
0x1277   :  { %3036 = vmatprep.subr.mxu1 %v4751_v9 }
0x1278   :  { %3037 = vmatpush1.msra.mxu1 %v4752_v10  ;;  %v2943_v10 = vstv %s4112_s4 }
0x1279   :  { %3038 = vmatprep.subr.mxu1 %v4753_v12  ;;  %v4804_v12 = vld [vmem:[%s11091_s10] sm:$0xff] }
0x127a   :  { %3039 = vmatpush1.msra.mxu1 %v4754_v13 }
0x127b   :  { %3040 = vmatprep.subr.mxu1 %v4755_v14 }
0x127c   :  { %3041 = vmatpush1.msra.mxu1 %v4756_v15 }
0x127d   :  { %3042 = vmatprep.subr.mxu1 %v4757_v17 }
0x127e   :  { %3043 = vmatpush1.msra.mxu1 %v4758_v52  ;;  %v4809_v52 = vld [vmem:[%s11071_s12 + $0x2d0] sm:$0xff] }
0x127f   :  { %3044 = vmatprep.subr.mxu1 %v4759_v22  ;;  %v4810_v22 = vld [vmem:[%s11071_s12 + $0x2c8] sm:$0xff] }
0x1280   :  { %3045 = vmatpush1.msra.mxu1 %v4760_v57  ;;  %v4811_v57 = vld [vmem:[%s11071_s12 + $0x2c0] sm:$0xff] }
0x1281   :  { %3046 = vmatprep.subr.mxu1 %v4761_v58  ;;  %v4812_v58 = vld [vmem:[%s11071_s12 + $0x2b8] sm:$0xff] }
0x1282   :  { %3047 = vmatpush1.msra.mxu1 %v4762_v59  ;;  %v4813_v59 = vld [vmem:[%s11071_s12 + $0x2b0] sm:$0xff] }
0x1283   :  { %3048 = vmatprep.subr.mxu1 %v4763_v37  ;;  %v4814_v37 = vld [vmem:[%s11071_s12 + $0x2a8] sm:$0xff] }
0x1284   :  { %3049 = vmatpush1.msra.mxu1 %v4764_v42  ;;  %v4815_v42 = vld [vmem:[%s11071_s12 + $0x2a0] sm:$0xff] }
0x1285   :  { %3050 = vmatprep.subr.mxu1 %v4765_v61  ;;  %v4816_v61 = vld [vmem:[%s11071_s12 + $0x298] sm:$0xff] }
0x1286   :  { %3051 = vmatpush1.msra.mxu1 %v4766_v4  ;;  %v4817_v4 = vld [vmem:[%s11071_s12 + $0x290] sm:$0xff] }
0x1287   :  { %3052 = vmatprep.subr.mxu1 %v4767_v62  ;;  %v4818_v62 = vld [vmem:[%s11071_s12 + $0x288] sm:$0xff] }
0x1288   :  { %3053 = vmatpush1.msra.mxu1 %v4768_v54  ;;  %v4819_v54 = vld [vmem:[%s11071_s12 + $0x280] sm:$0xff] }
0x1289   :  { %3054 = vmatprep.subr.mxu1 %v4769_v0  ;;  %v4820_v0 = vld [vmem:[%s11071_s12 + $0x278] sm:$0xff] }
0x128a   :  { %3055 = vmatpush1.msra.mxu1 %v4770_v1  ;;  %v4821_v1 = vld [vmem:[%s11071_s12 + $0x270] sm:$0xff] }
0x128b   :  { %3056 = vmatprep.subr.mxu1 %v4771_v26  ;;  %v4822_v26 = vld [vmem:[%s11071_s12 + $0x268] sm:$0xff] }
0x128c   :  { %3057 = vmatpush2.msra.mxu1 %v4772_v2  ;;  %v4823_v2 = vld [vmem:[%s11071_s12 + $0x260] sm:$0xff] }
0x128d   :  { %3058 = vmatprep.subr.mxu1 %v4773_v5  ;;  %v4824_v5 = vld [vmem:[%s11071_s12 + $0x258] sm:$0xff] }
0x128e   :  { %3059 = vmatpush2.msra.mxu1 %v4774_v18  ;;  %v4825_v18 = vld [vmem:[%s11071_s12 + $0x250] sm:$0xff] }
0x128f   :  { %3060 = vmatprep.subr.mxu1 %v4775_v19  ;;  %v4826_v19 = vld [vmem:[%s11071_s12 + $0x248] sm:$0xff] }
0x1290   :  { %3061 = vmatpush2.msra.mxu1 %v4776_v21  ;;  %v4827_v21 = vld [vmem:[%s11071_s12 + $0x240] sm:$0xff] }
0x1291   :  { %3062 = vmatprep.subr.mxu1 %v4777_v23  ;;  %v4828_v23 = vld [vmem:[%s11071_s12 + $0x238] sm:$0xff] }
0x1292   :  { %3063 = vmatpush2.msra.mxu1 %v4778_v25  ;;  %v4829_v25 = vld [vmem:[%s11071_s12 + $0x230] sm:$0xff] }
0x1293   :  { %3064 = vmatprep.subr.mxu1 %v4779_v28  ;;  %v4830_v28 = vld [vmem:[%s11071_s12 + $0x228] sm:$0xff] }
0x1294   :  { %3065 = vmatpush2.msra.mxu1 %v4780_v30  ;;  %v4831_v30 = vld [vmem:[%s11071_s12 + $0x220] sm:$0xff] }
0x1295   :  { %3066 = vmatprep.subr.mxu1 %v4781_v8  ;;  %v4832_v8 = vld [vmem:[%s11071_s12 + $0x218] sm:$0xff] }
0x1296   :  { %3067 = vmatpush2.msra.mxu1 %v4782_v24  ;;  %v4833_v24 = vld [vmem:[%s11071_s12 + $0x210] sm:$0xff] }
0x1297   :  { %3068 = vmatprep.subr.mxu1 %v4783_v11  ;;  %v4834_v11 = vld [vmem:[%s11071_s12 + $0x208] sm:$0xff] }
0x1298   :  { %3069 = vmatpush2.msra.mxu1 %v4784_v3  ;;  %v4835_v3 = vld [vmem:[%s11071_s12 + $0x200] sm:$0xff] }
0x1299   :  { %3070 = vmatprep.subr.mxu1 %v4785_v63  ;;  %v4836_v63 = vld [vmem:[%s11071_s12 + $0x3f8] sm:$0xff] }
0x129a   :  { %3071 = vmatpush2.msra.mxu1 %v4786_v32  ;;  %v4837_v32 = vld [vmem:[%s11071_s12 + $0x3f0] sm:$0xff] }
0x129b   :  { %3072 = vmatprep.subr.mxu1 %v4787_v38  ;;  %v4838_v38 = vld [vmem:[%s11071_s12 + $0x3e8] sm:$0xff] }
0x129c   :  { %3073 = vmatpush2.msra.mxu1 %v4788_v43  ;;  %v4839_v43 = vld [vmem:[%s11071_s12 + $0x3e0] sm:$0xff] }
0x129d   :  { %3074 = vmatprep.subr.mxu1 %v4789_v33  ;;  %v4840_v33 = vld [vmem:[%s11071_s12 + $0x3d8] sm:$0xff] }
0x129e   :  { %3075 = vmatpush2.msra.mxu1 %v4790_v34  ;;  %v4841_v34 = vld [vmem:[%s11071_s12 + $0x3d0] sm:$0xff] }
0x129f   :  { %3076 = vmatprep.subr.mxu1 %v4791_v35  ;;  %v4842_v35 = vld [vmem:[%s11071_s12 + $0x3c8] sm:$0xff] }
0x12a0   :  { %3077 = vmatpush2.msra.mxu1 %v4792_v36  ;;  %v4843_v36 = vld [vmem:[%s11071_s12 + $0x3c0] sm:$0xff] }
0x12a1   :  { %3078 = vmatprep.subr.mxu1 %v4793_v39  ;;  %v4844_v39 = vld [vmem:[%s11071_s12 + $0x3b8] sm:$0xff] }
0x12a2   :  { %3079 = vmatpush2.msra.mxu1 %v4794_v40  ;;  %v4845_v40 = vld [vmem:[%s11071_s12 + $0x3b0] sm:$0xff] }
0x12a3   :  { %3080 = vmatprep.subr.mxu1 %v4795_v41  ;;  %v4846_v41 = vld [vmem:[%s11071_s12 + $0x3a8] sm:$0xff] }
0x12a4   :  { %3081 = vmatpush2.msra.mxu1 %v4796_v44  ;;  %v4847_v44 = vld [vmem:[%s11071_s12 + $0x3a0] sm:$0xff] }
0x12a5   :  { %3082 = vmatprep.subr.mxu1 %v4797_v46  ;;  %v4848_v46 = vld [vmem:[%s11071_s12 + $0x398] sm:$0xff] }
0x12a6   :  { %3083 = vmatpush2.msra.mxu1 %v4798_v56  ;;  %v4849_v56 = vld [vmem:[%s11071_s12 + $0x390] sm:$0xff] }
0x12a7   :  { %3084 = vmatprep.subr.mxu1 %v4799_v50  ;;  %v4850_v50 = vld [vmem:[%s11071_s12 + $0x388] sm:$0xff] }
0x12a8   :  { %3085 = vmatpush2.msra.mxu1 %v4800_v47  ;;  %v4851_v47 = vld [vmem:[%s11071_s12 + $0x380] sm:$0xff] }
0x12a9   :  { %3086 = vmatprep.subr.mxu1 %v4801_v16  ;;  %v4852_v16 = vld [vmem:[%s11071_s12 + $0x378] sm:$0xff] }
0x12aa   :  { %3087 = vmatpush2.msra.mxu1 %v4802_v31  ;;  %v4853_v31 = vld [vmem:[%s11071_s12 + $0x370] sm:$0xff] }
0x12ab   :  { %3180 = vmatprep.subr.mxu1 %v4803_v48  ;;  %v4854_v48 = vld [vmem:[%s11071_s12 + $0x368] sm:$0xff] }
0x132b   :  { %v4215_v60 = vpop.f32.mrf.mxu1 }
0x132d   :  { %v4216_v53 = vpop.f32.mrf.mxu1 }
0x132e   :  { %v4217_v51 = vadd.f32 %v4216_v53, %v4215_v60  ;;  %v4855_v60 = vld [vmem:[%s11071_s12 + $0x360] sm:$0xff]  ;;  %v4856_v53 = vld [vmem:[%s11071_s12 + $0x358] sm:$0xff] }
0x1330   :  { %v2937_v55 = vadd.f32 %v4217_v51, %v9723_v45  ;;  %v4806_v45 = vld [vmem:[%s11071_s12 + $0x2e8] sm:$0xff]  ;;  %v4857_v51 = vld [vmem:[%s11071_s12 + $0x350] sm:$0xff] }
0x1332   :  { %v2938_v29 = vmul.f32 0.5, %v2937_v55  ;;  %v4858_v55 = vld [vmem:[%s11071_s12 + $0x348] sm:$0xff] }
0x1334   :  { %v2940_v9 = vadd.f32 %v2939_v7, %v2938_v29  ;;  %v4859_v29 = vld [vmem:[%s11071_s12 + $0x340] sm:$0xff]  ;;  %v4860_v7 = vld [vmem:[%s11071_s12 + $0x338] sm:$0xff] }
0x1336   :  { %v2942_v13 = vsub.f32 %v2940_v9, %v4804_v12  ;;  %v4861_v9 = vld [vmem:[%s11071_s12 + $0x330] sm:$0xff]  ;;  %v4863_v12 = vld [vmem:[%s11071_s12 + $0x320] sm:$0xff] }
0x1338   :  { %v2944_v14 = vmul.f32 %v2943_v10, %v2942_v13  ;;  %v4862_v10 = vld [vmem:[%s11071_s12 + $0x328] sm:$0xff]  ;;  %v4864_v13 = vld [vmem:[%s11071_s12 + $0x318] sm:$0xff] }
0x133a   :  { %v9927_v15 = vsub.f32 %v6844_v27, %v2944_v14  ;;  %v4807_v27 = vld [vmem:[%s11071_s12 + $0x2e0] sm:$0xff]  ;;  %v4865_v14 = vld [vmem:[%s11071_s12 + $0x310] sm:$0xff] }
0x133c   :  { %3011 = vmatmul.mubr.f32.vlgmr.msra.gmra.mxu0 %v9927_v15  ;;  %v3256_v17 = vmul.f32 %v9612_v6, %v9927_v15  ;;  %v4808_v6 = vld [vmem:[%s11071_s12 + $0x2d8] sm:$0xff] }
0x133d   :  { %3103 = vmatpush1.msra.mxu0 %v4805_v49  ;;  %v4867_v49 = vld [vmem:[%s11071_s12 + $0x300] sm:$0xff] }
0x133e   :  { %3257 = vadd.xlane.f32.xlu1 %v3256_v17  ;;  %3104 = vmatprep.subr.mxu0 %v4806_v45  ;;  %v4866_v17 = vld [vmem:[%s11071_s12 + $0x308] sm:$0xff]  ;;  %v4868_v45 = vld [vmem:[%s11074_s15 + $0x4f8] sm:$0xff] }
0x133f   :  { %3105 = vmatpush1.msra.mxu0 %v4807_v27 }
0x1340   :  { %3106 = vmatprep.subr.mxu0 %v4808_v6 }
0x1341   :  { %3107 = vmatpush1.msra.mxu0 %v4809_v52 }
0x1342   :  { %3108 = vmatprep.subr.mxu0 %v4810_v22 }
0x1343   :  { %3109 = vmatpush1.msra.mxu0 %v4811_v57  ;;  %v4869_v57 = vld [vmem:[%s11092_s2] ss:$0 sm:$0xff] }
0x1344   :  { %3110 = vmatprep.subr.mxu0 %v4812_v58 }
0x1345   :  { %3111 = vmatpush1.msra.mxu0 %v4813_v59 }
0x1346   :  { %3112 = vmatprep.subr.mxu0 %v4814_v37 }
0x1347   :  { %3113 = vmatpush1.msra.mxu0 %v4815_v42  ;;  %v4870_v42 = vld [vmem:[%s11071_s12 + $0x4f0] sm:$0xff] }
0x1348   :  { %3114 = vmatprep.subr.mxu0 %v4816_v61  ;;  %v4871_v61 = vld [vmem:[%s11071_s12 + $0x4e8] sm:$0xff] }
0x1349   :  { %3115 = vmatpush1.msra.mxu0 %v4817_v4  ;;  %v4872_v4 = vld [vmem:[%s11071_s12 + $0x4e0] sm:$0xff] }
0x134a   :  { %3116 = vmatprep.subr.mxu0 %v4818_v62  ;;  %v4873_v62 = vld [vmem:[%s11071_s12 + $0x4d8] sm:$0xff] }
0x134b   :  { %3117 = vmatpush1.msra.mxu0 %v4819_v54  ;;  %v4874_v54 = vld [vmem:[%s11071_s12 + $0x4d0] sm:$0xff] }
0x134c   :  { %3118 = vmatprep.subr.mxu0 %v4820_v0  ;;  %v4875_v0 = vld [vmem:[%s11071_s12 + $0x4c8] sm:$0xff] }
0x134d   :  { %3119 = vmatpush1.msra.mxu0 %v4821_v1  ;;  %v4876_v1 = vld [vmem:[%s11071_s12 + $0x4c0] sm:$0xff] }
0x134e   :  { %3120 = vmatprep.subr.mxu0 %v4822_v26  ;;  %v4877_v26 = vld [vmem:[%s11071_s12 + $0x4b8] sm:$0xff] }
0x134f   :  { %3121 = vmatpush1.msra.mxu0 %v4823_v2  ;;  %v4878_v2 = vld [vmem:[%s11071_s12 + $0x4b0] sm:$0xff] }
0x1350   :  { %3122 = vmatprep.subr.mxu0 %v4824_v5  ;;  %v4879_v5 = vld [vmem:[%s11071_s12 + $0x4a8] sm:$0xff] }
0x1351   :  { %3123 = vmatpush1.msra.mxu0 %v4825_v18  ;;  %v4880_v18 = vld [vmem:[%s11071_s12 + $0x4a0] sm:$0xff] }
0x1352   :  { %3124 = vmatprep.subr.mxu0 %v4826_v19  ;;  %v4881_v19 = vld [vmem:[%s11071_s12 + $0x498] sm:$0xff] }
0x1353   :  { %3125 = vmatpush1.msra.mxu0 %v4827_v21  ;;  %v4882_v21 = vld [vmem:[%s11071_s12 + $0x490] sm:$0xff] }
0x1354   :  { %3126 = vmatprep.subr.mxu0 %v4828_v23  ;;  %v4883_v23 = vld [vmem:[%s11071_s12 + $0x488] sm:$0xff] }
0x1355   :  { %3127 = vmatpush1.msra.mxu0 %v4829_v25  ;;  %v4884_v25 = vld [vmem:[%s11071_s12 + $0x480] sm:$0xff] }
0x1356   :  { %3128 = vmatprep.subr.mxu0 %v4830_v28  ;;  %v4885_v28 = vld [vmem:[%s11071_s12 + $0x478] sm:$0xff] }
0x1357   :  { %3129 = vmatpush1.msra.mxu0 %v4831_v30  ;;  %v4886_v30 = vld [vmem:[%s11071_s12 + $0x470] sm:$0xff] }
0x1358   :  { %3130 = vmatprep.subr.mxu0 %v4832_v8  ;;  %v4887_v8 = vld [vmem:[%s11071_s12 + $0x468] sm:$0xff] }
0x1359   :  { %3131 = vmatpush1.msra.mxu0 %v4833_v24  ;;  %v4888_v24 = vld [vmem:[%s11071_s12 + $0x460] sm:$0xff] }
0x135a   :  { %3132 = vmatprep.subr.mxu0 %v4834_v11  ;;  %v4889_v11 = vld [vmem:[%s11071_s12 + $0x458] sm:$0xff] }
0x135b   :  { %3133 = vmatpush1.msra.mxu0 %v4835_v3  ;;  %v4890_v3 = vld [vmem:[%s11071_s12 + $0x450] sm:$0xff] }
0x135c   :  { %3134 = vmatprep.subr.mxu0 %v4836_v63  ;;  %v4891_v63 = vld [vmem:[%s11071_s12 + $0x448] sm:$0xff] }
0x135d   :  { %3135 = vmatpush2.msra.mxu0 %v4837_v32  ;;  %v4892_v32 = vld [vmem:[%s11071_s12 + $0x440] sm:$0xff] }
0x135e   :  { %3136 = vmatprep.subr.mxu0 %v4838_v38  ;;  %v4893_v38 = vld [vmem:[%s11071_s12 + $0x438] sm:$0xff] }
0x135f   :  { %3137 = vmatpush2.msra.mxu0 %v4839_v43  ;;  %v4894_v43 = vld [vmem:[%s11071_s12 + $0x430] sm:$0xff] }
0x1360   :  { %3138 = vmatprep.subr.mxu0 %v4840_v33  ;;  %v4895_v33 = vld [vmem:[%s11071_s12 + $0x428] sm:$0xff] }
0x1361   :  { %3139 = vmatpush2.msra.mxu0 %v4841_v34  ;;  %v4896_v34 = vld [vmem:[%s11071_s12 + $0x420] sm:$0xff] }
0x1362   :  { %3140 = vmatprep.subr.mxu0 %v4842_v35  ;;  %v4897_v35 = vld [vmem:[%s11071_s12 + $0x418] sm:$0xff] }
0x1363   :  { %3141 = vmatpush2.msra.mxu0 %v4843_v36  ;;  %v4898_v36 = vld [vmem:[%s11071_s12 + $0x410] sm:$0xff] }
0x1364   :  { %3142 = vmatprep.subr.mxu0 %v4844_v39  ;;  %v4899_v39 = vld [vmem:[%s11071_s12 + $0x408] sm:$0xff] }
0x1365   :  { %3143 = vmatpush2.msra.mxu0 %v4845_v40  ;;  %v4900_v40 = vld [vmem:[%s11071_s12 + $0x400] sm:$0xff] }
0x1366   :  { %3144 = vmatprep.subr.mxu0 %v4846_v41  ;;  %v4901_v41 = vld [vmem:[%s11071_s12 + $0x5f8] sm:$0xff] }
0x1367   :  { %3145 = vmatpush2.msra.mxu0 %v4847_v44  ;;  %v4902_v44 = vld [vmem:[%s11071_s12 + $0x5f0] sm:$0xff] }
0x1368   :  { %3146 = vmatprep.subr.mxu0 %v4848_v46  ;;  %v4903_v46 = vld [vmem:[%s11071_s12 + $0x5e8] sm:$0xff] }
0x1369   :  { %3147 = vmatpush2.msra.mxu0 %v4849_v56  ;;  %v4904_v56 = vld [vmem:[%s11071_s12 + $0x5e0] sm:$0xff] }
0x136a   :  { %3148 = vmatprep.subr.mxu0 %v4850_v50  ;;  %v4905_v50 = vld [vmem:[%s11071_s12 + $0x5d8] sm:$0xff] }
0x136b   :  { %3149 = vmatpush2.msra.mxu0 %v4851_v47  ;;  %v4906_v47 = vld [vmem:[%s11071_s12 + $0x5d0] sm:$0xff] }
0x136c   :  { %3150 = vmatprep.subr.mxu0 %v4852_v16  ;;  %v4907_v16 = vld [vmem:[%s11071_s12 + $0x5c8] sm:$0xff] }
0x136d   :  { %3151 = vmatpush2.msra.mxu0 %v4853_v31  ;;  %v4908_v31 = vld [vmem:[%s11071_s12 + $0x5c0] sm:$0xff] }
0x136e   :  { %3152 = vmatprep.subr.mxu0 %v4854_v48  ;;  %v4909_v48 = vld [vmem:[%s11071_s12 + $0x5b8] sm:$0xff] }
0x136f   :  { %3153 = vmatpush2.msra.mxu0 %v4855_v60  ;;  %v4910_v60 = vld [vmem:[%s11071_s12 + $0x5b0] sm:$0xff] }
0x1370   :  { %3154 = vmatprep.subr.mxu0 %v4856_v53  ;;  %v4911_v53 = vld [vmem:[%s11071_s12 + $0x5a8] sm:$0xff] }
0x1371   :  { %3155 = vmatpush2.msra.mxu0 %v4857_v51  ;;  %v4912_v51 = vld [vmem:[%s11071_s12 + $0x5a0] sm:$0xff] }
0x1372   :  { %3156 = vmatprep.subr.mxu0 %v4858_v55  ;;  %v4913_v55 = vld [vmem:[%s11071_s12 + $0x598] sm:$0xff] }
0x1373   :  { %3157 = vmatpush2.msra.mxu0 %v4859_v29  ;;  %v4914_v29 = vld [vmem:[%s11071_s12 + $0x590] sm:$0xff] }
0x1374   :  { %3158 = vmatprep.subr.mxu0 %v4860_v7  ;;  %v4915_v7 = vld [vmem:[%s11071_s12 + $0x588] sm:$0xff] }
0x1375   :  { %3159 = vmatpush2.msra.mxu0 %v4861_v9  ;;  %v4916_v9 = vld [vmem:[%s11071_s12 + $0x580] sm:$0xff] }
0x1376   :  { %3160 = vmatprep.subr.mxu0 %v4862_v10  ;;  %v4917_v10 = vld [vmem:[%s11071_s12 + $0x578] sm:$0xff] }
0x1377   :  { %3161 = vmatpush2.msra.mxu0 %v4863_v12  ;;  %v4918_v12 = vld [vmem:[%s11071_s12 + $0x570] sm:$0xff] }
0x1378   :  { %3162 = vmatprep.subr.mxu0 %v4864_v13  ;;  %v4919_v13 = vld [vmem:[%s11071_s12 + $0x568] sm:$0xff] }
0x1379   :  { %3163 = vmatpush2.msra.mxu0 %v4865_v14  ;;  %v4920_v14 = vld [vmem:[%s11071_s12 + $0x560] sm:$0xff] }
0x137a   :  { %3164 = vmatprep.subr.mxu0 %v4866_v17  ;;  %v4921_v17 = vld [vmem:[%s11071_s12 + $0x558] sm:$0xff] }
0x137b   :  { %3165 = vmatpush2.msra.mxu0 %v4867_v49  ;;  %v4922_v49 = vld [vmem:[%s11071_s12 + $0x550] sm:$0xff] }
0x137c   :  { %3265 = vmatprep.subr.mxu0 %v4868_v45  ;;  %v4923_v45 = vld [vmem:[%s11071_s12 + $0x548] sm:$0xff] }
0x13fc   :  { %v10124_v27 = vpop.f32.mrf.mxu0 }
0x13fd   :  { %v3017_v6 = vmul.f32 %v10124_v27, %v10124_v27 }
0x13fe   :  { %v3014_v52 = vpop.f32.mrf.mxu0 }
0x13ff   :  { %v3018_v22 = vadd.f32 %v3017_v6, %v3014_v52  ;;  %v4924_v6 = vld [vmem:[%s11071_s12 + $0x540] sm:$0xff]  ;;  %v4925_v52 = vld [vmem:[%s11071_s12 + $0x538] sm:$0xff] }
0x1401   :  { %v10131_v58 = vadd.f32 %v4869_v57, %v3018_v22  ;;  %v4926_v22 = vld [vmem:[%s11071_s12 + $0x530] sm:$0xff]  ;;  %v4927_v57 = vld [vmem:[%s11071_s12 + $0x528] sm:$0xff] }
0x1403   :  { %vm3020_vm12 = vcmp.gt.f32.partialorder %v10131_v58, 0.0  ;;  %v3021_v59 = vmul.f32 0.2, %v10131_v58 }
0x1405   :  { %v3022_v37 = vsel %vm3020_vm12, %v10131_v58, %v3021_v59  ;;  %v4928_v59 = vld [vmem:[%s11071_s12 + $0x520] sm:$0xff] }
0x1406   :  { %3088 = vmatprep.mubr.f32.mxu1 %v3022_v37  ;;  %v4929_v37 = vld [vmem:[%s11071_s12 + $0x518] sm:$0xff] }
0x1407   :  { %3089 = vmatmul.mubr.f32.vlgmr.msra.gmra.mxu1 %v9927_v15 }
0x1408   :  { %3181 = vmatpush1.msra.mxu1 %v4870_v42  ;;  %v4930_v42 = vld [vmem:[%s11071_s12 + $0x510] sm:$0xff] }
0x1409   :  { %3182 = vmatprep.subr.mxu1 %v4871_v61  ;;  %v4931_v61 = vld [vmem:[%s11071_s12 + $0x508] sm:$0xff] }
0x140a   :  { %3183 = vmatpush1.msra.mxu1 %v4872_v4  ;;  %v4932_v4 = vld [vmem:[%s11071_s12 + $0x500] sm:$0xff] }
0x140b   :  { %3184 = vmatprep.subr.mxu1 %v4873_v62  ;;  %v4933_v62 = vld [vmem:[%s11074_s15 + $0x2f8] sm:$0xff] }
0x140c   :  { %3185 = vmatpush1.msra.mxu1 %v4874_v54 }
0x140d   :  { %3186 = vmatprep.subr.mxu1 %v4875_v0 }
0x140e   :  { %3187 = vmatpush1.msra.mxu1 %v4876_v1 }
0x140f   :  { %3188 = vmatprep.subr.mxu1 %v4877_v26 }
0x1410   :  { %3189 = vmatpush1.msra.mxu1 %v4878_v2  ;;  %v4934_v2 = vld [vmem:[%s11092_s2 + $0x1] ss:$0 sm:$0xff] }
0x1411   :  { %3190 = vmatprep.subr.mxu1 %v4879_v5 }
0x1412   :  { %3191 = vmatpush1.msra.mxu1 %v4880_v18 }
0x1413   :  { %3192 = vmatprep.subr.mxu1 %v4881_v19 }
0x1414   :  { %3193 = vmatpush1.msra.mxu1 %v4882_v21  ;;  %v4935_v21 = vld [vmem:[%s11074_s15 + $0x4f0] sm:$0xff] }
0x1415   :  { %3194 = vmatprep.subr.mxu1 %v4883_v23  ;;  %v4936_v23 = vld [vmem:[%s11074_s15 + $0x4e8] sm:$0xff] }
0x1416   :  { %3195 = vmatpush1.msra.mxu1 %v4884_v25  ;;  %v4937_v25 = vld [vmem:[%s11074_s15 + $0x4e0] sm:$0xff] }
0x1417   :  { %3196 = vmatprep.subr.mxu1 %v4885_v28  ;;  %v4938_v28 = vld [vmem:[%s11074_s15 + $0x4d8] sm:$0xff] }
0x1418   :  { %3197 = vmatpush1.msra.mxu1 %v4886_v30  ;;  %v4939_v30 = vld [vmem:[%s11074_s15 + $0x4d0] sm:$0xff] }
0x1419   :  { %3198 = vmatprep.subr.mxu1 %v4887_v8  ;;  %v4940_v8 = vld [vmem:[%s11074_s15 + $0x4c8] sm:$0xff] }
0x141a   :  { %3199 = vmatpush1.msra.mxu1 %v4888_v24  ;;  %v4941_v24 = vld [vmem:[%s11074_s15 + $0x4c0] sm:$0xff] }
0x141b   :  { %3200 = vmatprep.subr.mxu1 %v4889_v11  ;;  %v4942_v11 = vld [vmem:[%s11074_s15 + $0x4b8] sm:$0xff] }
0x141c   :  { %3201 = vmatpush1.msra.mxu1 %v4890_v3  ;;  %v4943_v3 = vld [vmem:[%s11074_s15 + $0x4b0] sm:$0xff] }
0x141d   :  { %3202 = vmatprep.subr.mxu1 %v4891_v63  ;;  %v4944_v63 = vld [vmem:[%s11074_s15 + $0x4a8] sm:$0xff] }
0x141e   :  { %3203 = vmatpush1.msra.mxu1 %v4892_v32  ;;  %v4945_v32 = vld [vmem:[%s11074_s15 + $0x4a0] sm:$0xff] }
0x141f   :  { %3204 = vmatprep.subr.mxu1 %v4893_v38  ;;  %v4946_v38 = vld [vmem:[%s11074_s15 + $0x498] sm:$0xff] }
0x1420   :  { %3205 = vmatpush1.msra.mxu1 %v4894_v43  ;;  %v4947_v43 = vld [vmem:[%s11074_s15 + $0x490] sm:$0xff] }
0x1421   :  { %3206 = vmatprep.subr.mxu1 %v4895_v33  ;;  %v4948_v33 = vld [vmem:[%s11074_s15 + $0x488] sm:$0xff] }
0x1422   :  { %3207 = vmatpush1.msra.mxu1 %v4896_v34  ;;  %v4949_v34 = vld [vmem:[%s11074_s15 + $0x480] sm:$0xff] }
0x1423   :  { %3208 = vmatprep.subr.mxu1 %v4897_v35  ;;  %v4950_v35 = vld [vmem:[%s11074_s15 + $0x478] sm:$0xff] }
0x1424   :  { %3209 = vmatpush1.msra.mxu1 %v4898_v36  ;;  %v4951_v36 = vld [vmem:[%s11074_s15 + $0x470] sm:$0xff] }
0x1425   :  { %3210 = vmatprep.subr.mxu1 %v4899_v39  ;;  %v4952_v39 = vld [vmem:[%s11074_s15 + $0x468] sm:$0xff] }
0x1426   :  { %3211 = vmatpush1.msra.mxu1 %v4900_v40  ;;  %v4953_v40 = vld [vmem:[%s11074_s15 + $0x460] sm:$0xff] }
0x1427   :  { %3212 = vmatprep.subr.mxu1 %v4901_v41  ;;  %v4954_v41 = vld [vmem:[%s11074_s15 + $0x458] sm:$0xff] }
0x1428   :  { %3213 = vmatpush2.msra.mxu1 %v4902_v44  ;;  %v4955_v44 = vld [vmem:[%s11074_s15 + $0x450] sm:$0xff] }
0x1429   :  { %3214 = vmatprep.subr.mxu1 %v4903_v46  ;;  %v4956_v46 = vld [vmem:[%s11074_s15 + $0x448] sm:$0xff] }
0x142a   :  { %3215 = vmatpush2.msra.mxu1 %v4904_v56  ;;  %v4957_v56 = vld [vmem:[%s11074_s15 + $0x440] sm:$0xff] }
0x142b   :  { %3216 = vmatprep.subr.mxu1 %v4905_v50  ;;  %v4958_v50 = vld [vmem:[%s11074_s15 + $0x438] sm:$0xff] }
0x142c   :  { %3217 = vmatpush2.msra.mxu1 %v4906_v47  ;;  %v4959_v47 = vld [vmem:[%s11074_s15 + $0x430] sm:$0xff] }
0x142d   :  { %3218 = vmatprep.subr.mxu1 %v4907_v16  ;;  %v4960_v16 = vld [vmem:[%s11074_s15 + $0x428] sm:$0xff] }
0x142e   :  { %3219 = vmatpush2.msra.mxu1 %v4908_v31  ;;  %v4961_v31 = vld [vmem:[%s11074_s15 + $0x420] sm:$0xff] }
0x142f   :  { %3220 = vmatprep.subr.mxu1 %v4909_v48  ;;  %v4962_v48 = vld [vmem:[%s11074_s15 + $0x418] sm:$0xff] }
0x1430   :  { %3221 = vmatpush2.msra.mxu1 %v4910_v60  ;;  %v4963_v60 = vld [vmem:[%s11074_s15 + $0x410] sm:$0xff] }
0x1431   :  { %3222 = vmatprep.subr.mxu1 %v4911_v53  ;;  %v4964_v53 = vld [vmem:[%s11074_s15 + $0x408] sm:$0xff] }
0x1432   :  { %3223 = vmatpush2.msra.mxu1 %v4912_v51  ;;  %v4965_v51 = vld [vmem:[%s11074_s15 + $0x400] sm:$0xff] }
0x1433   :  { %3224 = vmatprep.subr.mxu1 %v4913_v55  ;;  %v4966_v55 = vld [vmem:[%s11074_s15 + $0x5f8] sm:$0xff] }
0x1434   :  { %3225 = vmatpush2.msra.mxu1 %v4914_v29  ;;  %v4967_v29 = vld [vmem:[%s11074_s15 + $0x5f0] sm:$0xff] }
0x1435   :  { %3226 = vmatprep.subr.mxu1 %v4915_v7  ;;  %v4968_v7 = vld [vmem:[%s11074_s15 + $0x5e8] sm:$0xff] }
0x1436   :  { %3227 = vmatpush2.msra.mxu1 %v4916_v9  ;;  %v4969_v9 = vld [vmem:[%s11074_s15 + $0x5e0] sm:$0xff] }
0x1437   :  { %3228 = vmatprep.subr.mxu1 %v4917_v10  ;;  %v4970_v10 = vld [vmem:[%s11074_s15 + $0x5d8] sm:$0xff] }
0x1438   :  { %3229 = vmatpush2.msra.mxu1 %v4918_v12  ;;  %v4971_v12 = vld [vmem:[%s11074_s15 + $0x5d0] sm:$0xff] }
0x1439   :  { %3230 = vmatprep.subr.mxu1 %v4919_v13  ;;  %v4972_v13 = vld [vmem:[%s11074_s15 + $0x5c8] sm:$0xff] }
0x143a   :  { %3231 = vmatpush2.msra.mxu1 %v4920_v14  ;;  %v4973_v14 = vld [vmem:[%s11074_s15 + $0x5c0] sm:$0xff] }
0x143b   :  { %3232 = vmatprep.subr.mxu1 %v4921_v17  ;;  %v4974_v17 = vld [vmem:[%s11074_s15 + $0x5b8] sm:$0xff] }
0x143c   :  { %3233 = vmatpush2.msra.mxu1 %v4922_v49  ;;  %v4975_v49 = vld [vmem:[%s11074_s15 + $0x5b0] sm:$0xff] }
0x143d   :  { %3234 = vmatprep.subr.mxu1 %v4923_v45  ;;  %v4976_v45 = vld [vmem:[%s11074_s15 + $0x5a8] sm:$0xff] }
0x143e   :  { %3235 = vmatpush2.msra.mxu1 %v4924_v6  ;;  %v4977_v6 = vld [vmem:[%s11074_s15 + $0x5a0] sm:$0xff] }
0x143f   :  { %3236 = vmatprep.subr.mxu1 %v4925_v52  ;;  %v4978_v52 = vld [vmem:[%s11074_s15 + $0x598] sm:$0xff] }
0x1440   :  { %3237 = vmatpush2.msra.mxu1 %v4926_v22  ;;  %v4979_v22 = vld [vmem:[%s11074_s15 + $0x590] sm:$0xff] }
0x1441   :  { %3238 = vmatprep.subr.mxu1 %v4927_v57  ;;  %v4980_v57 = vld [vmem:[%s11074_s15 + $0x588] sm:$0xff] }
0x1442   :  { %3239 = vmatpush2.msra.mxu1 %v4928_v59  ;;  %v4981_v59 = vld [vmem:[%s11074_s15 + $0x580] sm:$0xff] }
0x1443   :  { %3240 = vmatprep.subr.mxu1 %v4929_v37  ;;  %v4982_v37 = vld [vmem:[%s11074_s15 + $0x578] sm:$0xff] }
0x1444   :  { %3241 = vmatpush2.msra.mxu1 %v4930_v42  ;;  %v4983_v42 = vld [vmem:[%s11074_s15 + $0x570] sm:$0xff] }
0x1445   :  { %3242 = vmatprep.subr.mxu1 %v4931_v61  ;;  %v4984_v61 = vld [vmem:[%s11074_s15 + $0x568] sm:$0xff] }
0x1446   :  { %3243 = vmatpush2.msra.mxu1 %v4932_v4  ;;  %v4985_v4 = vld [vmem:[%s11074_s15 + $0x560] sm:$0xff] }
0x1447   :  { %3340 = vmatprep.subr.mxu1 %v4933_v62  ;;  %v4986_v62 = vld [vmem:[%s11074_s15 + $0x558] sm:$0xff] }
0x14c7   :  { %v10331_v54 = vpop.f32.mrf.mxu1 }
0x14c8   :  { %v3095_v0 = vmul.f32 %v10331_v54, %v10331_v54 }
0x14c9   :  { %v3092_v1 = vpop.f32.mrf.mxu1 }
0x14ca   :  { %v3096_v26 = vadd.f32 %v3095_v0, %v3092_v1  ;;  %v4987_v0 = vld [vmem:[%s11074_s15 + $0x550] sm:$0xff]  ;;  %v4988_v1 = vld [vmem:[%s11074_s15 + $0x548] sm:$0xff] }
0x14cc   :  { %v10338_v5 = vadd.f32 %v4934_v2, %v3096_v26  ;;  %v4989_v26 = vld [vmem:[%s11074_s15 + $0x540] sm:$0xff]  ;;  %v4990_v2 = vld [vmem:[%s11074_s15 + $0x538] sm:$0xff] }
0x14ce   :  { %vm3098_vm13 = vcmp.gt.f32.partialorder %v10338_v5, 0.0  ;;  %v3099_v18 = vmul.f32 0.2, %v10338_v5 }
0x14d0   :  { %v3100_v19 = vsel %vm3098_vm13, %v10338_v5, %v3099_v18  ;;  %v4991_v18 = vld [vmem:[%s11074_s15 + $0x530] sm:$0xff] }
0x14d1   :  { %3166 = vmatprep.mubr.f32.mxu0 %v3100_v19  ;;  %v4992_v19 = vld [vmem:[%s11074_s15 + $0x528] sm:$0xff] }
0x14d2   :  { %3167 = vmatmul.mubr.f32.vlgmr.msra.gmra.mxu0 %v9927_v15 }
0x14d3   :  { %3266 = vmatpush1.msra.mxu0 %v4935_v21  ;;  %v4993_v21 = vld [vmem:[%s11074_s15 + $0x520] sm:$0xff] }
0x14d4   :  { %3267 = vmatprep.subr.mxu0 %v4936_v23  ;;  %v4994_v23 = vld [vmem:[%s11074_s15 + $0x518] sm:$0xff] }
0x14d5   :  { %3268 = vmatpush1.msra.mxu0 %v4937_v25  ;;  %v4995_v25 = vld [vmem:[%s11074_s15 + $0x510] sm:$0xff] }
0x14d6   :  { %3269 = vmatprep.subr.mxu0 %v4938_v28  ;;  %v4996_v28 = vld [vmem:[%s11074_s15 + $0x508] sm:$0xff] }
0x14d7   :  { %3270 = vmatpush1.msra.mxu0 %v4939_v30  ;;  %v4997_v30 = vld [vmem:[%s11074_s15 + $0x500] sm:$0xff] }
0x14d8   :  { %3271 = vmatprep.subr.mxu0 %v4940_v8  ;;  %v4998_v8 = vld [vmem:[%s11074_s15 + $0xf8] sm:$0xff] }
0x14d9   :  { %3272 = vmatpush1.msra.mxu0 %v4941_v24 }
0x14da   :  { %3273 = vmatprep.subr.mxu0 %v4942_v11 }
0x14db   :  { %3274 = vmatpush1.msra.mxu0 %v4943_v3 }
0x14dc   :  { %3275 = vmatprep.subr.mxu0 %v4944_v63 }
0x14dd   :  { %3276 = vmatpush1.msra.mxu0 %v4945_v32  ;;  %v4999_v32 = vld [vmem:[%s11092_s2 + $0x2] ss:$0 sm:$0xff] }
0x14de   :  { %3277 = vmatprep.subr.mxu0 %v4946_v38 }
0x14df   :  { %3278 = vmatpush1.msra.mxu0 %v4947_v43 }
0x14e0   :  { %3279 = vmatprep.subr.mxu0 %v4948_v33 }
0x14e1   :  { %3280 = vmatpush1.msra.mxu0 %v4949_v34  ;;  %v5000_v34 = vld [vmem:[%s11074_s15 + $0x2f0] sm:$0xff] }
0x14e2   :  { %3281 = vmatprep.subr.mxu0 %v4950_v35  ;;  %v5001_v35 = vld [vmem:[%s11074_s15 + $0x2e8] sm:$0xff] }
0x14e3   :  { %3282 = vmatpush1.msra.mxu0 %v4951_v36  ;;  %v5002_v36 = vld [vmem:[%s11074_s15 + $0x2e0] sm:$0xff] }
0x14e4   :  { %3283 = vmatprep.subr.mxu0 %v4952_v39  ;;  %v5003_v39 = vld [vmem:[%s11074_s15 + $0x2d8] sm:$0xff] }
0x14e5   :  { %3284 = vmatpush1.msra.mxu0 %v4953_v40  ;;  %v5004_v40 = vld [vmem:[%s11074_s15 + $0x2d0] sm:$0xff] }
0x14e6   :  { %3285 = vmatprep.subr.mxu0 %v4954_v41  ;;  %v5005_v41 = vld [vmem:[%s11074_s15 + $0x2c8] sm:$0xff] }
0x14e7   :  { %3286 = vmatpush1.msra.mxu0 %v4955_v44  ;;  %v5006_v44 = vld [vmem:[%s11074_s15 + $0x2c0] sm:$0xff] }
0x14e8   :  { %3287 = vmatprep.subr.mxu0 %v4956_v46  ;;  %v5007_v46 = vld [vmem:[%s11074_s15 + $0x2b8] sm:$0xff] }
0x14e9   :  { %3288 = vmatpush1.msra.mxu0 %v4957_v56  ;;  %v5008_v56 = vld [vmem:[%s11074_s15 + $0x2b0] sm:$0xff] }
0x14ea   :  { %3289 = vmatprep.subr.mxu0 %v4958_v50  ;;  %v5009_v50 = vld [vmem:[%s11074_s15 + $0x2a8] sm:$0xff] }
0x14eb   :  { %3290 = vmatpush1.msra.mxu0 %v4959_v47  ;;  %v5010_v47 = vld [vmem:[%s11074_s15 + $0x2a0] sm:$0xff] }
0x14ec   :  { %3291 = vmatprep.subr.mxu0 %v4960_v16  ;;  %v5011_v16 = vld [vmem:[%s11074_s15 + $0x298] sm:$0xff] }
0x14ed   :  { %3292 = vmatpush1.msra.mxu0 %v4961_v31  ;;  %v5012_v31 = vld [vmem:[%s11074_s15 + $0x290] sm:$0xff] }
0x14ee   :  { %3293 = vmatprep.subr.mxu0 %v4962_v48  ;;  %v5013_v48 = vld [vmem:[%s11074_s15 + $0x288] sm:$0xff] }
0x14ef   :  { %3294 = vmatpush1.msra.mxu0 %v4963_v60  ;;  %v5014_v60 = vld [vmem:[%s11074_s15 + $0x280] sm:$0xff] }
0x14f0   :  { %3295 = vmatprep.subr.mxu0 %v4964_v53  ;;  %v5015_v53 = vld [vmem:[%s11074_s15 + $0x278] sm:$0xff] }
0x14f1   :  { %3296 = vmatpush1.msra.mxu0 %v4965_v51  ;;  %v5016_v51 = vld [vmem:[%s11074_s15 + $0x270] sm:$0xff] }
0x14f2   :  { %3297 = vmatprep.subr.mxu0 %v4966_v55  ;;  %v5017_v55 = vld [vmem:[%s11074_s15 + $0x268] sm:$0xff] }
0x14f3   :  { %3298 = vmatpush2.msra.mxu0 %v4967_v29  ;;  %v5018_v29 = vld [vmem:[%s11074_s15 + $0x260] sm:$0xff] }
0x14f4   :  { %3299 = vmatprep.subr.mxu0 %v4968_v7  ;;  %v5019_v7 = vld [vmem:[%s11074_s15 + $0x258] sm:$0xff] }
0x14f5   :  { %3300 = vmatpush2.msra.mxu0 %v4969_v9  ;;  %v5020_v9 = vld [vmem:[%s11074_s15 + $0x250] sm:$0xff] }
0x14f6   :  { %3301 = vmatprep.subr.mxu0 %v4970_v10  ;;  %v5021_v10 = vld [vmem:[%s11074_s15 + $0x248] sm:$0xff] }
0x14f7   :  { %3302 = vmatpush2.msra.mxu0 %v4971_v12  ;;  %v5022_v12 = vld [vmem:[%s11074_s15 + $0x240] sm:$0xff] }
0x14f8   :  { %3303 = vmatprep.subr.mxu0 %v4972_v13  ;;  %v5023_v13 = vld [vmem:[%s11074_s15 + $0x238] sm:$0xff] }
0x14f9   :  { %3304 = vmatpush2.msra.mxu0 %v4973_v14  ;;  %v5024_v14 = vld [vmem:[%s11074_s15 + $0x230] sm:$0xff] }
0x14fa   :  { %3305 = vmatprep.subr.mxu0 %v4974_v17  ;;  %v5025_v17 = vld [vmem:[%s11074_s15 + $0x228] sm:$0xff] }
0x14fb   :  { %3306 = vmatpush2.msra.mxu0 %v4975_v49  ;;  %v5026_v49 = vld [vmem:[%s11074_s15 + $0x220] sm:$0xff] }
0x14fc   :  { %3307 = vmatprep.subr.mxu0 %v4976_v45  ;;  %v5027_v45 = vld [vmem:[%s11074_s15 + $0x218] sm:$0xff] }
0x14fd   :  { %3308 = vmatpush2.msra.mxu0 %v4977_v6  ;;  %v5028_v6 = vld [vmem:[%s11074_s15 + $0x210] sm:$0xff] }
0x14fe   :  { %3309 = vmatprep.subr.mxu0 %v4978_v52  ;;  %v5029_v52 = vld [vmem:[%s11074_s15 + $0x208] sm:$0xff] }
0x14ff   :  { %3310 = vmatpush2.msra.mxu0 %v4979_v22  ;;  %v5030_v22 = vld [vmem:[%s11074_s15 + $0x200] sm:$0xff] }
0x1500   :  { %3311 = vmatprep.subr.mxu0 %v4980_v57  ;;  %v5031_v57 = vld [vmem:[%s11074_s15 + $0x3f8] sm:$0xff] }
0x1501   :  { %3312 = vmatpush2.msra.mxu0 %v4981_v59  ;;  %v5032_v59 = vld [vmem:[%s11074_s15 + $0x3f0] sm:$0xff] }
0x1502   :  { %3313 = vmatprep.subr.mxu0 %v4982_v37  ;;  %v5033_v37 = vld [vmem:[%s11074_s15 + $0x3e8] sm:$0xff] }
0x1503   :  { %3314 = vmatpush2.msra.mxu0 %v4983_v42  ;;  %v5034_v42 = vld [vmem:[%s11074_s15 + $0x3e0] sm:$0xff] }
0x1504   :  { %3315 = vmatprep.subr.mxu0 %v4984_v61  ;;  %v5035_v61 = vld [vmem:[%s11074_s15 + $0x3d8] sm:$0xff] }
0x1505   :  { %3316 = vmatpush2.msra.mxu0 %v4985_v4  ;;  %v5036_v4 = vld [vmem:[%s11074_s15 + $0x3d0] sm:$0xff] }
0x1506   :  { %3317 = vmatprep.subr.mxu0 %v4986_v62  ;;  %v5037_v62 = vld [vmem:[%s11074_s15 + $0x3c8] sm:$0xff] }
0x1507   :  { %3318 = vmatpush2.msra.mxu0 %v4987_v0  ;;  %v5038_v0 = vld [vmem:[%s11074_s15 + $0x3c0] sm:$0xff] }
0x1508   :  { %3319 = vmatprep.subr.mxu0 %v4988_v1  ;;  %v5039_v1 = vld [vmem:[%s11074_s15 + $0x3b8] sm:$0xff] }
0x1509   :  { %3320 = vmatpush2.msra.mxu0 %v4989_v26  ;;  %v5040_v26 = vld [vmem:[%s11074_s15 + $0x3b0] sm:$0xff] }
0x150a   :  { %3321 = vmatprep.subr.mxu0 %v4990_v2  ;;  %v5041_v2 = vld [vmem:[%s11074_s15 + $0x3a8] sm:$0xff] }
0x150b   :  { %3322 = vmatpush2.msra.mxu0 %v4991_v18  ;;  %v5042_v18 = vld [vmem:[%s11074_s15 + $0x3a0] sm:$0xff] }
0x150c   :  { %3323 = vmatprep.subr.mxu0 %v4992_v19  ;;  %v5043_v19 = vld [vmem:[%s11074_s15 + $0x398] sm:$0xff] }
0x150d   :  { %3324 = vmatpush2.msra.mxu0 %v4993_v21  ;;  %v5044_v21 = vld [vmem:[%s11074_s15 + $0x390] sm:$0xff] }
0x150e   :  { %3325 = vmatprep.subr.mxu0 %v4994_v23  ;;  %v5045_v23 = vld [vmem:[%s11074_s15 + $0x388] sm:$0xff] }
0x150f   :  { %3326 = vmatpush2.msra.mxu0 %v4995_v25  ;;  %v5046_v25 = vld [vmem:[%s11074_s15 + $0x380] sm:$0xff] }
0x1510   :  { %3327 = vmatprep.subr.mxu0 %v4996_v28  ;;  %v5047_v28 = vld [vmem:[%s11074_s15 + $0x378] sm:$0xff] }
0x1511   :  { %3328 = vmatpush2.msra.mxu0 %v4997_v30  ;;  %v5048_v30 = vld [vmem:[%s11074_s15 + $0x370] sm:$0xff] }
0x1512   :  { %3415 = vmatprep.subr.mxu0 %v4998_v8  ;;  %v5049_v8 = vld [vmem:[%s11074_s15 + $0x368] sm:$0xff] }
0x1592   :  { %v10538_v24 = vpop.f32.mrf.mxu0 }
0x1593   :  { %v3173_v11 = vmul.f32 %v10538_v24, %v10538_v24 }
0x1594   :  { %v3170_v3 = vpop.f32.mrf.mxu0 }
0x1595   :  { %v3174_v63 = vadd.f32 %v3173_v11, %v3170_v3  ;;  %v5050_v11 = vld [vmem:[%s11074_s15 + $0x360] sm:$0xff]  ;;  %v5051_v3 = vld [vmem:[%s11074_s15 + $0x358] sm:$0xff] }
0x1597   :  { %v10545_v38 = vadd.f32 %v4999_v32, %v3174_v63  ;;  %v5052_v63 = vld [vmem:[%s11074_s15 + $0x350] sm:$0xff]  ;;  %v5053_v32 = vld [vmem:[%s11074_s15 + $0x348] sm:$0xff] }
0x1599   :  { %vm3176_vm14 = vcmp.gt.f32.partialorder %v10545_v38, 0.0  ;;  %v3177_v43 = vmul.f32 0.2, %v10545_v38 }
0x159b   :  { %v3178_v33 = vsel %vm3176_vm14, %v10545_v38, %v3177_v43  ;;  %v5054_v43 = vld [vmem:[%s11074_s15 + $0x340] sm:$0xff]  ;;  %v5131_v38 = vld [vmem:[%s11073_s14 + $0x70] sm:$0xff] }
0x159c   :  { %3244 = vmatprep.mubr.f32.mxu1 %v3178_v33  ;;  %v5055_v33 = vld [vmem:[%s11074_s15 + $0x338] sm:$0xff] }
0x159d   :  { %3245 = vmatmul.mubr.f32.vlgmr.msra.gmra.mxu1 %v9927_v15 }
0x159e   :  { %3341 = vmatpush1.msra.mxu1 %v5000_v34  ;;  %v5056_v34 = vld [vmem:[%s11074_s15 + $0x330] sm:$0xff] }
0x159f   :  { %3342 = vmatprep.subr.mxu1 %v5001_v35  ;;  %v5057_v35 = vld [vmem:[%s11074_s15 + $0x328] sm:$0xff] }
0x15a0   :  { %3343 = vmatpush1.msra.mxu1 %v5002_v36  ;;  %v5058_v36 = vld [vmem:[%s11074_s15 + $0x320] sm:$0xff] }
0x15a1   :  { %3344 = vmatprep.subr.mxu1 %v5003_v39  ;;  %v5059_v39 = vld [vmem:[%s11074_s15 + $0x318] sm:$0xff] }
0x15a2   :  { %3345 = vmatpush1.msra.mxu1 %v5004_v40  ;;  %v5060_v40 = vld [vmem:[%s11074_s15 + $0x310] sm:$0xff] }
0x15a3   :  { %3346 = vmatprep.subr.mxu1 %v5005_v41  ;;  %v5061_v41 = vld [vmem:[%s11074_s15 + $0x308] sm:$0xff] }
0x15a4   :  { %3347 = vmatpush1.msra.mxu1 %v5006_v44  ;;  %v5062_v44 = vld [vmem:[%s11074_s15 + $0x300] sm:$0xff] }
0x15a5   :  { %3348 = vmatprep.subr.mxu1 %v5007_v46  ;;  %v5063_v46 = vld [vmem:[%s11073_s14 + $0xf8] sm:$0xff] }
0x15a6   :  { %3349 = vmatpush1.msra.mxu1 %v5008_v56 }
0x15a7   :  { %3350 = vmatprep.subr.mxu1 %v5009_v50 }
0x15a8   :  { %3351 = vmatpush1.msra.mxu1 %v5010_v47 }
0x15a9   :  { %3352 = vmatprep.subr.mxu1 %v5011_v16 }
0x15aa   :  { %3353 = vmatpush1.msra.mxu1 %v5012_v31  ;;  %v5064_v31 = vld [vmem:[%s11092_s2 + $0x3] ss:$0 sm:$0xff] }
0x15ab   :  { %3354 = vmatprep.subr.mxu1 %v5013_v48 }
0x15ac   :  { %3355 = vmatpush1.msra.mxu1 %v5014_v60 }
0x15ad   :  { %3356 = vmatprep.subr.mxu1 %v5015_v53 }
0x15ae   :  { %3357 = vmatpush1.msra.mxu1 %v5016_v51  ;;  %v5065_v51 = vld [vmem:[%s11077_s18] ss:$0 sm:$0xff] }
0x15af   :  { %3358 = vmatprep.subr.mxu1 %v5017_v55 }
0x15b0   :  { %3359 = vmatpush1.msra.mxu1 %v5018_v29 }
0x15b1   :  { %3360 = vmatprep.subr.mxu1 %v5019_v7  ;;  %v5066_v7 = vld [vmem:[%s11074_s15 + $0xf0] sm:$0xff] }
0x15b2   :  { %3361 = vmatpush1.msra.mxu1 %v5020_v9  ;;  %v5067_v9 = vld [vmem:[%s11074_s15 + $0xe8] sm:$0xff] }
0x15b3   :  { %3362 = vmatprep.subr.mxu1 %v5021_v10  ;;  %v5068_v10 = vld [vmem:[%s11074_s15 + $0xe0] sm:$0xff] }
0x15b4   :  { %3363 = vmatpush1.msra.mxu1 %v5022_v12  ;;  %v5069_v12 = vld [vmem:[%s11074_s15 + $0xd8] sm:$0xff] }
0x15b5   :  { %3364 = vmatprep.subr.mxu1 %v5023_v13  ;;  %v5070_v13 = vld [vmem:[%s11074_s15 + $0xd0] sm:$0xff] }
0x15b6   :  { %3365 = vmatpush1.msra.mxu1 %v5024_v14  ;;  %v5071_v14 = vld [vmem:[%s11074_s15 + $0xc8] sm:$0xff] }
0x15b7   :  { %3366 = vmatprep.subr.mxu1 %v5025_v17  ;;  %v5072_v17 = vld [vmem:[%s11074_s15 + $0xc0] sm:$0xff] }
0x15b8   :  { %3367 = vmatpush1.msra.mxu1 %v5026_v49  ;;  %v5073_v49 = vld [vmem:[%s11074_s15 + $0xb8] sm:$0xff] }
0x15b9   :  { %3368 = vmatprep.subr.mxu1 %v5027_v45  ;;  %v5074_v45 = vld [vmem:[%s11074_s15 + $0xb0] sm:$0xff] }
0x15ba   :  { %3369 = vmatpush1.msra.mxu1 %v5028_v6  ;;  %v5075_v6 = vld [vmem:[%s11074_s15 + $0xa8] sm:$0xff] }
0x15bb   :  { %3370 = vmatprep.subr.mxu1 %v5029_v52  ;;  %v5076_v52 = vld [vmem:[%s11074_s15 + $0xa0] sm:$0xff] }
0x15bc   :  { %3371 = vmatpush1.msra.mxu1 %v5030_v22  ;;  %v5077_v22 = vld [vmem:[%s11074_s15 + $0x98] sm:$0xff] }
0x15bd   :  { %3372 = vmatprep.subr.mxu1 %v5031_v57  ;;  %v5078_v57 = vld [vmem:[%s11074_s15 + $0x90] sm:$0xff] }
0x15be   :  { %3373 = vmatpush2.msra.mxu1 %v5032_v59  ;;  %v5079_v59 = vld [vmem:[%s11074_s15 + $0x88] sm:$0xff] }
0x15bf   :  { %3374 = vmatprep.subr.mxu1 %v5033_v37  ;;  %v5080_v37 = vld [vmem:[%s11074_s15 + $0x80] sm:$0xff] }
0x15c0   :  { %3375 = vmatpush2.msra.mxu1 %v5034_v42  ;;  %v5081_v42 = vld [vmem:[%s11074_s15 + $0x78] sm:$0xff] }
0x15c1   :  { %3376 = vmatprep.subr.mxu1 %v5035_v61  ;;  %v5082_v61 = vld [vmem:[%s11074_s15 + $0x70] sm:$0xff] }
0x15c2   :  { %3377 = vmatpush2.msra.mxu1 %v5036_v4  ;;  %v5083_v4 = vld [vmem:[%s11074_s15 + $0x68] sm:$0xff] }
0x15c3   :  { %3378 = vmatprep.subr.mxu1 %v5037_v62  ;;  %v5084_v62 = vld [vmem:[%s11074_s15 + $0x60] sm:$0xff] }
0x15c4   :  { %3379 = vmatpush2.msra.mxu1 %v5038_v0  ;;  %v5085_v0 = vld [vmem:[%s11074_s15 + $0x58] sm:$0xff] }
0x15c5   :  { %3380 = vmatprep.subr.mxu1 %v5039_v1  ;;  %v5086_v1 = vld [vmem:[%s11074_s15 + $0x50] sm:$0xff] }
0x15c6   :  { %3381 = vmatpush2.msra.mxu1 %v5040_v26  ;;  %v5087_v26 = vld [vmem:[%s11074_s15 + $0x48] sm:$0xff] }
0x15c7   :  { %3382 = vmatprep.subr.mxu1 %v5041_v2  ;;  %v5088_v2 = vld [vmem:[%s11074_s15 + $0x40] sm:$0xff] }
0x15c8   :  { %3383 = vmatpush2.msra.mxu1 %v5042_v18  ;;  %v5089_v18 = vld [vmem:[%s11074_s15 + $0x38] sm:$0xff] }
0x15c9   :  { %3384 = vmatprep.subr.mxu1 %v5043_v19  ;;  %v5090_v19 = vld [vmem:[%s11074_s15 + $0x30] sm:$0xff] }
0x15ca   :  { %3385 = vmatpush2.msra.mxu1 %v5044_v21  ;;  %v5091_v21 = vld [vmem:[%s11074_s15 + $0x28] sm:$0xff] }
0x15cb   :  { %3386 = vmatprep.subr.mxu1 %v5045_v23  ;;  %v5092_v23 = vld [vmem:[%s11074_s15 + $0x20] sm:$0xff] }
0x15cc   :  { %3387 = vmatpush2.msra.mxu1 %v5046_v25  ;;  %v5093_v25 = vld [vmem:[%s11074_s15 + $0x18] sm:$0xff] }
0x15cd   :  { %3388 = vmatprep.subr.mxu1 %v5047_v28  ;;  %v5094_v28 = vld [vmem:[%s11074_s15 + $0x10] sm:$0xff] }
0x15ce   :  { %3389 = vmatpush2.msra.mxu1 %v5048_v30  ;;  %v5095_v30 = vld [vmem:[%s11074_s15 + $0x8] sm:$0xff] }
0x15cf   :  { %3390 = vmatprep.subr.mxu1 %v5049_v8  ;;  %v5096_v8 = vld [vmem:[%s11074_s15] sm:$0xff] }
0x15d0   :  { %3391 = vmatpush2.msra.mxu1 %v5050_v11  ;;  %v5097_v11 = vld [vmem:[%s11074_s15 + $0x1f8] sm:$0xff] }
0x15d1   :  { %3392 = vmatprep.subr.mxu1 %v5051_v3  ;;  %v5098_v3 = vld [vmem:[%s11074_s15 + $0x1f0] sm:$0xff] }
0x15d2   :  { %3393 = vmatpush2.msra.mxu1 %v5052_v63  ;;  %v5099_v63 = vld [vmem:[%s11074_s15 + $0x1e8] sm:$0xff] }
0x15d3   :  { %3394 = vmatprep.subr.mxu1 %v5053_v32  ;;  %v5100_v32 = vld [vmem:[%s11074_s15 + $0x1e0] sm:$0xff] }
0x15d4   :  { %3395 = vmatpush2.msra.mxu1 %v5054_v43  ;;  %v5101_v43 = vld [vmem:[%s11074_s15 + $0x1d8] sm:$0xff] }
0x15d5   :  { %3396 = vmatprep.subr.mxu1 %v5055_v33  ;;  %v5102_v33 = vld [vmem:[%s11074_s15 + $0x1d0] sm:$0xff] }
0x15d6   :  { %3397 = vmatpush2.msra.mxu1 %v5056_v34  ;;  %v5103_v34 = vld [vmem:[%s11074_s15 + $0x1c8] sm:$0xff] }
0x15d7   :  { %3398 = vmatprep.subr.mxu1 %v5057_v35  ;;  %v5104_v35 = vld [vmem:[%s11074_s15 + $0x1c0] sm:$0xff] }
0x15d8   :  { %3399 = vmatpush2.msra.mxu1 %v5058_v36  ;;  %v5105_v36 = vld [vmem:[%s11074_s15 + $0x1b8] sm:$0xff] }
0x15d9   :  { %3400 = vmatprep.subr.mxu1 %v5059_v39  ;;  %v5106_v39 = vld [vmem:[%s11074_s15 + $0x1b0] sm:$0xff] }
0x15da   :  { %3401 = vmatpush2.msra.mxu1 %v5060_v40  ;;  %v5107_v40 = vld [vmem:[%s11074_s15 + $0x1a8] sm:$0xff] }
0x15db   :  { %3402 = vmatprep.subr.mxu1 %v5061_v41  ;;  %v5108_v41 = vld [vmem:[%s11074_s15 + $0x1a0] sm:$0xff] }
0x15dc   :  { %3403 = vmatpush2.msra.mxu1 %v5062_v44  ;;  %v5109_v44 = vld [vmem:[%s11074_s15 + $0x198] sm:$0xff] }
0x15dd   :  { %4218 = vmatprep.subr.mxu1 %v5063_v46  ;;  %v5110_v46 = vld [vmem:[%s11074_s15 + $0x190] sm:$0xff] }
0x165d   :  { %v3246_v56 = vpop.f32.mrf.mxu1 }
0x165e   :  { %v3251_v50 = vmul.f32 %v3246_v56, %v3246_v56  ;;  %v3263_v53 = vmul.f32 2.0, %v3246_v56  ;;  %v5111_v56 = vld [vmem:[%s11074_s15 + $0x188] sm:$0xff] }
0x165f   :  { %v3248_v47 = vpop.f32.mrf.mxu1 }
0x1660   :  { %v3252_v16 = vadd.f32 %v3251_v50, %v3248_v47  ;;  %v5112_v50 = vld [vmem:[%s11074_s15 + $0x180] sm:$0xff]  ;;  %v5113_v47 = vld [vmem:[%s11074_s15 + $0x178] sm:$0xff] }
0x1662   :  { %v3253_v48 = vadd.f32 %v5064_v31, %v3252_v16  ;;  %v5114_v16 = vld [vmem:[%s11074_s15 + $0x170] sm:$0xff]  ;;  %v5115_v31 = vld [vmem:[%s11074_s15 + $0x168] sm:$0xff] }
0x1664   :  { %vm3254_vm15 = vcmp.gt.f32.partialorder %v3253_v48, 0.0  ;;  %v5116_v48 = vld [vmem:[%s11074_s15 + $0x160] sm:$0xff] }
0x1665   :  { %v3255_v60 = vsel %vm3254_vm15, 1.0, %v5200_v20 }
0x1666   :  { %v3262_v55 = vmul.f32 %v5065_v51, %v3255_v60  ;;  %v5117_v60 = vld [vmem:[%s11074_s15 + $0x158] sm:$0xff]  ;;  %v5119_v51 = vld [vmem:[%s11074_s15 + $0x148] sm:$0xff] }
0x1668   :  { %v3264_v29 = vmul.f32 %v3263_v53, %v3262_v55  ;;  %3329 = vmatprep.mubr.f32.mxu0 %v3262_v55  ;;  %v5118_v53 = vld [vmem:[%s11074_s15 + $0x150] sm:$0xff]  ;;  %v5120_v55 = vld [vmem:[%s11074_s15 + $0x140] sm:$0xff] }
0x166a   :  { %3330 = vmatmul.mubr.f32.vlgmr.msra.gmra.mxu0 %v3264_v29  ;;  %v5121_v29 = vld [vmem:[%s11074_s15 + $0x138] sm:$0xff] }
0x166b   :  { %3416 = vmatpush1.msra.mxu0 %v5066_v7  ;;  %v5122_v7 = vld [vmem:[%s11074_s15 + $0x130] sm:$0xff] }
0x166c   :  { %3417 = vmatprep.subr.mxu0 %v5067_v9  ;;  %v5123_v9 = vld [vmem:[%s11074_s15 + $0x128] sm:$0xff] }
0x166d   :  { %3418 = vmatpush1.msra.mxu0 %v5068_v10  ;;  %v5124_v10 = vld [vmem:[%s11074_s15 + $0x120] sm:$0xff] }
0x166e   :  { %3419 = vmatprep.subr.mxu0 %v5069_v12  ;;  %v5125_v12 = vld [vmem:[%s11074_s15 + $0x118] sm:$0xff] }
0x166f   :  { %3420 = vmatpush1.msra.mxu0 %v5070_v13  ;;  %v5126_v13 = vld [vmem:[%s11074_s15 + $0x110] sm:$0xff] }
0x1670   :  { %3421 = vmatprep.subr.mxu0 %v5071_v14  ;;  %v5127_v14 = vld [vmem:[%s11074_s15 + $0x108] sm:$0xff] }
0x1671   :  { %3422 = vmatpush1.msra.mxu0 %v5072_v17  ;;  %v5128_v17 = vld [vmem:[%s11074_s15 + $0x100] sm:$0xff] }
0x1672   :  { %3423 = vmatprep.subr.mxu0 %v5073_v49 }
0x1673   :  { %3424 = vmatpush1.msra.mxu0 %v5074_v45  ;;  %v3179_v45 = vsel %vm3176_vm14, 1.0, %v5200_v20 }
0x1674   :  { %3425 = vmatprep.subr.mxu0 %v5075_v6 }
0x1675   :  { %3426 = vmatpush1.msra.mxu0 %v5076_v52  ;;  %v3338_v52 = vmul.f32 2.0, %v10538_v24  ;;  %v5132_v24 = vld [vmem:[%s11073_s14 + $0xe8] sm:$0xff] }
0x1676   :  { %3427 = vmatprep.subr.mxu0 %v5077_v22 }
0x1677   :  { %3428 = vmatpush1.msra.mxu0 %v5078_v57 }
0x1678   :  { %3429 = vmatprep.subr.mxu0 %v5079_v59  ;;  %v5129_v59 = vld [vmem:[%s11073_s14 + $0x78] sm:$0xff] }
0x1679   :  { %3430 = vmatpush1.msra.mxu0 %v5080_v37  ;;  %v5130_v37 = vld [vmem:[%s11073_s14 + $0xf0] sm:$0xff] }
0x167a   :  { %3431 = vmatprep.subr.mxu0 %v5081_v42  ;;  %v5133_v42 = vld [vmem:[%s11073_s14 + $0x68] sm:$0xff] }
0x167b   :  { %3432 = vmatpush1.msra.mxu0 %v5082_v61  ;;  %v5134_v61 = vld [vmem:[%s11073_s14 + $0xe0] sm:$0xff] }
0x167c   :  { %3433 = vmatprep.subr.mxu0 %v5083_v4  ;;  %v5135_v4 = vld [vmem:[%s11073_s14 + $0x60] sm:$0xff] }
0x167d   :  { %3434 = vmatpush1.msra.mxu0 %v5084_v62  ;;  %v5136_v62 = vld [vmem:[%s11073_s14 + $0xd8] sm:$0xff] }
0x167e   :  { %3435 = vmatprep.subr.mxu0 %v5085_v0  ;;  %v5137_v0 = vld [vmem:[%s11073_s14 + $0x58] sm:$0xff] }
0x167f   :  { %3436 = vmatpush1.msra.mxu0 %v5086_v1  ;;  %v5138_v1 = vld [vmem:[%s11073_s14 + $0xd0] sm:$0xff] }
0x1680   :  { %3437 = vmatprep.subr.mxu0 %v5087_v26  ;;  %v5139_v26 = vld [vmem:[%s11073_s14 + $0x50] sm:$0xff] }
0x1681   :  { %3438 = vmatpush1.msra.mxu0 %v5088_v2  ;;  %v5140_v2 = vld [vmem:[%s11073_s14 + $0xc8] sm:$0xff] }
0x1682   :  { %3439 = vmatprep.subr.mxu0 %v5089_v18  ;;  %v5141_v18 = vld [vmem:[%s11073_s14 + $0x48] sm:$0xff] }
0x1683   :  { %3440 = vmatpush1.msra.mxu0 %v5090_v19  ;;  %v5142_v19 = vld [vmem:[%s11073_s14 + $0xc0] sm:$0xff] }
0x1684   :  { %3441 = vmatprep.subr.mxu0 %v5091_v21  ;;  %v5143_v21 = vld [vmem:[%s11073_s14 + $0x40] sm:$0xff] }
0x1685   :  { %3442 = vmatpush1.msra.mxu0 %v5092_v23  ;;  %v5144_v23 = vld [vmem:[%s11073_s14 + $0xb8] sm:$0xff] }
0x1686   :  { %3443 = vmatprep.subr.mxu0 %v5093_v25  ;;  %v5145_v25 = vld [vmem:[%s11073_s14 + $0x38] sm:$0xff] }
0x1687   :  { %3444 = vmatpush1.msra.mxu0 %v5094_v28  ;;  %v5146_v28 = vld [vmem:[%s11073_s14 + $0xb0] sm:$0xff] }
0x1688   :  { %3445 = vmatprep.subr.mxu0 %v5095_v30  ;;  %v5147_v30 = vld [vmem:[%s11073_s14 + $0x30] sm:$0xff] }
0x1689   :  { %3446 = vmatpush1.msra.mxu0 %v5096_v8  ;;  %v5148_v8 = vld [vmem:[%s11073_s14 + $0xa8] sm:$0xff] }
0x168a   :  { %3447 = vmatprep.subr.mxu0 %v5097_v11  ;;  %v5149_v11 = vld [vmem:[%s11073_s14 + $0x28] sm:$0xff] }
0x168b   :  { %3448 = vmatpush2.msra.mxu0 %v5098_v3  ;;  %v5150_v3 = vld [vmem:[%s11073_s14 + $0xa0] sm:$0xff] }
0x168c   :  { %3449 = vmatprep.subr.mxu0 %v5099_v63  ;;  %v5151_v63 = vld [vmem:[%s11073_s14 + $0x20] sm:$0xff] }
0x168d   :  { %3450 = vmatpush2.msra.mxu0 %v5100_v32  ;;  %v5152_v32 = vld [vmem:[%s11073_s14 + $0x98] sm:$0xff] }
0x168e   :  { %3451 = vmatprep.subr.mxu0 %v5101_v43  ;;  %v5153_v43 = vld [vmem:[%s11073_s14 + $0x18] sm:$0xff] }
0x168f   :  { %3452 = vmatpush2.msra.mxu0 %v5102_v33  ;;  %v5154_v33 = vld [vmem:[%s11073_s14 + $0x90] sm:$0xff] }
0x1690   :  { %3453 = vmatprep.subr.mxu0 %v5103_v34  ;;  %v5155_v34 = vld [vmem:[%s11073_s14 + $0x10] sm:$0xff] }
0x1691   :  { %3454 = vmatpush2.msra.mxu0 %v5104_v35  ;;  %v5156_v35 = vld [vmem:[%s11073_s14 + $0x88] sm:$0xff] }
0x1692   :  { %3455 = vmatprep.subr.mxu0 %v5105_v36  ;;  %v5157_v36 = vld [vmem:[%s11073_s14 + $0x8] sm:$0xff] }
0x1693   :  { %3456 = vmatpush2.msra.mxu0 %v5106_v39  ;;  %v5158_v39 = vld [vmem:[%s11073_s14 + $0x80] sm:$0xff] }
0x1694   :  { %3457 = vmatprep.subr.mxu0 %v5107_v40  ;;  %v5159_v40 = vld [vmem:[%s11073_s14] sm:$0xff]  ;;  %s5201_s14 = smov [#allocation4]  }
0x1695   :  { %3458 = vmatpush2.msra.mxu0 %v5108_v41  ;;  %v3258_v41 = vpop.xlane.xlu1 %3257 }
0x1696   :  { %3459 = vmatprep.subr.mxu0 %v5109_v44  ;;  %v3259_v44 = vmul.f32 2.0, %v3258_v41 }
0x1697   :  { %3460 = vmatpush2.msra.mxu0 %v5110_v46  ;;  %v5160_v46 = vld [vmem:[%s11075_s16] ss:$0 sm:$0xff]  ;;  %s3571_s16 = sshll.u32 %s5201_s14, 4  ;;  %s3572_s16 = int_to_ptr.vmem [resolvable:$true] %s3571_s16 }
0x1698   :  { %3461 = vmatprep.subr.mxu0 %v5111_v56  ;;  %v3260_v56 = vmul.f32 %v5160_v46, %v3259_v44  ;;  %p5179_p6 = scmp.lt.s32.totalorder %s3572_s16, %s3572_s16 }
0x1699   :  { %3462 = vmatpush2.msra.mxu0 %v5112_v50  ;;  %v5161_v50 = vld [vmem:[%s11076_s17] ss:$0 sm:$0xff]  ;;  %s5174_s17 = scalar_lea.vmem %s3572_s16, 128 }
0x169a   :  { %3463 = vmatprep.subr.mxu0 %v5113_v47  ;;  %v3261_v47 = vadd.f32 %v5161_v50, %v3260_v56  ;;  %p5175_p5 = scmp.ne.s32.totalorder %s3572_s16, %s5174_s17  ;;  %p5180_p7 = scmp.lt.s32.totalorder %s5174_s17, %s5174_s17 }
0x169b   :  { %3464 = vmatpush2.msra.mxu0 %v5114_v16 }
0x169c   :  { %3465 = vmatprep.subr.mxu0 %v5115_v31  ;;  %p5181_p8 = por %p5180_p7, %p5179_p6 }
0x169d   :  { %3466 = vmatpush2.msra.mxu0 %v5116_v48 }
0x169e   :  { %3467 = vmatprep.subr.mxu0 %v5117_v60  ;;  %v3101_v60 = vsel %vm3098_vm13, 1.0, %v5200_v20  ;;  %p5182_p9 = pnand %p5181_p8, %p5175_p5 }
0x169f   :  { %3468 = vmatpush2.msra.mxu0 %v5118_v53 }
0x16a0   :  { %3469 = vmatprep.subr.mxu0 %v5119_v51  ;;  %v3413_v51 = vmul.f32 2.0, %v10331_v54 }
0x16a1   :  { %3470 = vmatpush2.msra.mxu0 %v5120_v55 }
0x16a2   :  { %3471 = vmatprep.subr.mxu0 %v5121_v29 }
0x16a3   :  { %3472 = vmatpush2.msra.mxu0 %v5122_v7 }
0x16a4   :  { %3473 = vmatprep.subr.mxu0 %v5123_v9 }
0x16a5   :  { %3474 = vmatpush2.msra.mxu0 %v5124_v10  ;;  %v3023_v10 = vsel %vm3020_vm12, 1.0, %v5200_v20 }
0x16a6   :  { %3475 = vmatprep.subr.mxu0 %v5125_v12 }
0x16a7   :  { %3476 = vmatpush2.msra.mxu0 %v5126_v13  ;;  %v3488_v13 = vmul.f32 2.0, %v10124_v27 }
0x16a8   :  { %3477 = vmatprep.subr.mxu0 %v5127_v14 }
0x16a9   :  { %3478 = vmatpush2.msra.mxu0 %v5128_v17 }
0x172a   :  { %v10941_v49 = vpop.f32.mrf.mxu0 }
0x172b   :  { %v3336_v16 = vadd.f32 %v10941_v49, %v3261_v47 }
0x172c   :  { %v3333_v6 = vpop.f32.mrf.mxu0 }
0x172d   :  { %v3337_v22 = vmul.f32 %v3333_v6, %v3179_v45 }
0x172f   :  { %v3339_v57 = vmul.f32 %v3338_v52, %v3337_v22  ;;  %3404 = vmatprep.mubr.f32.mxu1 %v3337_v22  ;;  %v3562_v52 = vmul.f32 0.5, %v9927_v15 }
0x1731   :  { %3405 = vmatmul.mubr.f32.vlgmr.msra.gmra.mxu1 %v3339_v57 }
0x1732   :  { %4219 = vmatpush3.msra.mxu1 %v5129_v59 }
0x1733   :  { %4220 = vmatprep.subr.mxu1 %v5130_v37 }
0x1734   :  { %4221 = vmatpush3.msra.mxu1 %v5131_v38 }
0x1735   :  { %4222 = vmatprep.subr.mxu1 %v5132_v24 }
0x1736   :  { %4223 = vmatpush3.msra.mxu1 %v5133_v42 }
0x1737   :  { %4224 = vmatprep.subr.mxu1 %v5134_v61 }
0x1738   :  { %4225 = vmatpush3.msra.mxu1 %v5135_v4 }
0x1739   :  { %4226 = vmatprep.subr.mxu1 %v5136_v62 }
0x173a   :  { %4227 = vmatpush3.msra.mxu1 %v5137_v0 }
0x173b   :  { %4228 = vmatprep.subr.mxu1 %v5138_v1 }
0x173c   :  { %4229 = vmatpush3.msra.mxu1 %v5139_v26 }
0x173d   :  { %4230 = vmatprep.subr.mxu1 %v5140_v2 }
0x173e   :  { %4231 = vmatpush3.msra.mxu1 %v5141_v18 }
0x173f   :  { %4232 = vmatprep.subr.mxu1 %v5142_v19 }
0x1740   :  { %4233 = vmatpush3.msra.mxu1 %v5143_v21 }
0x1741   :  { %4234 = vmatprep.subr.mxu1 %v5144_v23 }
0x1742   :  { %4235 = vmatpush3.msra.mxu1 %v5145_v25 }
0x1743   :  { %4236 = vmatprep.subr.mxu1 %v5146_v28 }
0x1744   :  { %4237 = vmatpush3.msra.mxu1 %v5147_v30 }
0x1745   :  { %4238 = vmatprep.subr.mxu1 %v5148_v8 }
0x1746   :  { %4239 = vmatpush3.msra.mxu1 %v5149_v11 }
0x1747   :  { %4240 = vmatprep.subr.mxu1 %v5150_v3 }
0x1748   :  { %4241 = vmatpush3.msra.mxu1 %v5151_v63 }
0x1749   :  { %4242 = vmatprep.subr.mxu1 %v5152_v32 }
0x174a   :  { %4243 = vmatpush3.msra.mxu1 %v5153_v43 }
0x174b   :  { %4244 = vmatprep.subr.mxu1 %v5154_v33 }
0x174c   :  { %4245 = vmatpush3.msra.mxu1 %v5155_v34 }
0x174d   :  { %4246 = vmatprep.subr.mxu1 %v5156_v35 }
0x174e   :  { %4247 = vmatpush3.msra.mxu1 %v5157_v36 }
0x174f   :  { %4248 = vmatprep.subr.mxu1 %v5158_v39 }
0x1750   :  { %4249 = vmatpush3.msra.mxu1 %v5159_v40 }
0x17f1   :  { %v3406_v31 = vpop.f32.mrf.mxu1 }
0x17f2   :  { %v3411_v48 = vadd.f32 %v3406_v31, %v3336_v16 }
0x17f3   :  { %v3408_v53 = vpop.f32.mrf.mxu1 }
0x17f4   :  { %v3412_v55 = vmul.f32 %v3408_v53, %v3101_v60 }
0x17f6   :  { %v3414_v29 = vmul.f32 %v3413_v51, %v3412_v55  ;;  %3479 = vmatprep.mubr.f32.mxu0 %v3412_v55 }
0x17f8   :  { %3480 = vmatmul.mubr.f32.vlgmr.msra.gmra.mxu0 %v3414_v29 }
0x18b8   :  { %v3481_v7 = vpop.f32.mrf.mxu0 }
0x18b9   :  { %v3486_v9 = vadd.f32 %v3481_v7, %v3411_v48 }
0x18ba   :  { %v3483_v12 = vpop.f32.mrf.mxu0 }
0x18bb   :  { %v3487_v14 = vmul.f32 %v3483_v12, %v3023_v10 }
0x18bd   :  { %v3489_v17 = vmul.f32 %v3488_v13, %v3487_v14  ;;  %3554 = vmatprep.mubr.f32.mxu1 %v3487_v14 }
0x18bf   :  { %3555 = vmatmul.mubr.f32.vlgmr.msra.gmra.mxu1 %v3489_v17 }
0x197f   :  { %v4250_v5 = vpop.f32.mrf.mxu1 }
0x1981   :  { %v4251_v49 = vpop.f32.mrf.mxu1 }
0x1982   :  { %v4252_v54 = vadd.f32 %v4251_v49, %v4250_v5 }
0x1984   :  { %v3560_v45 = vadd.f32 %v4252_v54, %v3486_v9 }
0x1986   :  { %v3561_v6 = vmul.f32 0.5, %v3560_v45 }
0x1988   :  { %v3563_v22 = vadd.f32 %v3562_v52, %v3561_v6 }
0x198a   :  { %3564 = vst [vmem:[#allocation4] sm:$0xff] %v3563_v22 }
0x198b   :  { %5185 = shalt.err (!%p5182_p9)
}
0x198c   :  { %3574 = dma.vmem_to_hbm [thread:$0]  %s3572_s16, 128, %s11078_s19, [#allocation5]  }
0x198d   :  { %5196 = dma.done.wait [#allocation5], 128  }
0x198e   :  { %5197 = vsyncadd [#allocation5], 4294967168 }
0x198f   :  { %3578 = vsyncpa [#allocation5], 1 }

</bundles_post_ra>
